<compile_context>
chip_gen: v6e
topology: v6e:2x2x1
jax: 0.10.0
libtpu: 0.0.40
codegen_flags: <defaults>
</compile_context>

<pallas_src>
import jax
import jax.numpy as jnp
from jax.experimental import pallas as pl
from jax.experimental.pallas import tpu as pltpu

LRELU_SLOPE = 0.2
BN_EPS = 1e-5


# ---------------------------------------------------------------------------
# Small helpers
# ---------------------------------------------------------------------------
def _vmem_specs(n):
    return [pl.BlockSpec(memory_space=pltpu.MemorySpace.VMEM) for _ in range(n)]


def _pick_tile(m, cap=128):
    for tm in (cap, 256, 64, 32, 16, 8):
        if tm <= m and m % tm == 0:
            return tm
    return m          # full-extent block (exempt from the (8,128) rule)


# ---------------------------------------------------------------------------
# Pallas kernels
# ---------------------------------------------------------------------------
def _l1_bn_lrelu_kernel(x_ref, w_ref, g_ref, b_ref, o_ref):
    """Layer 1: ONE matmul (B,42)x(42,16*Cout) + train-mode BN + LeakyReLU(0.2).

    Column p*Cout + c of the result is conv tap p (= kh*4 + kw), channel c.
    BN statistics are per-channel over all 16 taps x B rows; the raw matmul
    result stays live (no store/reload round trip)."""
    C = g_ref.shape[-1]
    y = jnp.dot(x_ref[...], w_ref[...], preferred_element_type=jnp.float32)
    B, PC = y.shape
    P = PC // C
    n = P * B
    s = jnp.zeros((1, C), jnp.float32)
    ss = jnp.zeros((1, C), jnp.float32)
    for p in range(P):                                # static, lane-aligned slices
        sl = y[:, p * C:(p + 1) * C]
        s = s + jnp.sum(sl, axis=0, keepdims=True)
        ss = ss + jnp.sum(sl * sl, axis=0, keepdims=True)
    mean = s / n
    var = jnp.maximum(ss / n - mean * mean, 0.0)
    scale = g_ref[...] * jax.lax.rsqrt(var + BN_EPS)
    shift = b_ref[...] - mean * scale
    for p in range(P):
        z = y[:, p * C:(p + 1) * C] * scale + shift
        o_ref[:, p * C:(p + 1) * C] = jnp.where(
            z >= 0, z, LRELU_SLOPE * z).astype(o_ref.dtype)


def _ms_bn_lrelu_kernel(p_ref, w_ref, g_ref, b_ref, o_ref, y_ref):
    """Per-phase matmul + train-mode BatchNorm + LeakyReLU(0.2), bf16 output.

    p_ref: (P, M, K) phase patches (bf16), w_ref: (P, K, Cout) (bf16),
    o_ref: (P, M, Cout) bf16, y_ref: (P, M, Cout) f32 scratch holding the raw
    conv result so the BN epilogue stays in f32.  Statistics are global over
    all P*M rows per channel (single pass, fused with the matmul loop)."""
    P, M, _ = p_ref.shape
    C = o_ref.shape[-1]
    n = P * M
    s = jnp.zeros((1, C), jnp.float32)
    ss = jnp.zeros((1, C), jnp.float32)
    for p in range(P):                                # static, unrolled (P = 4)
        y = jnp.dot(p_ref[p], w_ref[p], preferred_element_type=jnp.float32)
        y_ref[p] = y
        s = s + jnp.sum(y, axis=0, keepdims=True)
        ss = ss + jnp.sum(y * y, axis=0, keepdims=True)
    mean = s / n
    var = jnp.maximum(ss / n - mean * mean, 0.0)
    scale = g_ref[...] * jax.lax.rsqrt(var + BN_EPS)
    shift = b_ref[...] - mean * scale
    for p in range(P):
        z = y_ref[p] * scale + shift
        o_ref[p] = jnp.where(z >= 0, z, LRELU_SLOPE * z).astype(o_ref.dtype)


def _ms_tanh_kernel(p_ref, w_ref, o_ref):
    """Per-phase matmul + tanh epilogue (final generator layer), bf16 output."""
    for p in range(p_ref.shape[0]):
        y = jnp.dot(p_ref[p], w_ref[p], preferred_element_type=jnp.float32)
        o_ref[p] = jnp.tanh(y).astype(o_ref.dtype)


# ---------------------------------------------------------------------------
# JAX glue: sub-pixel (phase) decomposition of stride-2 ConvTranspose2d (k=4, p=1)
#   out[b, 2q+rh, 2q'+rw, c] = sum_{dh,dw in {0,1}} zp[b, q+rh+dh, q'+rw+dw, :]
#                                                 . w[:, c, 3-rh-2dh, 3-rw-2dw]
# with zp = input padded by 1.  Each phase is ONE matmul with merged K = 4*Cin.
# ---------------------------------------------------------------------------
def _phase_patches(x):
    B, H, W, Cin = x.shape
    zp = jnp.pad(x, ((0, 0), (1, 1), (1, 1), (0, 0)))
    patches = []
    for rh in range(2):
        for rw in range(2):
            taps = [zp[:, rh + dh:rh + dh + H, rw + dw:rw + dw + W, :]
                    .reshape(B * H * W, Cin)
                    for dh in range(2) for dw in range(2)]
            patches.append(jnp.concatenate(taps, axis=-1))      # (Mq, 4*Cin)
    return jnp.stack(patches, axis=0).astype(jnp.bfloat16), (B, H, W)


def _prep_phase_weights(w_t, pad_to=None):
    """(Cin, Cout, 4, 4) ConvTranspose2d weight -> (4, 4*Cin, Cout[padded]) bf16,
    tap order matching _phase_patches.  Done once at init, not per forward."""
    ws = []
    for rh in range(2):
        for rw in range(2):
            wtaps = [w_t[:, :, 3 - rh - 2 * dh, 3 - rw - 2 * dw]
                     for dh in range(2) for dw in range(2)]
            ws.append(jnp.concatenate(wtaps, axis=0))            # (4*Cin, Cout)
    w = jnp.stack(ws, axis=0)                                    # (4, 4*Cin, Cout)
    if pad_to is not None and pad_to > w.shape[-1]:
        w = jnp.pad(w, ((0, 0), (0, 0), (0, pad_to - w.shape[-1])))
    return w.astype(jnp.bfloat16)


def _pixel_shuffle(y_phases, B, H, W, Cout):
    """(4, B*H*W, Cout), phase p = rh*2 + rw  ->  NHWC (B, 2H, 2W, Cout)."""
    y = y_phases.reshape(2, 2, B, H, W, Cout)
    y = jnp.transpose(y, (2, 3, 0, 4, 1, 5))             # (B, H, 2, W, 2, C)
    return y.reshape(B, 2 * H, 2 * W, Cout)


# ---------------------------------------------------------------------------
# Layer wrappers
# ---------------------------------------------------------------------------
def deconv1_bn_lrelu(inp, w1_mat, gamma, beta):
    """ConvTranspose2d(Cin, Cout, 4, stride=1, pad=0) on a 1x1 input + BN + LReLU.
    One merged matmul over all 16 kernel taps (columns = (kh,kw,cout))."""
    B = inp.shape[0]
    PC = w1_mat.shape[1]                                  # 16 * Cout
    Cout = gamma.shape[-1]
    out = pl.pallas_call(
        _l1_bn_lrelu_kernel,
        out_shape=jax.ShapeDtypeStruct((B, PC), jnp.bfloat16),
        in_specs=_vmem_specs(4),
        out_specs=pl.BlockSpec(memory_space=pltpu.MemorySpace.VMEM),
    )(inp, w1_mat, gamma, beta)
    return out.reshape(B, 4, 4, Cout)                     # free row-major split


def deconv_s2_bn_lrelu(x_nhwc, w_phase, gamma, beta):
    patches, (B, H, W) = _phase_patches(x_nhwc)
    Cout = gamma.shape[-1]
    Mq = B * H * W
    out = pl.pallas_call(
        _ms_bn_lrelu_kernel,
        out_shape=jax.ShapeDtypeStruct((4, Mq, Cout), jnp.bfloat16),
        in_specs=_vmem_specs(4),
        out_specs=pl.BlockSpec(memory_space=pltpu.MemorySpace.VMEM),
        scratch_shapes=[pltpu.VMEM((4, Mq, Cout), jnp.float32)],
    )(patches, w_phase, gamma, beta)
    return _pixel_shuffle(out, B, H, W, Cout)


def deconv_s2_tanh(x_nhwc, w_phase_padded, cout=3):
    patches, (B, H, W) = _phase_patches(x_nhwc)
    P, Mq, K = patches.shape
    Cp = w_phase_padded.shape[-1]                         # lane-padded (128)
    tm = _pick_tile(Mq)
    out = pl.pallas_call(
        _ms_tanh_kernel,
        out_shape=jax.ShapeDtypeStruct((P, Mq, Cp), jnp.bfloat16),
        grid=(Mq // tm,),
        in_specs=[pl.BlockSpec((P, tm, K), lambda i: (0, i, 0)),
                  pl.BlockSpec((P, K, Cp), lambda i: (0, 0, 0))],  # resident weights
        out_specs=pl.BlockSpec((P, tm, Cp), lambda i: (0, i, 0)),
        compiler_params=pltpu.CompilerParams(
            dimension_semantics=("parallel",)),
    )(patches, w_phase_padded)
    return _pixel_shuffle(out[:, :, :cout], B, H, W, cout)


# ---------------------------------------------------------------------------
# GenConv parameters + forward
# ---------------------------------------------------------------------------
def init_genconv_params(key, n_classes=10, latent_sz=32, ngf=32, nc=3):
    inp_dim = latent_sz + n_classes
    ks = jax.random.split(key, 11)
    nrm = lambda k, s, sc=0.02: sc * jax.random.normal(k, s, jnp.float32)
    # ConvTranspose2d weights in PyTorch layout (Cin, Cout, kH, kW)
    w1 = nrm(ks[1], (inp_dim, ngf * 8, 4, 4))
    w2 = nrm(ks[2], (ngf * 8, ngf * 4, 4, 4))
    w3 = nrm(ks[3], (ngf * 4, ngf * 2, 4, 4))
    w4 = nrm(ks[4], (ngf * 2, nc, 4, 4))
    # Kernel-ready layouts, built once at init (hoisted out of the forward):
    w1_mat = jnp.transpose(w1, (0, 2, 3, 1)).reshape(
        inp_dim, 16 * ngf * 8).astype(jnp.bfloat16)       # cols = (kh, kw, cout)
    gb = lambda k, c: (1.0 + 0.1 * jax.random.normal(k, (c,), jnp.float32)).reshape(1, c)
    bb = lambda k, c: (0.1 * jax.random.normal(k, (c,), jnp.float32)).reshape(1, c)
    return dict(
        emb=jax.random.normal(ks[0], (n_classes, n_classes), jnp.float32),
        w1_mat=w1_mat,
        w2_p=_prep_phase_weights(w2),
        w3_p=_prep_phase_weights(w3),
        w4_p=_prep_phase_weights(w4, pad_to=128),
        g1=gb(ks[5], ngf * 8), b1=bb(ks[6], ngf * 8),
        g2=gb(ks[7], ngf * 4), b2=bb(ks[8], ngf * 4),
        g3=gb(ks[9], ngf * 2), b3=bb(ks[10], ngf * 2),
    )


def genconv_forward(params, ys, noise_key, latent_sz=32, nc=3):
    # get_inp: u ~ N(0,1) latent + label-embedding lookup, viewed as a 1x1 map
    u = jax.random.normal(noise_key, (ys.shape[0], latent_sz), jnp.float32)
    y_vec = jnp.take(params["emb"], ys, axis=0)
    inp = jnp.concatenate([u, y_vec], axis=-1).astype(jnp.bfloat16)     # (B, 42)

    h = deconv1_bn_lrelu(inp, params["w1_mat"], params["g1"], params["b1"])  # (B,4,4,256)
    h = deconv_s2_bn_lrelu(h, params["w2_p"], params["g2"], params["b2"])    # (B,8,8,128)
    h = deconv_s2_bn_lrelu(h, params["w3_p"], params["g3"], params["b3"])    # (B,16,16,64)
    x = deconv_s2_tanh(h, params["w4_p"], cout=nc)                           # (B,32,32,3)
    return jnp.transpose(x, (0, 3, 1, 2)).astype(jnp.float32)   # NCHW (B,3,32,32)


if __name__ == "__main__":
    root = jax.random.PRNGKey(0)
    pkey, nkey = jax.random.split(root)
    params = init_genconv_params(pkey)

    ys = jnp.array([1, 7], dtype=jnp.int32)               # batch = 2 class labels

    fwd = jax.jit(lambda p, y: genconv_forward(p, y, nkey))
    x_gen = fwd(params, ys)
    jax.block_until_ready(x_gen)

    assert x_gen.shape == (2, 3, 32, 32), x_gen.shape
    assert bool(jnp.all(jnp.isfinite(x_gen)))
    assert bool(jnp.all(jnp.abs(x_gen) <= 1.0))           # tanh range
    print("KERNEL_OK")
</pallas_src>

<mosaic_0001>
module attributes {stable_mosaic.version = 11 : i64} {
  func.func @_l1_bn_lrelu_kernel(%arg0: memref<2x42xbf16, #tpu.memory_space<vmem>>, %arg1: memref<42x4096xbf16, #tpu.memory_space<vmem>>, %arg2: memref<1x256xf32, #tpu.memory_space<vmem>>, %arg3: memref<1x256xf32, #tpu.memory_space<vmem>>, %arg4: memref<2x4096xbf16, #tpu.memory_space<vmem>>) attributes {dimension_semantics = [], scalar_prefetch = 0 : i64, scratch_operands = 0 : i64, tpu.core_type = #tpu.core_type<tc>} {
    %c0 = arith.constant 0 : index
    %c0_0 = arith.constant 0 : index
    %0 = vector.load %arg0[%c0, %c0_0] : memref<2x42xbf16, #tpu.memory_space<vmem>>, vector<2x42xbf16>
    %c0_1 = arith.constant 0 : index
    %c0_2 = arith.constant 0 : index
    %1 = vector.load %arg1[%c0_1, %c0_2] : memref<42x4096xbf16, #tpu.memory_space<vmem>>, vector<42x4096xbf16>
    %cst = arith.constant dense<0.000000e+00> : vector<2x4096xf32>
    %2 = tpu.matmul %0, %1, %cst {dimension_numbers = #tpu.dot_dimension_numbers<[1], [0], [0], [1], [0, 0, 1, 1], [], []>} : vector<2x42xbf16>, vector<42x4096xbf16>, vector<2x4096xf32> -> vector<2x4096xf32>
    %cst_3 = arith.constant 0.000000e+00 : f32
    %3 = vector.broadcast %cst_3 : f32 to vector<1x256xf32>
    %cst_4 = arith.constant 0.000000e+00 : f32
    %4 = vector.broadcast %cst_4 : f32 to vector<1x256xf32>
    %5 = vector.extract_strided_slice %2 {offsets = [0, 0], sizes = [2, 256], strides = [1, 1]} : vector<2x4096xf32> to vector<2x256xf32>
    %cst_5 = arith.constant dense<0.000000e+00> : vector<256xf32>
    %6 = vector.multi_reduction <add>, %5, %cst_5 [0] : vector<2x256xf32> to vector<256xf32>
    %7 = vector.shape_cast %6 : vector<256xf32> to vector<1x256xf32>
    %8 = arith.addf %3, %7 : vector<1x256xf32>
    %9 = arith.mulf %5, %5 : vector<2x256xf32>
    %cst_6 = arith.constant dense<0.000000e+00> : vector<256xf32>
    %10 = vector.multi_reduction <add>, %9, %cst_6 [0] : vector<2x256xf32> to vector<256xf32>
    %11 = vector.shape_cast %10 : vector<256xf32> to vector<1x256xf32>
    %12 = arith.addf %4, %11 : vector<1x256xf32>
    %13 = vector.extract_strided_slice %2 {offsets = [0, 256], sizes = [2, 256], strides = [1, 1]} : vector<2x4096xf32> to vector<2x256xf32>
    %cst_7 = arith.constant dense<0.000000e+00> : vector<256xf32>
    %14 = vector.multi_reduction <add>, %13, %cst_7 [0] : vector<2x256xf32> to vector<256xf32>
    %15 = vector.shape_cast %14 : vector<256xf32> to vector<1x256xf32>
    %16 = arith.addf %8, %15 : vector<1x256xf32>
    %17 = arith.mulf %13, %13 : vector<2x256xf32>
    %cst_8 = arith.constant dense<0.000000e+00> : vector<256xf32>
    %18 = vector.multi_reduction <add>, %17, %cst_8 [0] : vector<2x256xf32> to vector<256xf32>
    %19 = vector.shape_cast %18 : vector<256xf32> to vector<1x256xf32>
    %20 = arith.addf %12, %19 : vector<1x256xf32>
    %21 = vector.extract_strided_slice %2 {offsets = [0, 512], sizes = [2, 256], strides = [1, 1]} : vector<2x4096xf32> to vector<2x256xf32>
    %cst_9 = arith.constant dense<0.000000e+00> : vector<256xf32>
    %22 = vector.multi_reduction <add>, %21, %cst_9 [0] : vector<2x256xf32> to vector<256xf32>
    %23 = vector.shape_cast %22 : vector<256xf32> to vector<1x256xf32>
    %24 = arith.addf %16, %23 : vector<1x256xf32>
    %25 = arith.mulf %21, %21 : vector<2x256xf32>
    %cst_10 = arith.constant dense<0.000000e+00> : vector<256xf32>
    %26 = vector.multi_reduction <add>, %25, %cst_10 [0] : vector<2x256xf32> to vector<256xf32>
    %27 = vector.shape_cast %26 : vector<256xf32> to vector<1x256xf32>
    %28 = arith.addf %20, %27 : vector<1x256xf32>
    %29 = vector.extract_strided_slice %2 {offsets = [0, 768], sizes = [2, 256], strides = [1, 1]} : vector<2x4096xf32> to vector<2x256xf32>
    %cst_11 = arith.constant dense<0.000000e+00> : vector<256xf32>
    %30 = vector.multi_reduction <add>, %29, %cst_11 [0] : vector<2x256xf32> to vector<256xf32>
    %31 = vector.shape_cast %30 : vector<256xf32> to vector<1x256xf32>
    %32 = arith.addf %24, %31 : vector<1x256xf32>
    %33 = arith.mulf %29, %29 : vector<2x256xf32>
    %cst_12 = arith.constant dense<0.000000e+00> : vector<256xf32>
    %34 = vector.multi_reduction <add>, %33, %cst_12 [0] : vector<2x256xf32> to vector<256xf32>
    %35 = vector.shape_cast %34 : vector<256xf32> to vector<1x256xf32>
    %36 = arith.addf %28, %35 : vector<1x256xf32>
    %37 = vector.extract_strided_slice %2 {offsets = [0, 1024], sizes = [2, 256], strides = [1, 1]} : vector<2x4096xf32> to vector<2x256xf32>
    %cst_13 = arith.constant dense<0.000000e+00> : vector<256xf32>
    %38 = vector.multi_reduction <add>, %37, %cst_13 [0] : vector<2x256xf32> to vector<256xf32>
    %39 = vector.shape_cast %38 : vector<256xf32> to vector<1x256xf32>
    %40 = arith.addf %32, %39 : vector<1x256xf32>
    %41 = arith.mulf %37, %37 : vector<2x256xf32>
    %cst_14 = arith.constant dense<0.000000e+00> : vector<256xf32>
    %42 = vector.multi_reduction <add>, %41, %cst_14 [0] : vector<2x256xf32> to vector<256xf32>
    %43 = vector.shape_cast %42 : vector<256xf32> to vector<1x256xf32>
    %44 = arith.addf %36, %43 : vector<1x256xf32>
    %45 = vector.extract_strided_slice %2 {offsets = [0, 1280], sizes = [2, 256], strides = [1, 1]} : vector<2x4096xf32> to vector<2x256xf32>
    %cst_15 = arith.constant dense<0.000000e+00> : vector<256xf32>
    %46 = vector.multi_reduction <add>, %45, %cst_15 [0] : vector<2x256xf32> to vector<256xf32>
    %47 = vector.shape_cast %46 : vector<256xf32> to vector<1x256xf32>
    %48 = arith.addf %40, %47 : vector<1x256xf32>
    %49 = arith.mulf %45, %45 : vector<2x256xf32>
    %cst_16 = arith.constant dense<0.000000e+00> : vector<256xf32>
    %50 = vector.multi_reduction <add>, %49, %cst_16 [0] : vector<2x256xf32> to vector<256xf32>
    %51 = vector.shape_cast %50 : vector<256xf32> to vector<1x256xf32>
    %52 = arith.addf %44, %51 : vector<1x256xf32>
    %53 = vector.extract_strided_slice %2 {offsets = [0, 1536], sizes = [2, 256], strides = [1, 1]} : vector<2x4096xf32> to vector<2x256xf32>
    %cst_17 = arith.constant dense<0.000000e+00> : vector<256xf32>
    %54 = vector.multi_reduction <add>, %53, %cst_17 [0] : vector<2x256xf32> to vector<256xf32>
    %55 = vector.shape_cast %54 : vector<256xf32> to vector<1x256xf32>
    %56 = arith.addf %48, %55 : vector<1x256xf32>
    %57 = arith.mulf %53, %53 : vector<2x256xf32>
    %cst_18 = arith.constant dense<0.000000e+00> : vector<256xf32>
    %58 = vector.multi_reduction <add>, %57, %cst_18 [0] : vector<2x256xf32> to vector<256xf32>
    %59 = vector.shape_cast %58 : vector<256xf32> to vector<1x256xf32>
    %60 = arith.addf %52, %59 : vector<1x256xf32>
    %61 = vector.extract_strided_slice %2 {offsets = [0, 1792], sizes = [2, 256], strides = [1, 1]} : vector<2x4096xf32> to vector<2x256xf32>
    %cst_19 = arith.constant dense<0.000000e+00> : vector<256xf32>
    %62 = vector.multi_reduction <add>, %61, %cst_19 [0] : vector<2x256xf32> to vector<256xf32>
    %63 = vector.shape_cast %62 : vector<256xf32> to vector<1x256xf32>
    %64 = arith.addf %56, %63 : vector<1x256xf32>
    %65 = arith.mulf %61, %61 : vector<2x256xf32>
    %cst_20 = arith.constant dense<0.000000e+00> : vector<256xf32>
    %66 = vector.multi_reduction <add>, %65, %cst_20 [0] : vector<2x256xf32> to vector<256xf32>
    %67 = vector.shape_cast %66 : vector<256xf32> to vector<1x256xf32>
    %68 = arith.addf %60, %67 : vector<1x256xf32>
    %69 = vector.extract_strided_slice %2 {offsets = [0, 2048], sizes = [2, 256], strides = [1, 1]} : vector<2x4096xf32> to vector<2x256xf32>
    %cst_21 = arith.constant dense<0.000000e+00> : vector<256xf32>
    %70 = vector.multi_reduction <add>, %69, %cst_21 [0] : vector<2x256xf32> to vector<256xf32>
    %71 = vector.shape_cast %70 : vector<256xf32> to vector<1x256xf32>
    %72 = arith.addf %64, %71 : vector<1x256xf32>
    %73 = arith.mulf %69, %69 : vector<2x256xf32>
    %cst_22 = arith.constant dense<0.000000e+00> : vector<256xf32>
    %74 = vector.multi_reduction <add>, %73, %cst_22 [0] : vector<2x256xf32> to vector<256xf32>
    %75 = vector.shape_cast %74 : vector<256xf32> to vector<1x256xf32>
    %76 = arith.addf %68, %75 : vector<1x256xf32>
    %77 = vector.extract_strided_slice %2 {offsets = [0, 2304], sizes = [2, 256], strides = [1, 1]} : vector<2x4096xf32> to vector<2x256xf32>
    %cst_23 = arith.constant dense<0.000000e+00> : vector<256xf32>
    %78 = vector.multi_reduction <add>, %77, %cst_23 [0] : vector<2x256xf32> to vector<256xf32>
    %79 = vector.shape_cast %78 : vector<256xf32> to vector<1x256xf32>
    %80 = arith.addf %72, %79 : vector<1x256xf32>
    %81 = arith.mulf %77, %77 : vector<2x256xf32>
    %cst_24 = arith.constant dense<0.000000e+00> : vector<256xf32>
    %82 = vector.multi_reduction <add>, %81, %cst_24 [0] : vector<2x256xf32> to vector<256xf32>
    %83 = vector.shape_cast %82 : vector<256xf32> to vector<1x256xf32>
    %84 = arith.addf %76, %83 : vector<1x256xf32>
    %85 = vector.extract_strided_slice %2 {offsets = [0, 2560], sizes = [2, 256], strides = [1, 1]} : vector<2x4096xf32> to vector<2x256xf32>
    %cst_25 = arith.constant dense<0.000000e+00> : vector<256xf32>
    %86 = vector.multi_reduction <add>, %85, %cst_25 [0] : vector<2x256xf32> to vector<256xf32>
    %87 = vector.shape_cast %86 : vector<256xf32> to vector<1x256xf32>
    %88 = arith.addf %80, %87 : vector<1x256xf32>
    %89 = arith.mulf %85, %85 : vector<2x256xf32>
    %cst_26 = arith.constant dense<0.000000e+00> : vector<256xf32>
    %90 = vector.multi_reduction <add>, %89, %cst_26 [0] : vector<2x256xf32> to vector<256xf32>
    %91 = vector.shape_cast %90 : vector<256xf32> to vector<1x256xf32>
    %92 = arith.addf %84, %91 : vector<1x256xf32>
    %93 = vector.extract_strided_slice %2 {offsets = [0, 2816], sizes = [2, 256], strides = [1, 1]} : vector<2x4096xf32> to vector<2x256xf32>
    %cst_27 = arith.constant dense<0.000000e+00> : vector<256xf32>
    %94 = vector.multi_reduction <add>, %93, %cst_27 [0] : vector<2x256xf32> to vector<256xf32>
    %95 = vector.shape_cast %94 : vector<256xf32> to vector<1x256xf32>
    %96 = arith.addf %88, %95 : vector<1x256xf32>
    %97 = arith.mulf %93, %93 : vector<2x256xf32>
    %cst_28 = arith.constant dense<0.000000e+00> : vector<256xf32>
    %98 = vector.multi_reduction <add>, %97, %cst_28 [0] : vector<2x256xf32> to vector<256xf32>
    %99 = vector.shape_cast %98 : vector<256xf32> to vector<1x256xf32>
    %100 = arith.addf %92, %99 : vector<1x256xf32>
    %101 = vector.extract_strided_slice %2 {offsets = [0, 3072], sizes = [2, 256], strides = [1, 1]} : vector<2x4096xf32> to vector<2x256xf32>
    %cst_29 = arith.constant dense<0.000000e+00> : vector<256xf32>
    %102 = vector.multi_reduction <add>, %101, %cst_29 [0] : vector<2x256xf32> to vector<256xf32>
    %103 = vector.shape_cast %102 : vector<256xf32> to vector<1x256xf32>
    %104 = arith.addf %96, %103 : vector<1x256xf32>
    %105 = arith.mulf %101, %101 : vector<2x256xf32>
    %cst_30 = arith.constant dense<0.000000e+00> : vector<256xf32>
    %106 = vector.multi_reduction <add>, %105, %cst_30 [0] : vector<2x256xf32> to vector<256xf32>
    %107 = vector.shape_cast %106 : vector<256xf32> to vector<1x256xf32>
    %108 = arith.addf %100, %107 : vector<1x256xf32>
    %109 = vector.extract_strided_slice %2 {offsets = [0, 3328], sizes = [2, 256], strides = [1, 1]} : vector<2x4096xf32> to vector<2x256xf32>
    %cst_31 = arith.constant dense<0.000000e+00> : vector<256xf32>
    %110 = vector.multi_reduction <add>, %109, %cst_31 [0] : vector<2x256xf32> to vector<256xf32>
    %111 = vector.shape_cast %110 : vector<256xf32> to vector<1x256xf32>
    %112 = arith.addf %104, %111 : vector<1x256xf32>
    %113 = arith.mulf %109, %109 : vector<2x256xf32>
    %cst_32 = arith.constant dense<0.000000e+00> : vector<256xf32>
    %114 = vector.multi_reduction <add>, %113, %cst_32 [0] : vector<2x256xf32> to vector<256xf32>
    %115 = vector.shape_cast %114 : vector<256xf32> to vector<1x256xf32>
    %116 = arith.addf %108, %115 : vector<1x256xf32>
    %117 = vector.extract_strided_slice %2 {offsets = [0, 3584], sizes = [2, 256], strides = [1, 1]} : vector<2x4096xf32> to vector<2x256xf32>
    %cst_33 = arith.constant dense<0.000000e+00> : vector<256xf32>
    %118 = vector.multi_reduction <add>, %117, %cst_33 [0] : vector<2x256xf32> to vector<256xf32>
    %119 = vector.shape_cast %118 : vector<256xf32> to vector<1x256xf32>
    %120 = arith.addf %112, %119 : vector<1x256xf32>
    %121 = arith.mulf %117, %117 : vector<2x256xf32>
    %cst_34 = arith.constant dense<0.000000e+00> : vector<256xf32>
    %122 = vector.multi_reduction <add>, %121, %cst_34 [0] : vector<2x256xf32> to vector<256xf32>
    %123 = vector.shape_cast %122 : vector<256xf32> to vector<1x256xf32>
    %124 = arith.addf %116, %123 : vector<1x256xf32>
    %125 = vector.extract_strided_slice %2 {offsets = [0, 3840], sizes = [2, 256], strides = [1, 1]} : vector<2x4096xf32> to vector<2x256xf32>
    %cst_35 = arith.constant dense<0.000000e+00> : vector<256xf32>
    %126 = vector.multi_reduction <add>, %125, %cst_35 [0] : vector<2x256xf32> to vector<256xf32>
    %127 = vector.shape_cast %126 : vector<256xf32> to vector<1x256xf32>
    %128 = arith.addf %120, %127 : vector<1x256xf32>
    %129 = arith.mulf %125, %125 : vector<2x256xf32>
    %cst_36 = arith.constant dense<0.000000e+00> : vector<256xf32>
    %130 = vector.multi_reduction <add>, %129, %cst_36 [0] : vector<2x256xf32> to vector<256xf32>
    %131 = vector.shape_cast %130 : vector<256xf32> to vector<1x256xf32>
    %132 = arith.addf %124, %131 : vector<1x256xf32>
    %cst_37 = arith.constant 3.200000e+01 : f32
    %133 = vector.broadcast %cst_37 : f32 to vector<1x256xf32>
    %134 = arith.divf %128, %133 : vector<1x256xf32>
    %cst_38 = arith.constant 3.200000e+01 : f32
    %135 = vector.broadcast %cst_38 : f32 to vector<1x256xf32>
    %136 = arith.divf %132, %135 : vector<1x256xf32>
    %137 = arith.mulf %134, %134 : vector<1x256xf32>
    %138 = arith.subf %136, %137 : vector<1x256xf32>
    %cst_39 = arith.constant 0.000000e+00 : f32
    %139 = vector.broadcast %cst_39 : f32 to vector<1x256xf32>
    %140 = arith.maximumf %138, %139 : vector<1x256xf32>
    %c0_40 = arith.constant 0 : index
    %c0_41 = arith.constant 0 : index
    %141 = vector.load %arg2[%c0_40, %c0_41] : memref<1x256xf32, #tpu.memory_space<vmem>>, vector<1x256xf32>
    %cst_42 = arith.constant 9.99999974E-6 : f32
    %142 = vector.broadcast %cst_42 : f32 to vector<1x256xf32>
    %143 = arith.addf %140, %142 : vector<1x256xf32>
    %144 = math.rsqrt %143 : vector<1x256xf32>
    %145 = arith.mulf %141, %144 : vector<1x256xf32>
    %c0_43 = arith.constant 0 : index
    %c0_44 = arith.constant 0 : index
    %146 = vector.load %arg3[%c0_43, %c0_44] : memref<1x256xf32, #tpu.memory_space<vmem>>, vector<1x256xf32>
    %147 = arith.mulf %134, %145 : vector<1x256xf32>
    %148 = arith.subf %146, %147 : vector<1x256xf32>
    %149 = vector.extract_strided_slice %2 {offsets = [0, 0], sizes = [2, 256], strides = [1, 1]} : vector<2x4096xf32> to vector<2x256xf32>
    %150 = vector.broadcast %145 : vector<1x256xf32> to vector<2x256xf32>
    %151 = arith.mulf %149, %150 : vector<2x256xf32>
    %152 = vector.broadcast %148 : vector<1x256xf32> to vector<2x256xf32>
    %153 = arith.addf %151, %152 : vector<2x256xf32>
    %cst_45 = arith.constant 0.000000e+00 : f32
    %154 = vector.broadcast %cst_45 : f32 to vector<2x256xf32>
    %155 = arith.cmpf oge, %153, %154 : vector<2x256xf32>
    %cst_46 = arith.constant 2.000000e-01 : f32
    %156 = vector.broadcast %cst_46 : f32 to vector<2x256xf32>
    %157 = arith.mulf %156, %153 : vector<2x256xf32>
    %158 = arith.select %155, %153, %157 : vector<2x256xi1>, vector<2x256xf32>
    %159 = arith.truncf %158 : vector<2x256xf32> to vector<2x256xbf16>
    %c0_47 = arith.constant 0 : index
    %c0_48 = arith.constant 0 : index
    %160 = vector.load %arg4[%c0_47, %c0_48] : memref<2x4096xbf16, #tpu.memory_space<vmem>>, vector<2x256xbf16>
    tpu.vector_store %arg4[%c0_47, %c0_48], %159 {strides = array<i32>} : memref<2x4096xbf16, #tpu.memory_space<vmem>>, vector<2x256xbf16>,
    %161 = vector.extract_strided_slice %2 {offsets = [0, 256], sizes = [2, 256], strides = [1, 1]} : vector<2x4096xf32> to vector<2x256xf32>
    %162 = vector.broadcast %145 : vector<1x256xf32> to vector<2x256xf32>
    %163 = arith.mulf %161, %162 : vector<2x256xf32>
    %164 = vector.broadcast %148 : vector<1x256xf32> to vector<2x256xf32>
    %165 = arith.addf %163, %164 : vector<2x256xf32>
    %cst_49 = arith.constant 0.000000e+00 : f32
    %166 = vector.broadcast %cst_49 : f32 to vector<2x256xf32>
    %167 = arith.cmpf oge, %165, %166 : vector<2x256xf32>
    %cst_50 = arith.constant 2.000000e-01 : f32
    %168 = vector.broadcast %cst_50 : f32 to vector<2x256xf32>
    %169 = arith.mulf %168, %165 : vector<2x256xf32>
    %170 = arith.select %167, %165, %169 : vector<2x256xi1>, vector<2x256xf32>
    %171 = arith.truncf %170 : vector<2x256xf32> to vector<2x256xbf16>
    %c0_51 = arith.constant 0 : index
    %c256 = arith.constant 256 : index
    %172 = vector.load %arg4[%c0_51, %c256] : memref<2x4096xbf16, #tpu.memory_space<vmem>>, vector<2x256xbf16>
    tpu.vector_store %arg4[%c0_51, %c256], %171 {strides = array<i32>} : memref<2x4096xbf16, #tpu.memory_space<vmem>>, vector<2x256xbf16>,
    %173 = vector.extract_strided_slice %2 {offsets = [0, 512], sizes = [2, 256], strides = [1, 1]} : vector<2x4096xf32> to vector<2x256xf32>
    %174 = vector.broadcast %145 : vector<1x256xf32> to vector<2x256xf32>
    %175 = arith.mulf %173, %174 : vector<2x256xf32>
    %176 = vector.broadcast %148 : vector<1x256xf32> to vector<2x256xf32>
    %177 = arith.addf %175, %176 : vector<2x256xf32>
    %cst_52 = arith.constant 0.000000e+00 : f32
    %178 = vector.broadcast %cst_52 : f32 to vector<2x256xf32>
    %179 = arith.cmpf oge, %177, %178 : vector<2x256xf32>
    %cst_53 = arith.constant 2.000000e-01 : f32
    %180 = vector.broadcast %cst_53 : f32 to vector<2x256xf32>
    %181 = arith.mulf %180, %177 : vector<2x256xf32>
    %182 = arith.select %179, %177, %181 : vector<2x256xi1>, vector<2x256xf32>
    %183 = arith.truncf %182 : vector<2x256xf32> to vector<2x256xbf16>
    %c0_54 = arith.constant 0 : index
    %c512 = arith.constant 512 : index
    %184 = vector.load %arg4[%c0_54, %c512] : memref<2x4096xbf16, #tpu.memory_space<vmem>>, vector<2x256xbf16>
    tpu.vector_store %arg4[%c0_54, %c512], %183 {strides = array<i32>} : memref<2x4096xbf16, #tpu.memory_space<vmem>>, vector<2x256xbf16>,
    %185 = vector.extract_strided_slice %2 {offsets = [0, 768], sizes = [2, 256], strides = [1, 1]} : vector<2x4096xf32> to vector<2x256xf32>
    %186 = vector.broadcast %145 : vector<1x256xf32> to vector<2x256xf32>
    %187 = arith.mulf %185, %186 : vector<2x256xf32>
    %188 = vector.broadcast %148 : vector<1x256xf32> to vector<2x256xf32>
    %189 = arith.addf %187, %188 : vector<2x256xf32>
    %cst_55 = arith.constant 0.000000e+00 : f32
    %190 = vector.broadcast %cst_55 : f32 to vector<2x256xf32>
    %191 = arith.cmpf oge, %189, %190 : vector<2x256xf32>
    %cst_56 = arith.constant 2.000000e-01 : f32
    %192 = vector.broadcast %cst_56 : f32 to vector<2x256xf32>
    %193 = arith.mulf %192, %189 : vector<2x256xf32>
    %194 = arith.select %191, %189, %193 : vector<2x256xi1>, vector<2x256xf32>
    %195 = arith.truncf %194 : vector<2x256xf32> to vector<2x256xbf16>
    %c0_57 = arith.constant 0 : index
    %c768 = arith.constant 768 : index
    %196 = vector.load %arg4[%c0_57, %c768] : memref<2x4096xbf16, #tpu.memory_space<vmem>>, vector<2x256xbf16>
    tpu.vector_store %arg4[%c0_57, %c768], %195 {strides = array<i32>} : memref<2x4096xbf16, #tpu.memory_space<vmem>>, vector<2x256xbf16>,
    %197 = vector.extract_strided_slice %2 {offsets = [0, 1024], sizes = [2, 256], strides = [1, 1]} : vector<2x4096xf32> to vector<2x256xf32>
    %198 = vector.broadcast %145 : vector<1x256xf32> to vector<2x256xf32>
    %199 = arith.mulf %197, %198 : vector<2x256xf32>
    %200 = vector.broadcast %148 : vector<1x256xf32> to vector<2x256xf32>
    %201 = arith.addf %199, %200 : vector<2x256xf32>
    %cst_58 = arith.constant 0.000000e+00 : f32
    %202 = vector.broadcast %cst_58 : f32 to vector<2x256xf32>
    %203 = arith.cmpf oge, %201, %202 : vector<2x256xf32>
    %cst_59 = arith.constant 2.000000e-01 : f32
    %204 = vector.broadcast %cst_59 : f32 to vector<2x256xf32>
    %205 = arith.mulf %204, %201 : vector<2x256xf32>
    %206 = arith.select %203, %201, %205 : vector<2x256xi1>, vector<2x256xf32>
    %207 = arith.truncf %206 : vector<2x256xf32> to vector<2x256xbf16>
    %c0_60 = arith.constant 0 : index
    %c1024 = arith.constant 1024 : index
    %208 = vector.load %arg4[%c0_60, %c1024] : memref<2x4096xbf16, #tpu.memory_space<vmem>>, vector<2x256xbf16>
    tpu.vector_store %arg4[%c0_60, %c1024], %207 {strides = array<i32>} : memref<2x4096xbf16, #tpu.memory_space<vmem>>, vector<2x256xbf16>,
    %209 = vector.extract_strided_slice %2 {offsets = [0, 1280], sizes = [2, 256], strides = [1, 1]} : vector<2x4096xf32> to vector<2x256xf32>
    %210 = vector.broadcast %145 : vector<1x256xf32> to vector<2x256xf32>
    %211 = arith.mulf %209, %210 : vector<2x256xf32>
    %212 = vector.broadcast %148 : vector<1x256xf32> to vector<2x256xf32>
    %213 = arith.addf %211, %212 : vector<2x256xf32>
    %cst_61 = arith.constant 0.000000e+00 : f32
    %214 = vector.broadcast %cst_61 : f32 to vector<2x256xf32>
    %215 = arith.cmpf oge, %213, %214 : vector<2x256xf32>
    %cst_62 = arith.constant 2.000000e-01 : f32
    %216 = vector.broadcast %cst_62 : f32 to vector<2x256xf32>
    %217 = arith.mulf %216, %213 : vector<2x256xf32>
    %218 = arith.select %215, %213, %217 : vector<2x256xi1>, vector<2x256xf32>
    %219 = arith.truncf %218 : vector<2x256xf32> to vector<2x256xbf16>
    %c0_63 = arith.constant 0 : index
    %c1280 = arith.constant 1280 : index
    %220 = vector.load %arg4[%c0_63, %c1280] : memref<2x4096xbf16, #tpu.memory_space<vmem>>, vector<2x256xbf16>
    tpu.vector_store %arg4[%c0_63, %c1280], %219 {strides = array<i32>} : memref<2x4096xbf16, #tpu.memory_space<vmem>>, vector<2x256xbf16>,
    %221 = vector.extract_strided_slice %2 {offsets = [0, 1536], sizes = [2, 256], strides = [1, 1]} : vector<2x4096xf32> to vector<2x256xf32>
    %222 = vector.broadcast %145 : vector<1x256xf32> to vector<2x256xf32>
    %223 = arith.mulf %221, %222 : vector<2x256xf32>
    %224 = vector.broadcast %148 : vector<1x256xf32> to vector<2x256xf32>
    %225 = arith.addf %223, %224 : vector<2x256xf32>
    %cst_64 = arith.constant 0.000000e+00 : f32
    %226 = vector.broadcast %cst_64 : f32 to vector<2x256xf32>
    %227 = arith.cmpf oge, %225, %226 : vector<2x256xf32>
    %cst_65 = arith.constant 2.000000e-01 : f32
    %228 = vector.broadcast %cst_65 : f32 to vector<2x256xf32>
    %229 = arith.mulf %228, %225 : vector<2x256xf32>
    %230 = arith.select %227, %225, %229 : vector<2x256xi1>, vector<2x256xf32>
    %231 = arith.truncf %230 : vector<2x256xf32> to vector<2x256xbf16>
    %c0_66 = arith.constant 0 : index
    %c1536 = arith.constant 1536 : index
    %232 = vector.load %arg4[%c0_66, %c1536] : memref<2x4096xbf16, #tpu.memory_space<vmem>>, vector<2x256xbf16>
    tpu.vector_store %arg4[%c0_66, %c1536], %231 {strides = array<i32>} : memref<2x4096xbf16, #tpu.memory_space<vmem>>, vector<2x256xbf16>,
    %233 = vector.extract_strided_slice %2 {offsets = [0, 1792], sizes = [2, 256], strides = [1, 1]} : vector<2x4096xf32> to vector<2x256xf32>
    %234 = vector.broadcast %145 : vector<1x256xf32> to vector<2x256xf32>
    %235 = arith.mulf %233, %234 : vector<2x256xf32>
    %236 = vector.broadcast %148 : vector<1x256xf32> to vector<2x256xf32>
    %237 = arith.addf %235, %236 : vector<2x256xf32>
    %cst_67 = arith.constant 0.000000e+00 : f32
    %238 = vector.broadcast %cst_67 : f32 to vector<2x256xf32>
    %239 = arith.cmpf oge, %237, %238 : vector<2x256xf32>
    %cst_68 = arith.constant 2.000000e-01 : f32
    %240 = vector.broadcast %cst_68 : f32 to vector<2x256xf32>
    %241 = arith.mulf %240, %237 : vector<2x256xf32>
    %242 = arith.select %239, %237, %241 : vector<2x256xi1>, vector<2x256xf32>
    %243 = arith.truncf %242 : vector<2x256xf32> to vector<2x256xbf16>
    %c0_69 = arith.constant 0 : index
    %c1792 = arith.constant 1792 : index
    %244 = vector.load %arg4[%c0_69, %c1792] : memref<2x4096xbf16, #tpu.memory_space<vmem>>, vector<2x256xbf16>
    tpu.vector_store %arg4[%c0_69, %c1792], %243 {strides = array<i32>} : memref<2x4096xbf16, #tpu.memory_space<vmem>>, vector<2x256xbf16>,
    %245 = vector.extract_strided_slice %2 {offsets = [0, 2048], sizes = [2, 256], strides = [1, 1]} : vector<2x4096xf32> to vector<2x256xf32>
    %246 = vector.broadcast %145 : vector<1x256xf32> to vector<2x256xf32>
    %247 = arith.mulf %245, %246 : vector<2x256xf32>
    %248 = vector.broadcast %148 : vector<1x256xf32> to vector<2x256xf32>
    %249 = arith.addf %247, %248 : vector<2x256xf32>
    %cst_70 = arith.constant 0.000000e+00 : f32
    %250 = vector.broadcast %cst_70 : f32 to vector<2x256xf32>
    %251 = arith.cmpf oge, %249, %250 : vector<2x256xf32>
    %cst_71 = arith.constant 2.000000e-01 : f32
    %252 = vector.broadcast %cst_71 : f32 to vector<2x256xf32>
    %253 = arith.mulf %252, %249 : vector<2x256xf32>
    %254 = arith.select %251, %249, %253 : vector<2x256xi1>, vector<2x256xf32>
    %255 = arith.truncf %254 : vector<2x256xf32> to vector<2x256xbf16>
    %c0_72 = arith.constant 0 : index
    %c2048 = arith.constant 2048 : index
    %256 = vector.load %arg4[%c0_72, %c2048] : memref<2x4096xbf16, #tpu.memory_space<vmem>>, vector<2x256xbf16>
    tpu.vector_store %arg4[%c0_72, %c2048], %255 {strides = array<i32>} : memref<2x4096xbf16, #tpu.memory_space<vmem>>, vector<2x256xbf16>,
    %257 = vector.extract_strided_slice %2 {offsets = [0, 2304], sizes = [2, 256], strides = [1, 1]} : vector<2x4096xf32> to vector<2x256xf32>
    %258 = vector.broadcast %145 : vector<1x256xf32> to vector<2x256xf32>
    %259 = arith.mulf %257, %258 : vector<2x256xf32>
    %260 = vector.broadcast %148 : vector<1x256xf32> to vector<2x256xf32>
    %261 = arith.addf %259, %260 : vector<2x256xf32>
    %cst_73 = arith.constant 0.000000e+00 : f32
    %262 = vector.broadcast %cst_73 : f32 to vector<2x256xf32>
    %263 = arith.cmpf oge, %261, %262 : vector<2x256xf32>
    %cst_74 = arith.constant 2.000000e-01 : f32
    %264 = vector.broadcast %cst_74 : f32 to vector<2x256xf32>
    %265 = arith.mulf %264, %261 : vector<2x256xf32>
    %266 = arith.select %263, %261, %265 : vector<2x256xi1>, vector<2x256xf32>
    %267 = arith.truncf %266 : vector<2x256xf32> to vector<2x256xbf16>
    %c0_75 = arith.constant 0 : index
    %c2304 = arith.constant 2304 : index
    %268 = vector.load %arg4[%c0_75, %c2304] : memref<2x4096xbf16, #tpu.memory_space<vmem>>, vector<2x256xbf16>
    tpu.vector_store %arg4[%c0_75, %c2304], %267 {strides = array<i32>} : memref<2x4096xbf16, #tpu.memory_space<vmem>>, vector<2x256xbf16>,
    %269 = vector.extract_strided_slice %2 {offsets = [0, 2560], sizes = [2, 256], strides = [1, 1]} : vector<2x4096xf32> to vector<2x256xf32>
    %270 = vector.broadcast %145 : vector<1x256xf32> to vector<2x256xf32>
    %271 = arith.mulf %269, %270 : vector<2x256xf32>
    %272 = vector.broadcast %148 : vector<1x256xf32> to vector<2x256xf32>
    %273 = arith.addf %271, %272 : vector<2x256xf32>
    %cst_76 = arith.constant 0.000000e+00 : f32
    %274 = vector.broadcast %cst_76 : f32 to vector<2x256xf32>
    %275 = arith.cmpf oge, %273, %274 : vector<2x256xf32>
    %cst_77 = arith.constant 2.000000e-01 : f32
    %276 = vector.broadcast %cst_77 : f32 to vector<2x256xf32>
    %277 = arith.mulf %276, %273 : vector<2x256xf32>
    %278 = arith.select %275, %273, %277 : vector<2x256xi1>, vector<2x256xf32>
    %279 = arith.truncf %278 : vector<2x256xf32> to vector<2x256xbf16>
    %c0_78 = arith.constant 0 : index
    %c2560 = arith.constant 2560 : index
    %280 = vector.load %arg4[%c0_78, %c2560] : memref<2x4096xbf16, #tpu.memory_space<vmem>>, vector<2x256xbf16>
    tpu.vector_store %arg4[%c0_78, %c2560], %279 {strides = array<i32>} : memref<2x4096xbf16, #tpu.memory_space<vmem>>, vector<2x256xbf16>,
    %281 = vector.extract_strided_slice %2 {offsets = [0, 2816], sizes = [2, 256], strides = [1, 1]} : vector<2x4096xf32> to vector<2x256xf32>
    %282 = vector.broadcast %145 : vector<1x256xf32> to vector<2x256xf32>
    %283 = arith.mulf %281, %282 : vector<2x256xf32>
    %284 = vector.broadcast %148 : vector<1x256xf32> to vector<2x256xf32>
    %285 = arith.addf %283, %284 : vector<2x256xf32>
    %cst_79 = arith.constant 0.000000e+00 : f32
    %286 = vector.broadcast %cst_79 : f32 to vector<2x256xf32>
    %287 = arith.cmpf oge, %285, %286 : vector<2x256xf32>
    %cst_80 = arith.constant 2.000000e-01 : f32
    %288 = vector.broadcast %cst_80 : f32 to vector<2x256xf32>
    %289 = arith.mulf %288, %285 : vector<2x256xf32>
    %290 = arith.select %287, %285, %289 : vector<2x256xi1>, vector<2x256xf32>
    %291 = arith.truncf %290 : vector<2x256xf32> to vector<2x256xbf16>
    %c0_81 = arith.constant 0 : index
    %c2816 = arith.constant 2816 : index
    %292 = vector.load %arg4[%c0_81, %c2816] : memref<2x4096xbf16, #tpu.memory_space<vmem>>, vector<2x256xbf16>
    tpu.vector_store %arg4[%c0_81, %c2816], %291 {strides = array<i32>} : memref<2x4096xbf16, #tpu.memory_space<vmem>>, vector<2x256xbf16>,
    %293 = vector.extract_strided_slice %2 {offsets = [0, 3072], sizes = [2, 256], strides = [1, 1]} : vector<2x4096xf32> to vector<2x256xf32>
    %294 = vector.broadcast %145 : vector<1x256xf32> to vector<2x256xf32>
    %295 = arith.mulf %293, %294 : vector<2x256xf32>
    %296 = vector.broadcast %148 : vector<1x256xf32> to vector<2x256xf32>
    %297 = arith.addf %295, %296 : vector<2x256xf32>
    %cst_82 = arith.constant 0.000000e+00 : f32
    %298 = vector.broadcast %cst_82 : f32 to vector<2x256xf32>
    %299 = arith.cmpf oge, %297, %298 : vector<2x256xf32>
    %cst_83 = arith.constant 2.000000e-01 : f32
    %300 = vector.broadcast %cst_83 : f32 to vector<2x256xf32>
    %301 = arith.mulf %300, %297 : vector<2x256xf32>
    %302 = arith.select %299, %297, %301 : vector<2x256xi1>, vector<2x256xf32>
    %303 = arith.truncf %302 : vector<2x256xf32> to vector<2x256xbf16>
    %c0_84 = arith.constant 0 : index
    %c3072 = arith.constant 3072 : index
    %304 = vector.load %arg4[%c0_84, %c3072] : memref<2x4096xbf16, #tpu.memory_space<vmem>>, vector<2x256xbf16>
    tpu.vector_store %arg4[%c0_84, %c3072], %303 {strides = array<i32>} : memref<2x4096xbf16, #tpu.memory_space<vmem>>, vector<2x256xbf16>,
    %305 = vector.extract_strided_slice %2 {offsets = [0, 3328], sizes = [2, 256], strides = [1, 1]} : vector<2x4096xf32> to vector<2x256xf32>
    %306 = vector.broadcast %145 : vector<1x256xf32> to vector<2x256xf32>
    %307 = arith.mulf %305, %306 : vector<2x256xf32>
    %308 = vector.broadcast %148 : vector<1x256xf32> to vector<2x256xf32>
    %309 = arith.addf %307, %308 : vector<2x256xf32>
    %cst_85 = arith.constant 0.000000e+00 : f32
    %310 = vector.broadcast %cst_85 : f32 to vector<2x256xf32>
    %311 = arith.cmpf oge, %309, %310 : vector<2x256xf32>
    %cst_86 = arith.constant 2.000000e-01 : f32
    %312 = vector.broadcast %cst_86 : f32 to vector<2x256xf32>
    %313 = arith.mulf %312, %309 : vector<2x256xf32>
    %314 = arith.select %311, %309, %313 : vector<2x256xi1>, vector<2x256xf32>
    %315 = arith.truncf %314 : vector<2x256xf32> to vector<2x256xbf16>
    %c0_87 = arith.constant 0 : index
    %c3328 = arith.constant 3328 : index
    %316 = vector.load %arg4[%c0_87, %c3328] : memref<2x4096xbf16, #tpu.memory_space<vmem>>, vector<2x256xbf16>
    tpu.vector_store %arg4[%c0_87, %c3328], %315 {strides = array<i32>} : memref<2x4096xbf16, #tpu.memory_space<vmem>>, vector<2x256xbf16>,
    %317 = vector.extract_strided_slice %2 {offsets = [0, 3584], sizes = [2, 256], strides = [1, 1]} : vector<2x4096xf32> to vector<2x256xf32>
    %318 = vector.broadcast %145 : vector<1x256xf32> to vector<2x256xf32>
    %319 = arith.mulf %317, %318 : vector<2x256xf32>
    %320 = vector.broadcast %148 : vector<1x256xf32> to vector<2x256xf32>
    %321 = arith.addf %319, %320 : vector<2x256xf32>
    %cst_88 = arith.constant 0.000000e+00 : f32
    %322 = vector.broadcast %cst_88 : f32 to vector<2x256xf32>
    %323 = arith.cmpf oge, %321, %322 : vector<2x256xf32>
    %cst_89 = arith.constant 2.000000e-01 : f32
    %324 = vector.broadcast %cst_89 : f32 to vector<2x256xf32>
    %325 = arith.mulf %324, %321 : vector<2x256xf32>
    %326 = arith.select %323, %321, %325 : vector<2x256xi1>, vector<2x256xf32>
    %327 = arith.truncf %326 : vector<2x256xf32> to vector<2x256xbf16>
    %c0_90 = arith.constant 0 : index
    %c3584 = arith.constant 3584 : index
    %328 = vector.load %arg4[%c0_90, %c3584] : memref<2x4096xbf16, #tpu.memory_space<vmem>>, vector<2x256xbf16>
    tpu.vector_store %arg4[%c0_90, %c3584], %327 {strides = array<i32>} : memref<2x4096xbf16, #tpu.memory_space<vmem>>, vector<2x256xbf16>,
    %329 = vector.extract_strided_slice %2 {offsets = [0, 3840], sizes = [2, 256], strides = [1, 1]} : vector<2x4096xf32> to vector<2x256xf32>
    %330 = vector.broadcast %145 : vector<1x256xf32> to vector<2x256xf32>
    %331 = arith.mulf %329, %330 : vector<2x256xf32>
    %332 = vector.broadcast %148 : vector<1x256xf32> to vector<2x256xf32>
    %333 = arith.addf %331, %332 : vector<2x256xf32>
    %cst_91 = arith.constant 0.000000e+00 : f32
    %334 = vector.broadcast %cst_91 : f32 to vector<2x256xf32>
    %335 = arith.cmpf oge, %333, %334 : vector<2x256xf32>
    %cst_92 = arith.constant 2.000000e-01 : f32
    %336 = vector.broadcast %cst_92 : f32 to vector<2x256xf32>
    %337 = arith.mulf %336, %333 : vector<2x256xf32>
    %338 = arith.select %335, %333, %337 : vector<2x256xi1>, vector<2x256xf32>
    %339 = arith.truncf %338 : vector<2x256xf32> to vector<2x256xbf16>
    %c0_93 = arith.constant 0 : index
    %c3840 = arith.constant 3840 : index
    %340 = vector.load %arg4[%c0_93, %c3840] : memref<2x4096xbf16, #tpu.memory_space<vmem>>, vector<2x256xbf16>
    tpu.vector_store %arg4[%c0_93, %c3840], %339 {strides = array<i32>} : memref<2x4096xbf16, #tpu.memory_space<vmem>>, vector<2x256xbf16>,
    return
  }
}

module attributes {stable_mosaic.version = 11 : i64} {
  func.func @_ms_bn_lrelu_kernel(%arg0: memref<4x32x1024xbf16, #tpu.memory_space<vmem>>, %arg1: memref<4x1024x128xbf16, #tpu.memory_space<vmem>>, %arg2: memref<1x128xf32, #tpu.memory_space<vmem>>, %arg3: memref<1x128xf32, #tpu.memory_space<vmem>>, %arg4: memref<4x32x128xbf16, #tpu.memory_space<vmem>>, %arg5: memref<4x32x128xf32, #tpu.memory_space<vmem>>) attributes {dimension_semantics = [], scalar_prefetch = 0 : i64, scratch_operands = 1 : i64, tpu.core_type = #tpu.core_type<tc>} {
    %cst = arith.constant 0.000000e+00 : f32
    %0 = vector.broadcast %cst : f32 to vector<1x128xf32>
    %cst_0 = arith.constant 0.000000e+00 : f32
    %1 = vector.broadcast %cst_0 : f32 to vector<1x128xf32>
    %c0 = arith.constant 0 : index
    %c0_1 = arith.constant 0 : index
    %c0_2 = arith.constant 0 : index
    %2 = vector.load %arg0[%c0, %c0_1, %c0_2] : memref<4x32x1024xbf16, #tpu.memory_space<vmem>>, vector<1x32x1024xbf16>
    %3 = vector.shape_cast %2 : vector<1x32x1024xbf16> to vector<32x1024xbf16>
    %c0_3 = arith.constant 0 : index
    %c0_4 = arith.constant 0 : index
    %c0_5 = arith.constant 0 : index
    %4 = vector.load %arg1[%c0_3, %c0_4, %c0_5] : memref<4x1024x128xbf16, #tpu.memory_space<vmem>>, vector<1x1024x128xbf16>
    %5 = vector.shape_cast %4 : vector<1x1024x128xbf16> to vector<1024x128xbf16>
    %cst_6 = arith.constant dense<0.000000e+00> : vector<32x128xf32>
    %6 = tpu.matmul %3, %5, %cst_6 {dimension_numbers = #tpu.dot_dimension_numbers<[1], [0], [0], [1], [0, 0, 1, 1], [], []>} : vector<32x1024xbf16>, vector<1024x128xbf16>, vector<32x128xf32> -> vector<32x128xf32>
    %c0_7 = arith.constant 0 : index
    %c0_8 = arith.constant 0 : index
    %c0_9 = arith.constant 0 : index
    %7 = vector.load %arg5[%c0_7, %c0_8, %c0_9] : memref<4x32x128xf32, #tpu.memory_space<vmem>>, vector<1x32x128xf32>
    %8 = vector.shape_cast %7 : vector<1x32x128xf32> to vector<32x128xf32>
    %9 = vector.shape_cast %6 : vector<32x128xf32> to vector<1x32x128xf32>
    tpu.vector_store %arg5[%c0_7, %c0_8, %c0_9], %9 {strides = array<i32>} : memref<4x32x128xf32, #tpu.memory_space<vmem>>, vector<1x32x128xf32>,
    %cst_10 = arith.constant dense<0.000000e+00> : vector<128xf32>
    %10 = vector.multi_reduction <add>, %6, %cst_10 [0] : vector<32x128xf32> to vector<128xf32>
    %11 = vector.shape_cast %10 : vector<128xf32> to vector<1x128xf32>
    %12 = arith.addf %0, %11 : vector<1x128xf32>
    %13 = arith.mulf %6, %6 : vector<32x128xf32>
    %cst_11 = arith.constant dense<0.000000e+00> : vector<128xf32>
    %14 = vector.multi_reduction <add>, %13, %cst_11 [0] : vector<32x128xf32> to vector<128xf32>
    %15 = vector.shape_cast %14 : vector<128xf32> to vector<1x128xf32>
    %16 = arith.addf %1, %15 : vector<1x128xf32>
    %c1 = arith.constant 1 : index
    %c0_12 = arith.constant 0 : index
    %c0_13 = arith.constant 0 : index
    %17 = vector.load %arg0[%c1, %c0_12, %c0_13] : memref<4x32x1024xbf16, #tpu.memory_space<vmem>>, vector<1x32x1024xbf16>
    %18 = vector.shape_cast %17 : vector<1x32x1024xbf16> to vector<32x1024xbf16>
    %c1_14 = arith.constant 1 : index
    %c0_15 = arith.constant 0 : index
    %c0_16 = arith.constant 0 : index
    %19 = vector.load %arg1[%c1_14, %c0_15, %c0_16] : memref<4x1024x128xbf16, #tpu.memory_space<vmem>>, vector<1x1024x128xbf16>
    %20 = vector.shape_cast %19 : vector<1x1024x128xbf16> to vector<1024x128xbf16>
    %cst_17 = arith.constant dense<0.000000e+00> : vector<32x128xf32>
    %21 = tpu.matmul %18, %20, %cst_17 {dimension_numbers = #tpu.dot_dimension_numbers<[1], [0], [0], [1], [0, 0, 1, 1], [], []>} : vector<32x1024xbf16>, vector<1024x128xbf16>, vector<32x128xf32> -> vector<32x128xf32>
    %c1_18 = arith.constant 1 : index
    %c0_19 = arith.constant 0 : index
    %c0_20 = arith.constant 0 : index
    %22 = vector.load %arg5[%c1_18, %c0_19, %c0_20] : memref<4x32x128xf32, #tpu.memory_space<vmem>>, vector<1x32x128xf32>
    %23 = vector.shape_cast %22 : vector<1x32x128xf32> to vector<32x128xf32>
    %24 = vector.shape_cast %21 : vector<32x128xf32> to vector<1x32x128xf32>
    tpu.vector_store %arg5[%c1_18, %c0_19, %c0_20], %24 {strides = array<i32>} : memref<4x32x128xf32, #tpu.memory_space<vmem>>, vector<1x32x128xf32>,
    %cst_21 = arith.constant dense<0.000000e+00> : vector<128xf32>
    %25 = vector.multi_reduction <add>, %21, %cst_21 [0] : vector<32x128xf32> to vector<128xf32>
    %26 = vector.shape_cast %25 : vector<128xf32> to vector<1x128xf32>
    %27 = arith.addf %12, %26 : vector<1x128xf32>
    %28 = arith.mulf %21, %21 : vector<32x128xf32>
    %cst_22 = arith.constant dense<0.000000e+00> : vector<128xf32>
    %29 = vector.multi_reduction <add>, %28, %cst_22 [0] : vector<32x128xf32> to vector<128xf32>
    %30 = vector.shape_cast %29 : vector<128xf32> to vector<1x128xf32>
    %31 = arith.addf %16, %30 : vector<1x128xf32>
    %c2 = arith.constant 2 : index
    %c0_23 = arith.constant 0 : index
    %c0_24 = arith.constant 0 : index
    %32 = vector.load %arg0[%c2, %c0_23, %c0_24] : memref<4x32x1024xbf16, #tpu.memory_space<vmem>>, vector<1x32x1024xbf16>
    %33 = vector.shape_cast %32 : vector<1x32x1024xbf16> to vector<32x1024xbf16>
    %c2_25 = arith.constant 2 : index
    %c0_26 = arith.constant 0 : index
    %c0_27 = arith.constant 0 : index
    %34 = vector.load %arg1[%c2_25, %c0_26, %c0_27] : memref<4x1024x128xbf16, #tpu.memory_space<vmem>>, vector<1x1024x128xbf16>
    %35 = vector.shape_cast %34 : vector<1x1024x128xbf16> to vector<1024x128xbf16>
    %cst_28 = arith.constant dense<0.000000e+00> : vector<32x128xf32>
    %36 = tpu.matmul %33, %35, %cst_28 {dimension_numbers = #tpu.dot_dimension_numbers<[1], [0], [0], [1], [0, 0, 1, 1], [], []>} : vector<32x1024xbf16>, vector<1024x128xbf16>, vector<32x128xf32> -> vector<32x128xf32>
    %c2_29 = arith.constant 2 : index
    %c0_30 = arith.constant 0 : index
    %c0_31 = arith.constant 0 : index
    %37 = vector.load %arg5[%c2_29, %c0_30, %c0_31] : memref<4x32x128xf32, #tpu.memory_space<vmem>>, vector<1x32x128xf32>
    %38 = vector.shape_cast %37 : vector<1x32x128xf32> to vector<32x128xf32>
    %39 = vector.shape_cast %36 : vector<32x128xf32> to vector<1x32x128xf32>
    tpu.vector_store %arg5[%c2_29, %c0_30, %c0_31], %39 {strides = array<i32>} : memref<4x32x128xf32, #tpu.memory_space<vmem>>, vector<1x32x128xf32>,
    %cst_32 = arith.constant dense<0.000000e+00> : vector<128xf32>
    %40 = vector.multi_reduction <add>, %36, %cst_32 [0] : vector<32x128xf32> to vector<128xf32>
    %41 = vector.shape_cast %40 : vector<128xf32> to vector<1x128xf32>
    %42 = arith.addf %27, %41 : vector<1x128xf32>
    %43 = arith.mulf %36, %36 : vector<32x128xf32>
    %cst_33 = arith.constant dense<0.000000e+00> : vector<128xf32>
    %44 = vector.multi_reduction <add>, %43, %cst_33 [0] : vector<32x128xf32> to vector<128xf32>
    %45 = vector.shape_cast %44 : vector<128xf32> to vector<1x128xf32>
    %46 = arith.addf %31, %45 : vector<1x128xf32>
    %c3 = arith.constant 3 : index
    %c0_34 = arith.constant 0 : index
    %c0_35 = arith.constant 0 : index
    %47 = vector.load %arg0[%c3, %c0_34, %c0_35] : memref<4x32x1024xbf16, #tpu.memory_space<vmem>>, vector<1x32x1024xbf16>
    %48 = vector.shape_cast %47 : vector<1x32x1024xbf16> to vector<32x1024xbf16>
    %c3_36 = arith.constant 3 : index
    %c0_37 = arith.constant 0 : index
    %c0_38 = arith.constant 0 : index
    %49 = vector.load %arg1[%c3_36, %c0_37, %c0_38] : memref<4x1024x128xbf16, #tpu.memory_space<vmem>>, vector<1x1024x128xbf16>
    %50 = vector.shape_cast %49 : vector<1x1024x128xbf16> to vector<1024x128xbf16>
    %cst_39 = arith.constant dense<0.000000e+00> : vector<32x128xf32>
    %51 = tpu.matmul %48, %50, %cst_39 {dimension_numbers = #tpu.dot_dimension_numbers<[1], [0], [0], [1], [0, 0, 1, 1], [], []>} : vector<32x1024xbf16>, vector<1024x128xbf16>, vector<32x128xf32> -> vector<32x128xf32>
    %c3_40 = arith.constant 3 : index
    %c0_41 = arith.constant 0 : index
    %c0_42 = arith.constant 0 : index
    %52 = vector.load %arg5[%c3_40, %c0_41, %c0_42] : memref<4x32x128xf32, #tpu.memory_space<vmem>>, vector<1x32x128xf32>
    %53 = vector.shape_cast %52 : vector<1x32x128xf32> to vector<32x128xf32>
    %54 = vector.shape_cast %51 : vector<32x128xf32> to vector<1x32x128xf32>
    tpu.vector_store %arg5[%c3_40, %c0_41, %c0_42], %54 {strides = array<i32>} : memref<4x32x128xf32, #tpu.memory_space<vmem>>, vector<1x32x128xf32>,
    %cst_43 = arith.constant dense<0.000000e+00> : vector<128xf32>
    %55 = vector.multi_reduction <add>, %51, %cst_43 [0] : vector<32x128xf32> to vector<128xf32>
    %56 = vector.shape_cast %55 : vector<128xf32> to vector<1x128xf32>
    %57 = arith.addf %42, %56 : vector<1x128xf32>
    %58 = arith.mulf %51, %51 : vector<32x128xf32>
    %cst_44 = arith.constant dense<0.000000e+00> : vector<128xf32>
    %59 = vector.multi_reduction <add>, %58, %cst_44 [0] : vector<32x128xf32> to vector<128xf32>
    %60 = vector.shape_cast %59 : vector<128xf32> to vector<1x128xf32>
    %61 = arith.addf %46, %60 : vector<1x128xf32>
    %cst_45 = arith.constant 1.280000e+02 : f32
    %62 = vector.broadcast %cst_45 : f32 to vector<1x128xf32>
    %63 = arith.divf %57, %62 : vector<1x128xf32>
    %cst_46 = arith.constant 1.280000e+02 : f32
    %64 = vector.broadcast %cst_46 : f32 to vector<1x128xf32>
    %65 = arith.divf %61, %64 : vector<1x128xf32>
    %66 = arith.mulf %63, %63 : vector<1x128xf32>
    %67 = arith.subf %65, %66 : vector<1x128xf32>
    %cst_47 = arith.constant 0.000000e+00 : f32
    %68 = vector.broadcast %cst_47 : f32 to vector<1x128xf32>
    %69 = arith.maximumf %67, %68 : vector<1x128xf32>
    %c0_48 = arith.constant 0 : index
    %c0_49 = arith.constant 0 : index
    %70 = vector.load %arg2[%c0_48, %c0_49] : memref<1x128xf32, #tpu.memory_space<vmem>>, vector<1x128xf32>
    %cst_50 = arith.constant 9.99999974E-6 : f32
    %71 = vector.broadcast %cst_50 : f32 to vector<1x128xf32>
    %72 = arith.addf %69, %71 : vector<1x128xf32>
    %73 = math.rsqrt %72 : vector<1x128xf32>
    %74 = arith.mulf %70, %73 : vector<1x128xf32>
    %c0_51 = arith.constant 0 : index
    %c0_52 = arith.constant 0 : index
    %75 = vector.load %arg3[%c0_51, %c0_52] : memref<1x128xf32, #tpu.memory_space<vmem>>, vector<1x128xf32>
    %76 = arith.mulf %63, %74 : vector<1x128xf32>
    %77 = arith.subf %75, %76 : vector<1x128xf32>
    %c0_53 = arith.constant 0 : index
    %c0_54 = arith.constant 0 : index
    %c0_55 = arith.constant 0 : index
    %78 = vector.load %arg5[%c0_53, %c0_54, %c0_55] : memref<4x32x128xf32, #tpu.memory_space<vmem>>, vector<1x32x128xf32>
    %79 = vector.shape_cast %78 : vector<1x32x128xf32> to vector<32x128xf32>
    %80 = vector.broadcast %74 : vector<1x128xf32> to vector<32x128xf32>
    %81 = arith.mulf %79, %80 : vector<32x128xf32>
    %82 = vector.broadcast %77 : vector<1x128xf32> to vector<32x128xf32>
    %83 = arith.addf %81, %82 : vector<32x128xf32>
    %cst_56 = arith.constant 0.000000e+00 : f32
    %84 = vector.broadcast %cst_56 : f32 to vector<32x128xf32>
    %85 = arith.cmpf oge, %83, %84 : vector<32x128xf32>
    %cst_57 = arith.constant 2.000000e-01 : f32
    %86 = vector.broadcast %cst_57 : f32 to vector<32x128xf32>
    %87 = arith.mulf %86, %83 : vector<32x128xf32>
    %88 = arith.select %85, %83, %87 : vector<32x128xi1>, vector<32x128xf32>
    %89 = arith.truncf %88 : vector<32x128xf32> to vector<32x128xbf16>
    %c0_58 = arith.constant 0 : index
    %c0_59 = arith.constant 0 : index
    %c0_60 = arith.constant 0 : index
    %90 = vector.load %arg4[%c0_58, %c0_59, %c0_60] : memref<4x32x128xbf16, #tpu.memory_space<vmem>>, vector<1x32x128xbf16>
    %91 = vector.shape_cast %90 : vector<1x32x128xbf16> to vector<32x128xbf16>
    %92 = vector.shape_cast %89 : vector<32x128xbf16> to vector<1x32x128xbf16>
    tpu.vector_store %arg4[%c0_58, %c0_59, %c0_60], %92 {strides = array<i32>} : memref<4x32x128xbf16, #tpu.memory_space<vmem>>, vector<1x32x128xbf16>,
    %c1_61 = arith.constant 1 : index
    %c0_62 = arith.constant 0 : index
    %c0_63 = arith.constant 0 : index
    %93 = vector.load %arg5[%c1_61, %c0_62, %c0_63] : memref<4x32x128xf32, #tpu.memory_space<vmem>>, vector<1x32x128xf32>
    %94 = vector.shape_cast %93 : vector<1x32x128xf32> to vector<32x128xf32>
    %95 = vector.broadcast %74 : vector<1x128xf32> to vector<32x128xf32>
    %96 = arith.mulf %94, %95 : vector<32x128xf32>
    %97 = vector.broadcast %77 : vector<1x128xf32> to vector<32x128xf32>
    %98 = arith.addf %96, %97 : vector<32x128xf32>
    %cst_64 = arith.constant 0.000000e+00 : f32
    %99 = vector.broadcast %cst_64 : f32 to vector<32x128xf32>
    %100 = arith.cmpf oge, %98, %99 : vector<32x128xf32>
    %cst_65 = arith.constant 2.000000e-01 : f32
    %101 = vector.broadcast %cst_65 : f32 to vector<32x128xf32>
    %102 = arith.mulf %101, %98 : vector<32x128xf32>
    %103 = arith.select %100, %98, %102 : vector<32x128xi1>, vector<32x128xf32>
    %104 = arith.truncf %103 : vector<32x128xf32> to vector<32x128xbf16>
    %c1_66 = arith.constant 1 : index
    %c0_67 = arith.constant 0 : index
    %c0_68 = arith.constant 0 : index
    %105 = vector.load %arg4[%c1_66, %c0_67, %c0_68] : memref<4x32x128xbf16, #tpu.memory_space<vmem>>, vector<1x32x128xbf16>
    %106 = vector.shape_cast %105 : vector<1x32x128xbf16> to vector<32x128xbf16>
    %107 = vector.shape_cast %104 : vector<32x128xbf16> to vector<1x32x128xbf16>
    tpu.vector_store %arg4[%c1_66, %c0_67, %c0_68], %107 {strides = array<i32>} : memref<4x32x128xbf16, #tpu.memory_space<vmem>>, vector<1x32x128xbf16>,
    %c2_69 = arith.constant 2 : index
    %c0_70 = arith.constant 0 : index
    %c0_71 = arith.constant 0 : index
    %108 = vector.load %arg5[%c2_69, %c0_70, %c0_71] : memref<4x32x128xf32, #tpu.memory_space<vmem>>, vector<1x32x128xf32>
    %109 = vector.shape_cast %108 : vector<1x32x128xf32> to vector<32x128xf32>
    %110 = vector.broadcast %74 : vector<1x128xf32> to vector<32x128xf32>
    %111 = arith.mulf %109, %110 : vector<32x128xf32>
    %112 = vector.broadcast %77 : vector<1x128xf32> to vector<32x128xf32>
    %113 = arith.addf %111, %112 : vector<32x128xf32>
    %cst_72 = arith.constant 0.000000e+00 : f32
    %114 = vector.broadcast %cst_72 : f32 to vector<32x128xf32>
    %115 = arith.cmpf oge, %113, %114 : vector<32x128xf32>
    %cst_73 = arith.constant 2.000000e-01 : f32
    %116 = vector.broadcast %cst_73 : f32 to vector<32x128xf32>
    %117 = arith.mulf %116, %113 : vector<32x128xf32>
    %118 = arith.select %115, %113, %117 : vector<32x128xi1>, vector<32x128xf32>
    %119 = arith.truncf %118 : vector<32x128xf32> to vector<32x128xbf16>
    %c2_74 = arith.constant 2 : index
    %c0_75 = arith.constant 0 : index
    %c0_76 = arith.constant 0 : index
    %120 = vector.load %arg4[%c2_74, %c0_75, %c0_76] : memref<4x32x128xbf16, #tpu.memory_space<vmem>>, vector<1x32x128xbf16>
    %121 = vector.shape_cast %120 : vector<1x32x128xbf16> to vector<32x128xbf16>
    %122 = vector.shape_cast %119 : vector<32x128xbf16> to vector<1x32x128xbf16>
    tpu.vector_store %arg4[%c2_74, %c0_75, %c0_76], %122 {strides = array<i32>} : memref<4x32x128xbf16, #tpu.memory_space<vmem>>, vector<1x32x128xbf16>,
    %c3_77 = arith.constant 3 : index
    %c0_78 = arith.constant 0 : index
    %c0_79 = arith.constant 0 : index
    %123 = vector.load %arg5[%c3_77, %c0_78, %c0_79] : memref<4x32x128xf32, #tpu.memory_space<vmem>>, vector<1x32x128xf32>
    %124 = vector.shape_cast %123 : vector<1x32x128xf32> to vector<32x128xf32>
    %125 = vector.broadcast %74 : vector<1x128xf32> to vector<32x128xf32>
    %126 = arith.mulf %124, %125 : vector<32x128xf32>
    %127 = vector.broadcast %77 : vector<1x128xf32> to vector<32x128xf32>
    %128 = arith.addf %126, %127 : vector<32x128xf32>
    %cst_80 = arith.constant 0.000000e+00 : f32
    %129 = vector.broadcast %cst_80 : f32 to vector<32x128xf32>
    %130 = arith.cmpf oge, %128, %129 : vector<32x128xf32>
    %cst_81 = arith.constant 2.000000e-01 : f32
    %131 = vector.broadcast %cst_81 : f32 to vector<32x128xf32>
    %132 = arith.mulf %131, %128 : vector<32x128xf32>
    %133 = arith.select %130, %128, %132 : vector<32x128xi1>, vector<32x128xf32>
    %134 = arith.truncf %133 : vector<32x128xf32> to vector<32x128xbf16>
    %c3_82 = arith.constant 3 : index
    %c0_83 = arith.constant 0 : index
    %c0_84 = arith.constant 0 : index
    %135 = vector.load %arg4[%c3_82, %c0_83, %c0_84] : memref<4x32x128xbf16, #tpu.memory_space<vmem>>, vector<1x32x128xbf16>
    %136 = vector.shape_cast %135 : vector<1x32x128xbf16> to vector<32x128xbf16>
    %137 = vector.shape_cast %134 : vector<32x128xbf16> to vector<1x32x128xbf16>
    tpu.vector_store %arg4[%c3_82, %c0_83, %c0_84], %137 {strides = array<i32>} : memref<4x32x128xbf16, #tpu.memory_space<vmem>>, vector<1x32x128xbf16>,
    return
  }
}

module attributes {stable_mosaic.version = 11 : i64} {
  func.func @_ms_bn_lrelu_kernel(%arg0: memref<4x128x512xbf16, #tpu.memory_space<vmem>>, %arg1: memref<4x512x64xbf16, #tpu.memory_space<vmem>>, %arg2: memref<1x64xf32, #tpu.memory_space<vmem>>, %arg3: memref<1x64xf32, #tpu.memory_space<vmem>>, %arg4: memref<4x128x64xbf16, #tpu.memory_space<vmem>>, %arg5: memref<4x128x64xf32, #tpu.memory_space<vmem>>) attributes {dimension_semantics = [], scalar_prefetch = 0 : i64, scratch_operands = 1 : i64, tpu.core_type = #tpu.core_type<tc>} {
    %cst = arith.constant 0.000000e+00 : f32
    %0 = vector.broadcast %cst : f32 to vector<1x64xf32>
    %cst_0 = arith.constant 0.000000e+00 : f32
    %1 = vector.broadcast %cst_0 : f32 to vector<1x64xf32>
    %c0 = arith.constant 0 : index
    %c0_1 = arith.constant 0 : index
    %c0_2 = arith.constant 0 : index
    %2 = vector.load %arg0[%c0, %c0_1, %c0_2] : memref<4x128x512xbf16, #tpu.memory_space<vmem>>, vector<1x128x512xbf16>
    %3 = vector.shape_cast %2 : vector<1x128x512xbf16> to vector<128x512xbf16>
    %c0_3 = arith.constant 0 : index
    %c0_4 = arith.constant 0 : index
    %c0_5 = arith.constant 0 : index
    %4 = vector.load %arg1[%c0_3, %c0_4, %c0_5] : memref<4x512x64xbf16, #tpu.memory_space<vmem>>, vector<1x512x64xbf16>
    %5 = vector.shape_cast %4 : vector<1x512x64xbf16> to vector<512x64xbf16>
    %cst_6 = arith.constant dense<0.000000e+00> : vector<128x64xf32>
    %6 = tpu.matmul %3, %5, %cst_6 {dimension_numbers = #tpu.dot_dimension_numbers<[1], [0], [0], [1], [0, 0, 1, 1], [], []>} : vector<128x512xbf16>, vector<512x64xbf16>, vector<128x64xf32> -> vector<128x64xf32>
    %c0_7 = arith.constant 0 : index
    %c0_8 = arith.constant 0 : index
    %c0_9 = arith.constant 0 : index
    %7 = vector.load %arg5[%c0_7, %c0_8, %c0_9] : memref<4x128x64xf32, #tpu.memory_space<vmem>>, vector<1x128x64xf32>
    %8 = vector.shape_cast %7 : vector<1x128x64xf32> to vector<128x64xf32>
    %9 = vector.shape_cast %6 : vector<128x64xf32> to vector<1x128x64xf32>
    tpu.vector_store %arg5[%c0_7, %c0_8, %c0_9], %9 {strides = array<i32>} : memref<4x128x64xf32, #tpu.memory_space<vmem>>, vector<1x128x64xf32>,
    %cst_10 = arith.constant dense<0.000000e+00> : vector<64xf32>
    %10 = vector.multi_reduction <add>, %6, %cst_10 [0] : vector<128x64xf32> to vector<64xf32>
    %11 = vector.shape_cast %10 : vector<64xf32> to vector<1x64xf32>
    %12 = arith.addf %0, %11 : vector<1x64xf32>
    %13 = arith.mulf %6, %6 : vector<128x64xf32>
    %cst_11 = arith.constant dense<0.000000e+00> : vector<64xf32>
    %14 = vector.multi_reduction <add>, %13, %cst_11 [0] : vector<128x64xf32> to vector<64xf32>
    %15 = vector.shape_cast %14 : vector<64xf32> to vector<1x64xf32>
    %16 = arith.addf %1, %15 : vector<1x64xf32>
    %c1 = arith.constant 1 : index
    %c0_12 = arith.constant 0 : index
    %c0_13 = arith.constant 0 : index
    %17 = vector.load %arg0[%c1, %c0_12, %c0_13] : memref<4x128x512xbf16, #tpu.memory_space<vmem>>, vector<1x128x512xbf16>
    %18 = vector.shape_cast %17 : vector<1x128x512xbf16> to vector<128x512xbf16>
    %c1_14 = arith.constant 1 : index
    %c0_15 = arith.constant 0 : index
    %c0_16 = arith.constant 0 : index
    %19 = vector.load %arg1[%c1_14, %c0_15, %c0_16] : memref<4x512x64xbf16, #tpu.memory_space<vmem>>, vector<1x512x64xbf16>
    %20 = vector.shape_cast %19 : vector<1x512x64xbf16> to vector<512x64xbf16>
    %cst_17 = arith.constant dense<0.000000e+00> : vector<128x64xf32>
    %21 = tpu.matmul %18, %20, %cst_17 {dimension_numbers = #tpu.dot_dimension_numbers<[1], [0], [0], [1], [0, 0, 1, 1], [], []>} : vector<128x512xbf16>, vector<512x64xbf16>, vector<128x64xf32> -> vector<128x64xf32>
    %c1_18 = arith.constant 1 : index
    %c0_19 = arith.constant 0 : index
    %c0_20 = arith.constant 0 : index
    %22 = vector.load %arg5[%c1_18, %c0_19, %c0_20] : memref<4x128x64xf32, #tpu.memory_space<vmem>>, vector<1x128x64xf32>
    %23 = vector.shape_cast %22 : vector<1x128x64xf32> to vector<128x64xf32>
    %24 = vector.shape_cast %21 : vector<128x64xf32> to vector<1x128x64xf32>
    tpu.vector_store %arg5[%c1_18, %c0_19, %c0_20], %24 {strides = array<i32>} : memref<4x128x64xf32, #tpu.memory_space<vmem>>, vector<1x128x64xf32>,
    %cst_21 = arith.constant dense<0.000000e+00> : vector<64xf32>
    %25 = vector.multi_reduction <add>, %21, %cst_21 [0] : vector<128x64xf32> to vector<64xf32>
    %26 = vector.shape_cast %25 : vector<64xf32> to vector<1x64xf32>
    %27 = arith.addf %12, %26 : vector<1x64xf32>
    %28 = arith.mulf %21, %21 : vector<128x64xf32>
    %cst_22 = arith.constant dense<0.000000e+00> : vector<64xf32>
    %29 = vector.multi_reduction <add>, %28, %cst_22 [0] : vector<128x64xf32> to vector<64xf32>
    %30 = vector.shape_cast %29 : vector<64xf32> to vector<1x64xf32>
    %31 = arith.addf %16, %30 : vector<1x64xf32>
    %c2 = arith.constant 2 : index
    %c0_23 = arith.constant 0 : index
    %c0_24 = arith.constant 0 : index
    %32 = vector.load %arg0[%c2, %c0_23, %c0_24] : memref<4x128x512xbf16, #tpu.memory_space<vmem>>, vector<1x128x512xbf16>
    %33 = vector.shape_cast %32 : vector<1x128x512xbf16> to vector<128x512xbf16>
    %c2_25 = arith.constant 2 : index
    %c0_26 = arith.constant 0 : index
    %c0_27 = arith.constant 0 : index
    %34 = vector.load %arg1[%c2_25, %c0_26, %c0_27] : memref<4x512x64xbf16, #tpu.memory_space<vmem>>, vector<1x512x64xbf16>
    %35 = vector.shape_cast %34 : vector<1x512x64xbf16> to vector<512x64xbf16>
    %cst_28 = arith.constant dense<0.000000e+00> : vector<128x64xf32>
    %36 = tpu.matmul %33, %35, %cst_28 {dimension_numbers = #tpu.dot_dimension_numbers<[1], [0], [0], [1], [0, 0, 1, 1], [], []>} : vector<128x512xbf16>, vector<512x64xbf16>, vector<128x64xf32> -> vector<128x64xf32>
    %c2_29 = arith.constant 2 : index
    %c0_30 = arith.constant 0 : index
    %c0_31 = arith.constant 0 : index
    %37 = vector.load %arg5[%c2_29, %c0_30, %c0_31] : memref<4x128x64xf32, #tpu.memory_space<vmem>>, vector<1x128x64xf32>
    %38 = vector.shape_cast %37 : vector<1x128x64xf32> to vector<128x64xf32>
    %39 = vector.shape_cast %36 : vector<128x64xf32> to vector<1x128x64xf32>
    tpu.vector_store %arg5[%c2_29, %c0_30, %c0_31], %39 {strides = array<i32>} : memref<4x128x64xf32, #tpu.memory_space<vmem>>, vector<1x128x64xf32>,
    %cst_32 = arith.constant dense<0.000000e+00> : vector<64xf32>
    %40 = vector.multi_reduction <add>, %36, %cst_32 [0] : vector<128x64xf32> to vector<64xf32>
    %41 = vector.shape_cast %40 : vector<64xf32> to vector<1x64xf32>
    %42 = arith.addf %27, %41 : vector<1x64xf32>
    %43 = arith.mulf %36, %36 : vector<128x64xf32>
    %cst_33 = arith.constant dense<0.000000e+00> : vector<64xf32>
    %44 = vector.multi_reduction <add>, %43, %cst_33 [0] : vector<128x64xf32> to vector<64xf32>
    %45 = vector.shape_cast %44 : vector<64xf32> to vector<1x64xf32>
    %46 = arith.addf %31, %45 : vector<1x64xf32>
    %c3 = arith.constant 3 : index
    %c0_34 = arith.constant 0 : index
    %c0_35 = arith.constant 0 : index
    %47 = vector.load %arg0[%c3, %c0_34, %c0_35] : memref<4x128x512xbf16, #tpu.memory_space<vmem>>, vector<1x128x512xbf16>
    %48 = vector.shape_cast %47 : vector<1x128x512xbf16> to vector<128x512xbf16>
    %c3_36 = arith.constant 3 : index
    %c0_37 = arith.constant 0 : index
    %c0_38 = arith.constant 0 : index
    %49 = vector.load %arg1[%c3_36, %c0_37, %c0_38] : memref<4x512x64xbf16, #tpu.memory_space<vmem>>, vector<1x512x64xbf16>
    %50 = vector.shape_cast %49 : vector<1x512x64xbf16> to vector<512x64xbf16>
    %cst_39 = arith.constant dense<0.000000e+00> : vector<128x64xf32>
    %51 = tpu.matmul %48, %50, %cst_39 {dimension_numbers = #tpu.dot_dimension_numbers<[1], [0], [0], [1], [0, 0, 1, 1], [], []>} : vector<128x512xbf16>, vector<512x64xbf16>, vector<128x64xf32> -> vector<128x64xf32>
    %c3_40 = arith.constant 3 : index
    %c0_41 = arith.constant 0 : index
    %c0_42 = arith.constant 0 : index
    %52 = vector.load %arg5[%c3_40, %c0_41, %c0_42] : memref<4x128x64xf32, #tpu.memory_space<vmem>>, vector<1x128x64xf32>
    %53 = vector.shape_cast %52 : vector<1x128x64xf32> to vector<128x64xf32>
    %54 = vector.shape_cast %51 : vector<128x64xf32> to vector<1x128x64xf32>
    tpu.vector_store %arg5[%c3_40, %c0_41, %c0_42], %54 {strides = array<i32>} : memref<4x128x64xf32, #tpu.memory_space<vmem>>, vector<1x128x64xf32>,
    %cst_43 = arith.constant dense<0.000000e+00> : vector<64xf32>
    %55 = vector.multi_reduction <add>, %51, %cst_43 [0] : vector<128x64xf32> to vector<64xf32>
    %56 = vector.shape_cast %55 : vector<64xf32> to vector<1x64xf32>
    %57 = arith.addf %42, %56 : vector<1x64xf32>
    %58 = arith.mulf %51, %51 : vector<128x64xf32>
    %cst_44 = arith.constant dense<0.000000e+00> : vector<64xf32>
    %59 = vector.multi_reduction <add>, %58, %cst_44 [0] : vector<128x64xf32> to vector<64xf32>
    %60 = vector.shape_cast %59 : vector<64xf32> to vector<1x64xf32>
    %61 = arith.addf %46, %60 : vector<1x64xf32>
    %cst_45 = arith.constant 5.120000e+02 : f32
    %62 = vector.broadcast %cst_45 : f32 to vector<1x64xf32>
    %63 = arith.divf %57, %62 : vector<1x64xf32>
    %cst_46 = arith.constant 5.120000e+02 : f32
    %64 = vector.broadcast %cst_46 : f32 to vector<1x64xf32>
    %65 = arith.divf %61, %64 : vector<1x64xf32>
    %66 = arith.mulf %63, %63 : vector<1x64xf32>
    %67 = arith.subf %65, %66 : vector<1x64xf32>
    %cst_47 = arith.constant 0.000000e+00 : f32
    %68 = vector.broadcast %cst_47 : f32 to vector<1x64xf32>
    %69 = arith.maximumf %67, %68 : vector<1x64xf32>
    %c0_48 = arith.constant 0 : index
    %c0_49 = arith.constant 0 : index
    %70 = vector.load %arg2[%c0_48, %c0_49] : memref<1x64xf32, #tpu.memory_space<vmem>>, vector<1x64xf32>
    %cst_50 = arith.constant 9.99999974E-6 : f32
    %71 = vector.broadcast %cst_50 : f32 to vector<1x64xf32>
    %72 = arith.addf %69, %71 : vector<1x64xf32>
    %73 = math.rsqrt %72 : vector<1x64xf32>
    %74 = arith.mulf %70, %73 : vector<1x64xf32>
    %c0_51 = arith.constant 0 : index
    %c0_52 = arith.constant 0 : index
    %75 = vector.load %arg3[%c0_51, %c0_52] : memref<1x64xf32, #tpu.memory_space<vmem>>, vector<1x64xf32>
    %76 = arith.mulf %63, %74 : vector<1x64xf32>
    %77 = arith.subf %75, %76 : vector<1x64xf32>
    %c0_53 = arith.constant 0 : index
    %c0_54 = arith.constant 0 : index
    %c0_55 = arith.constant 0 : index
    %78 = vector.load %arg5[%c0_53, %c0_54, %c0_55] : memref<4x128x64xf32, #tpu.memory_space<vmem>>, vector<1x128x64xf32>
    %79 = vector.shape_cast %78 : vector<1x128x64xf32> to vector<128x64xf32>
    %80 = vector.broadcast %74 : vector<1x64xf32> to vector<128x64xf32>
    %81 = arith.mulf %79, %80 : vector<128x64xf32>
    %82 = vector.broadcast %77 : vector<1x64xf32> to vector<128x64xf32>
    %83 = arith.addf %81, %82 : vector<128x64xf32>
    %cst_56 = arith.constant 0.000000e+00 : f32
    %84 = vector.broadcast %cst_56 : f32 to vector<128x64xf32>
    %85 = arith.cmpf oge, %83, %84 : vector<128x64xf32>
    %cst_57 = arith.constant 2.000000e-01 : f32
    %86 = vector.broadcast %cst_57 : f32 to vector<128x64xf32>
    %87 = arith.mulf %86, %83 : vector<128x64xf32>
    %88 = arith.select %85, %83, %87 : vector<128x64xi1>, vector<128x64xf32>
    %89 = arith.truncf %88 : vector<128x64xf32> to vector<128x64xbf16>
    %c0_58 = arith.constant 0 : index
    %c0_59 = arith.constant 0 : index
    %c0_60 = arith.constant 0 : index
    %90 = vector.load %arg4[%c0_58, %c0_59, %c0_60] : memref<4x128x64xbf16, #tpu.memory_space<vmem>>, vector<1x128x64xbf16>
    %91 = vector.shape_cast %90 : vector<1x128x64xbf16> to vector<128x64xbf16>
    %92 = vector.shape_cast %89 : vector<128x64xbf16> to vector<1x128x64xbf16>
    tpu.vector_store %arg4[%c0_58, %c0_59, %c0_60], %92 {strides = array<i32>} : memref<4x128x64xbf16, #tpu.memory_space<vmem>>, vector<1x128x64xbf16>,
    %c1_61 = arith.constant 1 : index
    %c0_62 = arith.constant 0 : index
    %c0_63 = arith.constant 0 : index
    %93 = vector.load %arg5[%c1_61, %c0_62, %c0_63] : memref<4x128x64xf32, #tpu.memory_space<vmem>>, vector<1x128x64xf32>
    %94 = vector.shape_cast %93 : vector<1x128x64xf32> to vector<128x64xf32>
    %95 = vector.broadcast %74 : vector<1x64xf32> to vector<128x64xf32>
    %96 = arith.mulf %94, %95 : vector<128x64xf32>
    %97 = vector.broadcast %77 : vector<1x64xf32> to vector<128x64xf32>
    %98 = arith.addf %96, %97 : vector<128x64xf32>
    %cst_64 = arith.constant 0.000000e+00 : f32
    %99 = vector.broadcast %cst_64 : f32 to vector<128x64xf32>
    %100 = arith.cmpf oge, %98, %99 : vector<128x64xf32>
    %cst_65 = arith.constant 2.000000e-01 : f32
    %101 = vector.broadcast %cst_65 : f32 to vector<128x64xf32>
    %102 = arith.mulf %101, %98 : vector<128x64xf32>
    %103 = arith.select %100, %98, %102 : vector<128x64xi1>, vector<128x64xf32>
    %104 = arith.truncf %103 : vector<128x64xf32> to vector<128x64xbf16>
    %c1_66 = arith.constant 1 : index
    %c0_67 = arith.constant 0 : index
    %c0_68 = arith.constant 0 : index
    %105 = vector.load %arg4[%c1_66, %c0_67, %c0_68] : memref<4x128x64xbf16, #tpu.memory_space<vmem>>, vector<1x128x64xbf16>
    %106 = vector.shape_cast %105 : vector<1x128x64xbf16> to vector<128x64xbf16>
    %107 = vector.shape_cast %104 : vector<128x64xbf16> to vector<1x128x64xbf16>
    tpu.vector_store %arg4[%c1_66, %c0_67, %c0_68], %107 {strides = array<i32>} : memref<4x128x64xbf16, #tpu.memory_space<vmem>>, vector<1x128x64xbf16>,
    %c2_69 = arith.constant 2 : index
    %c0_70 = arith.constant 0 : index
    %c0_71 = arith.constant 0 : index
    %108 = vector.load %arg5[%c2_69, %c0_70, %c0_71] : memref<4x128x64xf32, #tpu.memory_space<vmem>>, vector<1x128x64xf32>
    %109 = vector.shape_cast %108 : vector<1x128x64xf32> to vector<128x64xf32>
    %110 = vector.broadcast %74 : vector<1x64xf32> to vector<128x64xf32>
    %111 = arith.mulf %109, %110 : vector<128x64xf32>
    %112 = vector.broadcast %77 : vector<1x64xf32> to vector<128x64xf32>
    %113 = arith.addf %111, %112 : vector<128x64xf32>
    %cst_72 = arith.constant 0.000000e+00 : f32
    %114 = vector.broadcast %cst_72 : f32 to vector<128x64xf32>
    %115 = arith.cmpf oge, %113, %114 : vector<128x64xf32>
    %cst_73 = arith.constant 2.000000e-01 : f32
    %116 = vector.broadcast %cst_73 : f32 to vector<128x64xf32>
    %117 = arith.mulf %116, %113 : vector<128x64xf32>
    %118 = arith.select %115, %113, %117 : vector<128x64xi1>, vector<128x64xf32>
    %119 = arith.truncf %118 : vector<128x64xf32> to vector<128x64xbf16>
    %c2_74 = arith.constant 2 : index
    %c0_75 = arith.constant 0 : index
    %c0_76 = arith.constant 0 : index
    %120 = vector.load %arg4[%c2_74, %c0_75, %c0_76] : memref<4x128x64xbf16, #tpu.memory_space<vmem>>, vector<1x128x64xbf16>
    %121 = vector.shape_cast %120 : vector<1x128x64xbf16> to vector<128x64xbf16>
    %122 = vector.shape_cast %119 : vector<128x64xbf16> to vector<1x128x64xbf16>
    tpu.vector_store %arg4[%c2_74, %c0_75, %c0_76], %122 {strides = array<i32>} : memref<4x128x64xbf16, #tpu.memory_space<vmem>>, vector<1x128x64xbf16>,
    %c3_77 = arith.constant 3 : index
    %c0_78 = arith.constant 0 : index
    %c0_79 = arith.constant 0 : index
    %123 = vector.load %arg5[%c3_77, %c0_78, %c0_79] : memref<4x128x64xf32, #tpu.memory_space<vmem>>, vector<1x128x64xf32>
    %124 = vector.shape_cast %123 : vector<1x128x64xf32> to vector<128x64xf32>
    %125 = vector.broadcast %74 : vector<1x64xf32> to vector<128x64xf32>
    %126 = arith.mulf %124, %125 : vector<128x64xf32>
    %127 = vector.broadcast %77 : vector<1x64xf32> to vector<128x64xf32>
    %128 = arith.addf %126, %127 : vector<128x64xf32>
    %cst_80 = arith.constant 0.000000e+00 : f32
    %129 = vector.broadcast %cst_80 : f32 to vector<128x64xf32>
    %130 = arith.cmpf oge, %128, %129 : vector<128x64xf32>
    %cst_81 = arith.constant 2.000000e-01 : f32
    %131 = vector.broadcast %cst_81 : f32 to vector<128x64xf32>
    %132 = arith.mulf %131, %128 : vector<128x64xf32>
    %133 = arith.select %130, %128, %132 : vector<128x64xi1>, vector<128x64xf32>
    %134 = arith.truncf %133 : vector<128x64xf32> to vector<128x64xbf16>
    %c3_82 = arith.constant 3 : index
    %c0_83 = arith.constant 0 : index
    %c0_84 = arith.constant 0 : index
    %135 = vector.load %arg4[%c3_82, %c0_83, %c0_84] : memref<4x128x64xbf16, #tpu.memory_space<vmem>>, vector<1x128x64xbf16>
    %136 = vector.shape_cast %135 : vector<1x128x64xbf16> to vector<128x64xbf16>
    %137 = vector.shape_cast %134 : vector<128x64xbf16> to vector<1x128x64xbf16>
    tpu.vector_store %arg4[%c3_82, %c0_83, %c0_84], %137 {strides = array<i32>} : memref<4x128x64xbf16, #tpu.memory_space<vmem>>, vector<1x128x64xbf16>,
    return
  }
}

module attributes {stable_mosaic.version = 11 : i64} {
  func.func @_ms_tanh_kernel(%arg0: i32, %arg1: memref<4x128x256xbf16, #tpu.memory_space<vmem>>, %arg2: memref<4x256x128xbf16, #tpu.memory_space<vmem>>, %arg3: memref<4x128x128xbf16, #tpu.memory_space<vmem>>) attributes {dimension_semantics = [#tpu.dimension_semantics<parallel>], iteration_bounds = array<i64: 4>, scalar_prefetch = 0 : i64, scratch_operands = 0 : i64, tpu.core_type = #tpu.core_type<tc>, window_params = [{transform_indices = @transform_0, window_bounds = array<i64: 4, 128, 256>}, {pipeline_mode = #tpu.pipeline_mode<synchronous>, transform_indices = @transform_1, window_bounds = array<i64: 4, 256, 128>}, {transform_indices = @transform_2, window_bounds = array<i64: 4, 128, 128>}]} {
    %c0 = arith.constant 0 : index
    %c0_0 = arith.constant 0 : index
    %c0_1 = arith.constant 0 : index
    %0 = vector.load %arg1[%c0, %c0_0, %c0_1] : memref<4x128x256xbf16, #tpu.memory_space<vmem>>, vector<1x128x256xbf16>
    %1 = vector.shape_cast %0 : vector<1x128x256xbf16> to vector<128x256xbf16>
    %c0_2 = arith.constant 0 : index
    %c0_3 = arith.constant 0 : index
    %c0_4 = arith.constant 0 : index
    %2 = vector.load %arg2[%c0_2, %c0_3, %c0_4] : memref<4x256x128xbf16, #tpu.memory_space<vmem>>, vector<1x256x128xbf16>
    %3 = vector.shape_cast %2 : vector<1x256x128xbf16> to vector<256x128xbf16>
    %cst = arith.constant dense<0.000000e+00> : vector<128x128xf32>
    %4 = tpu.matmul %1, %3, %cst {dimension_numbers = #tpu.dot_dimension_numbers<[1], [0], [0], [1], [0, 0, 1, 1], [], []>} : vector<128x256xbf16>, vector<256x128xbf16>, vector<128x128xf32> -> vector<128x128xf32>
    %5 = math.tanh %4 : vector<128x128xf32>
    %6 = arith.truncf %5 : vector<128x128xf32> to vector<128x128xbf16>
    %c0_5 = arith.constant 0 : index
    %c0_6 = arith.constant 0 : index
    %c0_7 = arith.constant 0 : index
    %7 = vector.load %arg3[%c0_5, %c0_6, %c0_7] : memref<4x128x128xbf16, #tpu.memory_space<vmem>>, vector<1x128x128xbf16>
    %8 = vector.shape_cast %7 : vector<1x128x128xbf16> to vector<128x128xbf16>
    %9 = vector.shape_cast %6 : vector<128x128xbf16> to vector<1x128x128xbf16>
    tpu.vector_store %arg3[%c0_5, %c0_6, %c0_7], %9 {strides = array<i32>} : memref<4x128x128xbf16, #tpu.memory_space<vmem>>, vector<1x128x128xbf16>,
    %c1 = arith.constant 1 : index
    %c0_8 = arith.constant 0 : index
    %c0_9 = arith.constant 0 : index
    %10 = vector.load %arg1[%c1, %c0_8, %c0_9] : memref<4x128x256xbf16, #tpu.memory_space<vmem>>, vector<1x128x256xbf16>
    %11 = vector.shape_cast %10 : vector<1x128x256xbf16> to vector<128x256xbf16>
    %c1_10 = arith.constant 1 : index
    %c0_11 = arith.constant 0 : index
    %c0_12 = arith.constant 0 : index
    %12 = vector.load %arg2[%c1_10, %c0_11, %c0_12] : memref<4x256x128xbf16, #tpu.memory_space<vmem>>, vector<1x256x128xbf16>
    %13 = vector.shape_cast %12 : vector<1x256x128xbf16> to vector<256x128xbf16>
    %cst_13 = arith.constant dense<0.000000e+00> : vector<128x128xf32>
    %14 = tpu.matmul %11, %13, %cst_13 {dimension_numbers = #tpu.dot_dimension_numbers<[1], [0], [0], [1], [0, 0, 1, 1], [], []>} : vector<128x256xbf16>, vector<256x128xbf16>, vector<128x128xf32> -> vector<128x128xf32>
    %15 = math.tanh %14 : vector<128x128xf32>
    %16 = arith.truncf %15 : vector<128x128xf32> to vector<128x128xbf16>
    %c1_14 = arith.constant 1 : index
    %c0_15 = arith.constant 0 : index
    %c0_16 = arith.constant 0 : index
    %17 = vector.load %arg3[%c1_14, %c0_15, %c0_16] : memref<4x128x128xbf16, #tpu.memory_space<vmem>>, vector<1x128x128xbf16>
    %18 = vector.shape_cast %17 : vector<1x128x128xbf16> to vector<128x128xbf16>
    %19 = vector.shape_cast %16 : vector<128x128xbf16> to vector<1x128x128xbf16>
    tpu.vector_store %arg3[%c1_14, %c0_15, %c0_16], %19 {strides = array<i32>} : memref<4x128x128xbf16, #tpu.memory_space<vmem>>, vector<1x128x128xbf16>,
    %c2 = arith.constant 2 : index
    %c0_17 = arith.constant 0 : index
    %c0_18 = arith.constant 0 : index
    %20 = vector.load %arg1[%c2, %c0_17, %c0_18] : memref<4x128x256xbf16, #tpu.memory_space<vmem>>, vector<1x128x256xbf16>
    %21 = vector.shape_cast %20 : vector<1x128x256xbf16> to vector<128x256xbf16>
    %c2_19 = arith.constant 2 : index
    %c0_20 = arith.constant 0 : index
    %c0_21 = arith.constant 0 : index
    %22 = vector.load %arg2[%c2_19, %c0_20, %c0_21] : memref<4x256x128xbf16, #tpu.memory_space<vmem>>, vector<1x256x128xbf16>
    %23 = vector.shape_cast %22 : vector<1x256x128xbf16> to vector<256x128xbf16>
    %cst_22 = arith.constant dense<0.000000e+00> : vector<128x128xf32>
    %24 = tpu.matmul %21, %23, %cst_22 {dimension_numbers = #tpu.dot_dimension_numbers<[1], [0], [0], [1], [0, 0, 1, 1], [], []>} : vector<128x256xbf16>, vector<256x128xbf16>, vector<128x128xf32> -> vector<128x128xf32>
    %25 = math.tanh %24 : vector<128x128xf32>
    %26 = arith.truncf %25 : vector<128x128xf32> to vector<128x128xbf16>
    %c2_23 = arith.constant 2 : index
    %c0_24 = arith.constant 0 : index
    %c0_25 = arith.constant 0 : index
    %27 = vector.load %arg3[%c2_23, %c0_24, %c0_25] : memref<4x128x128xbf16, #tpu.memory_space<vmem>>, vector<1x128x128xbf16>
    %28 = vector.shape_cast %27 : vector<1x128x128xbf16> to vector<128x128xbf16>
    %29 = vector.shape_cast %26 : vector<128x128xbf16> to vector<1x128x128xbf16>
    tpu.vector_store %arg3[%c2_23, %c0_24, %c0_25], %29 {strides = array<i32>} : memref<4x128x128xbf16, #tpu.memory_space<vmem>>, vector<1x128x128xbf16>,
    %c3 = arith.constant 3 : index
    %c0_26 = arith.constant 0 : index
    %c0_27 = arith.constant 0 : index
    %30 = vector.load %arg1[%c3, %c0_26, %c0_27] : memref<4x128x256xbf16, #tpu.memory_space<vmem>>, vector<1x128x256xbf16>
    %31 = vector.shape_cast %30 : vector<1x128x256xbf16> to vector<128x256xbf16>
    %c3_28 = arith.constant 3 : index
    %c0_29 = arith.constant 0 : index
    %c0_30 = arith.constant 0 : index
    %32 = vector.load %arg2[%c3_28, %c0_29, %c0_30] : memref<4x256x128xbf16, #tpu.memory_space<vmem>>, vector<1x256x128xbf16>
    %33 = vector.shape_cast %32 : vector<1x256x128xbf16> to vector<256x128xbf16>
    %cst_31 = arith.constant dense<0.000000e+00> : vector<128x128xf32>
    %34 = tpu.matmul %31, %33, %cst_31 {dimension_numbers = #tpu.dot_dimension_numbers<[1], [0], [0], [1], [0, 0, 1, 1], [], []>} : vector<128x256xbf16>, vector<256x128xbf16>, vector<128x128xf32> -> vector<128x128xf32>
    %35 = math.tanh %34 : vector<128x128xf32>
    %36 = arith.truncf %35 : vector<128x128xf32> to vector<128x128xbf16>
    %c3_32 = arith.constant 3 : index
    %c0_33 = arith.constant 0 : index
    %c0_34 = arith.constant 0 : index
    %37 = vector.load %arg3[%c3_32, %c0_33, %c0_34] : memref<4x128x128xbf16, #tpu.memory_space<vmem>>, vector<1x128x128xbf16>
    %38 = vector.shape_cast %37 : vector<1x128x128xbf16> to vector<128x128xbf16>
    %39 = vector.shape_cast %36 : vector<128x128xbf16> to vector<1x128x128xbf16>
    tpu.vector_store %arg3[%c3_32, %c0_33, %c0_34], %39 {strides = array<i32>} : memref<4x128x128xbf16, #tpu.memory_space<vmem>>, vector<1x128x128xbf16>,
    return
  }
  func.func @transform_0(%arg0: i32) -> (i32, i32, i32) {
    %c0_i32 = arith.constant 0 : i32
    %c0_i32_0 = arith.constant 0 : i32
    %c0_i32_1 = arith.constant 0 : i32
    return %c0_i32, %arg0, %c0_i32_0 : i32, i32, i32
  }
  func.func @transform_1(%arg0: i32) -> (i32, i32, i32) {
    %c0_i32 = arith.constant 0 : i32
    %c0_i32_0 = arith.constant 0 : i32
    %c0_i32_1 = arith.constant 0 : i32
    %c0_i32_2 = arith.constant 0 : i32
    return %c0_i32, %c0_i32_0, %c0_i32_1 : i32, i32, i32
  }
  func.func @transform_2(%arg0: i32) -> (i32, i32, i32) {
    %c0_i32 = arith.constant 0 : i32
    %c0_i32_0 = arith.constant 0 : i32
    %c0_i32_1 = arith.constant 0 : i32
    return %c0_i32, %arg0, %c0_i32_0 : i32, i32, i32
  }
}

</mosaic_0001>

<bundles_post_ra>
// kernel: _lambda_.4
= control target key start
LH: loop header
LB: loop body
LE: loop exit
PB: predicated region body
PF: predicated region fallthrough
CT: control target
= control target key end

     0   :  { %9 = vsyncpa [#allocation3], 0  ;;  %s3284_s0 = inlined_call_operand.vmem [shape: bf16[2,42], index: 0, kind: input, shape index: {}]   ;;  %s3285_s1 = inlined_call_operand.hbm [shape: bf16[42,4096], index: 1, kind: input, shape index: {}]   ;;  %s3286_s2 = inlined_call_operand.hbm [shape: f32[1,256], index: 2, kind: input, shape index: {}]   ;;  %s3287_s3 = inlined_call_operand.hbm [shape: f32[1,256], index: 3, kind: input, shape index: {}]   ;;  %s3288_s4 = inlined_call_operand.vmem [shape: bf16[2,4096], index: 4, kind: output, shape index: {}]  }
   0x1   :  { %10 = vsyncpa [#allocation5], 0  ;;  %s2718_s15 = smov [#allocation4]   ;;  %s2719_s17 = smov [#allocation2]  }
   0x2   :  { %s31_s16 = sshll.u32 %s2718_s15, 4  ;;  %s18_s18 = sshll.u32 %s2719_s17, 4  ;;  %s32_s16 = int_to_ptr.vmem [resolvable:$true] %s31_s16  ;;  %s19_s18 = int_to_ptr.vmem [resolvable:$true] %s18_s18 }
   0x3   :  { %s2662_s19 = scalar_lea.vmem %s32_s16, 32  ;;  %p2667_p1 = scmp.lt.s32.totalorder %s32_s16, %s32_s16 }
   0x4   :  { %p2663_p0 = scmp.ne.s32.totalorder %s32_s16, %s2662_s19  ;;  %p2668_p2 = scmp.lt.s32.totalorder %s2662_s19, %s2662_s19 }
   0x6   :  { %p2669_p3 = por %p2668_p2, %p2667_p1 }
   0x8   :  { %p2670_p4 = pnand %p2669_p3, %p2663_p0 }
   0xa   :  { %2673 = shalt.err (!%p2670_p4)
}
   0xb   :  { %34 = dma.hbm_to_vmem [thread:$0]  %s3286_s2, 32, %s32_s16, [#allocation5]  }
   0xc   :  { %s2682_s22 = scalar_lea.vmem %s19_s18, 12288  ;;  %p2687_p6 = scmp.lt.s32.totalorder %s19_s18, %s19_s18 }
   0xd   :  { %p2683_p5 = scmp.ne.s32.totalorder %s19_s18, %s2682_s22  ;;  %p2688_p7 = scmp.lt.s32.totalorder %s2682_s22, %s2682_s22 }
   0xf   :  { %p2689_p8 = por %p2688_p7, %p2687_p6 }
  0x11   :  { %p2690_p9 = pnand %p2689_p8, %p2683_p5 }
  0x13   :  { %2693 = shalt.err (!%p2690_p9)
}
  0x14   :  { %s2720_s23 = smov 2048   ;;  %s2721_s24 = smov 128  }
  0x15   :  { %24 = dma.hbm_to_vmem [thread:$0]  %s3285_s1, 12288, %s19_s18, [#allocation3], %s2720_s23, %s2720_s23, %s2721_s24  }
  0x16   :  { %s2722_s27 = smov [#allocation6]  }
  0x17   :  { %s41_s28 = sshll.u32 %s2722_s27, 4  ;;  %s42_s28 = int_to_ptr.vmem [resolvable:$true] %s41_s28 }
  0x18   :  { %s2702_s29 = scalar_lea.vmem %s42_s28, 32  ;;  %p2707_p11 = scmp.lt.s32.totalorder %s42_s28, %s42_s28 }
  0x19   :  { %p2703_p10 = scmp.ne.s32.totalorder %s42_s28, %s2702_s29  ;;  %p2708_p12 = scmp.lt.s32.totalorder %s2702_s29, %s2702_s29 }
  0x1b   :  { %p2709_p13 = por %p2708_p12, %p2707_p11 }
  0x1d   :  { %p2710_p0 = pnand %p2709_p13, %p2703_p10 }
  0x1f   :  { %2713 = shalt.err (!%p2710_p0)
}
  0x20   :  { %44 = dma.hbm_to_vmem [thread:$0]  %s3287_s3, 32, %s42_s28, [#allocation5]  }
  0x21   :  { %2714 = dma.done.wait [#allocation3], 12288  }
  0x22   :  { %2715 = vsyncadd [#allocation3], 4294955008 }
  0x23   :  { %2716 = dma.done.wait [#allocation5], 64  }
  0x24   :  { %2717 = vsyncadd [#allocation5], 4294967232  ;;  %v2723_v0 = vmov 0   ;;  %v120_v1 = vld [vmem:[#allocation2 + $0x200] sm:$0xff]  ;;  %vm604_vm0 = vcmask 1044480   ;;  %v121_v3 = vld [vmem:[#allocation2 + $0x208] sm:$0xff] }
  0x25   :  { %733 = vmatprep.mubr.bf16.mxu0 %v2723_v0  ;;  %774 = vmatprep.mubr.bf16.mxu1 %v2723_v0  ;;  %v136_v2 = vld [vmem:[#allocation2 + $0x280] sm:$0x11]  ;;  %v137_v5 = vld [vmem:[#allocation2 + $0x288] sm:$0x11]  ;;  %v122_v25 = vld [vmem:[#allocation2 + $0x210] sm:$0xff]  ;;  %vm600_vm1 = vcmask 343040  }
  0x26   :  { %v2548_v4 = vcombine.high %v120_v1, %v136_v2  ;;  %v2547_v6 = vcombine.low %v120_v1, %v136_v2  ;;  %v88_v7 = vld [vmem:[#allocation2 + $0x100] sm:$0xff]  ;;  %v2550_v9 = vcombine.high %v121_v3, %v137_v5  ;;  %v2549_v10 = vcombine.low %v121_v3, %v137_v5  ;;  %v89_v12 = vld [vmem:[#allocation2 + $0x108] sm:$0xff]  ;;  %v138_v26 = vld [vmem:[#allocation2 + $0x290] sm:$0x11] }
  0x27   :  { %v104_v8 = vld [vmem:[#allocation2 + $0x180] sm:$0xff]  ;;  %v105_v13 = vld [vmem:[#allocation2 + $0x188] sm:$0xff]  ;;  %v123_v27 = vld [vmem:[#allocation2 + $0x218] sm:$0xff]  ;;  %v2552_v31 = vcombine.high %v122_v25, %v138_v26  ;;  %v2551_v32 = vcombine.low %v122_v25, %v138_v26  ;;  %vm1357_vm2 = vcmask 1041408  }
  0x28   :  { %v2516_v11 = vcombine.high %v88_v7, %v104_v8  ;;  %v56_v14 = vld [vmem:[#allocation2] sm:$0xff]  ;;  %2579 = vmatprep.subr.msk.bf16.mxu0 %vm604_vm0, %v2548_v4  ;;  %v606_v15 = vsel %vm604_vm0, %v2547_v6, 0  ;;  %v2518_v16 = vcombine.high %v89_v12, %v105_v13  ;;  %v57_v18 = vld [vmem:[#allocation2 + $0x8] sm:$0xff]  ;;  %2581 = vmatprep.subr.msk.bf16.mxu1 %vm604_vm0, %v2550_v9  ;;  %v612_v20 = vsel %vm604_vm0, %v2549_v10, 0  ;;  %v139_v28 = vld [vmem:[#allocation2 + $0x298] sm:$0x11] }
  0x29   :  { %v72_v17 = vld [vmem:[#allocation2 + $0x80] sm:$0xff]  ;;  %v73_v19 = vld [vmem:[#allocation2 + $0x88] sm:$0xff]  ;;  %712 = vmatpush1.bf16.msra.mxu0 %v606_v15  ;;  %v2515_v21 = vcombine.low %v88_v7, %v104_v8  ;;  %753 = vmatpush1.bf16.msra.mxu1 %v612_v20  ;;  %v2517_v22 = vcombine.low %v89_v12, %v105_v13  ;;  %v2554_v33 = vcombine.high %v123_v27, %v139_v28  ;;  %v90_v35 = vld [vmem:[#allocation2 + $0x110] sm:$0xff]  ;;  %v618_v40 = vsel %vm604_vm0, %v2551_v32, 0 }
  0x2a   :  { %713 = vmatprep.subr.bf16.mxu0 %v2516_v11  ;;  %v2484_v23 = vcombine.high %v56_v14, %v72_v17  ;;  %754 = vmatprep.subr.bf16.mxu1 %v2518_v16  ;;  %v2486_v24 = vcombine.high %v57_v18, %v73_v19  ;;  %v2483_v29 = vcombine.low %v56_v14, %v72_v17  ;;  %v106_v36 = vld [vmem:[#allocation2 + $0x190] sm:$0xff]  ;;  %v91_v37 = vld [vmem:[#allocation2 + $0x118] sm:$0xff]  ;;  %v2768_v39 = vld [vmem:[%s3284_s0] sm:$0x1] }
  0x2b   :  { %v2485_v30 = vcombine.low %v57_v18, %v73_v19  ;;  %v2553_v34 = vcombine.low %v123_v27, %v139_v28  ;;  %v107_v38 = vld [vmem:[#allocation2 + $0x198] sm:$0xff]  ;;  %v2520_v41 = vcombine.high %v90_v35, %v106_v36  ;;  %v58_v44 = vld [vmem:[#allocation2 + $0x10] sm:$0xff]  ;;  %v2519_v48 = vcombine.low %v90_v35, %v106_v36  ;;  %v124_v52 = vld [vmem:[#allocation2 + $0x220] sm:$0xff] }
  0x2c   :  { %v2522_v43 = vcombine.high %v91_v37, %v107_v38  ;;  %v74_v45 = vld [vmem:[#allocation2 + $0x90] sm:$0xff]  ;;  %v59_v46 = vld [vmem:[#allocation2 + $0x18] sm:$0xff]  ;;  %v2521_v49 = vcombine.low %v91_v37, %v107_v38  ;;  %v140_v53 = vld [vmem:[#allocation2 + $0x2a0] sm:$0x11] }
  0x2d   :  { %714 = vmatpush1.bf16.msra.mxu0 %v2515_v21  ;;  %755 = vmatpush1.bf16.msra.mxu1 %v2517_v22  ;;  %v624_v42 = vsel %vm604_vm0, %v2553_v34, 0  ;;  %v75_v47 = vld [vmem:[#allocation2 + $0x98] sm:$0xff]  ;;  %v2488_v50 = vcombine.high %v58_v44, %v74_v45  ;;  %v125_v54 = vld [vmem:[#allocation2 + $0x228] sm:$0xff]  ;;  %v2487_v56 = vcombine.low %v58_v44, %v74_v45  ;;  %v2556_v58 = vcombine.high %v124_v52, %v140_v53  ;;  %v92_v62 = vld [vmem:[#allocation2 + $0x120] sm:$0xff] }
  0x2e   :  { %715 = vmatprep.subr.bf16.mxu0 %v2484_v23  ;;  %756 = vmatprep.subr.bf16.mxu1 %v2486_v24  ;;  %v2490_v51 = vcombine.high %v59_v46, %v75_v47  ;;  %v141_v55 = vld [vmem:[#allocation2 + $0x2a8] sm:$0x11]  ;;  %v2489_v57 = vcombine.low %v59_v46, %v75_v47  ;;  %v2555_v59 = vcombine.low %v124_v52, %v140_v53  ;;  %v108_v63 = vld [vmem:[#allocation2 + $0x1a0] sm:$0xff]  ;;  %v126_v15 = vld [vmem:[#allocation2 + $0x230] sm:$0xff] }
  0x2f   :  { %v2558_v60 = vcombine.high %v125_v54, %v141_v55  ;;  %v2557_v61 = vcombine.low %v125_v54, %v141_v55  ;;  %v93_v1 = vld [vmem:[#allocation2 + $0x128] sm:$0xff]  ;;  %v2524_v4 = vcombine.high %v92_v62, %v108_v63  ;;  %v60_v7 = vld [vmem:[#allocation2 + $0x20] sm:$0xff]  ;;  %v2523_v11 = vcombine.low %v92_v62, %v108_v63  ;;  %v142_v16 = vld [vmem:[#allocation2 + $0x2b0] sm:$0x11] }
  0x30   :  { %v109_v2 = vld [vmem:[#allocation2 + $0x1a8] sm:$0xff]  ;;  %v630_v3 = vsel %vm604_vm0, %v2555_v59, 0  ;;  %v76_v8 = vld [vmem:[#allocation2 + $0xa0] sm:$0xff]  ;;  %v127_v17 = vld [vmem:[#allocation2 + $0x238] sm:$0xff]  ;;  %v2560_v21 = vcombine.high %v126_v15, %v142_v16  ;;  %v2559_v22 = vcombine.low %v126_v15, %v142_v16 }
  0x31   :  { %716 = vmatpush1.bf16.msra.mxu0 %v2483_v29  ;;  %757 = vmatpush1.bf16.msra.mxu1 %v2485_v30  ;;  %v636_v5 = vsel %vm604_vm0, %v2557_v61, 0  ;;  %v2526_v6 = vcombine.high %v93_v1, %v109_v2  ;;  %v61_v9 = vld [vmem:[#allocation2 + $0x28] sm:$0xff]  ;;  %v2525_v12 = vcombine.low %v93_v1, %v109_v2  ;;  %v2492_v13 = vcombine.high %v60_v7, %v76_v8  ;;  %v143_v18 = vld [vmem:[#allocation2 + $0x2b8] sm:$0x11]  ;;  %v94_v25 = vld [vmem:[#allocation2 + $0x130] sm:$0xff] }
  0x32   :  { %2583 = vmatprep.subr.msk.bf16.mxu0 %vm604_vm0, %v2552_v31  ;;  %2585 = vmatprep.subr.msk.bf16.mxu1 %vm604_vm0, %v2554_v33  ;;  %v77_v10 = vld [vmem:[#allocation2 + $0xa8] sm:$0xff]  ;;  %v2491_v19 = vcombine.low %v60_v7, %v76_v8  ;;  %v2562_v23 = vcombine.high %v127_v17, %v143_v18  ;;  %v2561_v24 = vcombine.low %v127_v17, %v143_v18  ;;  %v110_v26 = vld [vmem:[#allocation2 + $0x1b0] sm:$0xff]  ;;  %v95_v27 = vld [vmem:[#allocation2 + $0x138] sm:$0xff]  ;;  %v642_v29 = vsel %vm604_vm0, %v2559_v22, 0 }
  0x33   :  { %v2494_v14 = vcombine.high %v61_v9, %v77_v10  ;;  %v2493_v20 = vcombine.low %v61_v9, %v77_v10  ;;  %v111_v28 = vld [vmem:[#allocation2 + $0x1b8] sm:$0xff]  ;;  %v2528_v30 = vcombine.high %v94_v25, %v110_v26  ;;  %v62_v33 = vld [vmem:[#allocation2 + $0x30] sm:$0xff]  ;;  %v2527_v37 = vcombine.low %v94_v25, %v110_v26  ;;  %v129_v44 = vld [vmem:[#allocation2 + $0x248] sm:$0xff] }
  0x34   :  { %2580 = vmatmul.mubr.msk.bf16.vlgmr.msra.gmra.mxu0 %vm600_vm1, %v2768_v39  ;;  %2582 = vmatmul.mubr.msk.bf16.vlgmr.msra.gmra.mxu1 %vm600_vm1, %v2768_v39  ;;  %v648_v31 = vsel %vm604_vm0, %v2561_v24, 0  ;;  %v2530_v32 = vcombine.high %v95_v27, %v111_v28  ;;  %v78_v34 = vld [vmem:[#allocation2 + $0xb0] sm:$0xff]  ;;  %v63_v35 = vld [vmem:[#allocation2 + $0x38] sm:$0xff]  ;;  %v2529_v38 = vcombine.low %v95_v27, %v111_v28  ;;  %v145_v45 = vld [vmem:[#allocation2 + $0x2c8] sm:$0x11] }
  0x35   :  { %794 = vmatpush1.bf16.msra.mxu0 %v618_v40  ;;  %835 = vmatpush1.bf16.msra.mxu1 %v624_v42  ;;  %v79_v36 = vld [vmem:[#allocation2 + $0xb8] sm:$0xff]  ;;  %v2496_v40 = vcombine.high %v62_v33, %v78_v34  ;;  %v128_v42 = vld [vmem:[#allocation2 + $0x240] sm:$0xff]  ;;  %v2495_v46 = vcombine.low %v62_v33, %v78_v34  ;;  %v97_v54 = vld [vmem:[#allocation2 + $0x148] sm:$0xff] }
  0x36   :  { %795 = vmatprep.subr.bf16.mxu0 %v2520_v41  ;;  %836 = vmatprep.subr.bf16.mxu1 %v2522_v43  ;;  %v2498_v41 = vcombine.high %v63_v35, %v79_v36  ;;  %v144_v43 = vld [vmem:[#allocation2 + $0x2c0] sm:$0x11]  ;;  %v2497_v47 = vcombine.low %v63_v35, %v79_v36  ;;  %v113_v55 = vld [vmem:[#allocation2 + $0x1c8] sm:$0xff]  ;;  %v131_v7 = vld [vmem:[#allocation2 + $0x258] sm:$0xff] }
  0x37   :  { %815 = vmatprep.mubr.bf16.mxu0 %v2723_v0  ;;  %856 = vmatprep.mubr.bf16.mxu1 %v2723_v0  ;;  %v96_v52 = vld [vmem:[#allocation2 + $0x140] sm:$0xff]  ;;  %v2534_v59 = vcombine.high %v97_v54, %v113_v55  ;;  %v65_v62 = vld [vmem:[#allocation2 + $0x48] sm:$0xff]  ;;  %v2533_v2 = vcombine.low %v97_v54, %v113_v55  ;;  %v147_v8 = vld [vmem:[#allocation2 + $0x2d8] sm:$0x11] }
  0x38   :  { %v112_v53 = vld [vmem:[#allocation2 + $0x1c0] sm:$0xff]  ;;  %v81_v63 = vld [vmem:[#allocation2 + $0xc8] sm:$0xff]  ;;  %v98_v15 = vld [vmem:[#allocation2 + $0x150] sm:$0xff] }
  0x39   :  { %796 = vmatpush1.bf16.msra.mxu0 %v2519_v48  ;;  %837 = vmatpush1.bf16.msra.mxu1 %v2521_v49  ;;  %v2564_v48 = vcombine.high %v128_v42, %v144_v43  ;;  %v2563_v49 = vcombine.low %v128_v42, %v144_v43  ;;  %v80_v61 = vld [vmem:[#allocation2 + $0xc0] sm:$0xff]  ;;  %v2531_v1 = vcombine.low %v96_v52, %v112_v53  ;;  %v114_v16 = vld [vmem:[#allocation2 + $0x1d0] sm:$0xff]  ;;  %v99_v17 = vld [vmem:[#allocation2 + $0x158] sm:$0xff] }
  0x3a   :  { %797 = vmatprep.subr.bf16.mxu0 %v2488_v50  ;;  %838 = vmatprep.subr.bf16.mxu1 %v2490_v51  ;;  %v2566_v50 = vcombine.high %v129_v44, %v145_v45  ;;  %v2565_v51 = vcombine.low %v129_v44, %v145_v45  ;;  %v2501_v10 = vcombine.low %v65_v62, %v81_v63  ;;  %v115_v18 = vld [vmem:[#allocation2 + $0x1d8] sm:$0xff]  ;;  %v82_v24 = vld [vmem:[#allocation2 + $0xd0] sm:$0xff]  ;;  %v133_v33 = vld [vmem:[#allocation2 + $0x268] sm:$0xff] }
  0x3b   :  { %v2538_v22 = vcombine.high %v99_v17, %v115_v18  ;;  %v67_v25 = vld [vmem:[#allocation2 + $0x58] sm:$0xff]  ;;  %v2535_v27 = vcombine.low %v98_v15, %v114_v16  ;;  %v2537_v28 = vcombine.low %v99_v17, %v115_v18  ;;  %v149_v34 = vld [vmem:[#allocation2 + $0x2e8] sm:$0x11]  ;;  %v100_v42 = vld [vmem:[#allocation2 + $0x160] sm:$0xff] }
  0x3c   :  { %v83_v26 = vld [vmem:[#allocation2 + $0xd8] sm:$0xff]  ;;  %v116_v43 = vld [vmem:[#allocation2 + $0x1e0] sm:$0xff]  ;;  %v101_v44 = vld [vmem:[#allocation2 + $0x168] sm:$0xff] }
  0x3d   :  { %798 = vmatpush1.bf16.msra.mxu0 %v2487_v56  ;;  %839 = vmatpush1.bf16.msra.mxu1 %v2489_v57  ;;  %v654_v56 = vsel %vm604_vm0, %v2563_v49, 0  ;;  %v2532_v57 = vcombine.high %v96_v52, %v112_v53  ;;  %v2505_v36 = vcombine.low %v67_v25, %v83_v26  ;;  %v117_v45 = vld [vmem:[#allocation2 + $0x1e8] sm:$0xff]  ;;  %v2539_v54 = vcombine.low %v100_v42, %v116_v43 }
  0x3e   :  { %2587 = vmatprep.subr.msk.bf16.mxu0 %vm604_vm0, %v2556_v58  ;;  %2589 = vmatprep.subr.msk.bf16.mxu1 %vm604_vm0, %v2558_v60  ;;  %v660_v58 = vsel %vm604_vm0, %v2565_v51, 0  ;;  %v64_v60 = vld [vmem:[#allocation2 + $0x40] sm:$0xff]  ;;  %v2542_v49 = vcombine.high %v101_v44, %v117_v45  ;;  %v69_v52 = vld [vmem:[#allocation2 + $0x68] sm:$0xff]  ;;  %v2541_v55 = vcombine.low %v101_v44, %v117_v45 }
  0x3f   :  { %v2499_v9 = vcombine.low %v64_v60, %v80_v61  ;;  %v84_v51 = vld [vmem:[#allocation2 + $0xe0] sm:$0xff]  ;;  %v85_v53 = vld [vmem:[#allocation2 + $0xe8] sm:$0xff] }
  0x40   :  { %2584 = vmatmul.mubr.msk.bf16.vlgmr.msra.gmra.mxu0 %vm600_vm1, %v2768_v39  ;;  %2586 = vmatmul.mubr.msk.bf16.vlgmr.msra.gmra.mxu1 %vm600_vm1, %v2768_v39 }
  0x41   :  { %876 = vmatpush1.bf16.msra.mxu0 %v630_v3  ;;  %917 = vmatpush1.bf16.msra.mxu1 %v636_v5  ;;  %v2500_v3 = vcombine.high %v64_v60, %v80_v61  ;;  %v130_v5 = vld [vmem:[#allocation2 + $0x250] sm:$0xff]  ;;  %v135_v60 = vld [vmem:[#allocation2 + $0x278] sm:$0xff] }
  0x42   :  { %877 = vmatprep.subr.bf16.mxu0 %v2524_v4  ;;  %918 = vmatprep.subr.bf16.mxu1 %v2526_v6  ;;  %v2502_v4 = vcombine.high %v65_v62, %v81_v63  ;;  %v146_v6 = vld [vmem:[#allocation2 + $0x2d0] sm:$0x11]  ;;  %v151_v61 = vld [vmem:[#allocation2 + $0x2f8] sm:$0x11]  ;;  %v2509_v63 = vcombine.low %v69_v52, %v85_v53 }
  0x43   :  { %897 = vmatprep.mubr.bf16.mxu0 %v2723_v0  ;;  %938 = vmatprep.mubr.bf16.mxu1 %v2723_v0 }
  0x45   :  { %878 = vmatpush1.bf16.msra.mxu0 %v2523_v11  ;;  %919 = vmatpush1.bf16.msra.mxu1 %v2525_v12  ;;  %v2568_v11 = vcombine.high %v130_v5, %v146_v6  ;;  %v2567_v12 = vcombine.low %v130_v5, %v146_v6  ;;  %v102_v5 = vld [vmem:[#allocation2 + $0x170] sm:$0xff] }
  0x46   :  { %879 = vmatprep.subr.bf16.mxu0 %v2492_v13  ;;  %920 = vmatprep.subr.bf16.mxu1 %v2494_v14  ;;  %v2570_v13 = vcombine.high %v131_v7, %v147_v8  ;;  %v2569_v14 = vcombine.low %v131_v7, %v147_v8  ;;  %v118_v6 = vld [vmem:[#allocation2 + $0x1f0] sm:$0xff]  ;;  %v103_v7 = vld [vmem:[#allocation2 + $0x178] sm:$0xff] }
  0x47   :  { %v119_v8 = vld [vmem:[#allocation2 + $0x1f8] sm:$0xff]  ;;  %v2543_v17 = vcombine.low %v102_v5, %v118_v6 }
  0x48   :  { %v2545_v18 = vcombine.low %v103_v7, %v119_v8 }
  0x49   :  { %880 = vmatpush1.bf16.msra.mxu0 %v2491_v19  ;;  %921 = vmatpush1.bf16.msra.mxu1 %v2493_v20  ;;  %v666_v19 = vsel %vm604_vm0, %v2567_v12, 0  ;;  %v2536_v20 = vcombine.high %v98_v15, %v114_v16  ;;  %v2546_v12 = vcombine.high %v103_v7, %v119_v8  ;;  %v71_v15 = vld [vmem:[#allocation2 + $0x78] sm:$0xff] }
  0x4a   :  { %2591 = vmatprep.subr.msk.bf16.mxu0 %vm604_vm0, %v2560_v21  ;;  %2593 = vmatprep.subr.msk.bf16.mxu1 %vm604_vm0, %v2562_v23  ;;  %v672_v21 = vsel %vm604_vm0, %v2569_v14, 0  ;;  %v66_v23 = vld [vmem:[#allocation2 + $0x50] sm:$0xff]  ;;  %v87_v16 = vld [vmem:[#allocation2 + $0xf8] sm:$0xff] }
  0x4b   :  { %v2503_v35 = vcombine.low %v66_v23, %v82_v24  ;;  %v86_v14 = vld [vmem:[#allocation2 + $0xf0] sm:$0xff] }
  0x4c   :  { %2588 = vmatmul.mubr.msk.bf16.vlgmr.msra.gmra.mxu0 %vm600_vm1, %v2768_v39  ;;  %2590 = vmatmul.mubr.msk.bf16.vlgmr.msra.gmra.mxu1 %vm600_vm1, %v2768_v39 }
  0x4d   :  { %958 = vmatpush1.bf16.msra.mxu0 %v642_v29  ;;  %999 = vmatpush1.bf16.msra.mxu1 %v648_v31  ;;  %v2504_v29 = vcombine.high %v66_v23, %v82_v24  ;;  %v132_v31 = vld [vmem:[#allocation2 + $0x260] sm:$0xff] }
  0x4e   :  { %959 = vmatprep.subr.bf16.mxu0 %v2528_v30  ;;  %1000 = vmatprep.subr.bf16.mxu1 %v2530_v32  ;;  %v2506_v30 = vcombine.high %v67_v25, %v83_v26  ;;  %v148_v32 = vld [vmem:[#allocation2 + $0x2e0] sm:$0x11] }
  0x4f   :  { %979 = vmatprep.mubr.bf16.mxu0 %v2723_v0  ;;  %1020 = vmatprep.mubr.bf16.mxu1 %v2723_v0 }
  0x51   :  { %960 = vmatpush1.bf16.msra.mxu0 %v2527_v37  ;;  %1001 = vmatpush1.bf16.msra.mxu1 %v2529_v38  ;;  %v2572_v37 = vcombine.high %v132_v31, %v148_v32  ;;  %v2571_v38 = vcombine.low %v132_v31, %v148_v32 }
  0x52   :  { %961 = vmatprep.subr.bf16.mxu0 %v2496_v40  ;;  %1002 = vmatprep.subr.bf16.mxu1 %v2498_v41  ;;  %v2574_v40 = vcombine.high %v133_v33, %v149_v34  ;;  %v2573_v41 = vcombine.low %v133_v33, %v149_v34 }
  0x55   :  { %962 = vmatpush1.bf16.msra.mxu0 %v2495_v46  ;;  %1003 = vmatpush1.bf16.msra.mxu1 %v2497_v47  ;;  %v678_v46 = vsel %vm604_vm0, %v2571_v38, 0  ;;  %v2540_v47 = vcombine.high %v100_v42, %v116_v43 }
  0x56   :  { %2595 = vmatprep.subr.msk.bf16.mxu0 %vm604_vm0, %v2564_v48  ;;  %2597 = vmatprep.subr.msk.bf16.mxu1 %vm604_vm0, %v2566_v50  ;;  %v684_v48 = vsel %vm604_vm0, %v2573_v41, 0  ;;  %v68_v50 = vld [vmem:[#allocation2 + $0x60] sm:$0xff] }
  0x57   :  { %v2507_v62 = vcombine.low %v68_v50, %v84_v51 }
  0x58   :  { %2592 = vmatmul.mubr.msk.bf16.vlgmr.msra.gmra.mxu0 %vm600_vm1, %v2768_v39  ;;  %2594 = vmatmul.mubr.msk.bf16.vlgmr.msra.gmra.mxu1 %vm600_vm1, %v2768_v39 }
  0x59   :  { %1040 = vmatpush1.bf16.msra.mxu0 %v654_v56  ;;  %1081 = vmatpush1.bf16.msra.mxu1 %v660_v58  ;;  %v2508_v56 = vcombine.high %v68_v50, %v84_v51  ;;  %v134_v58 = vld [vmem:[#allocation2 + $0x270] sm:$0xff] }
  0x5a   :  { %1041 = vmatprep.subr.bf16.mxu0 %v2532_v57  ;;  %1082 = vmatprep.subr.bf16.mxu1 %v2534_v59  ;;  %v2510_v57 = vcombine.high %v69_v52, %v85_v53  ;;  %v150_v59 = vld [vmem:[#allocation2 + $0x2f0] sm:$0x11] }
  0x5b   :  { %1061 = vmatprep.mubr.bf16.mxu0 %v2723_v0  ;;  %1102 = vmatprep.mubr.bf16.mxu1 %v2723_v0 }
  0x5d   :  { %1042 = vmatpush1.bf16.msra.mxu0 %v2531_v1  ;;  %1083 = vmatpush1.bf16.msra.mxu1 %v2533_v2  ;;  %v2576_v1 = vcombine.high %v134_v58, %v150_v59  ;;  %v2575_v2 = vcombine.low %v134_v58, %v150_v59 }
  0x5e   :  { %1043 = vmatprep.subr.bf16.mxu0 %v2500_v3  ;;  %1084 = vmatprep.subr.bf16.mxu1 %v2502_v4  ;;  %v2578_v3 = vcombine.high %v135_v60, %v151_v61  ;;  %v2577_v4 = vcombine.low %v135_v60, %v151_v61 }
  0x61   :  { %1044 = vmatpush1.bf16.msra.mxu0 %v2499_v9  ;;  %1085 = vmatpush1.bf16.msra.mxu1 %v2501_v10  ;;  %v690_v9 = vsel %vm604_vm0, %v2575_v2, 0  ;;  %v2544_v10 = vcombine.high %v102_v5, %v118_v6 }
  0x62   :  { %2599 = vmatprep.subr.msk.bf16.mxu0 %vm604_vm0, %v2568_v11  ;;  %2601 = vmatprep.subr.msk.bf16.mxu1 %vm604_vm0, %v2570_v13  ;;  %v696_v11 = vsel %vm604_vm0, %v2577_v4, 0  ;;  %v70_v13 = vld [vmem:[#allocation2 + $0x70] sm:$0xff] }
  0x64   :  { %2596 = vmatmul.mubr.msk.bf16.vlgmr.msra.gmra.mxu0 %vm600_vm1, %v2768_v39  ;;  %2598 = vmatmul.mubr.msk.bf16.vlgmr.msra.gmra.mxu1 %vm600_vm1, %v2768_v39 }
  0x65   :  { %1122 = vmatpush1.bf16.msra.mxu0 %v666_v19  ;;  %1163 = vmatpush1.bf16.msra.mxu1 %v672_v21  ;;  %v2512_v19 = vcombine.high %v70_v13, %v86_v14  ;;  %v2511_v21 = vcombine.low %v70_v13, %v86_v14 }
  0x66   :  { %1123 = vmatprep.subr.bf16.mxu0 %v2536_v20  ;;  %1164 = vmatprep.subr.bf16.mxu1 %v2538_v22  ;;  %v2514_v20 = vcombine.high %v71_v15, %v87_v16  ;;  %v2513_v22 = vcombine.low %v71_v15, %v87_v16 }
  0x67   :  { %1143 = vmatprep.mubr.bf16.mxu0 %v2723_v0  ;;  %1184 = vmatprep.mubr.bf16.mxu1 %v2723_v0 }
  0x69   :  { %1124 = vmatpush1.bf16.msra.mxu0 %v2535_v27  ;;  %1165 = vmatpush1.bf16.msra.mxu1 %v2537_v28 }
  0x6a   :  { %1125 = vmatprep.subr.bf16.mxu0 %v2504_v29  ;;  %1166 = vmatprep.subr.bf16.mxu1 %v2506_v30 }
  0x6d   :  { %1126 = vmatpush1.bf16.msra.mxu0 %v2503_v35  ;;  %1167 = vmatpush1.bf16.msra.mxu1 %v2505_v36 }
  0x6e   :  { %2603 = vmatprep.subr.msk.bf16.mxu0 %vm604_vm0, %v2572_v37  ;;  %2605 = vmatprep.subr.msk.bf16.mxu1 %vm604_vm0, %v2574_v40 }
  0x70   :  { %2600 = vmatmul.mubr.msk.bf16.vlgmr.msra.gmra.mxu0 %vm600_vm1, %v2768_v39  ;;  %2602 = vmatmul.mubr.msk.bf16.vlgmr.msra.gmra.mxu1 %vm600_vm1, %v2768_v39 }
  0x71   :  { %1204 = vmatpush1.bf16.msra.mxu0 %v678_v46  ;;  %1245 = vmatpush1.bf16.msra.mxu1 %v684_v48 }
  0x72   :  { %1205 = vmatprep.subr.bf16.mxu0 %v2540_v47  ;;  %1246 = vmatprep.subr.bf16.mxu1 %v2542_v49 }
  0x73   :  { %1225 = vmatprep.mubr.bf16.mxu0 %v2723_v0  ;;  %1266 = vmatprep.mubr.bf16.mxu1 %v2723_v0 }
  0x75   :  { %1206 = vmatpush1.bf16.msra.mxu0 %v2539_v54  ;;  %1247 = vmatpush1.bf16.msra.mxu1 %v2541_v55 }
  0x76   :  { %1207 = vmatprep.subr.bf16.mxu0 %v2508_v56  ;;  %1248 = vmatprep.subr.bf16.mxu1 %v2510_v57 }
  0x79   :  { %1208 = vmatpush1.bf16.msra.mxu0 %v2507_v62  ;;  %1249 = vmatpush1.bf16.msra.mxu1 %v2509_v63 }
  0x7a   :  { %2607 = vmatprep.subr.msk.bf16.mxu0 %vm604_vm0, %v2576_v1  ;;  %2609 = vmatprep.subr.msk.bf16.mxu1 %vm604_vm0, %v2578_v3 }
  0x7c   :  { %2604 = vmatmul.mubr.msk.bf16.vlgmr.msra.gmra.mxu0 %vm600_vm1, %v2768_v39  ;;  %2606 = vmatmul.mubr.msk.bf16.vlgmr.msra.gmra.mxu1 %vm600_vm1, %v2768_v39 }
  0x7d   :  { %1286 = vmatpush1.bf16.msra.mxu0 %v690_v9  ;;  %1327 = vmatpush1.bf16.msra.mxu1 %v696_v11 }
  0x7e   :  { %1287 = vmatprep.subr.bf16.mxu0 %v2544_v10  ;;  %1328 = vmatprep.subr.bf16.mxu1 %v2546_v12 }
  0x7f   :  { %1307 = vmatprep.mubr.bf16.mxu0 %v2723_v0  ;;  %1348 = vmatprep.mubr.bf16.mxu1 %v2723_v0 }
  0x81   :  { %1288 = vmatpush1.bf16.msra.mxu0 %v2543_v17  ;;  %1329 = vmatpush1.bf16.msra.mxu1 %v2545_v18 }
  0x82   :  { %1289 = vmatprep.subr.bf16.mxu0 %v2512_v19  ;;  %1330 = vmatprep.subr.bf16.mxu1 %v2514_v20 }
  0x85   :  { %1290 = vmatpush1.bf16.msra.mxu0 %v2511_v21  ;;  %1331 = vmatpush1.bf16.msra.mxu1 %v2513_v22 }
  0x88   :  { %2608 = vmatmul.mubr.msk.bf16.vlgmr.msra.gmra.mxu0 %vm600_vm1, %v2768_v39  ;;  %2610 = vmatmul.mubr.msk.bf16.vlgmr.msra.gmra.mxu1 %vm600_vm1, %v2768_v39 }
  0xf4   :  { %v2844_v23 = vpop.f32.mrf.mxu0  ;;  %v2850_v25 = vpop.f32.mrf.mxu1 }
  0xf5   :  { %v1358_v0 = vsel %vm1357_vm2, %v2844_v23, 0.0  ;;  %v1374_v24 = vmul.f32 %v2844_v23, %v2844_v23  ;;  %v1392_v27 = vsel %vm1357_vm2, %v2850_v25, 0.0  ;;  %v1408_v28 = vmul.f32 %v2850_v25, %v2850_v25 }
  0xf6   :  { %v1359_v26 = vrot.slane %v1358_v0, 4  ;;  %v2856_v29 = vpop.f32.mrf.mxu0  ;;  %v1393_v30 = vrot.slane %v1392_v27, 4  ;;  %v2863_v33 = vpop.f32.mrf.mxu1 }
  0xf7   :  { %v1376_v39 = vsel %vm1357_vm2, %v1374_v24, 0.0  ;;  %v1365_v31 = vsel %vm1357_vm2, %v2856_v29, 0.0  ;;  %v1375_v32 = vmul.f32 %v2856_v29, %v2856_v29  ;;  %v1410_v36 = vsel %vm1357_vm2, %v1408_v28, 0.0 }
  0xf8   :  { %v1360_v34 = vadd.f32 %v1359_v26, %v1358_v0  ;;  %v1377_v35 = vrot.slane %v1376_v39, 4  ;;  %v1366_v37 = vrot.slane %v1365_v31, 4  ;;  %v739_v38 = vpop.f32.mrf.mxu0  ;;  %v1394_v40 = vadd.f32 %v1393_v30, %v1392_v27  ;;  %v780_v44 = vpop.f32.mrf.mxu1 }
  0xf9   :  { %v1411_v41 = vrot.slane %v1410_v36, 4  ;;  %v1383_v42 = vsel %vm1357_vm2, %v1375_v32, 0.0  ;;  %v1399_v43 = vsel %vm1357_vm2, %v2863_v33, 0.0  ;;  %v1409_v53 = vmul.f32 %v2863_v33, %v2863_v33 }
  0xfa   :  { %v1361_v45 = vrot.slane %v1360_v34, 2  ;;  %v1378_v46 = vadd.f32 %v1377_v35, %v1376_v39  ;;  %v1367_v47 = vadd.f32 %v1366_v37, %v1365_v31  ;;  %v1384_v48 = vrot.slane %v1383_v42, 4  ;;  %v740_v49 = vpop.f32.mrf.mxu0  ;;  %v781_v54 = vpop.f32.mrf.mxu1 }
  0xfb   :  { %v1395_v50 = vrot.slane %v1394_v40, 2  ;;  %v1412_v51 = vadd.f32 %v1411_v41, %v1410_v36  ;;  %v1400_v52 = vrot.slane %v1399_v43, 4  ;;  %v1417_v62 = vsel %vm1357_vm2, %v1409_v53, 0.0 }
  0xfc   :  { %v1362_v55 = vadd.f32 %v1361_v45, %v1360_v34  ;;  %v1379_v56 = vrot.slane %v1378_v46, 2  ;;  %v1368_v57 = vrot.slane %v1367_v47, 2  ;;  %v1385_v58 = vadd.f32 %v1384_v48, %v1383_v42 }
  0xfd   :  { %v1396_v59 = vadd.f32 %v1395_v50, %v1394_v40  ;;  %v1413_v60 = vrot.slane %v1412_v51, 2  ;;  %v1401_v61 = vadd.f32 %v1400_v52, %v1399_v43  ;;  %v1418_v7 = vrot.slane %v1417_v62, 4 }
  0xfe   :  { %v1363_v63 = vrot.slane %v1362_v55, 1  ;;  %v1380_v1 = vadd.f32 %v1379_v56, %v1378_v46  ;;  %v1369_v2 = vadd.f32 %v1368_v57, %v1367_v47  ;;  %v1386_v3 = vrot.slane %v1385_v58, 2 }
  0xff   :  { %v1397_v4 = vrot.slane %v1396_v59, 1  ;;  %v1414_v5 = vadd.f32 %v1413_v60, %v1412_v51  ;;  %v1402_v6 = vrot.slane %v1401_v61, 2  ;;  %v1419_v15 = vadd.f32 %v1418_v7, %v1417_v62 }
 0x100   :  { %v1364_v8 = vadd.f32 %v1363_v63, %v1362_v55  ;;  %v1381_v9 = vrot.slane %v1380_v1, 1  ;;  %v1370_v10 = vrot.slane %v1369_v2, 1  ;;  %v2872_v11 = vpop.f32.mrf.mxu0  ;;  %v1387_v14 = vadd.f32 %v1386_v3, %v1385_v58  ;;  %v2874_v16 = vpop.f32.mrf.mxu1 }
 0x101   :  { %v1398_v12 = vadd.f32 %v1397_v4, %v1396_v59  ;;  %v1415_v13 = vrot.slane %v1414_v5, 1  ;;  %v1426_v17 = vsel %vm1357_vm2, %v2872_v11, 0.0  ;;  %v1403_v20 = vadd.f32 %v1402_v6, %v1401_v61 }
 0x102   :  { %v2878_v18 = vpop.f32.mrf.mxu0  ;;  %v2880_v19 = vadd.f32 %v1381_v9, %v1380_v1  ;;  %v1420_v21 = vrot.slane %v1419_v15, 2  ;;  %v2882_v22 = vpop.f32.mrf.mxu1  ;;  %v2884_v0 = vadd.f32 %v1370_v10, %v1369_v2  ;;  %v1427_v24 = vrot.slane %v1426_v17, 4 }
 0x103   :  { %v1442_v26 = vmul.f32 %v2872_v11, %v2872_v11  ;;  %v1460_v27 = vsel %vm1357_vm2, %v2874_v16, 0.0  ;;  %v1406_v39 = vadd.f32 %v1398_v12, %v1364_v8  ;;  %v1416_v30 = vadd.f32 %v1415_v13, %v1414_v5 }
 0x104   :  { %v821_v28 = vpop.f32.mrf.mxu0  ;;  %v1388_v31 = vrot.slane %v1387_v14, 1  ;;  %v1461_v32 = vrot.slane %v1460_v27, 4  ;;  %v862_v34 = vpop.f32.mrf.mxu1  ;;  %v1428_v35 = vadd.f32 %v1427_v24, %v1426_v17  ;;  %v1476_v37 = vmul.f32 %v2874_v16, %v2874_v16 }
 0x105   :  { %v1444_v36 = vsel %vm1357_vm2, %v1442_v26, 0.0  ;;  %v1433_v38 = vsel %vm1357_vm2, %v2878_v18, 0.0  ;;  %v1404_v41 = vrot.slane %v1403_v20, 1  ;;  %v1421_v42 = vadd.f32 %v1420_v21, %v1419_v15 }
 0x106   :  { %v822_v40 = vpop.f32.mrf.mxu0  ;;  %v1445_v43 = vrot.slane %v1444_v36, 4  ;;  %v1462_v44 = vadd.f32 %v1461_v32, %v1460_v27  ;;  %v863_v45 = vpop.f32.mrf.mxu1  ;;  %v1429_v46 = vrot.slane %v1428_v35, 2  ;;  %v1478_v47 = vsel %vm1357_vm2, %v1476_v37, 0.0 }
 0x107   :  { %v1434_v48 = vrot.slane %v1433_v38, 4  ;;  %v1443_v49 = vmul.f32 %v2878_v18, %v2878_v18  ;;  %v1389_v50 = vadd.f32 %v1388_v31, %v1387_v14  ;;  %v1479_v53 = vrot.slane %v1478_v47, 4 }
 0x108   :  { %v1446_v51 = vadd.f32 %v1445_v43, %v1444_v36  ;;  %v1463_v52 = vrot.slane %v1462_v44, 2  ;;  %v1430_v54 = vadd.f32 %v1429_v46, %v1428_v35  ;;  %v1467_v57 = vsel %vm1357_vm2, %v2882_v22, 0.0 }
 0x109   :  { %v1435_v55 = vadd.f32 %v1434_v48, %v1433_v38  ;;  %v1451_v56 = vsel %vm1357_vm2, %v1443_v49, 0.0  ;;  %v1422_v58 = vrot.slane %v1421_v42, 1  ;;  %v1480_v61 = vadd.f32 %v1479_v53, %v1478_v47 }
 0x10a   :  { %v1447_v59 = vrot.slane %v1446_v51, 2  ;;  %v1464_v60 = vadd.f32 %v1463_v52, %v1462_v44  ;;  %v1431_v62 = vrot.slane %v1430_v54, 1  ;;  %v1452_v1 = vrot.slane %v1451_v56, 4 }
 0x10b   :  { %v1436_v63 = vrot.slane %v1435_v55, 2  ;;  %v1468_v2 = vrot.slane %v1467_v57, 4  ;;  %v1405_v4 = vadd.f32 %v1404_v41, %v1403_v20  ;;  %v1481_v6 = vrot.slane %v1480_v61, 2 }
 0x10c   :  { %v2901_v3 = vpop.f32.mrf.mxu0  ;;  %v1448_v5 = vadd.f32 %v1447_v59, %v1446_v51  ;;  %v1477_v7 = vmul.f32 %v2882_v22, %v2882_v22  ;;  %v2905_v8 = vpop.f32.mrf.mxu1  ;;  %v1432_v9 = vadd.f32 %v1431_v62, %v1430_v54  ;;  %v1453_v12 = vadd.f32 %v1452_v1, %v1451_v56 }
 0x10d   :  { %v1437_v10 = vadd.f32 %v1436_v63, %v1435_v55  ;;  %v1469_v13 = vadd.f32 %v1468_v2, %v1467_v57  ;;  %v1465_v17 = vrot.slane %v1464_v60, 1  ;;  %v1482_v21 = vadd.f32 %v1481_v6, %v1480_v61 }
 0x10e   :  { %v2907_v14 = vpop.f32.mrf.mxu0  ;;  %v1449_v15 = vrot.slane %v1448_v5, 1  ;;  %v1485_v24 = vsel %vm1357_vm2, %v1477_v7, 0.0  ;;  %v2910_v26 = vpop.f32.mrf.mxu1  ;;  %v1423_v20 = vadd.f32 %v1422_v58, %v1421_v42  ;;  %v1454_v28 = vrot.slane %v1453_v12, 2 }
 0x10f   :  { %v1438_v27 = vrot.slane %v1437_v10, 1  ;;  %v1470_v31 = vrot.slane %v1469_v13, 2  ;;  %v1440_v34 = vadd.f32 %v1432_v9, %v1406_v39  ;;  %v1486_v35 = vrot.slane %v1485_v24, 4 }
 0x110   :  { %v903_v32 = vpop.f32.mrf.mxu0  ;;  %v1494_v36 = vsel %vm1357_vm2, %v2901_v3, 0.0  ;;  %v944_v37 = vpop.f32.mrf.mxu1  ;;  %v1424_v38 = vadd.f32 %v1416_v30, %v2880_v19  ;;  %v1407_v40 = vadd.f32 %v1405_v4, %v2884_v0  ;;  %v1450_v41 = vadd.f32 %v1449_v15, %v1448_v5 }
 0x111   :  { %v1483_v43 = vrot.slane %v1482_v21, 1  ;;  %v1466_v45 = vadd.f32 %v1465_v17, %v1464_v60  ;;  %v1455_v46 = vadd.f32 %v1454_v28, %v1453_v12  ;;  %v1487_v42 = vadd.f32 %v1486_v35, %v1485_v24 }
 0x112   :  { %v904_v44 = vpop.f32.mrf.mxu0  ;;  %v1495_v47 = vrot.slane %v1494_v36, 4  ;;  %v945_v48 = vpop.f32.mrf.mxu1  ;;  %v1425_v49 = vadd.f32 %v1423_v20, %v1389_v50  ;;  %v1439_v51 = vadd.f32 %v1438_v27, %v1437_v10  ;;  %v1471_v39 = vadd.f32 %v1470_v31, %v1469_v13 }
 0x113   :  { %v1510_v52 = vmul.f32 %v2901_v3, %v2901_v3  ;;  %v1474_v53 = vadd.f32 %v1466_v45, %v1440_v34  ;;  %v1488_v54 = vrot.slane %v1487_v42, 2  ;;  %v1528_v19 = vsel %vm1357_vm2, %v2905_v8, 0.0 }
 0x114   :  { %v1496_v55 = vadd.f32 %v1495_v47, %v1494_v36  ;;  %v1458_v0 = vadd.f32 %v1450_v41, %v1424_v38  ;;  %v1484_v30 = vadd.f32 %v1483_v43, %v1482_v21  ;;  %v1529_v57 = vrot.slane %v1528_v19, 4 }
 0x115   :  { %v1512_v56 = vsel %vm1357_vm2, %v1510_v52, 0.0  ;;  %v1456_v58 = vrot.slane %v1455_v46, 1  ;;  %v1544_v50 = vmul.f32 %v2905_v8, %v2905_v8  ;;  %v1441_v61 = vadd.f32 %v1439_v51, %v1407_v40 }
 0x116   :  { %v1497_v59 = vrot.slane %v1496_v55, 2  ;;  %v1513_v60 = vrot.slane %v1512_v56, 4  ;;  %v1472_v62 = vrot.slane %v1471_v39, 1  ;;  %v1530_v63 = vadd.f32 %v1529_v57, %v1528_v19 }
 0x117   :  { %v1501_v1 = vsel %vm1357_vm2, %v2907_v14, 0.0  ;;  %v1489_v4 = vadd.f32 %v1488_v54, %v1487_v42  ;;  %v1546_v7 = vsel %vm1357_vm2, %v1544_v50, 0.0  ;;  %v1511_v15 = vmul.f32 %v2907_v14, %v2907_v14 }
 0x118   :  { %v2925_v2 = vpop.f32.mrf.mxu0  ;;  %v1498_v5 = vadd.f32 %v1497_v59, %v1496_v55  ;;  %v1514_v6 = vadd.f32 %v1513_v60, %v1512_v56  ;;  %v2928_v9 = vpop.f32.mrf.mxu1  ;;  %v1531_v10 = vrot.slane %v1530_v63, 2  ;;  %v1547_v12 = vrot.slane %v1546_v7, 4 }
 0x119   :  { %v1502_v13 = vrot.slane %v1501_v1, 4  ;;  %v1457_v21 = vadd.f32 %v1456_v58, %v1455_v46  ;;  %v1535_v27 = vsel %vm1357_vm2, %v2910_v26, 0.0  ;;  %v1519_v35 = vsel %vm1357_vm2, %v1511_v15, 0.0 }
 0x11a   :  { %v2932_v17 = vpop.f32.mrf.mxu0  ;;  %v1499_v24 = vrot.slane %v1498_v5, 1  ;;  %v1515_v20 = vrot.slane %v1514_v6, 2  ;;  %v2936_v28 = vpop.f32.mrf.mxu1  ;;  %v1532_v31 = vadd.f32 %v1531_v10, %v1530_v63  ;;  %v1548_v32 = vadd.f32 %v1547_v12, %v1546_v7 }
 0x11b   :  { %3297 = vst [vmem:[#allocation9_spill] sm:$0xff] %v2936_v28  ;;  %v1503_v34 = vadd.f32 %v1502_v13, %v1501_v1  ;;  %v1492_v37 = vadd.f32 %v1484_v30, %v1458_v0  ;;  %v1490_v38 = vrot.slane %v1489_v4, 1  ;;  %v1520_v41 = vrot.slane %v1519_v35, 4 }
 0x11c   :  { %v985_v36 = vpop.f32.mrf.mxu0  ;;  %v1516_v40 = vadd.f32 %v1515_v20, %v1514_v6  ;;  %v1026_v43 = vpop.f32.mrf.mxu1  ;;  %v1500_v44 = vadd.f32 %v1499_v24, %v1498_v5  ;;  %v1549_v45 = vrot.slane %v1548_v32, 2  ;;  %v1536_v42 = vrot.slane %v1535_v27, 4 }
 0x11d   :  { %v1504_v46 = vrot.slane %v1503_v34, 2  ;;  %v1473_v48 = vadd.f32 %v1472_v62, %v1471_v39  ;;  %v1521_v52 = vadd.f32 %v1520_v41, %v1519_v35  ;;  %v1545_v54 = vmul.f32 %v2910_v26, %v2910_v26 }
 0x11e   :  { %v986_v47 = vpop.f32.mrf.mxu0  ;;  %v1517_v51 = vrot.slane %v1516_v40, 1  ;;  %v1027_v55 = vpop.f32.mrf.mxu1  ;;  %v1459_v19 = vadd.f32 %v1457_v21, %v1425_v49  ;;  %v1533_v56 = vrot.slane %v1532_v31, 1  ;;  %v1550_v57 = vadd.f32 %v1549_v45, %v1548_v32 }
 0x11f   :  { %v1505_v0 = vadd.f32 %v1504_v46, %v1503_v34  ;;  %v1522_v30 = vrot.slane %v1521_v52, 2  ;;  %v1537_v58 = vadd.f32 %v1536_v42, %v1535_v27  ;;  %v1553_v59 = vsel %vm1357_vm2, %v1545_v54, 0.0 }
 0x120   :  { %v1562_v60 = vsel %vm1357_vm2, %v2925_v2, 0.0  ;;  %v1491_v50 = vadd.f32 %v1490_v38, %v1489_v4  ;;  %v1508_v63 = vadd.f32 %v1500_v44, %v1474_v53  ;;  %v1518_v39 = vadd.f32 %v1517_v51, %v1516_v40 }
 0x121   :  { %v1551_v62 = vrot.slane %v1550_v57, 1  ;;  %v1475_v1 = vadd.f32 %v1473_v48, %v1441_v61  ;;  %v1523_v5 = vadd.f32 %v1522_v30, %v1521_v52  ;;  %v1554_v6 = vrot.slane %v1553_v59, 4 }
 0x122   :  { %v1563_v7 = vrot.slane %v1562_v60, 4  ;;  %v1493_v10 = vadd.f32 %v1491_v50, %v1459_v19  ;;  %v1534_v49 = vadd.f32 %v1533_v56, %v1532_v31  ;;  %v1506_v12 = vrot.slane %v1505_v0, 1 }
 0x123   :  { %v1578_v13 = vmul.f32 %v2925_v2, %v2925_v2  ;;  %v1538_v21 = vrot.slane %v1537_v58, 2  ;;  %v1555_v24 = vadd.f32 %v1554_v6, %v1553_v59  ;;  %v1596_v53 = vsel %vm1357_vm2, %v2928_v9, 0.0 }
 0x124   :  { %v2946_v15 = vpop.f32.mrf.mxu0  ;;  %v1564_v20 = vadd.f32 %v1563_v7, %v1562_v60  ;;  %v2950_v4 = vpop.f32.mrf.mxu1  ;;  %v1526_v61 = vadd.f32 %v1518_v39, %v1492_v37  ;;  %v2952_v27 = vadd.f32 %v1534_v49, %v1508_v63  ;;  %v1552_v32 = vadd.f32 %v1551_v62, %v1550_v57 }
 0x125   :  { %3298 = vst [vmem:[#allocation10_spill] sm:$0xff] %v2946_v15  ;;  %3299 = vst [vmem:[#allocation11_spill] sm:$0xff] %v2950_v4  ;;  %v1580_v31 = vsel %vm1357_vm2, %v1578_v13, 0.0  ;;  %v1524_v35 = vrot.slane %v1523_v5, 1  ;;  %v1556_v36 = vrot.slane %v1555_v24, 2  ;;  %v1507_v43 = vadd.f32 %v1506_v12, %v1505_v0 }
 0x126   :  { %v2955_v34 = vpop.f32.mrf.mxu0  ;;  %v1565_v38 = vrot.slane %v1564_v20, 2  ;;  %v1581_v40 = vrot.slane %v1580_v31, 4  ;;  %v2957_v41 = vpop.f32.mrf.mxu1  ;;  %v1597_v44 = vrot.slane %v1596_v53, 4  ;;  %v1612_v45 = vmul.f32 %v2928_v9, %v2928_v9 }
 0x127   :  { %3300 = vst [vmem:[#allocation12_spill] sm:$0xff] %v2955_v34  ;;  %3301 = vst [vmem:[#allocation13_spill] sm:$0xff] %v2957_v41  ;;  %v1569_v37 = vsel %vm1357_vm2, %v2932_v17, 0.0  ;;  %v1539_v42 = vadd.f32 %v1538_v21, %v1537_v58  ;;  %v1557_v47 = vadd.f32 %v1556_v36, %v1555_v24  ;;  %v1560_v54 = vadd.f32 %v1552_v32, %v1526_v61 }
 0x128   :  { %v1067_v46 = vpop.f32.mrf.mxu0  ;;  %v1566_v48 = vadd.f32 %v1565_v38, %v1564_v20  ;;  %v1582_v51 = vadd.f32 %v1581_v40, %v1580_v31  ;;  %v1108_v52 = vpop.f32.mrf.mxu1  ;;  %v1598_v55 = vadd.f32 %v1597_v44, %v1596_v53  ;;  %v1614_v19 = vsel %vm1357_vm2, %v1612_v45, 0.0 }
 0x129   :  { %v1570_v56 = vrot.slane %v1569_v37, 4  ;;  %v1525_v0 = vadd.f32 %v1524_v35, %v1523_v5  ;;  %v1615_v60 = vrot.slane %v1614_v19, 4  ;;  %v1579_v58 = vmul.f32 %v2932_v17, %v2932_v17 }
 0x12a   :  { %v1068_v57 = vpop.f32.mrf.mxu0  ;;  %v1567_v30 = vrot.slane %v1566_v48, 1  ;;  %v1583_v59 = vrot.slane %v1582_v51, 2  ;;  %v1109_v50 = vpop.f32.mrf.mxu1  ;;  %v1599_v63 = vrot.slane %v1598_v55, 2  ;;  %v1603_v62 = vsel %vm1357_vm2, %v2936_v28, 0.0 }
 0x12b   :  { %v1571_v39 = vadd.f32 %v1570_v56, %v1569_v37  ;;  %v1540_v6 = vrot.slane %v1539_v42, 1  ;;  %v1558_v7 = vrot.slane %v1557_v47, 1  ;;  %v1616_v12 = vadd.f32 %v1615_v60, %v1614_v19 }
 0x12c   :  { %v1584_v49 = vadd.f32 %v1583_v59, %v1582_v51  ;;  %v1600_v13 = vadd.f32 %v1599_v63, %v1598_v55  ;;  %v1587_v5 = vsel %vm1357_vm2, %v1579_v58, 0.0  ;;  %v1604_v24 = vrot.slane %v1603_v62, 4 }
 0x12d   :  { %v1572_v21 = vrot.slane %v1571_v39, 2  ;;  %v1509_v20 = vadd.f32 %v1507_v43, %v1475_v1  ;;  %v1527_v53 = vadd.f32 %v1525_v0, %v1493_v10  ;;  %v1617_v32 = vrot.slane %v1616_v12, 2 }
 0x12e   :  { %v1585_v61 = vrot.slane %v1584_v49, 1  ;;  %v1568_v31 = vadd.f32 %v1567_v30, %v1566_v48  ;;  %v1588_v36 = vrot.slane %v1587_v5, 4  ;;  %v1605_v38 = vadd.f32 %v1604_v24, %v1603_v62 }
 0x12f   :  { %v1573_v35 = vadd.f32 %v1572_v21, %v1571_v39  ;;  %v1541_v44 = vadd.f32 %v1540_v6, %v1539_v42  ;;  %v1601_v45 = vrot.slane %v1600_v13, 1  ;;  %v1613_v37 = vmul.f32 %v2936_v28, %v2936_v28 }
 0x130   :  { %v2969_v40 = vpop.f32.mrf.mxu0  ;;  %v1630_v46 = vsel %vm1357_vm2, %v2946_v15, 0.0  ;;  %v2975_v51 = vpop.f32.mrf.mxu1  ;;  %v1559_v1 = vadd.f32 %v1558_v7, %v1557_v47  ;;  %v1586_v10 = vadd.f32 %v1585_v61, %v1584_v49  ;;  %v1618_v43 = vadd.f32 %v1617_v32, %v1616_v12 }
 0x131   :  { %3302 = vst [vmem:[#allocation14_spill] sm:$0xff] %v2969_v40  ;;  %3303 = vst [vmem:[#allocation15_spill] sm:$0xff] %v2975_v51  ;;  %v1589_v52 = vadd.f32 %v1588_v36, %v1587_v5  ;;  %v1543_v55 = vadd.f32 %v1541_v44, %v1509_v20  ;;  %v1606_v19 = vrot.slane %v1605_v38, 2  ;;  %v1621_v56 = vsel %vm1357_vm2, %v1613_v37, 0.0 }
 0x132   :  { %v2977_v48 = vpop.f32.mrf.mxu0  ;;  %v1631_v42 = vrot.slane %v1630_v46, 4  ;;  %v2980_v57 = vpop.f32.mrf.mxu1  ;;  %v1561_v0 = vadd.f32 %v1559_v1, %v1527_v53  ;;  %v1576_v30 = vadd.f32 %v1568_v31, %v2952_v27  ;;  %v1574_v59 = vrot.slane %v1573_v35, 1 }
 0x133   :  { %v1590_v60 = vrot.slane %v1589_v52, 2  ;;  %v1602_v63 = vadd.f32 %v1601_v45, %v1600_v13  ;;  %v1622_v47 = vrot.slane %v1621_v56, 4  ;;  %v1646_v58 = vmul.f32 %v2946_v15, %v2946_v15 }
 0x134   :  { %v1149_v50 = vpop.f32.mrf.mxu0  ;;  %v1632_v39 = vadd.f32 %v1631_v42, %v1630_v46  ;;  %v1190_v62 = vpop.f32.mrf.mxu1  ;;  %v1594_v6 = vadd.f32 %v1586_v10, %v1560_v54  ;;  %v1619_v7 = vrot.slane %v1618_v43, 1  ;;  %v1664_v12 = vsel %vm1357_vm2, %v2950_v4, 0.0 }
 0x135   :  { %v1591_v49 = vadd.f32 %v1590_v60, %v1589_v52  ;;  %v1607_v5 = vadd.f32 %v1606_v19, %v1605_v38  ;;  %v1623_v24 = vadd.f32 %v1622_v47, %v1621_v56  ;;  %v1648_v20 = vsel %vm1357_vm2, %v1646_v58, 0.0 }
 0x136   :  { %v1150_v21 = vpop.f32.mrf.mxu0  ;;  %v1633_v27 = vrot.slane %v1632_v39, 2  ;;  %v1191_v53 = vpop.f32.mrf.mxu1  ;;  %v1575_v13 = vadd.f32 %v1574_v59, %v1573_v35  ;;  %v1649_v32 = vrot.slane %v1648_v20, 4  ;;  %v1665_v31 = vrot.slane %v1664_v12, 4 }
 0x137   :  { %v1592_v61 = vrot.slane %v1591_v49, 1  ;;  %v1624_v36 = vrot.slane %v1623_v24, 2  ;;  %v1680_v54 = vmul.f32 %v2950_v4, %v2950_v4  ;;  %v1637_v45 = vsel %vm1357_vm2, %v2955_v34, 0.0 }
 0x138   :  { %v1634_v44 = vadd.f32 %v1633_v27, %v1632_v39  ;;  %v1610_v37 = vadd.f32 %v1602_v63, %v1576_v30  ;;  %v1620_v46 = vadd.f32 %v1619_v7, %v1618_v43  ;;  %v1650_v38 = vadd.f32 %v1649_v32, %v1648_v20 }
 0x139   :  { %v1666_v1 = vadd.f32 %v1665_v31, %v1664_v12  ;;  %v1608_v10 = vrot.slane %v1607_v5, 1  ;;  %v1625_v52 = vadd.f32 %v1624_v36, %v1623_v24  ;;  %v1682_v19 = vsel %vm1357_vm2, %v1680_v54, 0.0 }
 0x13a   :  { %v1638_v35 = vrot.slane %v1637_v45, 4  ;;  %v1635_v56 = vrot.slane %v1634_v44, 1  ;;  %v1651_v42 = vrot.slane %v1650_v38, 2  ;;  %v1683_v60 = vrot.slane %v1682_v19, 4 }
 0x13b   :  { %v1667_v59 = vrot.slane %v1666_v1, 2  ;;  %v1577_v47 = vadd.f32 %v1575_v13, %v1543_v55  ;;  %v1593_v39 = vadd.f32 %v1592_v61, %v1591_v49  ;;  %v1647_v30 = vmul.f32 %v2955_v34, %v2955_v34 }
 0x13c   :  { %v2993_v50 = vpop.f32.mrf.mxu0  ;;  %v1639_v58 = vadd.f32 %v1638_v35, %v1637_v45  ;;  %v2997_v43 = vpop.f32.mrf.mxu1  ;;  %v1626_v63 = vrot.slane %v1625_v52, 1  ;;  %v1652_v62 = vadd.f32 %v1651_v42, %v1650_v38  ;;  %v1684_v7 = vadd.f32 %v1683_v60, %v1682_v19 }
 0x13d   :  { %v1671_v12 = vsel %vm1357_vm2, %v2957_v41, 0.0  ;;  %v1628_v24 = vadd.f32 %v1620_v46, %v1594_v6  ;;  %v1668_v27 = vadd.f32 %v1667_v59, %v1666_v1  ;;  %v1655_v55 = vsel %vm1357_vm2, %v1647_v30, 0.0 }
 0x13e   :  { %v3001_v21 = vpop.f32.mrf.mxu0  ;;  %v1640_v20 = vrot.slane %v1639_v58, 2  ;;  %v3004_v49 = vpop.f32.mrf.mxu1  ;;  %v1609_v53 = vadd.f32 %v1608_v10, %v1607_v5  ;;  %v1636_v13 = vadd.f32 %v1635_v56, %v1634_v44  ;;  %v1685_v61 = vrot.slane %v1684_v7, 2 }
 0x13f   :  { %v1656_v32 = vrot.slane %v1655_v55, 4  ;;  %v1595_v36 = vadd.f32 %v1593_v39, %v1561_v0  ;;  %v1672_v45 = vrot.slane %v1671_v12, 4  ;;  %v1681_v38 = vmul.f32 %v2957_v41, %v2957_v41 }
 0x140   :  { %v1231_v31 = vpop.f32.mrf.mxu0  ;;  %v1641_v54 = vadd.f32 %v1640_v20, %v1639_v58  ;;  %v1272_v19 = vpop.f32.mrf.mxu1  ;;  %v1611_v35 = vadd.f32 %v1609_v53, %v1577_v47  ;;  %v1627_v6 = vadd.f32 %v1626_v63, %v1625_v52  ;;  %v1653_v46 = vrot.slane %v1652_v62, 1 }
 0x141   :  { %v1657_v1 = vadd.f32 %v1656_v32, %v1655_v55  ;;  %v1669_v59 = vrot.slane %v1668_v27, 1  ;;  %v1673_v60 = vadd.f32 %v1672_v45, %v1671_v12  ;;  %v1689_v5 = vsel %vm1357_vm2, %v1681_v38, 0.0 }
 0x142   :  { %v1232_v42 = vpop.f32.mrf.mxu0  ;;  %v1698_v44 = vsel %vm1357_vm2, %v2969_v40, 0.0  ;;  %v1273_v10 = vpop.f32.mrf.mxu1  ;;  %v1644_v0 = vadd.f32 %v1636_v13, %v1610_v37  ;;  %v1686_v56 = vadd.f32 %v1685_v61, %v1684_v7  ;;  %v1642_v39 = vrot.slane %v1641_v54, 1 }
 0x143   :  { %v1658_v58 = vrot.slane %v1657_v1, 2  ;;  %v1629_v30 = vadd.f32 %v1627_v6, %v1595_v36  ;;  %v1674_v20 = vrot.slane %v1673_v60, 2  ;;  %v1690_v31 = vrot.slane %v1689_v5, 4 }
 0x144   :  { %v1699_v47 = vrot.slane %v1698_v44, 4  ;;  %v1654_v52 = vadd.f32 %v1653_v46, %v1652_v62  ;;  %v1714_v55 = vmul.f32 %v2969_v40, %v2969_v40  ;;  %v1732_v12 = vsel %vm1357_vm2, %v2975_v51, 0.0 }
 0x145   :  { %v1659_v63 = vadd.f32 %v1658_v58, %v1657_v1  ;;  %v1670_v53 = vadd.f32 %v1669_v59, %v1668_v27  ;;  %v1675_v32 = vadd.f32 %v1674_v20, %v1673_v60  ;;  %v1691_v45 = vadd.f32 %v1690_v31, %v1689_v5 }
 0x146   :  { %v1700_v38 = vadd.f32 %v1699_v47, %v1698_v44  ;;  %v1687_v37 = vrot.slane %v1686_v56, 1  ;;  %v1643_v7 = vadd.f32 %v1642_v39, %v1641_v54  ;;  %v1716_v13 = vsel %vm1357_vm2, %v1714_v55, 0.0 }
 0x147   :  { %v1733_v61 = vrot.slane %v1732_v12, 4  ;;  %v1660_v19 = vrot.slane %v1659_v63, 1  ;;  %v1692_v62 = vrot.slane %v1691_v45, 2  ;;  %v1717_v46 = vrot.slane %v1716_v13, 4 }
 0x148   :  { %v3016_v36 = vpop.f32.mrf.mxu0  ;;  %v1701_v6 = vrot.slane %v1700_v38, 2  ;;  %v3018_v1 = vpop.f32.mrf.mxu1  ;;  %v1676_v42 = vrot.slane %v1675_v32, 1  ;;  %v1748_v27 = vmul.f32 %v2975_v51, %v2975_v51  ;;  %v1705_v59 = vsel %vm1357_vm2, %v2977_v48, 0.0 }
 0x149   :  { %3304 = vst [vmem:[#allocation16_spill] sm:$0xff] %v3016_v36  ;;  %v1734_v10 = vadd.f32 %v1733_v61, %v1732_v12  ;;  %v1662_v60 = vadd.f32 %v1654_v52, %v1628_v24  ;;  %v1693_v5 = vadd.f32 %v1692_v62, %v1691_v45  ;;  %v1718_v39 = vadd.f32 %v1717_v46, %v1716_v13 }
 0x14a   :  { %v3024_v54 = vpop.f32.mrf.mxu0  ;;  %v1702_v44 = vadd.f32 %v1701_v6, %v1700_v38  ;;  %v3026_v58 = vpop.f32.mrf.mxu1  ;;  %v1678_v20 = vadd.f32 %v1670_v53, %v1644_v0  ;;  %v1750_v47 = vsel %vm1357_vm2, %v1748_v27, 0.0  ;;  %v1706_v55 = vrot.slane %v1705_v59, 4 }
 0x14b   :  { %v1735_v31 = vrot.slane %v1734_v10, 2  ;;  %v1688_v61 = vadd.f32 %v1687_v37, %v1686_v56  ;;  %v1645_v40 = vadd.f32 %v1643_v7, %v1611_v35  ;;  %v1661_v51 = vadd.f32 %v1660_v19, %v1659_v63 }
 0x14c   :  { %v1313_v12 = vpop.f32.mrf.mxu0  ;;  %v1719_v41 = vrot.slane %v1718_v39, 2  ;;  %v1354_v4 = vpop.f32.mrf.mxu1  ;;  %v1677_v34 = vadd.f32 %v1676_v42, %v1675_v32  ;;  %v1751_v15 = vrot.slane %v1750_v47, 4  ;;  %v1707_v28 = vadd.f32 %v1706_v55, %v1705_v59 }
 0x14d   :  { %v1715_v24 = vmul.f32 %v2977_v48, %v2977_v48  ;;  %v1694_v45 = vrot.slane %v1693_v5, 1  ;;  %v1703_v38 = vrot.slane %v1702_v44, 1  ;;  %v1739_v53 = vsel %vm1357_vm2, %v2980_v57, 0.0 }
 0x14e   :  { %v1314_v52 = vpop.f32.mrf.mxu0  ;;  %v1720_v0 = vadd.f32 %v1719_v41, %v1718_v39  ;;  %v1355_v13 = vpop.f32.mrf.mxu1  ;;  %v1736_v62 = vadd.f32 %v1735_v31, %v1734_v10  ;;  %v1752_v56 = vadd.f32 %v1751_v15, %v1750_v47  ;;  %v1708_v35 = vrot.slane %v1707_v28, 2 }
 0x14f   :  { %v1723_v63 = vsel %vm1357_vm2, %v1715_v24, 0.0  ;;  %v1696_v4 = vadd.f32 %v1688_v61, %v1662_v60  ;;  %v1663_v32 = vadd.f32 %v1661_v51, %v1629_v30  ;;  %v1679_v37 = vadd.f32 %v1677_v34, %v1645_v40 }
 0x150   :  { %v1724_v7 = vrot.slane %v1723_v63, 4  ;;  %v1721_v19 = vrot.slane %v1720_v0, 1  ;;  %v1753_v6 = vrot.slane %v1752_v56, 2  ;;  %v1709_v46 = vadd.f32 %v1708_v35, %v1707_v28 }
 0x151   :  { %v1740_v42 = vrot.slane %v1739_v53, 4  ;;  %v1695_v27 = vadd.f32 %v1694_v45, %v1693_v5  ;;  %v1749_v41 = vmul.f32 %v2980_v57, %v2980_v57  ;;  %v1766_v10 = vsel %vm1357_vm2, %v2993_v50, 0.0 }
 0x152   :  { %v1725_v59 = vadd.f32 %v1724_v7, %v1723_v63  ;;  %v1704_v15 = vadd.f32 %v1703_v38, %v1702_v44  ;;  %v1737_v39 = vrot.slane %v1736_v62, 1  ;;  %v1754_v31 = vadd.f32 %v1753_v6, %v1752_v56 }
 0x153   :  { %v1741_v47 = vadd.f32 %v1740_v42, %v1739_v53  ;;  %v1697_v60 = vadd.f32 %v1695_v27, %v1663_v32  ;;  %v1757_v34 = vsel %vm1357_vm2, %v1749_v41, 0.0  ;;  %v1767_v40 = vrot.slane %v1766_v10, 4 }
 0x154   :  { %v1726_v51 = vrot.slane %v1725_v59, 2  ;;  %v1722_v30 = vadd.f32 %v1721_v19, %v1720_v0  ;;  %v1710_v28 = vrot.slane %v1709_v46, 1  ;;  %v1758_v5 = vrot.slane %v1757_v34, 4 }
 0x155   :  { %v1742_v55 = vrot.slane %v1741_v47, 2  ;;  %v1768_v61 = vadd.f32 %v1767_v40, %v1766_v10  ;;  %v1782_v24 = vmul.f32 %v2993_v50, %v2993_v50  ;;  %v1800_v44 = vsel %vm1357_vm2, %v2997_v43, 0.0 }
 0x156   :  { %v1727_v12 = vadd.f32 %v1726_v51, %v1725_v59  ;;  %v1712_v52 = vadd.f32 %v1704_v15, %v1678_v20  ;;  %v1755_v45 = vrot.slane %v1754_v31, 1  ;;  %v1759_v53 = vadd.f32 %v1758_v5, %v1757_v34 }
 0x157   :  { %v1743_v38 = vadd.f32 %v1742_v55, %v1741_v47  ;;  %v1769_v56 = vrot.slane %v1768_v61, 2  ;;  %v1784_v35 = vsel %vm1357_vm2, %v1782_v24, 0.0  ;;  %v1801_v0 = vrot.slane %v1800_v44, 4 }
 0x158   :  { %v1728_v13 = vrot.slane %v1727_v12, 1  ;;  %v1738_v63 = vadd.f32 %v1737_v39, %v1736_v62  ;;  %v1711_v32 = vadd.f32 %v1710_v28, %v1709_v46  ;;  %v1760_v7 = vrot.slane %v1759_v53, 2 }
 0x159   :  { %v1785_v19 = vrot.slane %v1784_v35, 4  ;;  %v1730_v6 = vadd.f32 %v1722_v30, %v1696_v4  ;;  %v1770_v42 = vadd.f32 %v1769_v56, %v1768_v61  ;;  %v1802_v27 = vadd.f32 %v1801_v0, %v1800_v44 }
 0x15a   :  { %v1816_v59 = vmul.f32 %v2997_v43, %v2997_v43  ;;  %v1746_v41 = vadd.f32 %v1738_v63, %v1712_v52  ;;  %v1761_v20 = vadd.f32 %v1760_v7, %v1759_v53  ;;  %v1773_v15 = vsel %vm1357_vm2, %v3001_v21, 0.0 }
 0x15b   :  { %v1786_v10 = vadd.f32 %v1785_v19, %v1784_v35  ;;  %v1756_v47 = vadd.f32 %v1755_v45, %v1754_v31  ;;  %v1729_v51 = vadd.f32 %v1728_v13, %v1727_v12  ;;  %v1744_v34 = vrot.slane %v1743_v38, 1 }
 0x15c   :  { %v1818_v62 = vsel %vm1357_vm2, %v1816_v59, 0.0  ;;  %v1713_v46 = vadd.f32 %v1711_v32, %v1679_v37  ;;  %v1803_v40 = vrot.slane %v1802_v27, 2  ;;  %v1771_v28 = vrot.slane %v1770_v42, 1 }
 0x15d   :  { %v1787_v39 = vrot.slane %v1786_v10, 2  ;;  %v1819_v4 = vrot.slane %v1818_v62, 4  ;;  %v1764_v30 = vadd.f32 %v1756_v47, %v1730_v6  ;;  %v1774_v55 = vrot.slane %v1773_v15, 4 }
 0x15e   :  { %v1783_v5 = vmul.f32 %v3001_v21, %v3001_v21  ;;  %v1762_v61 = vrot.slane %v1761_v20, 1  ;;  %v1807_v31 = vsel %vm1357_vm2, %v3004_v49, 0.0  ;;  %v1731_v12 = vadd.f32 %v1729_v51, %v1697_v60 }
 0x15f   :  { %v1788_v24 = vadd.f32 %v1787_v39, %v1786_v10  ;;  %v1820_v44 = vadd.f32 %v1819_v4, %v1818_v62  ;;  %v1745_v52 = vadd.f32 %v1744_v34, %v1743_v38  ;;  %v1775_v45 = vadd.f32 %v1774_v55, %v1773_v15 }
 0x160   :  { %v1791_v37 = vsel %vm1357_vm2, %v1783_v5, 0.0  ;;  %v1804_v13 = vadd.f32 %v1803_v40, %v1802_v27  ;;  %v1772_v0 = vadd.f32 %v1771_v28, %v1770_v42  ;;  %v1808_v32 = vrot.slane %v1807_v31, 4 }
 0x161   :  { %v1789_v53 = vrot.slane %v1788_v24, 1  ;;  %v1821_v56 = vrot.slane %v1820_v44, 2  ;;  %v1792_v35 = vrot.slane %v1791_v37, 4  ;;  %v1776_v63 = vrot.slane %v1775_v45, 2 }
 0x162   :  { %v1817_v7 = vmul.f32 %v3004_v49, %v3004_v49  ;;  %v1763_v19 = vadd.f32 %v1762_v61, %v1761_v20  ;;  %v1834_v60 = vsel %vm1357_vm2, %v3016_v36, 0.0  ;;  %v1809_v15 = vadd.f32 %v1808_v32, %v1807_v31 }
 0x163   :  { %v1822_v6 = vadd.f32 %v1821_v56, %v1820_v44  ;;  %v1793_v59 = vadd.f32 %v1792_v35, %v1791_v37  ;;  %v1790_v38 = vadd.f32 %v1789_v53, %v1788_v24  ;;  %v1777_v10 = vadd.f32 %v1776_v63, %v1775_v45 }
 0x164   :  { %v1825_v47 = vsel %vm1357_vm2, %v1817_v7, 0.0  ;;  %v1805_v27 = vrot.slane %v1804_v13, 1  ;;  %v1810_v39 = vrot.slane %v1809_v15, 2  ;;  %v1835_v40 = vrot.slane %v1834_v60, 4 }
 0x165   :  { %v1823_v51 = vrot.slane %v1822_v6, 1  ;;  %v1794_v34 = vrot.slane %v1793_v59, 2  ;;  %v1826_v42 = vrot.slane %v1825_v47, 4  ;;  %v1778_v62 = vrot.slane %v1777_v10, 1 }
 0x166   :  { %v1850_v20 = vmul.f32 %v3016_v36, %v3016_v36  ;;  %v1747_v4 = vadd.f32 %v1745_v52, %v1713_v46  ;;  %v1780_v28 = vadd.f32 %v1772_v0, %v1746_v41  ;;  %v1868_v5 = vsel %vm1357_vm2, %v3018_v1, 0.0 }
 0x167   :  { %v1827_v55 = vadd.f32 %v1826_v42, %v1825_v47  ;;  %v1765_v61 = vadd.f32 %v1763_v19, %v1731_v12  ;;  %v1798_v24 = vadd.f32 %v1790_v38, %v1764_v30  ;;  %v1836_v44 = vadd.f32 %v1835_v40, %v1834_v60 }
 0x168   :  { %v1852_v31 = vsel %vm1357_vm2, %v1850_v20, 0.0  ;;  %v1806_v45 = vadd.f32 %v1805_v27, %v1804_v13  ;;  %v1779_v37 = vadd.f32 %v1778_v62, %v1777_v10  ;;  %v1795_v53 = vadd.f32 %v1794_v34, %v1793_v59 }
 0x169   :  { %v1853_v56 = vrot.slane %v1852_v31, 4  ;;  %v1824_v35 = vadd.f32 %v1823_v51, %v1822_v6  ;;  %v1811_v63 = vadd.f32 %v1810_v39, %v1809_v15  ;;  %v1837_v32 = vrot.slane %v1836_v44, 2 }
 0x16a   :  { %v1869_v7 = vrot.slane %v1868_v5, 4  ;;  %v1814_v36 = vadd.f32 %v1806_v45, %v1780_v28  ;;  %v1828_v46 = vrot.slane %v1827_v55, 2  ;;  %v1884_v52 = vmul.f32 %v3018_v1, %v3018_v1 }
 0x16b   :  { %v1854_v41 = vadd.f32 %v1853_v56, %v1852_v31  ;;  %v1832_v0 = vadd.f32 %v1824_v35, %v1798_v24  ;;  %v1838_v12 = vadd.f32 %v1837_v32, %v1836_v44  ;;  %v1841_v19 = vsel %vm1357_vm2, %v3024_v54, 0.0 }
 0x16c   :  { %v1870_v30 = vadd.f32 %v1869_v7, %v1868_v5  ;;  %v1781_v13 = vadd.f32 %v1779_v37, %v1747_v4  ;;  %v1796_v60 = vrot.slane %v1795_v53, 1  ;;  %v1886_v6 = vsel %vm1357_vm2, %v1884_v52, 0.0 }
 0x16d   :  { %v1855_v59 = vrot.slane %v1854_v41, 2  ;;  %v1812_v38 = vrot.slane %v1811_v63, 1  ;;  %v1839_v10 = vrot.slane %v1838_v12, 1  ;;  %v1887_v47 = vrot.slane %v1886_v6, 4 }
 0x16e   :  { %v1871_v15 = vrot.slane %v1870_v30, 2  ;;  %v1829_v27 = vadd.f32 %v1828_v46, %v1827_v55  ;;  %v1842_v34 = vrot.slane %v1841_v19, 4  ;;  %v1851_v42 = vmul.f32 %v3024_v54, %v3024_v54 }
 0x16f   :  { %v1856_v51 = vadd.f32 %v1855_v59, %v1854_v41  ;;  %v1840_v62 = vadd.f32 %v1839_v10, %v1838_v12  ;;  %v1888_v40 = vadd.f32 %v1887_v47, %v1886_v6  ;;  %v1875_v20 = vsel %vm1357_vm2, %v3026_v58, 0.0 }
 0x170   :  { %v1872_v39 = vadd.f32 %v1871_v15, %v1870_v30  ;;  %v1797_v4 = vadd.f32 %v1796_v60, %v1795_v53  ;;  %v1843_v5 = vadd.f32 %v1842_v34, %v1841_v19  ;;  %v1859_v24 = vsel %vm1357_vm2, %v1851_v42, 0.0 }
 0x171   :  { %v1857_v28 = vrot.slane %v1856_v51, 1  ;;  %v1848_v44 = vadd.f32 %v1840_v62, %v1814_v36  ;;  %v1889_v45 = vrot.slane %v1888_v40, 2  ;;  %v1860_v55 = vrot.slane %v1859_v24, 4 }
 0x172   :  { %v1873_v31 = vrot.slane %v1872_v39, 1  ;;  %v1844_v56 = vrot.slane %v1843_v5, 2  ;;  %v1876_v35 = vrot.slane %v1875_v20, 4  ;;  %v1885_v32 = vmul.f32 %v3026_v58, %v3026_v58 }
 0x173   :  { %v1858_v37 = vadd.f32 %v1857_v28, %v1856_v51  ;;  %v1830_v7 = vrot.slane %v1829_v27, 1  ;;  %v1890_v41 = vadd.f32 %v1889_v45, %v1888_v40  ;;  %v1861_v52 = vadd.f32 %v1860_v55, %v1859_v24 }
 0x174   :  { %v1874_v46 = vadd.f32 %v1873_v31, %v1872_v39  ;;  %v1845_v53 = vadd.f32 %v1844_v56, %v1843_v5  ;;  %v1877_v30 = vadd.f32 %v1876_v35, %v1875_v20  ;;  %v1893_v19 = vsel %vm1357_vm2, %v1885_v32, 0.0 }
 0x175   :  { %v1866_v12 = vadd.f32 %v1858_v37, %v1832_v0  ;;  %v1891_v36 = vrot.slane %v1890_v41, 1  ;;  %v1862_v59 = vrot.slane %v1861_v52, 2  ;;  %v1894_v6 = vrot.slane %v1893_v19, 4 }
 0x176   :  { %v1882_v60 = vadd.f32 %v1874_v46, %v1848_v44  ;;  %v1799_v10 = vadd.f32 %v1797_v4, %v1765_v61  ;;  %v1813_v15 = vadd.f32 %v1812_v38, %v1811_v63  ;;  %v1846_v47 = vrot.slane %v1845_v53, 1 }
 0x177   :  { %v1878_v51 = vrot.slane %v1877_v30, 2  ;;  %v1892_v34 = vadd.f32 %v1891_v36, %v1890_v41  ;;  %v1863_v62 = vadd.f32 %v1862_v59, %v1861_v52  ;;  %v1895_v28 = vadd.f32 %v1894_v6, %v1893_v19 }
 0x178   :  { %v1903_v42 = vmul.f32 0.03125, %v1882_v60  ;;  %v1815_v39 = vadd.f32 %v1813_v15, %v1781_v13  ;;  %v1847_v40 = vadd.f32 %v1846_v47, %v1845_v53  ;;  %v1831_v0 = vadd.f32 %v1830_v7, %v1829_v27 }
 0x179   :  { %v1879_v24 = vadd.f32 %v1878_v51, %v1877_v30  ;;  %v1900_v5 = vadd.f32 %v1892_v34, %v1866_v12  ;;  %v1864_v20 = vrot.slane %v1863_v62, 1  ;;  %v1896_v31 = vrot.slane %v1895_v28, 2 }
 0x17a   :  { %v1907_v45 = vmul.f32 %v1903_v42, %v1903_v42  ;;  %v1849_v44 = vadd.f32 %v1847_v40, %v1815_v39  ;;  %v1833_v37 = vadd.f32 %v1831_v0, %v1799_v10  ;;  %v2724_v36 = vmov 1966171168   ;;  %v1913_v39 = vld [vmem:[#allocation4] sm:$0x3] }
 0x17b   :  { %v1880_v55 = vrot.slane %v1879_v24, 1  ;;  %v1905_v56 = vmul.f32 0.03125, %v1900_v5  ;;  %v1865_v61 = vadd.f32 %v1864_v20, %v1863_v62  ;;  %v1897_v63 = vadd.f32 %v1896_v31, %v1895_v28 }
 0x17c   :  { %v1922_v59 = vunpack.c.l.s4 %v2724_v36  ;;  %v1924_v6 = vlaneseq }
 0x17d   :  { %v1881_v38 = vadd.f32 %v1880_v55, %v1879_v24  ;;  %v1867_v4 = vadd.f32 %v1865_v61, %v1833_v37  ;;  %v1898_v35 = vrot.slane %v1897_v63, 1  ;;  %v1909_v32 = vsub.f32 %v1905_v56, %v1907_v45 }
 0x17e   :  { %v1923_v10 = vunpack.c.0.s8 %v1922_v59  ;;  %v1925_v15 = vshrl.u32 %v1924_v6, 7 }
 0x17f   :  { %v1883_v46 = vadd.f32 %v1881_v38, %v1849_v44  ;;  %v1899_v41 = vadd.f32 %v1898_v35, %v1897_v63  ;;  %v1911_v53 = vmax.f32 %v1909_v32, 0.0 }
 0x180   :  { %v3077_v51 = vsub.s32 %v1923_v10, %v1925_v15  ;;  %v1941_v24 = vsub.s32 0, %v1925_v15  ;;  %v1945_v0 = vsub.s32 1, %v1925_v15 }
 0x181   :  { %v1904_v13 = vmul.f32 0.03125, %v1883_v46  ;;  %v1901_v52 = vadd.f32 %v1899_v41, %v1867_v4  ;;  %v1914_v30 = vadd.f32 1e-05, %v1911_v53  ;;  %v1937_v46 = vld [vmem:[#allocation6] sm:$0x3] }
 0x183   :  { %v1908_v27 = vmul.f32 %v1904_v13, %v1904_v13  ;;  %v1906_v7 = vmul.f32 0.03125, %v1901_v52  ;;  %2650 = vrsqrt.f32 %v1914_v30  ;;  %v3308_v52 = vld [vmem:[#allocation11_spill] sm:$0xff] }
 0x184   :  { %v3311_v30 = vld [vmem:[#allocation15_spill] sm:$0xff] }
 0x185   :  { %v1910_v12 = vsub.f32 %v1906_v7, %v1908_v27  ;;  %v3309_v27 = vld [vmem:[#allocation13_spill] sm:$0xff] }
 0x187   :  { %v1912_v19 = vmax.f32 %v1910_v12, 0.0 }
 0x189   :  { %v1915_v60 = vadd.f32 1e-05, %v1912_v19 }
 0x18b   :  { %2652 = vrsqrt.f32 %v1915_v60 }
 0x190   :  { %v2651_v47 = vpop.eup %2650 }
 0x198   :  { %v2653_v34 = vpop.eup %2652 }
 0x199   :  { %v1920_v62 = vcombine.low %v2651_v47, %v2653_v34  ;;  %v3312_v47 = vld [vmem:[#allocation16_spill] sm:$0xff] }
 0x19b   :  { %v1927_v28 = vrot.slane %v1920_v62, %v3077_v51 }
 0x19d   :  { %v1934_v40 = vrot.slane %v1927_v28, %v3077_v51 }
 0x19f   :  { %v1936_v5 = vmul.f32 %v1934_v40, %v1913_v39 }
 0x1a1   :  { %v1942_v20 = vrot.slane %v1936_v5, %v1941_v24  ;;  %v1946_v31 = vrot.slane %v1936_v5, %v1945_v0 }
 0x1a3   :  { %v1949_v45 = vmul.f32 %v1942_v20, %v1903_v42  ;;  %v1950_v44 = vmul.f32 %v1946_v31, %v1904_v13  ;;  %v1970_v37 = vmul.f32 %v1942_v20, %v2844_v23  ;;  %v1971_v56 = vmul.f32 %v1946_v31, %v2856_v29  ;;  %v3307_v13 = vld [vmem:[#allocation12_spill] sm:$0xff] }
 0x1a4   :  { %v2012_v61 = vmul.f32 %v1942_v20, %v2850_v25  ;;  %v2013_v63 = vmul.f32 %v1946_v31, %v2863_v33  ;;  %v2043_v38 = vmul.f32 %v1942_v20, %v2872_v11  ;;  %v2044_v35 = vmul.f32 %v1946_v31, %v2878_v18 }
 0x1a5   :  { %v1953_v55 = vcombine.low %v1949_v45, %v1950_v44  ;;  %v2074_v32 = vmul.f32 %v1942_v20, %v2874_v16  ;;  %v2075_v42 = vmul.f32 %v1946_v31, %v2882_v22  ;;  %v3091_v41 = vmul.f32 %v1942_v20, %v2901_v3  ;;  %v3305_v22 = vld [vmem:[#allocation9_spill] sm:$0xff] }
 0x1a6   :  { %v2106_v23 = vmul.f32 %v1946_v31, %v2907_v14  ;;  %v3095_v25 = vmul.f32 %v1942_v20, %v2905_v8  ;;  %v3098_v29 = vmul.f32 %v1946_v31, %v2910_v26  ;;  %v3102_v11 = vmul.f32 %v1942_v20, %v2925_v2  ;;  %v3306_v14 = vld [vmem:[#allocation10_spill] sm:$0xff] }
 0x1a7   :  { %v1960_v4 = vrot.slane %v1953_v55, %v3077_v51  ;;  %v3105_v16 = vmul.f32 %v1946_v31, %v2932_v17  ;;  %v3108_v18 = vmul.f32 %v1942_v20, %v2928_v9  ;;  %v3111_v3 = vmul.f32 %v1946_v31, %v3305_v22  ;;  %v3310_v17 = vld [vmem:[#allocation14_spill] sm:$0xff] }
 0x1a8   :  { %v3114_v8 = vmul.f32 %v1942_v20, %v3306_v14  ;;  %v3117_v26 = vmul.f32 %v1946_v31, %v3307_v13  ;;  %v3120_v53 = vmul.f32 %v1942_v20, %v3308_v52  ;;  %v3123_v7 = vmul.f32 %v1946_v31, %v3309_v27 }
 0x1a9   :  { %v1967_v33 = vrot.slane %v1960_v4, %v3077_v51  ;;  %v3126_v12 = vmul.f32 %v1942_v20, %v3310_v17  ;;  %v3129_v9 = vmul.f32 %v1946_v31, %v2977_v48  ;;  %v3132_v19 = vmul.f32 %v1942_v20, %v3311_v30 }
 0x1aa   :  { %v3135_v60 = vmul.f32 %v1946_v31, %v2980_v57  ;;  %v3138_v36 = vmul.f32 %v1942_v20, %v2993_v50  ;;  %v3141_v59 = vmul.f32 %v1946_v31, %v3001_v21  ;;  %v3148_v15 = vmul.f32 %v1942_v20, %v2997_v43 }
 0x1ab   :  { %v1969_v2 = vsub.f32 %v1937_v46, %v1967_v33  ;;  %v3151_v48 = vmul.f32 %v1946_v31, %v3004_v49  ;;  %v3154_v34 = vmul.f32 %v1942_v20, %v3312_v47  ;;  %v3157_v57 = vmul.f32 %v1946_v31, %v3024_v54 }
 0x1ac   :  { %v3160_v50 = vmul.f32 %v1942_v20, %v3018_v1  ;;  %v3163_v21 = vmul.f32 %v1946_v31, %v3026_v58 }
 0x1ad   :  { %v3143_v6 = vrot.slane %v1969_v2, %v1941_v24  ;;  %v3145_v10 = vrot.slane %v1969_v2, %v1945_v0 }
 0x1af   :  { %v1983_v62 = vadd.f32 %v3143_v6, %v1970_v37  ;;  %v1984_v43 = vadd.f32 %v3145_v10, %v1971_v56  ;;  %v2014_v28 = vadd.f32 %v2012_v61, %v3143_v6  ;;  %v2015_v49 = vadd.f32 %v2013_v63, %v3145_v10 }
 0x1b0   :  { %v2045_v39 = vadd.f32 %v2043_v38, %v3143_v6  ;;  %v2046_v40 = vadd.f32 %v2044_v35, %v3145_v10  ;;  %v2076_v54 = vadd.f32 %v2074_v32, %v3143_v6  ;;  %v2077_v1 = vadd.f32 %v2075_v42, %v3145_v10 }
 0x1b1   :  { %vm1985_vm3 = vcmp.ge.f32.partialorder %v1983_v62, 0.0  ;;  %vm1986_vm4 = vcmp.ge.f32.partialorder %v1984_v43, 0.0  ;;  %v1987_v58 = vmul.f32 0.2, %v1983_v62  ;;  %v1988_v24 = vmul.f32 0.2, %v1984_v43 }
 0x1b2   :  { %vm2016_vm5 = vcmp.ge.f32.partialorder %v2014_v28, 0.0  ;;  %vm2017_vm6 = vcmp.ge.f32.partialorder %v2015_v49, 0.0  ;;  %v2018_v0 = vmul.f32 0.2, %v2014_v28  ;;  %v2019_v5 = vmul.f32 0.2, %v2015_v49 }
 0x1b3   :  { %v1989_v20 = vsel %vm1985_vm3, %v1983_v62, %v1987_v58  ;;  %v1990_v31 = vsel %vm1986_vm4, %v1984_v43, %v1988_v24  ;;  %vm2047_vm7 = vcmp.ge.f32.partialorder %v2045_v39, 0.0  ;;  %vm2048_vm8 = vcmp.ge.f32.partialorder %v2046_v40, 0.0 }
 0x1b4   :  { %v2611_v45 = vpack.c.bf16 %v1990_v31, %v1989_v20  ;;  %v2020_v44 = vsel %vm2016_vm5, %v2014_v28, %v2018_v0  ;;  %v2021_v55 = vsel %vm2017_vm6, %v2015_v49, %v2019_v5  ;;  %v2049_v37 = vmul.f32 0.2, %v2045_v39 }
 0x1b5   :  { %v2613_v56 = vpack.c.bf16 %v2021_v55, %v2020_v44  ;;  %v2050_v61 = vmul.f32 0.2, %v2046_v40  ;;  %vm2078_vm9 = vcmp.ge.f32.partialorder %v2076_v54, 0.0  ;;  %vm2079_vm10 = vcmp.ge.f32.partialorder %v2077_v1, 0.0 }
 0x1b6   :  { %v2002_v63 = vrot.slane %v2611_v45, %v3077_v51  ;;  %v2051_v38 = vsel %vm2047_vm7, %v2045_v39, %v2049_v37  ;;  %v2080_v4 = vmul.f32 0.2, %v2076_v54  ;;  %v2081_v35 = vmul.f32 0.2, %v2077_v1 }
 0x1b7   :  { %v2033_v32 = vrot.slane %v2613_v56, %v3077_v51  ;;  %v2052_v42 = vsel %vm2048_vm8, %v2046_v40, %v2050_v61  ;;  %v2107_v46 = vadd.f32 %v3091_v41, %v3143_v6  ;;  %v2108_v33 = vadd.f32 %v2106_v23, %v3145_v10 }
 0x1b8   :  { %2612 = vst.sshfl [vmem:[%s3288_s4] sm:$0x5 pattern:$0x73625140] %v2002_v63  ;;  %v2615_v22 = vpack.c.bf16 %v2052_v42, %v2051_v38  ;;  %v2082_v14 = vsel %vm2078_vm9, %v2076_v54, %v2080_v4  ;;  %v2083_v13 = vsel %vm2079_vm10, %v2077_v1, %v2081_v35  ;;  %v2138_v52 = vadd.f32 %v3095_v25, %v3143_v6 }
 0x1b9   :  { %2614 = vst.sshfl [vmem:[%s3288_s4 + $0x2] sm:$0x5 pattern:$0x73625140] %v2033_v32  ;;  %v2617_v2 = vpack.c.bf16 %v2083_v13, %v2082_v14  ;;  %vm2109_vm11 = vcmp.ge.f32.partialorder %v2107_v46, 0.0  ;;  %vm2110_vm12 = vcmp.ge.f32.partialorder %v2108_v33, 0.0  ;;  %v2139_v17 = vadd.f32 %v3098_v29, %v3145_v10 }
 0x1ba   :  { %v2111_v41 = vmul.f32 0.2, %v2107_v46  ;;  %v2064_v23 = vrot.slane %v2615_v22, %v3077_v51  ;;  %v2112_v27 = vmul.f32 0.2, %v2108_v33  ;;  %vm2140_vm13 = vcmp.ge.f32.partialorder %v2138_v52, 0.0 }
 0x1bb   :  { %v2095_v30 = vrot.slane %v2617_v2, %v3077_v51  ;;  %v2142_v62 = vmul.f32 0.2, %v2138_v52  ;;  %v2169_v25 = vadd.f32 %v3102_v11, %v3143_v6  ;;  %vm2141_vm14 = vcmp.ge.f32.partialorder %v2139_v17, 0.0 }
 0x1bc   :  { %v2113_v47 = vsel %vm2109_vm11, %v2107_v46, %v2111_v41  ;;  %2616 = vst.sshfl [vmem:[%s3288_s4 + $0x4] sm:$0x5 pattern:$0x73625140] %v2064_v23  ;;  %v2114_v43 = vsel %vm2110_vm12, %v2108_v33, %v2112_v27  ;;  %v2143_v28 = vmul.f32 0.2, %v2139_v17  ;;  %v2170_v49 = vadd.f32 %v3105_v16, %v3145_v10 }
 0x1bd   :  { %2618 = vst.sshfl [vmem:[%s3288_s4 + $0x6] sm:$0x5 pattern:$0x73625140] %v2095_v30  ;;  %v2619_v29 = vpack.c.bf16 %v2114_v43, %v2113_v47  ;;  %v2144_v39 = vsel %vm2140_vm13, %v2138_v52, %v2142_v62  ;;  %vm2171_vm15 = vcmp.ge.f32.partialorder %v2169_v25, 0.0  ;;  %v2200_v1 = vadd.f32 %v3108_v18, %v3143_v6 }
 0x1be   :  { %v2173_v40 = vmul.f32 0.2, %v2169_v25  ;;  %v2145_v54 = vsel %vm2141_vm14, %v2139_v17, %v2143_v28  ;;  %vm2172_vm0 = vcmp.ge.f32.partialorder %v2170_v49, 0.0  ;;  %v2174_v11 = vmul.f32 0.2, %v2170_v49 }
 0x1bf   :  { %v2126_v58 = vrot.slane %v2619_v29, %v3077_v51  ;;  %v2621_v24 = vpack.c.bf16 %v2145_v54, %v2144_v39  ;;  %v2201_v16 = vadd.f32 %v3111_v3, %v3145_v10  ;;  %vm2202_vm1 = vcmp.ge.f32.partialorder %v2200_v1, 0.0 }
 0x1c0   :  { %v2175_v0 = vsel %vm2171_vm15, %v2169_v25, %v2173_v40  ;;  %v2176_v5 = vsel %vm2172_vm0, %v2170_v49, %v2174_v11  ;;  %v2204_v20 = vmul.f32 0.2, %v2200_v1  ;;  %v2231_v31 = vadd.f32 %v3114_v8, %v3143_v6 }
 0x1c1   :  { %2620 = vst.sshfl [vmem:[%s3288_s4 + $0x8] sm:$0x5 pattern:$0x73625140] %v2126_v58  ;;  %v2157_v45 = vrot.slane %v2621_v24, %v3077_v51  ;;  %v2623_v18 = vpack.c.bf16 %v2176_v5, %v2175_v0  ;;  %vm2203_vm2 = vcmp.ge.f32.partialorder %v2201_v16, 0.0  ;;  %v2232_v37 = vadd.f32 %v3117_v26, %v3145_v10 }
 0x1c2   :  { %v2205_v44 = vmul.f32 0.2, %v2201_v16  ;;  %v2206_v55 = vsel %vm2202_vm1, %v2200_v1, %v2204_v20  ;;  %vm2233_vm3 = vcmp.ge.f32.partialorder %v2231_v31, 0.0  ;;  %v2235_v3 = vmul.f32 0.2, %v2231_v31 }
 0x1c3   :  { %2622 = vst.sshfl [vmem:[%s3288_s4 + $0xa] sm:$0x5 pattern:$0x73625140] %v2157_v45  ;;  %v2188_v8 = vrot.slane %v2623_v18, %v3077_v51  ;;  %v2262_v61 = vadd.f32 %v3120_v53, %v3143_v6  ;;  %v2263_v63 = vadd.f32 %v3123_v7, %v3145_v10  ;;  %vm2234_vm4 = vcmp.ge.f32.partialorder %v2232_v37, 0.0 }
 0x1c4   :  { %v2207_v56 = vsel %vm2203_vm2, %v2201_v16, %v2205_v44  ;;  %v2236_v4 = vmul.f32 0.2, %v2232_v37  ;;  %v2237_v35 = vsel %vm2233_vm3, %v2231_v31, %v2235_v3  ;;  %v2293_v53 = vadd.f32 %v3126_v12, %v3143_v6 }
 0x1c5   :  { %v2625_v38 = vpack.c.bf16 %v2207_v56, %v2206_v55  ;;  %2624 = vst.sshfl [vmem:[%s3288_s4 + $0xc] sm:$0x5 pattern:$0x73625140] %v2188_v8  ;;  %vm2264_vm5 = vcmp.ge.f32.partialorder %v2262_v61, 0.0  ;;  %vm2265_vm6 = vcmp.ge.f32.partialorder %v2263_v63, 0.0  ;;  %v2294_v7 = vadd.f32 %v3129_v9, %v3145_v10 }
 0x1c6   :  { %v2266_v26 = vmul.f32 0.2, %v2262_v61  ;;  %v2267_v32 = vmul.f32 0.2, %v2263_v63  ;;  %v2238_v46 = vsel %vm2234_vm4, %v2232_v37, %v2236_v4  ;;  %v2324_v13 = vadd.f32 %v3132_v19, %v3143_v6 }
 0x1c7   :  { %v2219_v42 = vrot.slane %v2625_v38, %v3077_v51  ;;  %v2627_v33 = vpack.c.bf16 %v2238_v46, %v2237_v35  ;;  %vm2295_vm7 = vcmp.ge.f32.partialorder %v2293_v53, 0.0  ;;  %vm2296_vm8 = vcmp.ge.f32.partialorder %v2294_v7, 0.0 }
 0x1c8   :  { %v2268_v22 = vsel %vm2264_vm5, %v2262_v61, %v2266_v26  ;;  %v2269_v14 = vsel %vm2265_vm6, %v2263_v63, %v2267_v32  ;;  %v2297_v2 = vmul.f32 0.2, %v2293_v53  ;;  %v2298_v12 = vmul.f32 0.2, %v2294_v7 }
 0x1c9   :  { %2626 = vst.sshfl [vmem:[%s3288_s4 + $0xe] sm:$0x5 pattern:$0x73625140] %v2219_v42  ;;  %v2629_v52 = vpack.c.bf16 %v2269_v14, %v2268_v22  ;;  %v2250_v41 = vrot.slane %v2627_v33, %v3077_v51  ;;  %v2325_v9 = vadd.f32 %v3135_v60, %v3145_v10  ;;  %vm2326_vm9 = vcmp.ge.f32.partialorder %v2324_v13, 0.0 }
 0x1ca   :  { %v2299_v27 = vsel %vm2295_vm7, %v2293_v53, %v2297_v2  ;;  %v2328_v17 = vmul.f32 0.2, %v2324_v13  ;;  %v2355_v19 = vadd.f32 %v3138_v36, %v3143_v6  ;;  %v2300_v30 = vsel %vm2296_vm8, %v2294_v7, %v2298_v12 }
 0x1cb   :  { %v2281_v23 = vrot.slane %v2629_v52, %v3077_v51  ;;  %2628 = vst.sshfl [vmem:[%s3288_s4 + $0x10] sm:$0x5 pattern:$0x73625140] %v2250_v41  ;;  %vm2327_vm10 = vcmp.ge.f32.partialorder %v2325_v9, 0.0  ;;  %v2356_v62 = vadd.f32 %v3141_v59, %v3145_v10  ;;  %v2631_v60 = vpack.c.bf16 %v2300_v30, %v2299_v27 }
 0x1cc   :  { %v2329_v47 = vmul.f32 0.2, %v2325_v9  ;;  %v2330_v25 = vsel %vm2326_vm9, %v2324_v13, %v2328_v17  ;;  %vm2357_vm11 = vcmp.ge.f32.partialorder %v2355_v19, 0.0  ;;  %v2359_v43 = vmul.f32 0.2, %v2355_v19 }
 0x1cd   :  { %2630 = vst.sshfl [vmem:[%s3288_s4 + $0x12] sm:$0x5 pattern:$0x73625140] %v2281_v23  ;;  %vm2358_vm12 = vcmp.ge.f32.partialorder %v2356_v62, 0.0  ;;  %v2386_v49 = vadd.f32 %v3148_v15, %v3143_v6  ;;  %v2312_v29 = vrot.slane %v2631_v60, %v3077_v51  ;;  %v2387_v59 = vadd.f32 %v3151_v48, %v3145_v10 }
 0x1ce   :  { %v2331_v28 = vsel %vm2327_vm10, %v2325_v9, %v2329_v47  ;;  %v2360_v36 = vmul.f32 0.2, %v2356_v62  ;;  %v2361_v40 = vsel %vm2357_vm11, %v2355_v19, %v2359_v43  ;;  %v2417_v1 = vadd.f32 %v3154_v34, %v3143_v6 }
 0x1cf   :  { %v2633_v39 = vpack.c.bf16 %v2331_v28, %v2330_v25  ;;  %vm2388_vm13 = vcmp.ge.f32.partialorder %v2386_v49, 0.0  ;;  %v2390_v11 = vmul.f32 0.2, %v2386_v49  ;;  %vm2389_vm14 = vcmp.ge.f32.partialorder %v2387_v59, 0.0 }
 0x1d0   :  { %v2362_v54 = vsel %vm2358_vm12, %v2356_v62, %v2360_v36  ;;  %2632 = vst.sshfl [vmem:[%s3288_s4 + $0x14] sm:$0x5 pattern:$0x73625140] %v2312_v29  ;;  %v2391_v24 = vmul.f32 0.2, %v2387_v59  ;;  %v2418_v16 = vadd.f32 %v3157_v57, %v3145_v10  ;;  %v2448_v20 = vadd.f32 %v3160_v50, %v3143_v6 }
 0x1d1   :  { %v2343_v58 = vrot.slane %v2633_v39, %v3077_v51  ;;  %v2635_v15 = vpack.c.bf16 %v2362_v54, %v2361_v40  ;;  %v2392_v0 = vsel %vm2388_vm13, %v2386_v49, %v2390_v11  ;;  %vm2419_vm15 = vcmp.ge.f32.partialorder %v2417_v1, 0.0 }
 0x1d2   :  { %v2421_v48 = vmul.f32 0.2, %v2417_v1  ;;  %v2393_v5 = vsel %vm2389_vm14, %v2387_v59, %v2391_v24  ;;  %v2449_v31 = vadd.f32 %v3163_v21, %v3145_v10  ;;  %vm2420_vm0 = vcmp.ge.f32.partialorder %v2418_v16, 0.0 }
 0x1d3   :  { %2634 = vst.sshfl [vmem:[%s3288_s4 + $0x16] sm:$0x5 pattern:$0x73625140] %v2343_v58  ;;  %v2374_v34 = vrot.slane %v2635_v15, %v3077_v51  ;;  %v2637_v45 = vpack.c.bf16 %v2393_v5, %v2392_v0  ;;  %v2422_v18 = vmul.f32 0.2, %v2418_v16 }
 0x1d4   :  { %v2423_v44 = vsel %vm2419_vm15, %v2417_v1, %v2421_v48  ;;  %vm2450_vm1 = vcmp.ge.f32.partialorder %v2448_v20, 0.0  ;;  %vm2451_vm2 = vcmp.ge.f32.partialorder %v2449_v31, 0.0  ;;  %v2452_v57 = vmul.f32 0.2, %v2448_v20 }
 0x1d5   :  { %2636 = vst.sshfl [vmem:[%s3288_s4 + $0x18] sm:$0x5 pattern:$0x73625140] %v2374_v34  ;;  %v2453_v55 = vmul.f32 0.2, %v2449_v31  ;;  %v2405_v37 = vrot.slane %v2637_v45, %v3077_v51  ;;  %v2424_v3 = vsel %vm2420_vm0, %v2418_v16, %v2422_v18 }
 0x1d6   :  { %v2639_v8 = vpack.c.bf16 %v2424_v3, %v2423_v44  ;;  %v2454_v6 = vsel %vm2450_vm1, %v2448_v20, %v2452_v57 }
 0x1d7   :  { %v2455_v50 = vsel %vm2451_vm2, %v2449_v31, %v2453_v55  ;;  %2638 = vst.sshfl [vmem:[%s3288_s4 + $0x1a] sm:$0x5 pattern:$0x73625140] %v2405_v37 }
 0x1d8   :  { %v2641_v10 = vpack.c.bf16 %v2455_v50, %v2454_v6  ;;  %v2436_v21 = vrot.slane %v2639_v8, %v3077_v51 }
 0x1da   :  { %v2467_v56 = vrot.slane %v2641_v10, %v3077_v51  ;;  %2640 = vst.sshfl [vmem:[%s3288_s4 + $0x1c] sm:$0x5 pattern:$0x73625140] %v2436_v21 }
 0x1dc   :  { %2642 = vst.sshfl [vmem:[%s3288_s4 + $0x1e] sm:$0x5 pattern:$0x73625140] %v2467_v56 }
 0x1dd   :  { %2481 = vsyncpa [#allocation3], 1 }
 0x1de   :  { %2482 = vsyncpa [#allocation5], 1 }

// kernel: _lambda_.5
= control target key start
LH: loop header
LB: loop body
LE: loop exit
PB: predicated region body
PF: predicated region fallthrough
CT: control target
= control target key end

     0   :  { %s6289_s1 = inlined_call_operand.vmem [shape: bf16[4,1024,128], index: 1, kind: input, shape index: {}]   ;;  %s6290_s0 = inlined_call_operand.vmem [shape: bf16[4,32,1024], index: 0, kind: input, shape index: {}]   ;;  %s6291_s2 = inlined_call_operand.vmem [shape: f32[1,128], index: 2, kind: input, shape index: {}]   ;;  %s6292_s3 = inlined_call_operand.vmem [shape: f32[1,128], index: 3, kind: input, shape index: {}]   ;;  %s6293_s4 = inlined_call_operand.vmem [shape: bf16[4,32,128], index: 4, kind: output, shape index: {}]  }
   0x1   :  { %v4854_v0 = vld [vmem:[%s6289_s1 + $0x78] sm:$0xff]   ;;  %v4858_v4 = vld [vmem:[%s6289_s1 + $0x70] sm:$0xff]   ;;  %v4862_v8 = vld [vmem:[%s6289_s1 + $0x68] sm:$0xff]  }
   0x2   :  { %v4855_v1 = vld [vmem:[%s6289_s1 + $0xf8] sm:$0xff]   ;;  %4406 = vmatprep.subr.bf16.mxu0 %v4854_v0  ;;  %v4859_v5 = vld [vmem:[%s6289_s1 + $0xf0] sm:$0xff]   ;;  %v4863_v9 = vld [vmem:[%s6289_s1 + $0xe8] sm:$0xff]  }
   0x3   :  { %v4856_v2 = vld [vmem:[%s6289_s1 + $0x38] sm:$0xff]   ;;  %4434 = vmatprep.subr.bf16.mxu1 %v4855_v1  ;;  %v4860_v6 = vld [vmem:[%s6289_s1 + $0x30] sm:$0xff]   ;;  %v4864_v10 = vld [vmem:[%s6289_s1 + $0x28] sm:$0xff]  }
   0x4   :  { %v4857_v3 = vld [vmem:[%s6289_s1 + $0xb8] sm:$0xff]   ;;  %4407 = vmatpush3.bf16.msra.mxu0 %v4856_v2  ;;  %v4861_v7 = vld [vmem:[%s6289_s1 + $0xb0] sm:$0xff]   ;;  %v4865_v11 = vld [vmem:[%s6289_s1 + $0xa8] sm:$0xff]  }
   0x5   :  { %4435 = vmatpush3.bf16.msra.mxu1 %v4857_v3  ;;  %4408 = vmatprep.subr.bf16.mxu0 %v4858_v4  ;;  %v4866_v12 = vld [vmem:[%s6289_s1 + $0x60] sm:$0xff]   ;;  %v4870_v16 = vld [vmem:[%s6289_s1 + $0x58] sm:$0xff]   ;;  %v4874_v20 = vld [vmem:[%s6289_s1 + $0x50] sm:$0xff]  }
   0x6   :  { %4436 = vmatprep.subr.bf16.mxu1 %v4859_v5  ;;  %v4867_v13 = vld [vmem:[%s6289_s1 + $0xe0] sm:$0xff]   ;;  %v4871_v17 = vld [vmem:[%s6289_s1 + $0xd8] sm:$0xff]   ;;  %v4875_v21 = vld [vmem:[%s6289_s1 + $0xd0] sm:$0xff]  }
   0x7   :  { %v4868_v14 = vld [vmem:[%s6289_s1 + $0x20] sm:$0xff]   ;;  %v4872_v18 = vld [vmem:[%s6289_s1 + $0x18] sm:$0xff]   ;;  %v4876_v22 = vld [vmem:[%s6289_s1 + $0x10] sm:$0xff]  }
   0x8   :  { %4409 = vmatpush3.bf16.msra.mxu0 %v4860_v6  ;;  %v4869_v15 = vld [vmem:[%s6289_s1 + $0xa0] sm:$0xff]   ;;  %v4873_v19 = vld [vmem:[%s6289_s1 + $0x98] sm:$0xff]   ;;  %v4877_v23 = vld [vmem:[%s6289_s1 + $0x90] sm:$0xff]  }
   0x9   :  { %4437 = vmatpush3.bf16.msra.mxu1 %v4861_v7  ;;  %4410 = vmatprep.subr.bf16.mxu0 %v4862_v8  ;;  %v4878_v24 = vld [vmem:[%s6289_s1 + $0x48] sm:$0xff]   ;;  %v4882_v28 = vld [vmem:[%s6289_s1 + $0x40] sm:$0xff]   ;;  %v4886_v40 = vld [vmem:[%s6289_s1 + $0x178] sm:$0xff]  }
   0xa   :  { %4438 = vmatprep.subr.bf16.mxu1 %v4863_v9  ;;  %v4879_v25 = vld [vmem:[%s6289_s1 + $0xc8] sm:$0xff]   ;;  %v4883_v29 = vld [vmem:[%s6289_s1 + $0xc0] sm:$0xff]   ;;  %v4887_v41 = vld [vmem:[%s6289_s1 + $0x1f8] sm:$0xff]  }
   0xb   :  { %v4880_v26 = vld [vmem:[%s6289_s1 + $0x8] sm:$0xff]   ;;  %v4884_v30 = vld [vmem:[%s6289_s1] sm:$0xff]   ;;  %v4888_v42 = vld [vmem:[%s6289_s1 + $0x138] sm:$0xff]  }
   0xc   :  { %4411 = vmatpush3.bf16.msra.mxu0 %v4864_v10  ;;  %v4881_v27 = vld [vmem:[%s6289_s1 + $0x88] sm:$0xff]   ;;  %v4885_v31 = vld [vmem:[%s6289_s1 + $0x80] sm:$0xff]   ;;  %v4889_v43 = vld [vmem:[%s6289_s1 + $0x1b8] sm:$0xff]  }
   0xd   :  { %4439 = vmatpush3.bf16.msra.mxu1 %v4865_v11  ;;  %4412 = vmatprep.subr.bf16.mxu0 %v4866_v12  ;;  %v18_v32 = vld [vmem:[%s6290_s0] sm:$0xff]  ;;  %v19_v34 = vld [vmem:[%s6290_s0 + $0x8] sm:$0xff]  ;;  %v4890_v44 = vld [vmem:[%s6289_s1 + $0x170] sm:$0xff]  }
   0xe   :  { %4440 = vmatprep.subr.bf16.mxu1 %v4867_v13  ;;  %v22_v33 = vld [vmem:[%s6290_s0 + $0x20] sm:$0xff]  ;;  %v23_v37 = vld [vmem:[%s6290_s0 + $0x28] sm:$0xff]  ;;  %v4891_v45 = vld [vmem:[%s6289_s1 + $0x1f0] sm:$0xff]  }
   0xf   :  { %v3563_v35 = vcombine.low %v18_v32, %v22_v33  ;;  %v3564_v36 = vcombine.high %v18_v32, %v22_v33  ;;  %v3565_v38 = vcombine.low %v19_v34, %v23_v37  ;;  %v3566_v39 = vcombine.high %v19_v34, %v23_v37  ;;  %v4892_v46 = vld [vmem:[%s6289_s1 + $0x130] sm:$0xff]   ;;  %v4894_v48 = vld [vmem:[%s6289_s1 + $0x168] sm:$0xff]   ;;  %v4898_v52 = vld [vmem:[%s6289_s1 + $0x160] sm:$0xff]  }
  0x10   :  { %4413 = vmatpush3.bf16.msra.mxu0 %v4868_v14  ;;  %v4893_v47 = vld [vmem:[%s6289_s1 + $0x1b0] sm:$0xff]   ;;  %v4895_v49 = vld [vmem:[%s6289_s1 + $0x1e8] sm:$0xff]   ;;  %v4899_v53 = vld [vmem:[%s6289_s1 + $0x1e0] sm:$0xff]  }
  0x11   :  { %4441 = vmatpush3.bf16.msra.mxu1 %v4869_v15  ;;  %4414 = vmatprep.subr.bf16.mxu0 %v4870_v16  ;;  %v4896_v50 = vld [vmem:[%s6289_s1 + $0x128] sm:$0xff]   ;;  %v4900_v54 = vld [vmem:[%s6289_s1 + $0x120] sm:$0xff]   ;;  %v4902_v56 = vld [vmem:[%s6289_s1 + $0x158] sm:$0xff]  }
  0x12   :  { %4442 = vmatprep.subr.bf16.mxu1 %v4871_v17  ;;  %658 = vmatprep.mubr.bf16.mxu0 %v3564_v36  ;;  %v4897_v51 = vld [vmem:[%s6289_s1 + $0x1a8] sm:$0xff]   ;;  %v4901_v55 = vld [vmem:[%s6289_s1 + $0x1a0] sm:$0xff]   ;;  %v4903_v57 = vld [vmem:[%s6289_s1 + $0x1d8] sm:$0xff]  }
  0x13   :  { %707 = vmatprep.mubr.bf16.mxu1 %v3566_v39  ;;  %v4904_v58 = vld [vmem:[%s6289_s1 + $0x118] sm:$0xff]   ;;  %v26_v60 = vld [vmem:[%s6290_s0 + $0x40] sm:$0xff]  ;;  %v27_v63 = vld [vmem:[%s6290_s0 + $0x48] sm:$0xff] }
  0x14   :  { %4415 = vmatpush3.bf16.msra.mxu0 %v4872_v18  ;;  %v4905_v59 = vld [vmem:[%s6289_s1 + $0x198] sm:$0xff]   ;;  %v30_v61 = vld [vmem:[%s6290_s0 + $0x60] sm:$0xff]  ;;  %v31_v0 = vld [vmem:[%s6290_s0 + $0x68] sm:$0xff] }
  0x15   :  { %4443 = vmatpush3.bf16.msra.mxu1 %v4873_v19  ;;  %4416 = vmatprep.subr.bf16.mxu0 %v4874_v20  ;;  %v3572_v62 = vcombine.high %v26_v60, %v30_v61  ;;  %v3571_v1 = vcombine.low %v26_v60, %v30_v61  ;;  %v3574_v2 = vcombine.high %v27_v63, %v31_v0  ;;  %v4906_v4 = vld [vmem:[%s6289_s1 + $0x150] sm:$0xff]   ;;  %v4910_v8 = vld [vmem:[%s6289_s1 + $0x148] sm:$0xff]   ;;  %v4914_v12 = vld [vmem:[%s6289_s1 + $0x140] sm:$0xff]  }
  0x16   :  { %4444 = vmatprep.subr.bf16.mxu1 %v4875_v21  ;;  %v3573_v3 = vcombine.low %v27_v63, %v31_v0  ;;  %v4907_v5 = vld [vmem:[%s6289_s1 + $0x1d0] sm:$0xff]   ;;  %v4911_v9 = vld [vmem:[%s6289_s1 + $0x1c8] sm:$0xff]   ;;  %v4915_v13 = vld [vmem:[%s6289_s1 + $0x1c0] sm:$0xff]  }
  0x17   :  { %v4908_v6 = vld [vmem:[%s6289_s1 + $0x110] sm:$0xff]   ;;  %v4912_v10 = vld [vmem:[%s6289_s1 + $0x108] sm:$0xff]   ;;  %v4916_v14 = vld [vmem:[%s6289_s1 + $0x100] sm:$0xff]  }
  0x18   :  { %4417 = vmatpush3.bf16.msra.mxu0 %v4876_v22  ;;  %v4909_v7 = vld [vmem:[%s6289_s1 + $0x190] sm:$0xff]   ;;  %v4913_v11 = vld [vmem:[%s6289_s1 + $0x188] sm:$0xff]   ;;  %v4917_v15 = vld [vmem:[%s6289_s1 + $0x180] sm:$0xff]  }
  0x19   :  { %4445 = vmatpush3.bf16.msra.mxu1 %v4877_v23  ;;  %4418 = vmatprep.subr.bf16.mxu0 %v4878_v24  ;;  %v20_v16 = vld [vmem:[%s6290_s0 + $0x10] sm:$0xff]  ;;  %v21_v18 = vld [vmem:[%s6290_s0 + $0x18] sm:$0xff]  ;;  %v4926_v36 = vld [vmem:[%s6289_s1 + $0x268] sm:$0xff]  }
  0x1a   :  { %4446 = vmatprep.subr.bf16.mxu1 %v4879_v25  ;;  %v24_v17 = vld [vmem:[%s6290_s0 + $0x30] sm:$0xff]  ;;  %v25_v19 = vld [vmem:[%s6290_s0 + $0x38] sm:$0xff]  ;;  %v4927_v37 = vld [vmem:[%s6289_s1 + $0x2e8] sm:$0xff]  }
  0x1b   :  { %v3567_v20 = vcombine.low %v20_v16, %v24_v17  ;;  %v3568_v21 = vcombine.high %v20_v16, %v24_v17  ;;  %v3569_v22 = vcombine.low %v21_v18, %v25_v19  ;;  %v3570_v23 = vcombine.high %v21_v18, %v25_v19  ;;  %v4918_v24 = vld [vmem:[%s6289_s1 + $0x278] sm:$0xff]   ;;  %v28_v32 = vld [vmem:[%s6290_s0 + $0x50] sm:$0xff]  ;;  %v4946_v60 = vld [vmem:[%s6289_s1 + $0x240] sm:$0xff]  }
  0x1c   :  { %4419 = vmatpush3.bf16.msra.mxu0 %v4880_v26  ;;  %v4919_v25 = vld [vmem:[%s6289_s1 + $0x2f8] sm:$0xff]   ;;  %v32_v33 = vld [vmem:[%s6290_s0 + $0x70] sm:$0xff]  ;;  %v4947_v61 = vld [vmem:[%s6289_s1 + $0x2c0] sm:$0xff]  }
  0x1d   :  { %4447 = vmatpush3.bf16.msra.mxu1 %v4881_v27  ;;  %4420 = vmatprep.subr.bf16.mxu0 %v4882_v28  ;;  %v4920_v26 = vld [vmem:[%s6289_s1 + $0x238] sm:$0xff]   ;;  %v4922_v28 = vld [vmem:[%s6289_s1 + $0x270] sm:$0xff]   ;;  %v3576_v34 = vcombine.high %v28_v32, %v32_v33  ;;  %v4949_v63 = vld [vmem:[%s6289_s1 + $0x280] sm:$0xff]  }
  0x1e   :  { %4448 = vmatprep.subr.bf16.mxu1 %v4883_v29  ;;  %v4921_v27 = vld [vmem:[%s6289_s1 + $0x2b8] sm:$0xff]   ;;  %v4923_v29 = vld [vmem:[%s6289_s1 + $0x2f0] sm:$0xff]   ;;  %v3643_v0 = vld [vmem:[%s6290_s0 + $0x80] sm:$0xff] }
  0x1f   :  { %v33_v39 = vld [vmem:[%s6290_s0 + $0x78] sm:$0xff]  ;;  %v4958_v16 = vld [vmem:[%s6289_s1 + $0x368] sm:$0xff]  }
  0x20   :  { %4421 = vmatpush3.bf16.msra.mxu0 %v4884_v30  ;;  %v4924_v30 = vld [vmem:[%s6289_s1 + $0x230] sm:$0xff]   ;;  %v4959_v17 = vld [vmem:[%s6289_s1 + $0x3e8] sm:$0xff]  }
  0x21   :  { %4449 = vmatpush3.bf16.msra.mxu1 %v4885_v31  ;;  %4462 = vmatprep.subr.bf16.mxu0 %v4886_v40  ;;  %v4925_v31 = vld [vmem:[%s6289_s1 + $0x2b0] sm:$0xff]   ;;  %v4960_v18 = vld [vmem:[%s6289_s1 + $0x328] sm:$0xff]  }
  0x22   :  { %4490 = vmatprep.subr.bf16.mxu1 %v4887_v41  ;;  %v4928_v41 = vld [vmem:[%s6289_s1 + $0x228] sm:$0xff]  }
  0x23   :  { %659 = vmatmul.mubr.bf16.vlgmr.msra.gmra.mxu0 %v3563_v35  ;;  %v3575_v35 = vcombine.low %v28_v32, %v32_v33  ;;  %v4961_v19 = vld [vmem:[%s6289_s1 + $0x3a8] sm:$0xff]  }
  0x24   :  { %708 = vmatmul.mubr.bf16.vlgmr.msra.gmra.mxu1 %v3565_v38  ;;  %4463 = vmatpush3.bf16.msra.mxu0 %v4888_v42  ;;  %v29_v38 = vld [vmem:[%s6290_s0 + $0x58] sm:$0xff] }
  0x25   :  { %4491 = vmatpush3.bf16.msra.mxu1 %v4889_v43  ;;  %4464 = vmatprep.subr.bf16.mxu0 %v4890_v44  ;;  %v3578_v40 = vcombine.high %v29_v38, %v33_v39  ;;  %v3577_v42 = vcombine.low %v29_v38, %v33_v39  ;;  %v4929_v43 = vld [vmem:[%s6289_s1 + $0x2a8] sm:$0xff]   ;;  %v4930_v44 = vld [vmem:[%s6289_s1 + $0x260] sm:$0xff]   ;;  %v4972_v38 = vld [vmem:[%s6289_s1 + $0x310] sm:$0xff]  }
  0x26   :  { %4492 = vmatprep.subr.bf16.mxu1 %v4891_v45  ;;  %666 = vmatprep.mubr.bf16.mxu0 %v3572_v62  ;;  %v4931_v45 = vld [vmem:[%s6289_s1 + $0x2e0] sm:$0xff]   ;;  %v4973_v39 = vld [vmem:[%s6289_s1 + $0x390] sm:$0xff]  }
  0x27   :  { %715 = vmatprep.mubr.bf16.mxu1 %v3574_v2  ;;  %v4948_v62 = vld [vmem:[%s6289_s1 + $0x200] sm:$0xff]  }
  0x28   :  { %4465 = vmatpush3.bf16.msra.mxu0 %v4892_v46  ;;  %v4932_v46 = vld [vmem:[%s6289_s1 + $0x220] sm:$0xff]  }
  0x29   :  { %4493 = vmatpush3.bf16.msra.mxu1 %v4893_v47  ;;  %4466 = vmatprep.subr.bf16.mxu0 %v4894_v48  ;;  %v4933_v47 = vld [vmem:[%s6289_s1 + $0x2a0] sm:$0xff]   ;;  %v4934_v48 = vld [vmem:[%s6289_s1 + $0x258] sm:$0xff]  }
  0x2a   :  { %4494 = vmatprep.subr.bf16.mxu1 %v4895_v49  ;;  %v4935_v49 = vld [vmem:[%s6289_s1 + $0x2d8] sm:$0xff]  }
  0x2b   :  { %667 = vmatmul.mubr.bf16.gmra.mxu0 %v3571_v1  ;;  %v3647_v1 = vld [vmem:[%s6290_s0 + $0xa0] sm:$0xff] }
  0x2c   :  { %4467 = vmatpush3.bf16.msra.mxu0 %v4896_v50  ;;  %716 = vmatmul.mubr.bf16.gmra.mxu1 %v3573_v3  ;;  %v4936_v50 = vld [vmem:[%s6289_s1 + $0x218] sm:$0xff]   ;;  %v3787_v2 = vcombine.low %v3643_v0, %v3647_v1  ;;  %v3788_v3 = vcombine.high %v3643_v0, %v3647_v1  ;;  %v3653_v0 = vld [vmem:[%s6290_s0 + $0xd0] sm:$0xff] }
  0x2d   :  { %4495 = vmatpush3.bf16.msra.mxu1 %v4897_v51  ;;  %4468 = vmatprep.subr.bf16.mxu0 %v4898_v52  ;;  %v4937_v51 = vld [vmem:[%s6289_s1 + $0x298] sm:$0xff]   ;;  %v4938_v52 = vld [vmem:[%s6289_s1 + $0x250] sm:$0xff]  }
  0x2e   :  { %4496 = vmatprep.subr.bf16.mxu1 %v4899_v53  ;;  %756 = vmatprep.mubr.bf16.mxu0 %v3568_v21  ;;  %v4939_v53 = vld [vmem:[%s6289_s1 + $0x2d0] sm:$0xff]   ;;  %v4963_v21 = vld [vmem:[%s6289_s1 + $0x3e0] sm:$0xff]  }
  0x2f   :  { %805 = vmatprep.mubr.bf16.mxu1 %v3570_v23  ;;  %v4965_v23 = vld [vmem:[%s6289_s1 + $0x3a0] sm:$0xff]   ;;  %v3657_v1 = vld [vmem:[%s6290_s0 + $0xf0] sm:$0xff] }
  0x30   :  { %4469 = vmatpush3.bf16.msra.mxu0 %v4900_v54  ;;  %v4940_v54 = vld [vmem:[%s6289_s1 + $0x210] sm:$0xff]  }
  0x31   :  { %4497 = vmatpush3.bf16.msra.mxu1 %v4901_v55  ;;  %4470 = vmatprep.subr.bf16.mxu0 %v4902_v56  ;;  %v4941_v55 = vld [vmem:[%s6289_s1 + $0x290] sm:$0xff]   ;;  %v4942_v56 = vld [vmem:[%s6289_s1 + $0x248] sm:$0xff]  }
  0x32   :  { %4498 = vmatprep.subr.bf16.mxu1 %v4903_v57  ;;  %v4943_v57 = vld [vmem:[%s6289_s1 + $0x2c8] sm:$0xff]  }
  0x34   :  { %4471 = vmatpush3.bf16.msra.mxu0 %v4904_v58  ;;  %v4944_v58 = vld [vmem:[%s6289_s1 + $0x208] sm:$0xff]  }
  0x35   :  { %4499 = vmatpush3.bf16.msra.mxu1 %v4905_v59  ;;  %4472 = vmatprep.subr.bf16.mxu0 %v4906_v4  ;;  %v4945_v59 = vld [vmem:[%s6289_s1 + $0x288] sm:$0xff]  }
  0x36   :  { %4500 = vmatprep.subr.bf16.mxu1 %v4907_v5  ;;  %v3644_v4 = vld [vmem:[%s6290_s0 + $0x88] sm:$0xff] }
  0x37   :  { %v3648_v5 = vld [vmem:[%s6290_s0 + $0xa8] sm:$0xff] }
  0x38   :  { %4473 = vmatpush3.bf16.msra.mxu0 %v4908_v6  ;;  %v3789_v6 = vcombine.low %v3644_v4, %v3648_v5 }
  0x39   :  { %4501 = vmatpush3.bf16.msra.mxu1 %v4909_v7  ;;  %4474 = vmatprep.subr.bf16.mxu0 %v4910_v8  ;;  %v3790_v7 = vcombine.high %v3644_v4, %v3648_v5  ;;  %v4950_v8 = vld [vmem:[%s6289_s1 + $0x378] sm:$0xff]   ;;  %v4990_v4 = vld [vmem:[%s6289_s1 + $0x468] sm:$0xff]  }
  0x3a   :  { %4502 = vmatprep.subr.bf16.mxu1 %v4911_v9  ;;  %v4951_v9 = vld [vmem:[%s6289_s1 + $0x3f8] sm:$0xff]   ;;  %v4991_v5 = vld [vmem:[%s6289_s1 + $0x4e8] sm:$0xff]  }
  0x3c   :  { %4475 = vmatpush3.bf16.msra.mxu0 %v4912_v10  ;;  %v4952_v10 = vld [vmem:[%s6289_s1 + $0x338] sm:$0xff]  }
  0x3d   :  { %4503 = vmatpush3.bf16.msra.mxu1 %v4913_v11  ;;  %4476 = vmatprep.subr.bf16.mxu0 %v4914_v12  ;;  %v4953_v11 = vld [vmem:[%s6289_s1 + $0x3b8] sm:$0xff]   ;;  %v4954_v12 = vld [vmem:[%s6289_s1 + $0x370] sm:$0xff]  }
  0x3e   :  { %4504 = vmatprep.subr.bf16.mxu1 %v4915_v13  ;;  %v4955_v13 = vld [vmem:[%s6289_s1 + $0x3f0] sm:$0xff]  }
  0x40   :  { %4477 = vmatpush3.bf16.msra.mxu0 %v4916_v14  ;;  %v4956_v14 = vld [vmem:[%s6289_s1 + $0x330] sm:$0xff]  }
  0x41   :  { %4505 = vmatpush3.bf16.msra.mxu1 %v4917_v15  ;;  %4518 = vmatprep.subr.bf16.mxu0 %v4918_v24  ;;  %v4957_v15 = vld [vmem:[%s6289_s1 + $0x3b0] sm:$0xff]   ;;  %v4966_v24 = vld [vmem:[%s6289_s1 + $0x358] sm:$0xff]  }
  0x42   :  { %4546 = vmatprep.subr.bf16.mxu1 %v4919_v25  ;;  %v4967_v25 = vld [vmem:[%s6289_s1 + $0x3d8] sm:$0xff]  }
  0x43   :  { %757 = vmatmul.mubr.bf16.vlgmr.msra.gmra.mxu0 %v3567_v20  ;;  %v4962_v20 = vld [vmem:[%s6289_s1 + $0x360] sm:$0xff]  }
  0x44   :  { %806 = vmatmul.mubr.bf16.vlgmr.msra.gmra.mxu1 %v3569_v22  ;;  %4519 = vmatpush3.bf16.msra.mxu0 %v4920_v26  ;;  %v4964_v22 = vld [vmem:[%s6289_s1 + $0x320] sm:$0xff]   ;;  %v4968_v26 = vld [vmem:[%s6289_s1 + $0x318] sm:$0xff]  }
  0x45   :  { %4547 = vmatpush3.bf16.msra.mxu1 %v4921_v27  ;;  %4520 = vmatprep.subr.bf16.mxu0 %v4922_v28  ;;  %v4969_v27 = vld [vmem:[%s6289_s1 + $0x398] sm:$0xff]   ;;  %v3651_v28 = vld [vmem:[%s6290_s0 + $0xc0] sm:$0xff] }
  0x46   :  { %4548 = vmatprep.subr.bf16.mxu1 %v4923_v29  ;;  %764 = vmatprep.mubr.bf16.mxu0 %v3576_v34  ;;  %v3655_v29 = vld [vmem:[%s6290_s0 + $0xe0] sm:$0xff] }
  0x47   :  { %813 = vmatprep.mubr.bf16.mxu1 %v3578_v40  ;;  %v3796_v32 = vcombine.high %v3651_v28, %v3655_v29  ;;  %v3795_v34 = vcombine.low %v3651_v28, %v3655_v29  ;;  %v4974_v40 = vld [vmem:[%s6289_s1 + $0x348] sm:$0xff]   ;;  %v5010_v28 = vld [vmem:[%s6289_s1 + $0x440] sm:$0xff]  }
  0x48   :  { %4521 = vmatpush3.bf16.msra.mxu0 %v4924_v30  ;;  %v3652_v30 = vld [vmem:[%s6290_s0 + $0xc8] sm:$0xff]  ;;  %v5011_v29 = vld [vmem:[%s6289_s1 + $0x4c0] sm:$0xff]  }
  0x49   :  { %4549 = vmatpush3.bf16.msra.mxu1 %v4925_v31  ;;  %4522 = vmatprep.subr.bf16.mxu0 %v4926_v36  ;;  %v3656_v31 = vld [vmem:[%s6290_s0 + $0xe8] sm:$0xff]  ;;  %v4970_v36 = vld [vmem:[%s6289_s1 + $0x350] sm:$0xff]  }
  0x4a   :  { %4550 = vmatprep.subr.bf16.mxu1 %v4927_v37  ;;  %v3798_v33 = vcombine.high %v3652_v30, %v3656_v31  ;;  %v4971_v37 = vld [vmem:[%s6289_s1 + $0x3d0] sm:$0xff]  }
  0x4b   :  { %765 = vmatmul.mubr.bf16.gmra.mxu0 %v3575_v35  ;;  %v3797_v35 = vcombine.low %v3652_v30, %v3656_v31  ;;  %v5012_v30 = vld [vmem:[%s6289_s1 + $0x400] sm:$0xff]  }
  0x4c   :  { %4523 = vmatpush3.bf16.msra.mxu0 %v4928_v41  ;;  %814 = vmatmul.mubr.bf16.gmra.mxu1 %v3577_v42  ;;  %v4975_v41 = vld [vmem:[%s6289_s1 + $0x3c8] sm:$0xff]   ;;  %v5013_v31 = vld [vmem:[%s6289_s1 + $0x480] sm:$0xff]  }
  0x4d   :  { %4551 = vmatpush3.bf16.msra.mxu1 %v4929_v43  ;;  %4524 = vmatprep.subr.bf16.mxu0 %v4930_v44  ;;  %v4976_v42 = vld [vmem:[%s6289_s1 + $0x308] sm:$0xff]   ;;  %v4978_v44 = vld [vmem:[%s6289_s1 + $0x340] sm:$0xff]  }
  0x4e   :  { %4552 = vmatprep.subr.bf16.mxu1 %v4931_v45  ;;  %1492 = vmatprep.mubr.bf16.mxu0 %v3788_v3  ;;  %v4977_v43 = vld [vmem:[%s6289_s1 + $0x388] sm:$0xff]   ;;  %v4979_v45 = vld [vmem:[%s6289_s1 + $0x3c0] sm:$0xff]   ;;  %v3799_v3 = vcombine.low %v3653_v0, %v3657_v1 }
  0x4f   :  { %1541 = vmatprep.mubr.bf16.mxu1 %v3790_v7  ;;  %v3658_v7 = vld [vmem:[%s6290_s0 + $0xf8] sm:$0xff] }
  0x50   :  { %4525 = vmatpush3.bf16.msra.mxu0 %v4932_v46  ;;  %v4980_v46 = vld [vmem:[%s6289_s1 + $0x300] sm:$0xff]  }
  0x51   :  { %4553 = vmatpush3.bf16.msra.mxu1 %v4933_v47  ;;  %4526 = vmatprep.subr.bf16.mxu0 %v4934_v48  ;;  %v4981_v47 = vld [vmem:[%s6289_s1 + $0x380] sm:$0xff]   ;;  %v3645_v48 = vld [vmem:[%s6290_s0 + $0x90] sm:$0xff] }
  0x52   :  { %4554 = vmatprep.subr.bf16.mxu1 %v4935_v49  ;;  %v3649_v49 = vld [vmem:[%s6290_s0 + $0xb0] sm:$0xff] }
  0x54   :  { %4527 = vmatpush3.bf16.msra.mxu0 %v4936_v50  ;;  %v3646_v50 = vld [vmem:[%s6290_s0 + $0x98] sm:$0xff] }
  0x55   :  { %4555 = vmatpush3.bf16.msra.mxu1 %v4937_v51  ;;  %4528 = vmatprep.subr.bf16.mxu0 %v4938_v52  ;;  %v3791_v51 = vcombine.low %v3645_v48, %v3649_v49  ;;  %v3792_v52 = vcombine.high %v3645_v48, %v3649_v49  ;;  %v5022_v48 = vld [vmem:[%s6289_s1 + $0x568] sm:$0xff]  }
  0x56   :  { %4556 = vmatprep.subr.bf16.mxu1 %v4939_v53  ;;  %v3650_v53 = vld [vmem:[%s6290_s0 + $0xb8] sm:$0xff]  ;;  %v5023_v49 = vld [vmem:[%s6289_s1 + $0x5e8] sm:$0xff]  }
  0x58   :  { %4529 = vmatpush3.bf16.msra.mxu0 %v4940_v54  ;;  %v3793_v54 = vcombine.low %v3646_v50, %v3650_v53 }
  0x59   :  { %4557 = vmatpush3.bf16.msra.mxu1 %v4941_v55  ;;  %4530 = vmatprep.subr.bf16.mxu0 %v4942_v56  ;;  %v3794_v55 = vcombine.high %v3646_v50, %v3650_v53  ;;  %v4982_v56 = vld [vmem:[%s6289_s1 + $0x478] sm:$0xff]   ;;  %v5024_v50 = vld [vmem:[%s6289_s1 + $0x528] sm:$0xff]   ;;  %v5027_v53 = vld [vmem:[%s6289_s1 + $0x5e0] sm:$0xff]  }
  0x5a   :  { %4558 = vmatprep.subr.bf16.mxu1 %v4943_v57  ;;  %v4983_v57 = vld [vmem:[%s6289_s1 + $0x4f8] sm:$0xff]  }
  0x5c   :  { %4531 = vmatpush3.bf16.msra.mxu0 %v4944_v58  ;;  %v4984_v58 = vld [vmem:[%s6289_s1 + $0x438] sm:$0xff]  }
  0x5d   :  { %4559 = vmatpush3.bf16.msra.mxu1 %v4945_v59  ;;  %4532 = vmatprep.subr.bf16.mxu0 %v4946_v60  ;;  %v4985_v59 = vld [vmem:[%s6289_s1 + $0x4b8] sm:$0xff]   ;;  %v4986_v60 = vld [vmem:[%s6289_s1 + $0x470] sm:$0xff]  }
  0x5e   :  { %4560 = vmatprep.subr.bf16.mxu1 %v4947_v61  ;;  %v4987_v61 = vld [vmem:[%s6289_s1 + $0x4f0] sm:$0xff]  }
  0x60   :  { %4533 = vmatpush3.bf16.msra.mxu0 %v4948_v62  ;;  %v4988_v62 = vld [vmem:[%s6289_s1 + $0x430] sm:$0xff]  }
  0x61   :  { %4561 = vmatpush3.bf16.msra.mxu1 %v4949_v63  ;;  %4574 = vmatprep.subr.bf16.mxu0 %v4950_v8  ;;  %v4989_v63 = vld [vmem:[%s6289_s1 + $0x4b0] sm:$0xff]  }
  0x62   :  { %4602 = vmatprep.subr.bf16.mxu1 %v4951_v9  ;;  %v4992_v9 = vld [vmem:[%s6289_s1 + $0x428] sm:$0xff]  }
  0x63   :  { %1493 = vmatmul.mubr.bf16.vlgmr.msra.gmra.mxu0 %v3787_v2  ;;  %v3800_v2 = vcombine.high %v3653_v0, %v3657_v1  ;;  %v3880_v0 = vld [vmem:[%s6290_s0 + $0x168] sm:$0xff] }
  0x64   :  { %1542 = vmatmul.mubr.bf16.vlgmr.msra.gmra.mxu1 %v3789_v6  ;;  %4575 = vmatpush3.bf16.msra.mxu0 %v4952_v10  ;;  %v3654_v6 = vld [vmem:[%s6290_s0 + $0xd8] sm:$0xff] }
  0x65   :  { %4603 = vmatpush3.bf16.msra.mxu1 %v4953_v11  ;;  %4576 = vmatprep.subr.bf16.mxu0 %v4954_v12  ;;  %v3802_v8 = vcombine.high %v3654_v6, %v3658_v7  ;;  %v3801_v10 = vcombine.low %v3654_v6, %v3658_v7  ;;  %v4993_v11 = vld [vmem:[%s6289_s1 + $0x4a8] sm:$0xff]   ;;  %v4994_v12 = vld [vmem:[%s6289_s1 + $0x460] sm:$0xff]   ;;  %v5036_v6 = vld [vmem:[%s6289_s1 + $0x510] sm:$0xff]  }
  0x66   :  { %4604 = vmatprep.subr.bf16.mxu1 %v4955_v13  ;;  %1500 = vmatprep.mubr.bf16.mxu0 %v3796_v32  ;;  %v4995_v13 = vld [vmem:[%s6289_s1 + $0x4e0] sm:$0xff]   ;;  %v5037_v7 = vld [vmem:[%s6289_s1 + $0x590] sm:$0xff]  }
  0x67   :  { %1549 = vmatprep.mubr.bf16.mxu1 %v3798_v33  ;;  %v3867_v32 = vld [vmem:[%s6290_s0 + $0x100] sm:$0xff] }
  0x68   :  { %4577 = vmatpush3.bf16.msra.mxu0 %v4956_v14  ;;  %v4996_v14 = vld [vmem:[%s6289_s1 + $0x420] sm:$0xff]  }
  0x69   :  { %4605 = vmatpush3.bf16.msra.mxu1 %v4957_v15  ;;  %4578 = vmatprep.subr.bf16.mxu0 %v4958_v16  ;;  %v4997_v15 = vld [vmem:[%s6289_s1 + $0x4a0] sm:$0xff]   ;;  %v4998_v16 = vld [vmem:[%s6289_s1 + $0x458] sm:$0xff]  }
  0x6a   :  { %4606 = vmatprep.subr.bf16.mxu1 %v4959_v17  ;;  %v4999_v17 = vld [vmem:[%s6289_s1 + $0x4d8] sm:$0xff]   ;;  %v3871_v33 = vld [vmem:[%s6290_s0 + $0x120] sm:$0xff] }
  0x6b   :  { %1501 = vmatmul.mubr.bf16.gmra.mxu0 %v3795_v34  ;;  %v3868_v34 = vld [vmem:[%s6290_s0 + $0x108] sm:$0xff] }
  0x6c   :  { %4579 = vmatpush3.bf16.msra.mxu0 %v4960_v18  ;;  %1550 = vmatmul.mubr.bf16.gmra.mxu1 %v3797_v35  ;;  %v5000_v18 = vld [vmem:[%s6289_s1 + $0x418] sm:$0xff]   ;;  %v3872_v35 = vld [vmem:[%s6290_s0 + $0x128] sm:$0xff] }
  0x6d   :  { %4607 = vmatpush3.bf16.msra.mxu1 %v4961_v19  ;;  %4580 = vmatprep.subr.bf16.mxu0 %v4962_v20  ;;  %v5001_v19 = vld [vmem:[%s6289_s1 + $0x498] sm:$0xff]   ;;  %v5002_v20 = vld [vmem:[%s6289_s1 + $0x450] sm:$0xff]  }
  0x6e   :  { %4608 = vmatprep.subr.bf16.mxu1 %v4963_v21  ;;  %1590 = vmatprep.mubr.bf16.mxu0 %v3792_v52  ;;  %v5003_v21 = vld [vmem:[%s6289_s1 + $0x4d0] sm:$0xff]   ;;  %v5026_v52 = vld [vmem:[%s6289_s1 + $0x560] sm:$0xff]  }
  0x6f   :  { %1639 = vmatprep.mubr.bf16.mxu1 %v3794_v55  ;;  %v5029_v55 = vld [vmem:[%s6289_s1 + $0x5a0] sm:$0xff]  }
  0x70   :  { %4581 = vmatpush3.bf16.msra.mxu0 %v4964_v22  ;;  %v5004_v22 = vld [vmem:[%s6289_s1 + $0x410] sm:$0xff]  }
  0x71   :  { %4609 = vmatpush3.bf16.msra.mxu1 %v4965_v23  ;;  %4582 = vmatprep.subr.bf16.mxu0 %v4966_v24  ;;  %v5005_v23 = vld [vmem:[%s6289_s1 + $0x490] sm:$0xff]   ;;  %v5006_v24 = vld [vmem:[%s6289_s1 + $0x448] sm:$0xff]  }
  0x72   :  { %4610 = vmatprep.subr.bf16.mxu1 %v4967_v25  ;;  %v5007_v25 = vld [vmem:[%s6289_s1 + $0x4c8] sm:$0xff]  }
  0x74   :  { %4583 = vmatpush3.bf16.msra.mxu0 %v4968_v26  ;;  %v5008_v26 = vld [vmem:[%s6289_s1 + $0x408] sm:$0xff]  }
  0x75   :  { %4611 = vmatpush3.bf16.msra.mxu1 %v4969_v27  ;;  %4584 = vmatprep.subr.bf16.mxu0 %v4970_v36  ;;  %v5009_v27 = vld [vmem:[%s6289_s1 + $0x488] sm:$0xff]   ;;  %v4011_v36 = vcombine.low %v3867_v32, %v3871_v33 }
  0x76   :  { %4612 = vmatprep.subr.bf16.mxu1 %v4971_v37  ;;  %v4012_v37 = vcombine.high %v3867_v32, %v3871_v33  ;;  %v3877_v32 = vld [vmem:[%s6290_s0 + $0x150] sm:$0xff] }
  0x77   :  { %v3881_v33 = vld [vmem:[%s6290_s0 + $0x170] sm:$0xff] }
  0x78   :  { %4585 = vmatpush3.bf16.msra.mxu0 %v4972_v38  ;;  %v4013_v38 = vcombine.low %v3868_v34, %v3872_v35 }
  0x79   :  { %4613 = vmatpush3.bf16.msra.mxu1 %v4973_v39  ;;  %4586 = vmatprep.subr.bf16.mxu0 %v4974_v40  ;;  %v4014_v39 = vcombine.high %v3868_v34, %v3872_v35  ;;  %v5014_v40 = vld [vmem:[%s6289_s1 + $0x578] sm:$0xff]   ;;  %v4024_v34 = vcombine.high %v3877_v32, %v3881_v33  ;;  %v4023_v35 = vcombine.low %v3877_v32, %v3881_v33  ;;  %v5087_v33 = vld [vmem:[%s6289_s1 + $0x7e8] sm:$0xff]  }
  0x7a   :  { %4614 = vmatprep.subr.bf16.mxu1 %v4975_v41  ;;  %v5015_v41 = vld [vmem:[%s6289_s1 + $0x5f8] sm:$0xff]  }
  0x7c   :  { %4587 = vmatpush3.bf16.msra.mxu0 %v4976_v42  ;;  %v5016_v42 = vld [vmem:[%s6289_s1 + $0x538] sm:$0xff]  }
  0x7d   :  { %4615 = vmatpush3.bf16.msra.mxu1 %v4977_v43  ;;  %4588 = vmatprep.subr.bf16.mxu0 %v4978_v44  ;;  %v5017_v43 = vld [vmem:[%s6289_s1 + $0x5b8] sm:$0xff]   ;;  %v5018_v44 = vld [vmem:[%s6289_s1 + $0x570] sm:$0xff]  }
  0x7e   :  { %4616 = vmatprep.subr.bf16.mxu1 %v4979_v45  ;;  %v5019_v45 = vld [vmem:[%s6289_s1 + $0x5f0] sm:$0xff]  }
  0x80   :  { %4589 = vmatpush3.bf16.msra.mxu0 %v4980_v46  ;;  %v5020_v46 = vld [vmem:[%s6289_s1 + $0x530] sm:$0xff]  }
  0x81   :  { %4617 = vmatpush3.bf16.msra.mxu1 %v4981_v47  ;;  %4630 = vmatprep.subr.bf16.mxu0 %v4982_v56  ;;  %v5021_v47 = vld [vmem:[%s6289_s1 + $0x5b0] sm:$0xff]   ;;  %v5030_v56 = vld [vmem:[%s6289_s1 + $0x558] sm:$0xff]  }
  0x82   :  { %4658 = vmatprep.subr.bf16.mxu1 %v4983_v57  ;;  %v5031_v57 = vld [vmem:[%s6289_s1 + $0x5d8] sm:$0xff]  }
  0x83   :  { %1591 = vmatmul.mubr.bf16.vlgmr.msra.gmra.mxu0 %v3791_v51  ;;  %v5025_v51 = vld [vmem:[%s6289_s1 + $0x5a8] sm:$0xff]  }
  0x84   :  { %1640 = vmatmul.mubr.bf16.vlgmr.msra.gmra.mxu1 %v3793_v54  ;;  %4631 = vmatpush3.bf16.msra.mxu0 %v4984_v58  ;;  %v5028_v54 = vld [vmem:[%s6289_s1 + $0x520] sm:$0xff]   ;;  %v5032_v58 = vld [vmem:[%s6289_s1 + $0x518] sm:$0xff]  }
  0x85   :  { %4659 = vmatpush3.bf16.msra.mxu1 %v4985_v59  ;;  %4632 = vmatprep.subr.bf16.mxu0 %v4986_v60  ;;  %v5033_v59 = vld [vmem:[%s6289_s1 + $0x598] sm:$0xff]   ;;  %v3875_v60 = vld [vmem:[%s6290_s0 + $0x140] sm:$0xff] }
  0x86   :  { %4660 = vmatprep.subr.bf16.mxu1 %v4987_v61  ;;  %1598 = vmatprep.mubr.bf16.mxu0 %v3800_v2  ;;  %v3879_v61 = vld [vmem:[%s6290_s0 + $0x160] sm:$0xff] }
  0x87   :  { %1647 = vmatprep.mubr.bf16.mxu1 %v3802_v8  ;;  %v4019_v1 = vcombine.low %v3875_v60, %v3879_v61  ;;  %v5038_v8 = vld [vmem:[%s6289_s1 + $0x548] sm:$0xff]  }
  0x88   :  { %4633 = vmatpush3.bf16.msra.mxu0 %v4988_v62  ;;  %v3876_v62 = vld [vmem:[%s6290_s0 + $0x148] sm:$0xff] }
  0x89   :  { %4661 = vmatpush3.bf16.msra.mxu1 %v4989_v63  ;;  %4634 = vmatprep.subr.bf16.mxu0 %v4990_v4  ;;  %v4020_v63 = vcombine.high %v3875_v60, %v3879_v61  ;;  %v4022_v2 = vcombine.high %v3876_v62, %v3880_v0  ;;  %v5034_v4 = vld [vmem:[%s6289_s1 + $0x550] sm:$0xff]   ;;  %v5070_v61 = vld [vmem:[%s6289_s1 + $0x648] sm:$0xff]  }
  0x8a   :  { %4662 = vmatprep.subr.bf16.mxu1 %v4991_v5  ;;  %v5035_v5 = vld [vmem:[%s6289_s1 + $0x5d0] sm:$0xff]  }
  0x8b   :  { %1599 = vmatmul.mubr.bf16.gmra.mxu0 %v3799_v3  ;;  %v4021_v3 = vcombine.low %v3876_v62, %v3880_v0  ;;  %v5071_v0 = vld [vmem:[%s6289_s1 + $0x6c8] sm:$0xff]  }
  0x8c   :  { %4635 = vmatpush3.bf16.msra.mxu0 %v4992_v9  ;;  %1648 = vmatmul.mubr.bf16.gmra.mxu1 %v3801_v10  ;;  %v5039_v9 = vld [vmem:[%s6289_s1 + $0x5c8] sm:$0xff]  }
  0x8d   :  { %4663 = vmatpush3.bf16.msra.mxu1 %v4993_v11  ;;  %4636 = vmatprep.subr.bf16.mxu0 %v4994_v12  ;;  %v5040_v10 = vld [vmem:[%s6289_s1 + $0x508] sm:$0xff]   ;;  %v5042_v12 = vld [vmem:[%s6289_s1 + $0x540] sm:$0xff]  }
  0x8e   :  { %4664 = vmatprep.subr.bf16.mxu1 %v4995_v13  ;;  %2327 = vmatprep.mubr.bf16.mxu0 %v4012_v37  ;;  %v5041_v11 = vld [vmem:[%s6289_s1 + $0x588] sm:$0xff]   ;;  %v5043_v13 = vld [vmem:[%s6289_s1 + $0x5c0] sm:$0xff]  }
  0x8f   :  { %2376 = vmatprep.mubr.bf16.mxu1 %v4014_v39  ;;  %v5055_v37 = vld [vmem:[%s6289_s1 + $0x6e8] sm:$0xff]   ;;  %v3882_v39 = vld [vmem:[%s6290_s0 + $0x178] sm:$0xff] }
  0x90   :  { %4637 = vmatpush3.bf16.msra.mxu0 %v4996_v14  ;;  %v5044_v14 = vld [vmem:[%s6289_s1 + $0x500] sm:$0xff]  }
  0x91   :  { %4665 = vmatpush3.bf16.msra.mxu1 %v4997_v15  ;;  %4638 = vmatprep.subr.bf16.mxu0 %v4998_v16  ;;  %v5045_v15 = vld [vmem:[%s6289_s1 + $0x580] sm:$0xff]   ;;  %v3869_v16 = vld [vmem:[%s6290_s0 + $0x110] sm:$0xff] }
  0x92   :  { %4666 = vmatprep.subr.bf16.mxu1 %v4999_v17  ;;  %v3873_v17 = vld [vmem:[%s6290_s0 + $0x130] sm:$0xff] }
  0x94   :  { %4639 = vmatpush3.bf16.msra.mxu0 %v5000_v18  ;;  %v4015_v18 = vcombine.low %v3869_v16, %v3873_v17 }
  0x95   :  { %4667 = vmatpush3.bf16.msra.mxu1 %v5001_v19  ;;  %4640 = vmatprep.subr.bf16.mxu0 %v5002_v20  ;;  %v4016_v19 = vcombine.high %v3869_v16, %v3873_v17  ;;  %v3870_v20 = vld [vmem:[%s6290_s0 + $0x118] sm:$0xff]  ;;  %v4092_v16 = vld [vmem:[%s6290_s0 + $0x188] sm:$0xff] }
  0x96   :  { %4668 = vmatprep.subr.bf16.mxu1 %v5003_v21  ;;  %v3874_v21 = vld [vmem:[%s6290_s0 + $0x138] sm:$0xff] }
  0x98   :  { %4641 = vmatpush3.bf16.msra.mxu0 %v5004_v22  ;;  %v4017_v22 = vcombine.low %v3870_v20, %v3874_v21 }
  0x99   :  { %4669 = vmatpush3.bf16.msra.mxu1 %v5005_v23  ;;  %4642 = vmatprep.subr.bf16.mxu0 %v5006_v24  ;;  %v4018_v23 = vcombine.high %v3870_v20, %v3874_v21  ;;  %v5046_v24 = vld [vmem:[%s6289_s1 + $0x678] sm:$0xff]  }
  0x9a   :  { %4670 = vmatprep.subr.bf16.mxu1 %v5007_v25  ;;  %v5047_v25 = vld [vmem:[%s6289_s1 + $0x6f8] sm:$0xff]  }
  0x9c   :  { %4643 = vmatpush3.bf16.msra.mxu0 %v5008_v26  ;;  %v5048_v26 = vld [vmem:[%s6289_s1 + $0x638] sm:$0xff]  }
  0x9d   :  { %4671 = vmatpush3.bf16.msra.mxu1 %v5009_v27  ;;  %4644 = vmatprep.subr.bf16.mxu0 %v5010_v28  ;;  %v5049_v27 = vld [vmem:[%s6289_s1 + $0x6b8] sm:$0xff]   ;;  %v5050_v28 = vld [vmem:[%s6289_s1 + $0x670] sm:$0xff]  }
  0x9e   :  { %4672 = vmatprep.subr.bf16.mxu1 %v5011_v29  ;;  %v5051_v29 = vld [vmem:[%s6289_s1 + $0x6f0] sm:$0xff]  }
  0xa0   :  { %4645 = vmatpush3.bf16.msra.mxu0 %v5012_v30  ;;  %v5052_v30 = vld [vmem:[%s6289_s1 + $0x630] sm:$0xff]  }
  0xa1   :  { %4673 = vmatpush3.bf16.msra.mxu1 %v5013_v31  ;;  %4686 = vmatprep.subr.bf16.mxu0 %v5014_v40  ;;  %v5053_v31 = vld [vmem:[%s6289_s1 + $0x6b0] sm:$0xff]  }
  0xa2   :  { %4714 = vmatprep.subr.bf16.mxu1 %v5015_v41  ;;  %v5056_v41 = vld [vmem:[%s6289_s1 + $0x628] sm:$0xff]  }
  0xa3   :  { %2328 = vmatmul.mubr.bf16.vlgmr.msra.gmra.mxu0 %v4011_v36  ;;  %v5054_v36 = vld [vmem:[%s6289_s1 + $0x668] sm:$0xff]  }
  0xa4   :  { %2377 = vmatmul.mubr.bf16.vlgmr.msra.gmra.mxu1 %v4013_v38  ;;  %4687 = vmatpush3.bf16.msra.mxu0 %v5016_v42  ;;  %v3878_v38 = vld [vmem:[%s6290_s0 + $0x158] sm:$0xff] }
  0xa5   :  { %4715 = vmatpush3.bf16.msra.mxu1 %v5017_v43  ;;  %4688 = vmatprep.subr.bf16.mxu0 %v5018_v44  ;;  %v4026_v40 = vcombine.high %v3878_v38, %v3882_v39  ;;  %v4025_v42 = vcombine.low %v3878_v38, %v3882_v39  ;;  %v5057_v43 = vld [vmem:[%s6289_s1 + $0x6a8] sm:$0xff]   ;;  %v5058_v44 = vld [vmem:[%s6289_s1 + $0x660] sm:$0xff]  }
  0xa6   :  { %4716 = vmatprep.subr.bf16.mxu1 %v5019_v45  ;;  %2335 = vmatprep.mubr.bf16.mxu0 %v4020_v63  ;;  %v5059_v45 = vld [vmem:[%s6289_s1 + $0x6e0] sm:$0xff]   ;;  %v5089_v38 = vld [vmem:[%s6289_s1 + $0x7a8] sm:$0xff]  }
  0xa7   :  { %2384 = vmatprep.mubr.bf16.mxu1 %v4022_v2  ;;  %v5072_v2 = vld [vmem:[%s6289_s1 + $0x608] sm:$0xff]  }
  0xa8   :  { %4689 = vmatpush3.bf16.msra.mxu0 %v5020_v46  ;;  %v5060_v46 = vld [vmem:[%s6289_s1 + $0x620] sm:$0xff]  }
  0xa9   :  { %4717 = vmatpush3.bf16.msra.mxu1 %v5021_v47  ;;  %4690 = vmatprep.subr.bf16.mxu0 %v5022_v48  ;;  %v5061_v47 = vld [vmem:[%s6289_s1 + $0x6a0] sm:$0xff]   ;;  %v5062_v48 = vld [vmem:[%s6289_s1 + $0x658] sm:$0xff]  }
  0xaa   :  { %4718 = vmatprep.subr.bf16.mxu1 %v5023_v49  ;;  %v5063_v49 = vld [vmem:[%s6289_s1 + $0x6d8] sm:$0xff]  }
  0xab   :  { %2336 = vmatmul.mubr.bf16.gmra.mxu0 %v4019_v1 }
  0xac   :  { %4691 = vmatpush3.bf16.msra.mxu0 %v5024_v50  ;;  %2385 = vmatmul.mubr.bf16.gmra.mxu1 %v4021_v3  ;;  %v5064_v50 = vld [vmem:[%s6289_s1 + $0x618] sm:$0xff]  }
  0xad   :  { %4719 = vmatpush3.bf16.msra.mxu1 %v5025_v51  ;;  %4692 = vmatprep.subr.bf16.mxu0 %v5026_v52  ;;  %v5065_v51 = vld [vmem:[%s6289_s1 + $0x698] sm:$0xff]   ;;  %v5066_v52 = vld [vmem:[%s6289_s1 + $0x650] sm:$0xff]  }
  0xae   :  { %4720 = vmatprep.subr.bf16.mxu1 %v5027_v53  ;;  %2425 = vmatprep.mubr.bf16.mxu0 %v4016_v19  ;;  %v4096_v19 = vld [vmem:[%s6290_s0 + $0x1a8] sm:$0xff] }
  0xaf   :  { %2474 = vmatprep.mubr.bf16.mxu1 %v4018_v23  ;;  %v4237_v20 = vcombine.low %v4092_v16, %v4096_v19  ;;  %v4238_v21 = vcombine.high %v4092_v16, %v4096_v19  ;;  %v5079_v23 = vld [vmem:[%s6289_s1 + $0x7f8] sm:$0xff]  }
  0xb0   :  { %4693 = vmatpush3.bf16.msra.mxu0 %v5028_v54  ;;  %v5067_v54 = vld [vmem:[%s6289_s1 + $0x6d0] sm:$0xff]  }
  0xb1   :  { %4721 = vmatpush3.bf16.msra.mxu1 %v5029_v55  ;;  %4694 = vmatprep.subr.bf16.mxu0 %v5030_v56  ;;  %v5068_v56 = vld [vmem:[%s6289_s1 + $0x610] sm:$0xff]  }
  0xb2   :  { %4722 = vmatprep.subr.bf16.mxu1 %v5031_v57 }
  0xb4   :  { %4695 = vmatpush3.bf16.msra.mxu0 %v5032_v58  ;;  %v5069_v58 = vld [vmem:[%s6289_s1 + $0x690] sm:$0xff]  }
  0xb5   :  { %4723 = vmatpush3.bf16.msra.mxu1 %v5033_v59  ;;  %4696 = vmatprep.subr.bf16.mxu0 %v5034_v4 }
  0xb6   :  { %4724 = vmatprep.subr.bf16.mxu1 %v5035_v5  ;;  %v5073_v5 = vld [vmem:[%s6289_s1 + $0x688] sm:$0xff]  }
  0xb8   :  { %4697 = vmatpush3.bf16.msra.mxu0 %v5036_v6 }
  0xb9   :  { %4725 = vmatpush3.bf16.msra.mxu1 %v5037_v7  ;;  %4698 = vmatprep.subr.bf16.mxu0 %v5038_v8  ;;  %v5074_v8 = vld [vmem:[%s6289_s1 + $0x640] sm:$0xff]  }
  0xba   :  { %4726 = vmatprep.subr.bf16.mxu1 %v5039_v9 }
  0xbc   :  { %4699 = vmatpush3.bf16.msra.mxu0 %v5040_v10  ;;  %v5075_v10 = vld [vmem:[%s6289_s1 + $0x6c0] sm:$0xff]  }
  0xbd   :  { %4727 = vmatpush3.bf16.msra.mxu1 %v5041_v11  ;;  %4700 = vmatprep.subr.bf16.mxu0 %v5042_v12  ;;  %v5076_v11 = vld [vmem:[%s6289_s1 + $0x600] sm:$0xff]  }
  0xbe   :  { %4728 = vmatprep.subr.bf16.mxu1 %v5043_v13  ;;  %v5077_v13 = vld [vmem:[%s6289_s1 + $0x680] sm:$0xff]  }
  0xc0   :  { %4701 = vmatpush3.bf16.msra.mxu0 %v5044_v14  ;;  %v4091_v14 = vld [vmem:[%s6290_s0 + $0x180] sm:$0xff] }
  0xc1   :  { %4729 = vmatpush3.bf16.msra.mxu1 %v5045_v15  ;;  %4742 = vmatprep.subr.bf16.mxu0 %v5046_v24  ;;  %v4095_v15 = vld [vmem:[%s6290_s0 + $0x1a0] sm:$0xff]  ;;  %v5080_v24 = vld [vmem:[%s6289_s1 + $0x738] sm:$0xff]  }
  0xc2   :  { %4770 = vmatprep.subr.bf16.mxu1 %v5047_v25  ;;  %v4235_v17 = vcombine.low %v4091_v14, %v4095_v15  ;;  %v5081_v25 = vld [vmem:[%s6289_s1 + $0x7b8] sm:$0xff]  }
  0xc3   :  { %2426 = vmatmul.mubr.bf16.vlgmr.msra.gmra.mxu0 %v4015_v18  ;;  %v4236_v18 = vcombine.high %v4091_v14, %v4095_v15  ;;  %v5103_v15 = vld [vmem:[%s6289_s1 + $0x7c8] sm:$0xff]  }
  0xc4   :  { %2475 = vmatmul.mubr.bf16.vlgmr.msra.gmra.mxu1 %v4017_v22  ;;  %4743 = vmatpush3.bf16.msra.mxu0 %v5048_v26  ;;  %v5078_v22 = vld [vmem:[%s6289_s1 + $0x778] sm:$0xff]   ;;  %v5082_v26 = vld [vmem:[%s6289_s1 + $0x770] sm:$0xff]  }
  0xc5   :  { %4771 = vmatpush3.bf16.msra.mxu1 %v5049_v27  ;;  %4744 = vmatprep.subr.bf16.mxu0 %v5050_v28  ;;  %v5083_v27 = vld [vmem:[%s6289_s1 + $0x7f0] sm:$0xff]  }
  0xc6   :  { %4772 = vmatprep.subr.bf16.mxu1 %v5051_v29  ;;  %2433 = vmatprep.mubr.bf16.mxu0 %v4024_v34  ;;  %v5084_v28 = vld [vmem:[%s6289_s1 + $0x730] sm:$0xff]  }
  0xc7   :  { %2482 = vmatprep.mubr.bf16.mxu1 %v4026_v40  ;;  %v5085_v29 = vld [vmem:[%s6289_s1 + $0x7b0] sm:$0xff]  }
  0xc8   :  { %4745 = vmatpush3.bf16.msra.mxu0 %v5052_v30 }
  0xc9   :  { %4773 = vmatpush3.bf16.msra.mxu1 %v5053_v31  ;;  %4746 = vmatprep.subr.bf16.mxu0 %v5054_v36  ;;  %v5086_v31 = vld [vmem:[%s6289_s1 + $0x768] sm:$0xff]  }
  0xca   :  { %4774 = vmatprep.subr.bf16.mxu1 %v5055_v37 }
  0xcb   :  { %2434 = vmatmul.mubr.bf16.gmra.mxu0 %v4023_v35  ;;  %v5088_v35 = vld [vmem:[%s6289_s1 + $0x728] sm:$0xff]  }
  0xcc   :  { %4747 = vmatpush3.bf16.msra.mxu0 %v5056_v41  ;;  %2483 = vmatmul.mubr.bf16.gmra.mxu1 %v4025_v42  ;;  %v5090_v41 = vld [vmem:[%s6289_s1 + $0x760] sm:$0xff]  }
  0xcd   :  { %4775 = vmatpush3.bf16.msra.mxu1 %v5057_v43  ;;  %4748 = vmatprep.subr.bf16.mxu0 %v5058_v44  ;;  %v5091_v43 = vld [vmem:[%s6289_s1 + $0x7e0] sm:$0xff]  }
  0xce   :  { %4776 = vmatprep.subr.bf16.mxu1 %v5059_v45  ;;  %3162 = vmatprep.mubr.bf16.mxu0 %v4236_v18 }
  0xcf   :  { %3211 = vmatprep.mubr.bf16.mxu1 %v4238_v21 }
  0xd0   :  { %4749 = vmatpush3.bf16.msra.mxu0 %v5060_v46  ;;  %v5092_v46 = vld [vmem:[%s6289_s1 + $0x720] sm:$0xff]  }
  0xd1   :  { %4777 = vmatpush3.bf16.msra.mxu1 %v5061_v47  ;;  %4750 = vmatprep.subr.bf16.mxu0 %v5062_v48 }
  0xd2   :  { %4778 = vmatprep.subr.bf16.mxu1 %v5063_v49  ;;  %v5093_v49 = vld [vmem:[%s6289_s1 + $0x7a0] sm:$0xff]  }
  0xd4   :  { %4751 = vmatpush3.bf16.msra.mxu0 %v5064_v50 }
  0xd5   :  { %4779 = vmatpush3.bf16.msra.mxu1 %v5065_v51  ;;  %4752 = vmatprep.subr.bf16.mxu0 %v5066_v52  ;;  %v5094_v51 = vld [vmem:[%s6289_s1 + $0x758] sm:$0xff]  }
  0xd6   :  { %4780 = vmatprep.subr.bf16.mxu1 %v5067_v54  ;;  %v5095_v52 = vld [vmem:[%s6289_s1 + $0x7d8] sm:$0xff]   ;;  %v4103_v54 = vld [vmem:[%s6290_s0 + $0x1e0] sm:$0xff] }
  0xd8   :  { %4753 = vmatpush3.bf16.msra.mxu0 %v5068_v56 }
  0xd9   :  { %4781 = vmatpush3.bf16.msra.mxu1 %v5069_v58  ;;  %4754 = vmatprep.subr.bf16.mxu0 %v5070_v61  ;;  %v4104_v58 = vld [vmem:[%s6290_s0 + $0x1e8] sm:$0xff]  ;;  %v5096_v61 = vld [vmem:[%s6289_s1 + $0x718] sm:$0xff]  }
  0xda   :  { %4782 = vmatprep.subr.bf16.mxu1 %v5071_v0  ;;  %v5098_v0 = vld [vmem:[%s6289_s1 + $0x750] sm:$0xff]  }
  0xdc   :  { %4755 = vmatpush3.bf16.msra.mxu0 %v5072_v2 }
  0xdd   :  { %4783 = vmatpush3.bf16.msra.mxu1 %v5073_v5  ;;  %4756 = vmatprep.subr.bf16.mxu0 %v5074_v8  ;;  %v5100_v5 = vld [vmem:[%s6289_s1 + $0x710] sm:$0xff]  }
  0xde   :  { %4784 = vmatprep.subr.bf16.mxu1 %v5075_v10  ;;  %v5101_v8 = vld [vmem:[%s6289_s1 + $0x790] sm:$0xff]  }
  0xe0   :  { %4757 = vmatpush3.bf16.msra.mxu0 %v5076_v11  ;;  %v5102_v11 = vld [vmem:[%s6289_s1 + $0x748] sm:$0xff]  }
  0xe1   :  { %4785 = vmatpush3.bf16.msra.mxu1 %v5077_v13  ;;  %4798 = vmatprep.subr.bf16.mxu0 %v5078_v22 }
  0xe2   :  { %4826 = vmatprep.subr.bf16.mxu1 %v5079_v23 }
  0xe3   :  { %v4422_v53 = vpop.f32.mrf.mxu0  ;;  %3163 = vmatmul.mubr.bf16.vlgmr.msra.gmra.mxu0 %v4235_v17  ;;  %v5104_v17 = vld [vmem:[%s6289_s1 + $0x708] sm:$0xff]  }
  0xe4   :  { %v4450_v55 = vpop.f32.mrf.mxu1  ;;  %3212 = vmatmul.mubr.bf16.vlgmr.msra.gmra.mxu1 %v4237_v20  ;;  %4799 = vmatpush3.bf16.msra.mxu0 %v5080_v24  ;;  %v5105_v20 = vld [vmem:[%s6289_s1 + $0x788] sm:$0xff]   ;;  %v5107_v24 = vld [vmem:[%s6289_s1 + $0x7c0] sm:$0xff]  }
  0xe5   :  { %v4423_v57 = vpop.f32.mrf.mxu0  ;;  %4827 = vmatpush3.bf16.msra.mxu1 %v5081_v25  ;;  %4800 = vmatprep.subr.bf16.mxu0 %v5082_v26 }
  0xe6   :  { %v4424_v59 = vadd.f32 %v4423_v57, %v4422_v53  ;;  %v4451_v60 = vpop.f32.mrf.mxu1  ;;  %4828 = vmatprep.subr.bf16.mxu1 %v5083_v27  ;;  %v4099_v53 = vld [vmem:[%s6290_s0 + $0x1c0] sm:$0xff]  ;;  %v4100_v57 = vld [vmem:[%s6290_s0 + $0x1c8] sm:$0xff] }
  0xe7   :  { %v4452_v62 = vadd.f32 %v4451_v60, %v4450_v55  ;;  %v4425_v63 = vpop.f32.mrf.mxu0  ;;  %v4244_v56 = vcombine.high %v4099_v53, %v4103_v54  ;;  %v4246_v60 = vcombine.high %v4100_v57, %v4104_v58  ;;  %v5108_v27 = vld [vmem:[%s6289_s1 + $0x700] sm:$0xff]  }
  0xe8   :  { %v4453_v1 = vpop.f32.mrf.mxu1  ;;  %4801 = vmatpush3.bf16.msra.mxu0 %v5084_v28  ;;  %v5109_v28 = vld [vmem:[%s6289_s1 + $0x780] sm:$0xff]  }
  0xe9   :  { %v5938_v3 = vadd.f32 %v4452_v62, %v4424_v59  ;;  %v4426_v4 = vpop.f32.mrf.mxu0  ;;  %4829 = vmatpush3.bf16.msra.mxu1 %v5085_v29  ;;  %4802 = vmatprep.subr.bf16.mxu0 %v5086_v31  ;;  %v4243_v59 = vcombine.low %v4099_v53, %v4103_v54  ;;  %v4245_v62 = vcombine.low %v4100_v57, %v4104_v58  ;;  %v4093_v29 = vld [vmem:[%s6290_s0 + $0x190] sm:$0xff] }
  0xea   :  { %v4427_v6 = vadd.f32 %v4426_v4, %v4425_v63  ;;  %v4454_v7 = vpop.f32.mrf.mxu1  ;;  %4830 = vmatprep.subr.bf16.mxu1 %v5087_v33  ;;  %3170 = vmatprep.mubr.bf16.mxu0 %v4244_v56  ;;  %v5097_v63 = vld [vmem:[%s6289_s1 + $0x798] sm:$0xff]   ;;  %v5099_v4 = vld [vmem:[%s6289_s1 + $0x7d0] sm:$0xff]  }
  0xeb   :  { %v4455_v9 = vadd.f32 %v4454_v7, %v4453_v1  ;;  %v4428_v30 = vpop.f32.mrf.mxu0  ;;  %3219 = vmatprep.mubr.bf16.mxu1 %v4246_v60  ;;  %3171 = vmatmul.mubr.bf16.gmra.mxu0 %v4243_v59  ;;  %v4098_v33 = vld [vmem:[%s6290_s0 + $0x1b8] sm:$0xff] }
  0xec   :  { %v4456_v32 = vpop.f32.mrf.mxu1  ;;  %4803 = vmatpush3.bf16.msra.mxu0 %v5088_v35  ;;  %3220 = vmatmul.mubr.bf16.gmra.mxu1 %v4245_v62 }
  0xed   :  { %v5952_v12 = vadd.f32 %v4455_v9, %v4427_v6  ;;  %v4429_v34 = vpop.f32.mrf.mxu0  ;;  %4831 = vmatpush3.bf16.msra.mxu1 %v5089_v38  ;;  %4804 = vmatprep.subr.bf16.mxu0 %v5090_v41  ;;  %v4102_v41 = vld [vmem:[%s6290_s0 + $0x1d8] sm:$0xff] }
  0xee   :  { %v4430_v36 = vadd.f32 %v4429_v34, %v4428_v30  ;;  %v4457_v37 = vpop.f32.mrf.mxu1  ;;  %4832 = vmatprep.subr.bf16.mxu1 %v5091_v43 }
  0xef   :  { %v4458_v39 = vadd.f32 %v4457_v37, %v4456_v32  ;;  %v4431_v40 = vpop.f32.mrf.mxu0  ;;  %v4094_v32 = vld [vmem:[%s6290_s0 + $0x198] sm:$0xff] }
  0xf0   :  { %v4459_v42 = vpop.f32.mrf.mxu1  ;;  %4805 = vmatpush3.bf16.msra.mxu0 %v5092_v46  ;;  %v4241_v37 = vcombine.low %v4094_v32, %v4098_v33  ;;  %v4242_v38 = vcombine.high %v4094_v32, %v4098_v33 }
  0xf1   :  { %v6011_v44 = vadd.f32 %v4458_v39, %v4430_v36  ;;  %v4432_v45 = vpop.f32.mrf.mxu0  ;;  %4833 = vmatpush3.bf16.msra.mxu1 %v5093_v49  ;;  %4806 = vmatprep.subr.bf16.mxu0 %v5094_v51  ;;  %v4101_v39 = vld [vmem:[%s6290_s0 + $0x1d0] sm:$0xff]  ;;  %v4106_v49 = vld [vmem:[%s6290_s0 + $0x1f8] sm:$0xff] }
  0xf2   :  { %v4433_v47 = vadd.f32 %v4432_v45, %v4431_v40  ;;  %v4460_v48 = vpop.f32.mrf.mxu1  ;;  %4834 = vmatprep.subr.bf16.mxu1 %v5095_v52  ;;  %v4105_v40 = vld [vmem:[%s6290_s0 + $0x1f0] sm:$0xff]  ;;  %3309 = vmatprep.mubr.bf16.mxu1 %v4242_v38 }
  0xf3   :  { %v4461_v50 = vadd.f32 %v4460_v48, %v4459_v42  ;;  %v4248_v48 = vcombine.high %v4101_v39, %v4105_v40 }
  0xf4   :  { %4807 = vmatpush3.bf16.msra.mxu0 %v5096_v61  ;;  %v4247_v61 = vcombine.low %v4101_v39, %v4105_v40 }
  0xf5   :  { %v6031_v55 = vadd.f32 %v4461_v50, %v4433_v47  ;;  %4835 = vmatpush3.bf16.msra.mxu1 %v5097_v63  ;;  %4808 = vmatprep.subr.bf16.mxu0 %v5098_v0  ;;  %v4250_v50 = vcombine.high %v4102_v41, %v4106_v49  ;;  %v4249_v63 = vcombine.low %v4102_v41, %v4106_v49 }
  0xf6   :  { %4836 = vmatprep.subr.bf16.mxu1 %v5099_v4 }
  0xf8   :  { %4809 = vmatpush3.bf16.msra.mxu0 %v5100_v5 }
  0xf9   :  { %4837 = vmatpush3.bf16.msra.mxu1 %v5101_v8  ;;  %4810 = vmatprep.subr.bf16.mxu0 %v5102_v11 }
  0xfa   :  { %4838 = vmatprep.subr.bf16.mxu1 %v5103_v15 }
  0xfc   :  { %4811 = vmatpush3.bf16.msra.mxu0 %v5104_v17 }
  0xfd   :  { %4839 = vmatpush3.bf16.msra.mxu1 %v5105_v20 }
  0xfe   :  { %4840 = vmatprep.subr.bf16.mxu1 %v5107_v24 }
 0x101   :  { %4841 = vmatpush3.bf16.msra.mxu1 %v5109_v28 }
 0x103   :  { %v4478_v1 = vpop.f32.mrf.mxu0 }
 0x104   :  { %v4506_v2 = vpop.f32.mrf.mxu1  ;;  %3310 = vmatmul.mubr.bf16.vlgmr.msra.gmra.mxu1 %v4241_v37 }
 0x105   :  { %v4479_v6 = vpop.f32.mrf.mxu0  ;;  %3317 = vmatprep.mubr.bf16.mxu1 %v4250_v50 }
 0x106   :  { %v4507_v7 = vpop.f32.mrf.mxu1  ;;  %v4480_v9 = vadd.f32 %v4479_v6, %v4478_v1 }
 0x107   :  { %v4508_v10 = vadd.f32 %v4507_v7, %v4506_v2  ;;  %v4481_v13 = vpop.f32.mrf.mxu0 }
 0x108   :  { %v4509_v14 = vpop.f32.mrf.mxu1  ;;  %v759_v16 = vadd.f32 %v4480_v9, %v5938_v3  ;;  %v5106_v3 = vld [vmem:[%s6289_s1 + $0x740] sm:$0xff]  }
 0x109   :  { %v4482_v18 = vpop.f32.mrf.mxu0  ;;  %4812 = vmatprep.subr.bf16.mxu0 %v5106_v3 }
 0x10a   :  { %v4510_v19 = vpop.f32.mrf.mxu1  ;;  %v6070_v21 = vadd.f32 %v4508_v10, %v759_v16  ;;  %v4483_v22 = vadd.f32 %v4482_v18, %v4481_v13  ;;  %4813 = vmatpush3.bf16.msra.mxu0 %v5108_v27 }
 0x10b   :  { %v4511_v23 = vadd.f32 %v4510_v19, %v4509_v14  ;;  %v4484_v26 = vpop.f32.mrf.mxu0 }
 0x10c   :  { %v762_v25 = vadd.f32 %v4483_v22, %v5952_v12  ;;  %v4097_v12 = vld [vmem:[%s6290_s0 + $0x1b0] sm:$0xff]  ;;  %v4512_v42 = vpop.f32.mrf.mxu1  ;;  %v836_v45 = vmul.f32 %v6070_v21, %v6070_v21  ;;  %3318 = vmatmul.mubr.bf16.gmra.mxu1 %v4249_v63 }
 0x10d   :  { %v4485_v31 = vpop.f32.mrf.mxu0  ;;  %v4239_v35 = vcombine.low %v4093_v29, %v4097_v12  ;;  %v4240_v36 = vcombine.high %v4093_v29, %v4097_v12 }
 0x10e   :  { %v6088_v30 = vadd.f32 %v4511_v23, %v762_v25  ;;  %v4486_v34 = vadd.f32 %v4485_v31, %v4484_v26  ;;  %v4513_v52 = vpop.f32.mrf.mxu1 }
 0x10f   :  { %v4487_v43 = vpop.f32.mrf.mxu0  ;;  %3260 = vmatprep.mubr.bf16.mxu0 %v4240_v36  ;;  %v4514_v56 = vadd.f32 %v4513_v52, %v4512_v42 }
 0x110   :  { %v826_v46 = vadd.f32 %v6088_v30, %v6070_v21  ;;  %v837_v47 = vmul.f32 %v6088_v30, %v6088_v30  ;;  %v767_v51 = vadd.f32 %v4486_v34, %v6011_v44  ;;  %3261 = vmatmul.mubr.bf16.vlgmr.msra.gmra.mxu0 %v4239_v35  ;;  %v4515_v58 = vpop.f32.mrf.mxu1 }
 0x111   :  { %v4488_v53 = vpop.f32.mrf.mxu0  ;;  %3268 = vmatprep.mubr.bf16.mxu0 %v4248_v48 }
 0x112   :  { %v840_v54 = vadd.f32 %v837_v47, %v836_v45  ;;  %v4489_v57 = vadd.f32 %v4488_v53, %v4487_v43  ;;  %v6118_v59 = vadd.f32 %v4514_v56, %v767_v51  ;;  %v4516_v62 = vpop.f32.mrf.mxu1 }
 0x113   :  { %v4517_v1 = vadd.f32 %v4516_v62, %v4515_v58 }
 0x114   :  { %v770_v60 = vadd.f32 %v4489_v57, %v6031_v55  ;;  %v827_v0 = vadd.f32 %v826_v46, %v6118_v59  ;;  %v838_v44 = vmul.f32 %v6118_v59, %v6118_v59 }
 0x116   :  { %v841_v2 = vadd.f32 %v840_v54, %v838_v44  ;;  %v6124_v4 = vadd.f32 %v4517_v1, %v770_v60 }
 0x118   :  { %3269 = vmatmul.mubr.bf16.gmra.mxu0 %v4247_v61  ;;  %v6127_v5 = vadd.f32 %v827_v0, %v6124_v4  ;;  %v839_v55 = vmul.f32 %v6124_v4, %v6124_v4 }
 0x11a   :  { %v6131_v6 = vadd.f32 %v841_v2, %v839_v55  ;;  %v829_v2 = vrot.slane %v6127_v5, 4 }
 0x123   :  { %v4534_v7 = vpop.f32.mrf.mxu0 }
 0x124   :  { %v4562_v8 = vpop.f32.mrf.mxu1 }
 0x125   :  { %v4535_v9 = vpop.f32.mrf.mxu0 }
 0x126   :  { %v4536_v10 = vadd.f32 %v4535_v9, %v4534_v7  ;;  %v4563_v11 = vpop.f32.mrf.mxu1  ;;  %v843_v9 = vrot.slane %v6131_v6, 4 }
 0x127   :  { %v4564_v13 = vadd.f32 %v4563_v11, %v4562_v8  ;;  %v4537_v14 = vpop.f32.mrf.mxu0 }
 0x128   :  { %v4565_v15 = vpop.f32.mrf.mxu1 }
 0x129   :  { %v1544_v16 = vadd.f32 %v4564_v13, %v4536_v10  ;;  %v4538_v17 = vpop.f32.mrf.mxu0 }
 0x12a   :  { %v4539_v18 = vadd.f32 %v4538_v17, %v4537_v14  ;;  %v4566_v19 = vpop.f32.mrf.mxu1  ;;  %v830_v14 = vadd.f32 %v829_v2, %v6127_v5 }
 0x12b   :  { %v4567_v20 = vadd.f32 %v4566_v19, %v4565_v15  ;;  %v4540_v23 = vpop.f32.mrf.mxu0 }
 0x12c   :  { %v4568_v3 = vpop.f32.mrf.mxu1 }
 0x12d   :  { %v1547_v22 = vadd.f32 %v4567_v20, %v4539_v18  ;;  %v4541_v24 = vpop.f32.mrf.mxu0  ;;  %v844_v18 = vadd.f32 %v843_v9, %v6131_v6 }
 0x12e   :  { %v4569_v25 = vpop.f32.mrf.mxu1  ;;  %v4542_v26 = vadd.f32 %v4541_v24, %v4540_v23 }
 0x12f   :  { %v4570_v27 = vadd.f32 %v4569_v25, %v4568_v3  ;;  %v4543_v28 = vpop.f32.mrf.mxu0  ;;  %v845_v24 = vrot.slane %v844_v18, 2 }
 0x130   :  { %v4571_v29 = vpop.f32.mrf.mxu1 }
 0x131   :  { %v1552_v31 = vadd.f32 %v4570_v27, %v4542_v26  ;;  %v4544_v12 = vpop.f32.mrf.mxu0 }
 0x132   :  { %v4572_v32 = vpop.f32.mrf.mxu1  ;;  %v4545_v33 = vadd.f32 %v4544_v12, %v4543_v28 }
 0x133   :  { %v4573_v34 = vadd.f32 %v4572_v32, %v4571_v29  ;;  %v846_v29 = vadd.f32 %v845_v24, %v844_v18 }
 0x135   :  { %v1555_v35 = vadd.f32 %v4573_v34, %v4545_v33  ;;  %v847_v34 = vrot.slane %v846_v29, 1 }
 0x143   :  { %v4590_v36 = vpop.f32.mrf.mxu0 }
 0x144   :  { %v4618_v37 = vpop.f32.mrf.mxu1 }
 0x145   :  { %v4591_v38 = vpop.f32.mrf.mxu0 }
 0x146   :  { %v4592_v39 = vadd.f32 %v4591_v38, %v4590_v36  ;;  %v4619_v40 = vpop.f32.mrf.mxu1 }
 0x147   :  { %v4620_v41 = vadd.f32 %v4619_v40, %v4618_v37  ;;  %v4593_v42 = vpop.f32.mrf.mxu0  ;;  %v848_v40 = vadd.f32 %v847_v34, %v846_v29 }
 0x148   :  { %v1593_v43 = vadd.f32 %v4592_v39, %v1544_v16  ;;  %v4621_v45 = vpop.f32.mrf.mxu1 }
 0x149   :  { %v4594_v46 = vpop.f32.mrf.mxu0 }
 0x14a   :  { %v6133_v47 = vadd.f32 %v4620_v41, %v1593_v43  ;;  %v4595_v48 = vadd.f32 %v4594_v46, %v4593_v42  ;;  %v4622_v49 = vpop.f32.mrf.mxu1 }
 0x14b   :  { %v4623_v50 = vadd.f32 %v4622_v49, %v4621_v45  ;;  %v4596_v52 = vpop.f32.mrf.mxu0 }
 0x14c   :  { %6298 = vst [vmem:[#allocation3_spill] sm:$0xff] %v6133_v47  ;;  %v1596_v51 = vadd.f32 %v4595_v48, %v1547_v22  ;;  %v1671_v57 = vmul.f32 %v6133_v47, %v6133_v47  ;;  %v4624_v61 = vpop.f32.mrf.mxu1  ;;  %v831_v22 = vrot.slane %v830_v14, 2 }
 0x14d   :  { %v4597_v54 = vpop.f32.mrf.mxu0 }
 0x14e   :  { %v6135_v53 = vadd.f32 %v4623_v50, %v1596_v51  ;;  %v4598_v56 = vadd.f32 %v4597_v54, %v4596_v52  ;;  %v4625_v44 = vpop.f32.mrf.mxu1  ;;  %v832_v26 = vadd.f32 %v831_v22, %v830_v14 }
 0x14f   :  { %v4599_v62 = vpop.f32.mrf.mxu0  ;;  %v4626_v55 = vadd.f32 %v4625_v44, %v4624_v61 }
 0x150   :  { %6299 = vst [vmem:[#allocation4_spill] sm:$0xff] %v6135_v53  ;;  %v1661_v58 = vadd.f32 %v6135_v53, %v6133_v47  ;;  %v1672_v60 = vmul.f32 %v6135_v53, %v6135_v53  ;;  %v1601_v63 = vadd.f32 %v4598_v56, %v1552_v31  ;;  %v4627_v8 = vpop.f32.mrf.mxu1  ;;  %v833_v32 = vrot.slane %v832_v26, 1 }
 0x151   :  { %v4600_v1 = vpop.f32.mrf.mxu0 }
 0x152   :  { %v1675_v0 = vadd.f32 %v1672_v60, %v1671_v57  ;;  %v4601_v7 = vadd.f32 %v4600_v1, %v4599_v62  ;;  %v6145_v10 = vadd.f32 %v4626_v55, %v1601_v63  ;;  %v4628_v13 = vpop.f32.mrf.mxu1  ;;  %v834_v37 = vadd.f32 %v833_v32, %v832_v26 }
 0x153   :  { %v4629_v17 = vadd.f32 %v4628_v13, %v4627_v8 }
 0x154   :  { %6300 = vst [vmem:[#allocation5_spill] sm:$0xff] %v6145_v10  ;;  %v1604_v11 = vadd.f32 %v4601_v7, %v1555_v35  ;;  %v1662_v15 = vadd.f32 %v1661_v58, %v6145_v10  ;;  %v1673_v16 = vmul.f32 %v6145_v10, %v6145_v10 }
 0x156   :  { %v1676_v19 = vadd.f32 %v1675_v0, %v1673_v16  ;;  %v6152_v20 = vadd.f32 %v4629_v17, %v1604_v11 }
 0x158   :  { %6301 = vst [vmem:[#allocation6_spill] sm:$0xff] %v6152_v20  ;;  %v1663_v23 = vadd.f32 %v1662_v15, %v6152_v20  ;;  %v1674_v3 = vmul.f32 %v6152_v20, %v6152_v20 }
 0x15a   :  { %v1664_v25 = vrot.slane %v1663_v23, 4  ;;  %v1677_v5 = vadd.f32 %v1676_v19, %v1674_v3 }
 0x15c   :  { %v1665_v27 = vadd.f32 %v1664_v25, %v1663_v23  ;;  %v1678_v28 = vrot.slane %v1677_v5, 4 }
 0x15e   :  { %v1666_v31 = vrot.slane %v1665_v27, 2  ;;  %v1679_v12 = vadd.f32 %v1678_v28, %v1677_v5 }
 0x160   :  { %v1667_v6 = vadd.f32 %v1666_v31, %v1665_v27  ;;  %v1680_v33 = vrot.slane %v1679_v12, 2 }
 0x162   :  { %v1668_v35 = vrot.slane %v1667_v6, 1  ;;  %v1681_v36 = vadd.f32 %v1680_v33, %v1679_v12 }
 0x163   :  { %v4646_v45 = vpop.f32.mrf.mxu0 }
 0x164   :  { %v1669_v38 = vadd.f32 %v1668_v35, %v1667_v6  ;;  %v1682_v39 = vrot.slane %v1681_v36, 1  ;;  %v4674_v46 = vpop.f32.mrf.mxu1 }
 0x165   :  { %v4647_v48 = vpop.f32.mrf.mxu0 }
 0x166   :  { %v6157_v41 = vadd.f32 %v1669_v38, %v834_v37  ;;  %v1683_v42 = vadd.f32 %v1682_v39, %v1681_v36  ;;  %v4675_v49 = vpop.f32.mrf.mxu1  ;;  %v4648_v12 = vadd.f32 %v4647_v48, %v4646_v45 }
 0x167   :  { %v4649_v50 = vpop.f32.mrf.mxu0  ;;  %v4676_v32 = vadd.f32 %v4675_v49, %v4674_v46 }
 0x168   :  { %v6159_v43 = vadd.f32 %v1683_v42, %v848_v40  ;;  %v4677_v51 = vpop.f32.mrf.mxu1 }
 0x169   :  { %v4650_v52 = vpop.f32.mrf.mxu0  ;;  %v2379_v20 = vadd.f32 %v4676_v32, %v4648_v12 }
 0x16a   :  { %v4678_v54 = vpop.f32.mrf.mxu1  ;;  %v4651_v27 = vadd.f32 %v4650_v52, %v4649_v50 }
 0x16b   :  { %v4652_v56 = vpop.f32.mrf.mxu0  ;;  %v4679_v28 = vadd.f32 %v4678_v54, %v4677_v51 }
 0x16c   :  { %v4680_v57 = vpop.f32.mrf.mxu1 }
 0x16d   :  { %v4653_v58 = vpop.f32.mrf.mxu0  ;;  %v2382_v37 = vadd.f32 %v4679_v28, %v4651_v27 }
 0x16e   :  { %v4681_v60 = vpop.f32.mrf.mxu1  ;;  %v4654_v33 = vadd.f32 %v4653_v58, %v4652_v56 }
 0x16f   :  { %v4655_v61 = vpop.f32.mrf.mxu0  ;;  %v4682_v34 = vadd.f32 %v4681_v60, %v4680_v57 }
 0x170   :  { %v4683_v62 = vpop.f32.mrf.mxu1 }
 0x171   :  { %v4656_v63 = vpop.f32.mrf.mxu0  ;;  %v2387_v53 = vadd.f32 %v4682_v34, %v4654_v33 }
 0x172   :  { %v4684_v0 = vpop.f32.mrf.mxu1  ;;  %v4657_v39 = vadd.f32 %v4656_v63, %v4655_v61 }
 0x173   :  { %v4685_v40 = vadd.f32 %v4684_v0, %v4683_v62 }
 0x175   :  { %v2390_v46 = vadd.f32 %v4685_v40, %v4657_v39 }
 0x183   :  { %v4702_v44 = vpop.f32.mrf.mxu0 }
 0x184   :  { %v4730_v1 = vpop.f32.mrf.mxu1 }
 0x185   :  { %v4703_v2 = vpop.f32.mrf.mxu0 }
 0x186   :  { %v4731_v55 = vpop.f32.mrf.mxu1  ;;  %v4704_v38 = vadd.f32 %v4703_v2, %v4702_v44 }
 0x187   :  { %v4705_v7 = vpop.f32.mrf.mxu0  ;;  %v4732_v54 = vadd.f32 %v4731_v55, %v4730_v1 }
 0x188   :  { %v4733_v8 = vpop.f32.mrf.mxu1  ;;  %v2428_v52 = vadd.f32 %v4704_v38, %v2379_v20 }
 0x189   :  { %v4706_v9 = vpop.f32.mrf.mxu0 }
 0x18a   :  { %v4734_v11 = vpop.f32.mrf.mxu1  ;;  %v4707_v6 = vadd.f32 %v4706_v9, %v4705_v7  ;;  %v6163_v62 = vadd.f32 %v4732_v54, %v2428_v52 }
 0x18b   :  { %v4708_v13 = vpop.f32.mrf.mxu0  ;;  %v4735_v45 = vadd.f32 %v4734_v11, %v4733_v8 }
 0x18c   :  { %v4736_v14 = vpop.f32.mrf.mxu1  ;;  %v2431_v10 = vadd.f32 %v4707_v6, %v2382_v37 }
 0x18d   :  { %v4709_v15 = vpop.f32.mrf.mxu0 }
 0x18e   :  { %v4737_v16 = vpop.f32.mrf.mxu1  ;;  %v4710_v42 = vadd.f32 %v4709_v15, %v4708_v13  ;;  %v6161_v56 = vadd.f32 %v4735_v45, %v2431_v10 }
 0x18f   :  { %v4711_v17 = vpop.f32.mrf.mxu0  ;;  %v4738_v49 = vadd.f32 %v4737_v16, %v4736_v14 }
 0x190   :  { %v4739_v18 = vpop.f32.mrf.mxu1  ;;  %v2436_v48 = vadd.f32 %v4710_v42, %v2387_v53  ;;  %v2507_v0 = vmul.f32 %v6161_v56, %v6161_v56  ;;  %v2506_v53 = vmul.f32 %v6163_v62, %v6163_v62 }
 0x191   :  { %v4712_v19 = vpop.f32.mrf.mxu0 }
 0x192   :  { %v4740_v22 = vpop.f32.mrf.mxu1  ;;  %v4713_v47 = vadd.f32 %v4712_v19, %v4711_v17  ;;  %v6165_v63 = vadd.f32 %v4738_v49, %v2436_v48  ;;  %v2510_v7 = vadd.f32 %v2507_v0, %v2506_v53 }
 0x193   :  { %v4741_v58 = vadd.f32 %v4740_v22, %v4739_v18 }
 0x194   :  { %v2439_v57 = vadd.f32 %v4713_v47, %v2390_v46  ;;  %v2496_v47 = vadd.f32 %v6161_v56, %v6163_v62  ;;  %v2508_v10 = vmul.f32 %v6165_v63, %v6165_v63 }
 0x196   :  { %v6169_v44 = vadd.f32 %v4741_v58, %v2439_v57  ;;  %v2497_v8 = vadd.f32 %v2496_v47, %v6165_v63  ;;  %v2511_v18 = vadd.f32 %v2510_v7, %v2508_v10 }
 0x198   :  { %v2509_v9 = vmul.f32 %v6169_v44, %v6169_v44  ;;  %v2498_v19 = vadd.f32 %v2497_v8, %v6169_v44 }
 0x19a   :  { %v2512_v12 = vadd.f32 %v2511_v18, %v2509_v9 }
 0x1a3   :  { %v4758_v23 = vpop.f32.mrf.mxu0 }
 0x1a4   :  { %v4786_v3 = vpop.f32.mrf.mxu1 }
 0x1a5   :  { %v4759_v24 = vpop.f32.mrf.mxu0 }
 0x1a6   :  { %v4787_v25 = vpop.f32.mrf.mxu1  ;;  %v4760_v11 = vadd.f32 %v4759_v24, %v4758_v23  ;;  %v2499_v23 = vrot.slane %v2498_v19, 4 }
 0x1a7   :  { %v4761_v5 = vpop.f32.mrf.mxu0  ;;  %v4788_v13 = vadd.f32 %v4787_v25, %v4786_v3 }
 0x1a8   :  { %v4789_v26 = vpop.f32.mrf.mxu1 }
 0x1a9   :  { %v4762_v29 = vpop.f32.mrf.mxu0  ;;  %v3214_v32 = vadd.f32 %v4788_v13, %v4760_v11 }
 0x1aa   :  { %v4790_v31 = vpop.f32.mrf.mxu1  ;;  %v4763_v16 = vadd.f32 %v4762_v29, %v4761_v5  ;;  %v2513_v29 = vrot.slane %v2512_v12, 4 }
 0x1ab   :  { %v4764_v35 = vpop.f32.mrf.mxu0  ;;  %v4791_v17 = vadd.f32 %v4790_v31, %v4789_v26 }
 0x1ac   :  { %v4792_v36 = vpop.f32.mrf.mxu1  ;;  %v2514_v58 = vadd.f32 %v2513_v29, %v2512_v12 }
 0x1ad   :  { %v4765_v50 = vpop.f32.mrf.mxu0  ;;  %v3217_v38 = vadd.f32 %v4791_v17, %v4763_v16 }
 0x1ae   :  { %v4793_v51 = vpop.f32.mrf.mxu1  ;;  %v4766_v6 = vadd.f32 %v4765_v50, %v4764_v35  ;;  %v2515_v9 = vrot.slane %v2514_v58, 2 }
 0x1af   :  { %v4767_v60 = vpop.f32.mrf.mxu0  ;;  %v4794_v33 = vadd.f32 %v4793_v51, %v4792_v36  ;;  %v2500_v36 = vadd.f32 %v2499_v23, %v2498_v19 }
 0x1b0   :  { %v4795_v61 = vpop.f32.mrf.mxu1  ;;  %v2516_v19 = vadd.f32 %v2515_v9, %v2514_v58 }
 0x1b1   :  { %v4768_v20 = vpop.f32.mrf.mxu0  ;;  %v3222_v31 = vadd.f32 %v4794_v33, %v4766_v6 }
 0x1b2   :  { %v4796_v1 = vpop.f32.mrf.mxu1  ;;  %v4769_v54 = vadd.f32 %v4768_v20, %v4767_v60  ;;  %v2517_v6 = vrot.slane %v2516_v19, 1 }
 0x1b3   :  { %v4797_v45 = vadd.f32 %v4796_v1, %v4795_v61  ;;  %v2501_v61 = vrot.slane %v2500_v36, 2 }
 0x1b4   :  { %v2518_v23 = vadd.f32 %v2517_v6, %v2516_v19 }
 0x1b5   :  { %v3225_v47 = vadd.f32 %v4797_v45, %v4769_v54 }
 0x1b6   :  { %v2519_v29 = vadd.f32 %v2518_v23, %v6159_v43  ;;  %v3365_v43 = vld [vmem:[%s6292_s3] sm:$0x1] }
 0x1c4   :  { %v4842_v55 = vpop.f32.mrf.mxu1 }
 0x1c6   :  { %v4843_v15 = vpop.f32.mrf.mxu1 }
 0x1c7   :  { %v4844_v40 = vadd.f32 %v4843_v15, %v4842_v55  ;;  %v2502_v15 = vadd.f32 %v2501_v61, %v2500_v36 }
 0x1c8   :  { %v4845_v28 = vpop.f32.mrf.mxu1 }
 0x1ca   :  { %v4846_v37 = vpop.f32.mrf.mxu1 }
 0x1cb   :  { %v4847_v26 = vadd.f32 %v4846_v37, %v4845_v28  ;;  %v2503_v28 = vrot.slane %v2502_v15, 1 }
 0x1cc   :  { %v4848_v25 = vpop.f32.mrf.mxu1 }
 0x1cd   :  { %v2504_v37 = vadd.f32 %v2503_v28, %v2502_v15 }
 0x1ce   :  { %v4849_v52 = vpop.f32.mrf.mxu1 }
 0x1cf   :  { %v4850_v57 = vadd.f32 %v4849_v52, %v4848_v25  ;;  %v2505_v25 = vadd.f32 %v2504_v37, %v6157_v41  ;;  %v3361_v41 = vld [vmem:[%s6291_s2] sm:$0x1] }
 0x1d0   :  { %v4814_v2 = vpop.f32.mrf.mxu0  ;;  %v4851_v48 = vpop.f32.mrf.mxu1 }
 0x1d2   :  { %v4815_v14 = vpop.f32.mrf.mxu0  ;;  %v4852_v53 = vpop.f32.mrf.mxu1 }
 0x1d3   :  { %v4816_v22 = vadd.f32 %v4815_v14, %v4814_v2  ;;  %v4853_v8 = vadd.f32 %v4852_v53, %v4851_v48  ;;  %v3373_v48 = vlaneseq }
 0x1d4   :  { %v4817_v27 = vpop.f32.mrf.mxu0 }
 0x1d5   :  { %v3263_v3 = vadd.f32 %v4816_v22, %v3214_v32 }
 0x1d6   :  { %v4818_v34 = vpop.f32.mrf.mxu0 }
 0x1d7   :  { %v4819_v39 = vadd.f32 %v4818_v34, %v4817_v27  ;;  %v6183_v50 = vadd.f32 %v4844_v40, %v3263_v3 }
 0x1d8   :  { %v4820_v24 = vpop.f32.mrf.mxu0 }
 0x1d9   :  { %v3266_v5 = vadd.f32 %v4819_v39, %v3217_v38  ;;  %v3341_v20 = vmul.f32 %v6183_v50, %v6183_v50 }
 0x1da   :  { %v4821_v42 = vpop.f32.mrf.mxu0 }
 0x1db   :  { %v6181_v46 = vadd.f32 %v4847_v26, %v3266_v5  ;;  %v4822_v35 = vadd.f32 %v4821_v42, %v4820_v24 }
 0x1dc   :  { %v4823_v51 = vpop.f32.mrf.mxu0 }
 0x1dd   :  { %v3271_v49 = vadd.f32 %v4822_v35, %v3222_v31  ;;  %v3342_v10 = vmul.f32 %v6181_v46, %v6181_v46  ;;  %v3331_v1 = vadd.f32 %v6181_v46, %v6183_v50 }
 0x1de   :  { %v4824_v0 = vpop.f32.mrf.mxu0 }
 0x1df   :  { %v6187_v2 = vadd.f32 %v4850_v57, %v3271_v49  ;;  %v4825_v60 = vadd.f32 %v4824_v0, %v4823_v51  ;;  %v3345_v11 = vadd.f32 %v3342_v10, %v3341_v20  ;;  %v3374_v49 = vshrl.u32 %v3373_v48, 7 }
 0x1e1   :  { %v3343_v55 = vmul.f32 %v6187_v2, %v6187_v2  ;;  %v3274_v7 = vadd.f32 %v4825_v60, %v3225_v47  ;;  %v3332_v13 = vadd.f32 %v3331_v1, %v6187_v2  ;;  %v3375_v57 = vsub.s32 0, %v3374_v49 }
 0x1e3   :  { %v6196_v14 = vadd.f32 %v4853_v8, %v3274_v7  ;;  %v3346_v16 = vadd.f32 %v3345_v11, %v3343_v55  ;;  %v6302_v55 = vld [vmem:[#allocation3_spill] sm:$0xff]  ;;  %v6303_v8 = vld [vmem:[#allocation4_spill] sm:$0xff]  ;;  %v6304_v11 = vld [vmem:[#allocation5_spill] sm:$0xff] }
 0x1e5   :  { %v3333_v17 = vadd.f32 %v3332_v13, %v6196_v14  ;;  %v3344_v18 = vmul.f32 %v6196_v14, %v6196_v14 }
 0x1e7   :  { %v3334_v22 = vrot.slane %v3333_v17, 4  ;;  %v3347_v27 = vadd.f32 %v3346_v16, %v3344_v18 }
 0x1e9   :  { %v3335_v12 = vadd.f32 %v3334_v22, %v3333_v17  ;;  %v3348_v32 = vrot.slane %v3347_v27, 4 }
 0x1eb   :  { %v3336_v33 = vrot.slane %v3335_v12, 2  ;;  %v3349_v34 = vadd.f32 %v3348_v32, %v3347_v27 }
 0x1ed   :  { %v3337_v38 = vadd.f32 %v3336_v33, %v3335_v12  ;;  %v3350_v39 = vrot.slane %v3349_v34, 2 }
 0x1ef   :  { %v3338_v3 = vrot.slane %v3337_v38, 1  ;;  %v3351_v24 = vadd.f32 %v3350_v39, %v3349_v34 }
 0x1f1   :  { %v3339_v5 = vadd.f32 %v3338_v3, %v3337_v38  ;;  %v3352_v26 = vrot.slane %v3351_v24, 1 }
 0x1f3   :  { %v3340_v31 = vadd.f32 %v3339_v5, %v2505_v25  ;;  %v3353_v40 = vadd.f32 %v3352_v26, %v3351_v24 }
 0x1f5   :  { %v3354_v42 = vadd.f32 %v3353_v40, %v2519_v29  ;;  %v3356_v52 = vmul.f32 0.0078125, %v3340_v31 }
 0x1f7   :  { %v3357_v54 = vmul.f32 0.0078125, %v3354_v42  ;;  %v3358_v45 = vmul.f32 %v3356_v52, %v3356_v52 }
 0x1f9   :  { %v3359_v35 = vsub.f32 %v3357_v54, %v3358_v45 }
 0x1fb   :  { %v3360_v36 = vmax.f32 %v3359_v35, 0.0 }
 0x1fd   :  { %v3362_v51 = vadd.f32 1e-05, %v3360_v36 }
 0x1ff   :  { %5110 = vrsqrt.f32 %v3362_v51 }
 0x20c   :  { %v5111_v58 = vpop.eup %5110 }
 0x20d   :  { %v3364_v0 = vmul.f32 %v5111_v58, %v3361_v41 }
 0x20f   :  { %v3366_v53 = vmul.f32 %v3364_v0, %v3356_v52  ;;  %v6209_v47 = vrot.slane %v3364_v0, %v3375_v57 }
 0x211   :  { %v3367_v10 = vsub.f32 %v3365_v43, %v3366_v53  ;;  %v3378_v60 = vmul.f32 %v6209_v47, %v6070_v21  ;;  %v3379_v61 = vmul.f32 %v6209_v47, %v6088_v30  ;;  %v3380_v20 = vmul.f32 %v6209_v47, %v6118_v59  ;;  %v6305_v21 = vld [vmem:[#allocation6_spill] sm:$0xff] }
 0x212   :  { %v3381_v1 = vmul.f32 %v6209_v47, %v6124_v4  ;;  %v3428_v7 = vmul.f32 %v6209_v47, %v6302_v55  ;;  %v3429_v9 = vmul.f32 %v6209_v47, %v6303_v8  ;;  %v3430_v13 = vmul.f32 %v6209_v47, %v6304_v11 }
 0x213   :  { %v6225_v15 = vrot.slane %v3367_v10, %v3375_v57  ;;  %v3431_v30 = vmul.f32 %v6209_v47, %v6305_v21  ;;  %v3473_v59 = vmul.f32 %v6209_v47, %v6163_v62  ;;  %v3474_v4 = vmul.f32 %v6209_v47, %v6161_v56 }
 0x214   :  { %v3475_v16 = vmul.f32 %v6209_v47, %v6165_v63  ;;  %v3476_v17 = vmul.f32 %v6209_v47, %v6169_v44  ;;  %v3518_v18 = vmul.f32 %v6209_v47, %v6183_v50  ;;  %v3519_v19 = vmul.f32 %v6209_v47, %v6181_v46 }
 0x215   :  { %v3388_v22 = vadd.f32 %v6225_v15, %v3378_v60  ;;  %v3389_v27 = vadd.f32 %v6225_v15, %v3379_v61  ;;  %v3390_v62 = vadd.f32 %v6225_v15, %v3380_v20  ;;  %v3391_v56 = vadd.f32 %v6225_v15, %v3381_v1 }
 0x216   :  { %v3432_v28 = vadd.f32 %v3428_v7, %v6225_v15  ;;  %v3433_v63 = vadd.f32 %v3429_v9, %v6225_v15  ;;  %v3434_v44 = vadd.f32 %v3430_v13, %v6225_v15  ;;  %v3435_v12 = vadd.f32 %v3431_v30, %v6225_v15 }
 0x217   :  { %vm3392_vm0 = vcmp.ge.f32.partialorder %v3388_v22, 0.0  ;;  %vm3393_vm1 = vcmp.ge.f32.partialorder %v3389_v27, 0.0  ;;  %vm3394_vm2 = vcmp.ge.f32.partialorder %v3390_v62, 0.0  ;;  %vm3395_vm3 = vcmp.ge.f32.partialorder %v3391_v56, 0.0 }
 0x218   :  { %v3396_v46 = vmul.f32 0.2, %v3388_v22  ;;  %v3397_v50 = vmul.f32 0.2, %v3389_v27  ;;  %v3398_v32 = vmul.f32 0.2, %v3390_v62  ;;  %v3477_v6 = vadd.f32 %v3473_v59, %v6225_v15 }
 0x219   :  { %v3399_v33 = vmul.f32 0.2, %v3391_v56  ;;  %vm3436_vm4 = vcmp.ge.f32.partialorder %v3432_v28, 0.0  ;;  %vm3437_vm5 = vcmp.ge.f32.partialorder %v3433_v63, 0.0  ;;  %vm3438_vm6 = vcmp.ge.f32.partialorder %v3434_v44, 0.0 }
 0x21a   :  { %v3400_v34 = vsel %vm3392_vm0, %v3388_v22, %v3396_v46  ;;  %v3401_v37 = vsel %vm3393_vm1, %v3389_v27, %v3397_v50  ;;  %v3402_v38 = vsel %vm3394_vm2, %v3390_v62, %v3398_v32  ;;  %vm3439_vm7 = vcmp.ge.f32.partialorder %v3435_v12, 0.0 }
 0x21b   :  { %v3403_v39 = vsel %vm3395_vm3, %v3391_v56, %v3399_v33  ;;  %v4362_v23 = vpack.c.bf16 %v3401_v37, %v3400_v34  ;;  %v3440_v3 = vmul.f32 0.2, %v3432_v28  ;;  %v3441_v24 = vmul.f32 0.2, %v3433_v63 }
 0x21c   :  { %v4367_v25 = vpack.c.bf16 %v3403_v39, %v3402_v38  ;;  %v3442_v5 = vmul.f32 0.2, %v3434_v44  ;;  %v3443_v26 = vmul.f32 0.2, %v3435_v12  ;;  %v3478_v29 = vadd.f32 %v3474_v4, %v6225_v15 }
 0x21d   :  { %4363 = vst [vmem:[%s6293_s4] sm:$0xff] %v4362_v23   ;;  %v3444_v31 = vsel %vm3436_vm4, %v3432_v28, %v3440_v3  ;;  %v3445_v40 = vsel %vm3437_vm5, %v3433_v63, %v3441_v24  ;;  %v3479_v42 = vadd.f32 %v3475_v16, %v6225_v15  ;;  %v3480_v52 = vadd.f32 %v3476_v17, %v6225_v15 }
 0x21e   :  { %4399 = vst [vmem:[%s6293_s4 + $0x8] sm:$0xff] %v4367_v25   ;;  %v3446_v54 = vsel %vm3438_vm6, %v3434_v44, %v3442_v5  ;;  %v3447_v45 = vsel %vm3439_vm7, %v3435_v12, %v3443_v26  ;;  %v4372_v35 = vpack.c.bf16 %v3445_v40, %v3444_v31  ;;  %vm3481_vm8 = vcmp.ge.f32.partialorder %v3477_v6, 0.0 }
 0x21f   :  { %v4377_v36 = vpack.c.bf16 %v3447_v45, %v3446_v54  ;;  %vm3482_vm9 = vcmp.ge.f32.partialorder %v3478_v29, 0.0  ;;  %vm3483_vm10 = vcmp.ge.f32.partialorder %v3479_v42, 0.0  ;;  %vm3484_vm11 = vcmp.ge.f32.partialorder %v3480_v52, 0.0 }
 0x220   :  { %4400 = vst [vmem:[%s6293_s4 + $0x10] sm:$0xff] %v4372_v35   ;;  %v3485_v51 = vmul.f32 0.2, %v3477_v6  ;;  %v3486_v48 = vmul.f32 0.2, %v3478_v29  ;;  %v3520_v41 = vmul.f32 %v6209_v47, %v6187_v2  ;;  %v3521_v58 = vmul.f32 %v6209_v47, %v6196_v14 }
 0x221   :  { %v3487_v49 = vmul.f32 0.2, %v3479_v42  ;;  %4401 = vst [vmem:[%s6293_s4 + $0x18] sm:$0xff] %v4377_v36   ;;  %v3488_v57 = vmul.f32 0.2, %v3480_v52  ;;  %v3522_v0 = vadd.f32 %v3518_v18, %v6225_v15  ;;  %v3523_v43 = vadd.f32 %v3519_v19, %v6225_v15 }
 0x222   :  { %v3489_v53 = vsel %vm3481_vm8, %v3477_v6, %v3485_v51  ;;  %v3490_v10 = vsel %vm3482_vm9, %v3478_v29, %v3486_v48  ;;  %v3524_v61 = vadd.f32 %v3520_v41, %v6225_v15  ;;  %v3525_v2 = vadd.f32 %v3521_v58, %v6225_v15 }
 0x223   :  { %v3491_v60 = vsel %vm3483_vm10, %v3479_v42, %v3487_v49  ;;  %v3492_v20 = vsel %vm3484_vm11, %v3480_v52, %v3488_v57  ;;  %v4382_v1 = vpack.c.bf16 %v3490_v10, %v3489_v53  ;;  %vm3526_vm12 = vcmp.ge.f32.partialorder %v3522_v0, 0.0 }
 0x224   :  { %v4387_v55 = vpack.c.bf16 %v3492_v20, %v3491_v60  ;;  %vm3527_vm13 = vcmp.ge.f32.partialorder %v3523_v43, 0.0  ;;  %vm3528_vm14 = vcmp.ge.f32.partialorder %v3524_v61, 0.0  ;;  %v3530_v7 = vmul.f32 0.2, %v3522_v0 }
 0x225   :  { %4402 = vst [vmem:[%s6293_s4 + $0x20] sm:$0xff] %v4382_v1   ;;  %vm3529_vm15 = vcmp.ge.f32.partialorder %v3525_v2, 0.0  ;;  %v3531_v14 = vmul.f32 0.2, %v3523_v43  ;;  %v3532_v47 = vmul.f32 0.2, %v3524_v61 }
 0x226   :  { %4403 = vst [vmem:[%s6293_s4 + $0x28] sm:$0xff] %v4387_v55   ;;  %v3533_v8 = vmul.f32 0.2, %v3525_v2  ;;  %v3534_v9 = vsel %vm3526_vm12, %v3522_v0, %v3530_v7 }
 0x227   :  { %v3535_v11 = vsel %vm3527_vm13, %v3523_v43, %v3531_v14  ;;  %v3536_v13 = vsel %vm3528_vm14, %v3524_v61, %v3532_v47 }
 0x228   :  { %v3537_v15 = vsel %vm3529_vm15, %v3525_v2, %v3533_v8  ;;  %v4392_v21 = vpack.c.bf16 %v3535_v11, %v3534_v9 }
 0x229   :  { %v4397_v30 = vpack.c.bf16 %v3537_v15, %v3536_v13 }
 0x22a   :  { %4404 = vst [vmem:[%s6293_s4 + $0x30] sm:$0xff] %v4392_v21  }
 0x22b   :  { %4405 = vst [vmem:[%s6293_s4 + $0x38] sm:$0xff] %v4397_v30  }

// kernel: _lambda_.6
= control target key start
LH: loop header
LB: loop body
LE: loop exit
PB: predicated region body
PF: predicated region fallthrough
CT: control target
= control target key end

     0   :  { %vm660_vm0 = vcmask 523264   ;;  %vm6841_vm1 = vcmask 519168   ;;  %s6836_s1 = inlined_call_operand.vmem [shape: bf16[4,512,64], index: 1, kind: input, shape index: {}]   ;;  %s6837_s0 = inlined_call_operand.vmem [shape: bf16[4,128,512], index: 0, kind: input, shape index: {}]   ;;  %s6838_s2 = inlined_call_operand.vmem [shape: f32[1,64], index: 2, kind: input, shape index: {}]   ;;  %s6839_s3 = inlined_call_operand.vmem [shape: f32[1,64], index: 3, kind: input, shape index: {}]   ;;  %s6840_s4 = inlined_call_operand.vmem [shape: bf16[4,128,64], index: 4, kind: output, shape index: {}]  }
   0x1   :  { %v4997_v0 = vld [vmem:[%s6836_s1 + $0x78] sm:$0xff]   ;;  %v5001_v4 = vld [vmem:[%s6836_s1 + $0x70] sm:$0xff]   ;;  %v5005_v8 = vld [vmem:[%s6836_s1 + $0x68] sm:$0xff]  }
   0x2   :  { %v4998_v1 = vld [vmem:[%s6836_s1 + $0xf8] sm:$0xff]   ;;  %4485 = vmatprep.subr.bf16.mxu0 %v4997_v0  ;;  %v5002_v5 = vld [vmem:[%s6836_s1 + $0xf0] sm:$0xff]   ;;  %v5006_v9 = vld [vmem:[%s6836_s1 + $0xe8] sm:$0xff]  }
   0x3   :  { %v4999_v2 = vld [vmem:[%s6836_s1 + $0x38] sm:$0xff]   ;;  %4549 = vmatprep.subr.bf16.mxu1 %v4998_v1  ;;  %v5003_v6 = vld [vmem:[%s6836_s1 + $0x30] sm:$0xff]   ;;  %v5007_v10 = vld [vmem:[%s6836_s1 + $0x28] sm:$0xff]  }
   0x4   :  { %v5000_v3 = vld [vmem:[%s6836_s1 + $0xb8] sm:$0xff]   ;;  %4486 = vmatpush3.bf16.msra.mxu0 %v4999_v2  ;;  %v5004_v7 = vld [vmem:[%s6836_s1 + $0xb0] sm:$0xff]   ;;  %v5008_v11 = vld [vmem:[%s6836_s1 + $0xa8] sm:$0xff]  }
   0x5   :  { %4550 = vmatpush3.bf16.msra.mxu1 %v5000_v3  ;;  %4487 = vmatprep.subr.bf16.mxu0 %v5001_v4  ;;  %v5009_v12 = vld [vmem:[%s6836_s1 + $0x60] sm:$0xff]   ;;  %v5013_v16 = vld [vmem:[%s6836_s1 + $0x58] sm:$0xff]   ;;  %v5017_v20 = vld [vmem:[%s6836_s1 + $0x50] sm:$0xff]  }
   0x6   :  { %4551 = vmatprep.subr.bf16.mxu1 %v5002_v5  ;;  %v5010_v13 = vld [vmem:[%s6836_s1 + $0xe0] sm:$0xff]   ;;  %v5014_v17 = vld [vmem:[%s6836_s1 + $0xd8] sm:$0xff]   ;;  %v5018_v21 = vld [vmem:[%s6836_s1 + $0xd0] sm:$0xff]  }
   0x7   :  { %v5011_v14 = vld [vmem:[%s6836_s1 + $0x20] sm:$0xff]   ;;  %v5015_v18 = vld [vmem:[%s6836_s1 + $0x18] sm:$0xff]   ;;  %v5019_v22 = vld [vmem:[%s6836_s1 + $0x10] sm:$0xff]  }
   0x8   :  { %4488 = vmatpush3.bf16.msra.mxu0 %v5003_v6  ;;  %v5012_v15 = vld [vmem:[%s6836_s1 + $0xa0] sm:$0xff]   ;;  %v5016_v19 = vld [vmem:[%s6836_s1 + $0x98] sm:$0xff]   ;;  %v5020_v23 = vld [vmem:[%s6836_s1 + $0x90] sm:$0xff]  }
   0x9   :  { %4552 = vmatpush3.bf16.msra.mxu1 %v5004_v7  ;;  %4489 = vmatprep.subr.bf16.mxu0 %v5005_v8  ;;  %v5021_v24 = vld [vmem:[%s6836_s1 + $0x48] sm:$0xff]   ;;  %v5025_v28 = vld [vmem:[%s6836_s1 + $0x40] sm:$0xff]   ;;  %v5035_v36 = vld [vmem:[%s6836_s1 + $0x178] sm:$0xff]  }
   0xa   :  { %4553 = vmatprep.subr.bf16.mxu1 %v5006_v9  ;;  %v5022_v25 = vld [vmem:[%s6836_s1 + $0xc8] sm:$0xff]   ;;  %v5026_v29 = vld [vmem:[%s6836_s1 + $0xc0] sm:$0xff]   ;;  %v5036_v37 = vld [vmem:[%s6836_s1 + $0x1f8] sm:$0xff]  }
   0xb   :  { %v5023_v26 = vld [vmem:[%s6836_s1 + $0x8] sm:$0xff]   ;;  %v5027_v30 = vld [vmem:[%s6836_s1] sm:$0xff]   ;;  %v5037_v38 = vld [vmem:[%s6836_s1 + $0x138] sm:$0xff]  }
   0xc   :  { %4490 = vmatpush3.bf16.msra.mxu0 %v5007_v10  ;;  %v5024_v27 = vld [vmem:[%s6836_s1 + $0x88] sm:$0xff]   ;;  %v5028_v31 = vld [vmem:[%s6836_s1 + $0x80] sm:$0xff]   ;;  %v5038_v39 = vld [vmem:[%s6836_s1 + $0x1b8] sm:$0xff]  }
   0xd   :  { %4554 = vmatpush3.bf16.msra.mxu1 %v5008_v11  ;;  %4491 = vmatprep.subr.bf16.mxu0 %v5009_v12  ;;  %v5029_v32 = vld [vmem:[%s6837_s0] ss:$16 sps:$4 sm:$0xff]   ;;  %v5031_v33 = vld [vmem:[%s6837_s0 + $0x4] ss:$16 sps:$4 sm:$0xff]   ;;  %v5032_v34 = vld [vmem:[%s6837_s0 + $0x8] ss:$16 sps:$4 sm:$0xff]  }
   0xe   :  { %4555 = vmatprep.subr.bf16.mxu1 %v5010_v13  ;;  %v5034_v35 = vld [vmem:[%s6837_s0 + $0xc] ss:$16 sps:$4 sm:$0xff]   ;;  %498 = vmatprep.mubr.bf16.mxu0 %v5031_v33  ;;  %v5039_v40 = vld [vmem:[%s6837_s0 + $0x24] ss:$16 sps:$4 sm:$0xff]   ;;  %v5043_v42 = vld [vmem:[%s6837_s0 + $0x20] ss:$16 sps:$4 sm:$0xff]  }
   0xf   :  { %595 = vmatprep.mubr.bf16.mxu1 %v5034_v35  ;;  %v5041_v41 = vld [vmem:[%s6837_s0 + $0x2c] ss:$16 sps:$4 sm:$0xff]   ;;  %v5044_v43 = vld [vmem:[%s6837_s0 + $0x28] ss:$16 sps:$4 sm:$0xff]   ;;  %v5045_v44 = vld [vmem:[%s6836_s1 + $0x170] sm:$0xff]  }
  0x10   :  { %4492 = vmatpush3.bf16.msra.mxu0 %v5011_v14  ;;  %v5046_v45 = vld [vmem:[%s6836_s1 + $0x1f0] sm:$0xff]   ;;  %v5051_v49 = vld [vmem:[%s6837_s0 + $0x4c] ss:$16 sps:$4 sm:$0xff]   ;;  %v5054_v51 = vld [vmem:[%s6837_s0 + $0x48] ss:$16 sps:$4 sm:$0xff]  }
  0x11   :  { %4556 = vmatpush3.bf16.msra.mxu1 %v5012_v15  ;;  %4493 = vmatprep.subr.bf16.mxu0 %v5013_v16  ;;  %v5047_v46 = vld [vmem:[%s6836_s1 + $0x130] sm:$0xff]   ;;  %v5055_v52 = vld [vmem:[%s6836_s1 + $0x168] sm:$0xff]   ;;  %v5065_v60 = vld [vmem:[%s6836_s1 + $0x160] sm:$0xff]  }
  0x12   :  { %4557 = vmatprep.subr.bf16.mxu1 %v5014_v17  ;;  %v5048_v47 = vld [vmem:[%s6836_s1 + $0x1b0] sm:$0xff]   ;;  %v5056_v53 = vld [vmem:[%s6836_s1 + $0x1e8] sm:$0xff]   ;;  %v5066_v61 = vld [vmem:[%s6836_s1 + $0x1e0] sm:$0xff]  }
  0x13   :  { %v5049_v48 = vld [vmem:[%s6837_s0 + $0x44] ss:$16 sps:$4 sm:$0xff]   ;;  %v5053_v50 = vld [vmem:[%s6837_s0 + $0x40] ss:$16 sps:$4 sm:$0xff]   ;;  %v5057_v54 = vld [vmem:[%s6836_s1 + $0x128] sm:$0xff]  }
  0x14   :  { %4494 = vmatpush3.bf16.msra.mxu0 %v5015_v18  ;;  %v5058_v55 = vld [vmem:[%s6836_s1 + $0x1a8] sm:$0xff]   ;;  %v5059_v56 = vld [vmem:[%s6837_s0 + $0x64] ss:$16 sps:$4 sm:$0xff]   ;;  %v5063_v58 = vld [vmem:[%s6837_s0 + $0x60] ss:$16 sps:$4 sm:$0xff]  }
  0x15   :  { %4558 = vmatpush3.bf16.msra.mxu1 %v5016_v19  ;;  %4495 = vmatprep.subr.bf16.mxu0 %v5017_v20  ;;  %v5061_v57 = vld [vmem:[%s6837_s0 + $0x6c] ss:$16 sps:$4 sm:$0xff]   ;;  %v5064_v59 = vld [vmem:[%s6837_s0 + $0x68] ss:$16 sps:$4 sm:$0xff]   ;;  %v5067_v62 = vld [vmem:[%s6836_s1 + $0x120] sm:$0xff]  }
  0x16   :  { %4559 = vmatprep.subr.bf16.mxu1 %v5018_v21  ;;  %v5068_v63 = vld [vmem:[%s6836_s1 + $0x1a0] sm:$0xff]   ;;  %v5071_v1 = vld [vmem:[%s6837_s0 + $0x8c] ss:$16 sps:$4 sm:$0xff]   ;;  %v5074_v4 = vld [vmem:[%s6837_s0 + $0x88] ss:$16 sps:$4 sm:$0xff]  }
  0x17   :  { %v5069_v0 = vld [vmem:[%s6837_s0 + $0x84] ss:$16 sps:$4 sm:$0xff]   ;;  %v5073_v2 = vld [vmem:[%s6837_s0 + $0x80] ss:$16 sps:$4 sm:$0xff]   ;;  %v5075_v3 = vld [vmem:[%s6836_s1 + $0x158] sm:$0xff]  }
  0x18   :  { %4496 = vmatpush3.bf16.msra.mxu0 %v5019_v22  ;;  %v5076_v5 = vld [vmem:[%s6836_s1 + $0x1d8] sm:$0xff]   ;;  %v5079_v8 = vld [vmem:[%s6837_s0 + $0xa4] ss:$16 sps:$4 sm:$0xff]   ;;  %v5083_v12 = vld [vmem:[%s6837_s0 + $0xa0] ss:$16 sps:$4 sm:$0xff]  }
  0x19   :  { %4560 = vmatpush3.bf16.msra.mxu1 %v5020_v23  ;;  %4497 = vmatprep.subr.bf16.mxu0 %v5021_v24  ;;  %v5077_v6 = vld [vmem:[%s6836_s1 + $0x118] sm:$0xff]   ;;  %v5085_v10 = vld [vmem:[%s6836_s1 + $0x150] sm:$0xff]   ;;  %v5095_v18 = vld [vmem:[%s6836_s1 + $0x148] sm:$0xff]  }
  0x1a   :  { %4561 = vmatprep.subr.bf16.mxu1 %v5022_v25  ;;  %v5078_v7 = vld [vmem:[%s6836_s1 + $0x198] sm:$0xff]   ;;  %v5086_v11 = vld [vmem:[%s6836_s1 + $0x1d0] sm:$0xff]   ;;  %v5096_v19 = vld [vmem:[%s6836_s1 + $0x1c8] sm:$0xff]  }
  0x1b   :  { %v5081_v9 = vld [vmem:[%s6837_s0 + $0xac] ss:$16 sps:$4 sm:$0xff]   ;;  %v5087_v13 = vld [vmem:[%s6836_s1 + $0x110] sm:$0xff]   ;;  %v5084_v15 = vld [vmem:[%s6837_s0 + $0xa8] ss:$16 sps:$4 sm:$0xff]  }
  0x1c   :  { %4498 = vmatpush3.bf16.msra.mxu0 %v5023_v26  ;;  %v5088_v14 = vld [vmem:[%s6836_s1 + $0x190] sm:$0xff]   ;;  %v5091_v17 = vld [vmem:[%s6837_s0 + $0xcc] ss:$16 sps:$4 sm:$0xff]   ;;  %v5094_v23 = vld [vmem:[%s6837_s0 + $0xc8] ss:$16 sps:$4 sm:$0xff]  }
  0x1d   :  { %4562 = vmatpush3.bf16.msra.mxu1 %v5024_v27  ;;  %4499 = vmatprep.subr.bf16.mxu0 %v5025_v28  ;;  %v5089_v16 = vld [vmem:[%s6837_s0 + $0xc4] ss:$16 sps:$4 sm:$0xff]   ;;  %v5097_v20 = vld [vmem:[%s6836_s1 + $0x108] sm:$0xff]   ;;  %v5093_v22 = vld [vmem:[%s6837_s0 + $0xc0] ss:$16 sps:$4 sm:$0xff]  }
  0x1e   :  { %4563 = vmatprep.subr.bf16.mxu1 %v5026_v29  ;;  %v5098_v21 = vld [vmem:[%s6836_s1 + $0x188] sm:$0xff]   ;;  %v5099_v24 = vld [vmem:[%s6837_s0 + $0xe4] ss:$16 sps:$4 sm:$0xff]   ;;  %v5115_v33 = vld [vmem:[%s6836_s1 + $0x278] sm:$0xff]  }
  0x1f   :  { %v5101_v25 = vld [vmem:[%s6837_s0 + $0xec] ss:$16 sps:$4 sm:$0xff]   ;;  %v5105_v26 = vld [vmem:[%s6836_s1 + $0x140] sm:$0xff]  }
  0x20   :  { %4500 = vmatpush3.bf16.msra.mxu0 %v5027_v30  ;;  %v5106_v27 = vld [vmem:[%s6836_s1 + $0x1c0] sm:$0xff]   ;;  %v5114_v35 = vld [vmem:[%s6837_s0 + $0x10c] ss:$16 sps:$4 sm:$0xff]  }
  0x21   :  { %4564 = vmatpush3.bf16.msra.mxu1 %v5028_v31  ;;  %4613 = vmatprep.subr.bf16.mxu0 %v5035_v36  ;;  %v5107_v28 = vld [vmem:[%s6836_s1 + $0x100] sm:$0xff]   ;;  %v5104_v31 = vld [vmem:[%s6837_s0 + $0xe8] ss:$16 sps:$4 sm:$0xff]  }
  0x22   :  { %4677 = vmatprep.subr.bf16.mxu1 %v5036_v37  ;;  %v5108_v29 = vld [vmem:[%s6836_s1 + $0x180] sm:$0xff]   ;;  %v5112_v37 = vld [vmem:[%s6837_s0 + $0x108] ss:$16 sps:$4 sm:$0xff]  }
  0x23   :  { %499 = vmatmul.mubr.bf16.vlgmr.msra.gmra.mxu0 %v5029_v32  ;;  %v5103_v30 = vld [vmem:[%s6837_s0 + $0xe0] ss:$16 sps:$4 sm:$0xff]   ;;  %v5111_v32 = vld [vmem:[%s6837_s0 + $0x104] ss:$16 sps:$4 sm:$0xff]  }
  0x24   :  { %596 = vmatmul.mubr.bf16.vlgmr.msra.gmra.mxu1 %v5032_v34  ;;  %4614 = vmatpush3.bf16.msra.mxu0 %v5037_v38  ;;  %v5116_v34 = vld [vmem:[%s6836_s1 + $0x2f8] sm:$0xff]   ;;  %v5109_v36 = vld [vmem:[%s6837_s0 + $0x100] ss:$16 sps:$4 sm:$0xff]  }
  0x25   :  { %4678 = vmatpush3.bf16.msra.mxu1 %v5038_v39  ;;  %506 = vmatprep.mubr.bf16.mxu0 %v5039_v40  ;;  %v5117_v38 = vld [vmem:[%s6836_s1 + $0x238] sm:$0xff]   ;;  %v5119_v40 = vld [vmem:[%s6837_s0 + $0x124] ss:$16 sps:$4 sm:$0xff]  }
  0x26   :  { %603 = vmatprep.mubr.bf16.mxu1 %v5041_v41  ;;  %4615 = vmatprep.subr.bf16.mxu0 %v5045_v44  ;;  %v5118_v39 = vld [vmem:[%s6836_s1 + $0x2b8] sm:$0xff]   ;;  %v5127_v44 = vld [vmem:[%s6836_s1 + $0x230] sm:$0xff]  }
  0x27   :  { %4679 = vmatprep.subr.bf16.mxu1 %v5046_v45  ;;  %v5121_v41 = vld [vmem:[%s6837_s0 + $0x12c] ss:$16 sps:$4 sm:$0xff]   ;;  %v5128_v45 = vld [vmem:[%s6836_s1 + $0x2b0] sm:$0xff]  }
  0x28   :  { %4616 = vmatpush3.bf16.msra.mxu0 %v5047_v46  ;;  %v5123_v46 = vld [vmem:[%s6837_s0 + $0x120] ss:$16 sps:$4 sm:$0xff]  }
  0x29   :  { %4680 = vmatpush3.bf16.msra.mxu1 %v5048_v47  ;;  %4617 = vmatprep.subr.bf16.mxu0 %v5055_v52  ;;  %v5135_v47 = vld [vmem:[%s6836_s1 + $0x268] sm:$0xff]  }
  0x2a   :  { %4681 = vmatprep.subr.bf16.mxu1 %v5056_v53  ;;  %v5137_v52 = vld [vmem:[%s6836_s1 + $0x228] sm:$0xff]  }
  0x2b   :  { %507 = vmatmul.mubr.bf16.gmra.mxu0 %v5043_v42  ;;  %v5125_v42 = vld [vmem:[%s6836_s1 + $0x270] sm:$0xff]   ;;  %v5138_v53 = vld [vmem:[%s6836_s1 + $0x2a8] sm:$0xff]  }
  0x2c   :  { %604 = vmatmul.mubr.bf16.gmra.mxu1 %v5044_v43  ;;  %514 = vmatprep.mubr.bf16.mxu0 %v5049_v48  ;;  %v5126_v43 = vld [vmem:[%s6836_s1 + $0x2f0] sm:$0xff]   ;;  %v5124_v48 = vld [vmem:[%s6837_s0 + $0x128] ss:$16 sps:$4 sm:$0xff]  }
  0x2d   :  { %611 = vmatprep.mubr.bf16.mxu1 %v5051_v49  ;;  %4618 = vmatpush3.bf16.msra.mxu0 %v5057_v54  ;;  %v5136_v49 = vld [vmem:[%s6836_s1 + $0x2e8] sm:$0xff]   ;;  %v5145_v54 = vld [vmem:[%s6836_s1 + $0x260] sm:$0xff]  }
  0x2e   :  { %4682 = vmatpush3.bf16.msra.mxu1 %v5058_v55  ;;  %4619 = vmatprep.subr.bf16.mxu0 %v5065_v60  ;;  %v5146_v55 = vld [vmem:[%s6836_s1 + $0x2e0] sm:$0xff]  }
  0x2f   :  { %4683 = vmatprep.subr.bf16.mxu1 %v5066_v61  ;;  %v5139_v60 = vld [vmem:[%s6837_s0 + $0x164] ss:$16 sps:$4 sm:$0xff]   ;;  %v5141_v61 = vld [vmem:[%s6837_s0 + $0x16c] ss:$16 sps:$4 sm:$0xff]  }
  0x31   :  { %4620 = vmatpush3.bf16.msra.mxu0 %v5067_v62  ;;  %v5155_v62 = vld [vmem:[%s6836_s1 + $0x258] sm:$0xff]  }
  0x32   :  { %4684 = vmatpush3.bf16.msra.mxu1 %v5068_v63  ;;  %4621 = vmatprep.subr.bf16.mxu0 %v5075_v3  ;;  %v5156_v63 = vld [vmem:[%s6836_s1 + $0x2d8] sm:$0xff]  }
  0x33   :  { %515 = vmatmul.mubr.bf16.gmra.mxu0 %v5053_v50  ;;  %4685 = vmatprep.subr.bf16.mxu1 %v5076_v5  ;;  %v5129_v50 = vld [vmem:[%s6837_s0 + $0x144] ss:$16 sps:$4 sm:$0xff]   ;;  %v5144_v3 = vld [vmem:[%s6837_s0 + $0x168] ss:$16 sps:$4 sm:$0xff]   ;;  %v5151_v5 = vld [vmem:[%s6837_s0 + $0x18c] ss:$16 sps:$4 sm:$0xff]  }
  0x34   :  { %612 = vmatmul.mubr.bf16.gmra.mxu1 %v5054_v51  ;;  %522 = vmatprep.mubr.bf16.mxu0 %v5059_v56  ;;  %v5131_v51 = vld [vmem:[%s6837_s0 + $0x14c] ss:$16 sps:$4 sm:$0xff]   ;;  %v5133_v56 = vld [vmem:[%s6837_s0 + $0x140] ss:$16 sps:$4 sm:$0xff]  }
  0x35   :  { %619 = vmatprep.mubr.bf16.mxu1 %v5061_v57  ;;  %4622 = vmatpush3.bf16.msra.mxu0 %v5077_v6  ;;  %v5147_v57 = vld [vmem:[%s6836_s1 + $0x220] sm:$0xff]   ;;  %v5165_v6 = vld [vmem:[%s6836_s1 + $0x250] sm:$0xff]  }
  0x36   :  { %4686 = vmatpush3.bf16.msra.mxu1 %v5078_v7  ;;  %4623 = vmatprep.subr.bf16.mxu0 %v5085_v10  ;;  %v5166_v7 = vld [vmem:[%s6836_s1 + $0x2d0] sm:$0xff]  }
  0x37   :  { %4687 = vmatprep.subr.bf16.mxu1 %v5086_v11  ;;  %v5153_v10 = vld [vmem:[%s6837_s0 + $0x180] ss:$16 sps:$4 sm:$0xff]   ;;  %v5154_v11 = vld [vmem:[%s6837_s0 + $0x188] ss:$16 sps:$4 sm:$0xff]  }
  0x39   :  { %4624 = vmatpush3.bf16.msra.mxu0 %v5087_v13  ;;  %v5161_v13 = vld [vmem:[%s6837_s0 + $0x1ac] ss:$16 sps:$4 sm:$0xff]  }
  0x3a   :  { %4688 = vmatpush3.bf16.msra.mxu1 %v5088_v14  ;;  %4625 = vmatprep.subr.bf16.mxu0 %v5095_v18  ;;  %v5175_v14 = vld [vmem:[%s6836_s1 + $0x248] sm:$0xff]   ;;  %v5163_v18 = vld [vmem:[%s6837_s0 + $0x1a0] ss:$16 sps:$4 sm:$0xff]  }
  0x3b   :  { %523 = vmatmul.mubr.bf16.gmra.mxu0 %v5063_v58  ;;  %4689 = vmatprep.subr.bf16.mxu1 %v5096_v19  ;;  %v5148_v58 = vld [vmem:[%s6836_s1 + $0x2a0] sm:$0xff]   ;;  %v5164_v19 = vld [vmem:[%s6837_s0 + $0x1a8] ss:$16 sps:$4 sm:$0xff]  }
  0x3c   :  { %620 = vmatmul.mubr.bf16.gmra.mxu1 %v5064_v59  ;;  %530 = vmatprep.mubr.bf16.mxu0 %v5069_v0  ;;  %v5134_v59 = vld [vmem:[%s6837_s0 + $0x148] ss:$16 sps:$4 sm:$0xff]  }
  0x3d   :  { %627 = vmatprep.mubr.bf16.mxu1 %v5071_v1  ;;  %4626 = vmatpush3.bf16.msra.mxu0 %v5097_v20  ;;  %v5157_v0 = vld [vmem:[%s6836_s1 + $0x218] sm:$0xff]   ;;  %v5169_v20 = vld [vmem:[%s6837_s0 + $0x1c4] ss:$16 sps:$4 sm:$0xff]  }
  0x3e   :  { %4690 = vmatpush3.bf16.msra.mxu1 %v5098_v21  ;;  %4627 = vmatprep.subr.bf16.mxu0 %v5105_v26  ;;  %v5158_v1 = vld [vmem:[%s6836_s1 + $0x298] sm:$0xff]   ;;  %v5185_v21 = vld [vmem:[%s6836_s1 + $0x240] sm:$0xff]  }
  0x3f   :  { %4691 = vmatprep.subr.bf16.mxu1 %v5106_v27  ;;  %v5173_v26 = vld [vmem:[%s6837_s0 + $0x1c0] ss:$16 sps:$4 sm:$0xff]   ;;  %v5195_v27 = vld [vmem:[%s6836_s1 + $0x378] sm:$0xff]  }
  0x41   :  { %4628 = vmatpush3.bf16.msra.mxu0 %v5107_v28  ;;  %v5196_v28 = vld [vmem:[%s6836_s1 + $0x3f8] sm:$0xff]  }
  0x42   :  { %4692 = vmatpush3.bf16.msra.mxu1 %v5108_v29  ;;  %4741 = vmatprep.subr.bf16.mxu0 %v5115_v33  ;;  %v5174_v29 = vld [vmem:[%s6837_s0 + $0x1c8] ss:$16 sps:$4 sm:$0xff]  }
  0x43   :  { %531 = vmatmul.mubr.bf16.gmra.mxu0 %v5073_v2  ;;  %4805 = vmatprep.subr.bf16.mxu1 %v5116_v34  ;;  %v5143_v2 = vld [vmem:[%s6837_s0 + $0x160] ss:$16 sps:$4 sm:$0xff]   ;;  %v5184_v33 = vld [vmem:[%s6837_s0 + $0x1e8] ss:$16 sps:$4 sm:$0xff]   ;;  %v5191_v34 = vld [vmem:[%s6837_s0 + $0x204] ss:$16 sps:$4 sm:$0xff]  }
  0x44   :  { %628 = vmatmul.mubr.bf16.gmra.mxu1 %v5074_v4  ;;  %538 = vmatprep.mubr.bf16.mxu0 %v5079_v8  ;;  %v5149_v4 = vld [vmem:[%s6837_s0 + $0x184] ss:$16 sps:$4 sm:$0xff]  }
  0x45   :  { %635 = vmatprep.mubr.bf16.mxu1 %v5081_v9  ;;  %v5167_v8 = vld [vmem:[%s6836_s1 + $0x210] sm:$0xff]  }
  0x46   :  { %v5168_v9 = vld [vmem:[%s6836_s1 + $0x290] sm:$0xff]  }
  0x4b   :  { %539 = vmatmul.mubr.bf16.gmra.mxu0 %v5083_v12  ;;  %v5159_v12 = vld [vmem:[%s6837_s0 + $0x1a4] ss:$16 sps:$4 sm:$0xff]  }
  0x4c   :  { %636 = vmatmul.mubr.bf16.gmra.mxu1 %v5084_v15  ;;  %546 = vmatprep.mubr.bf16.mxu0 %v5089_v16  ;;  %v5176_v15 = vld [vmem:[%s6836_s1 + $0x2c8] sm:$0xff]  }
  0x4d   :  { %643 = vmatprep.mubr.bf16.mxu1 %v5091_v17  ;;  %v5177_v16 = vld [vmem:[%s6836_s1 + $0x208] sm:$0xff]  }
  0x4e   :  { %v5178_v17 = vld [vmem:[%s6836_s1 + $0x288] sm:$0xff]  }
  0x53   :  { %547 = vmatmul.mubr.bf16.gmra.mxu0 %v5093_v22  ;;  %v5171_v22 = vld [vmem:[%s6837_s0 + $0x1cc] ss:$16 sps:$4 sm:$0xff]  }
  0x54   :  { %644 = vmatmul.mubr.bf16.gmra.mxu1 %v5094_v23  ;;  %554 = vmatprep.mubr.bf16.mxu0 %v5099_v24  ;;  %v5186_v23 = vld [vmem:[%s6836_s1 + $0x2c0] sm:$0xff]  }
  0x55   :  { %651 = vmatprep.mubr.bf16.mxu1 %v5101_v25  ;;  %v5187_v24 = vld [vmem:[%s6836_s1 + $0x200] sm:$0xff]  }
  0x56   :  { %v5188_v25 = vld [vmem:[%s6836_s1 + $0x280] sm:$0xff]  }
  0x5b   :  { %555 = vmatmul.mubr.bf16.gmra.mxu0 %v5103_v30  ;;  %v5179_v30 = vld [vmem:[%s6837_s0 + $0x1e4] ss:$16 sps:$4 sm:$0xff]  }
  0x5c   :  { %652 = vmatmul.mubr.bf16.gmra.mxu1 %v5104_v31  ;;  %1251 = vmatprep.mubr.bf16.mxu0 %v5111_v32  ;;  %v5181_v31 = vld [vmem:[%s6837_s0 + $0x1ec] ss:$16 sps:$4 sm:$0xff]   ;;  %v5183_v32 = vld [vmem:[%s6837_s0 + $0x1e0] ss:$16 sps:$4 sm:$0xff]  }
  0x5d   :  { %1348 = vmatprep.mubr.bf16.mxu1 %v5114_v35  ;;  %v5194_v35 = vld [vmem:[%s6837_s0 + $0x20c] ss:$16 sps:$4 sm:$0xff]  }
  0x63   :  { %1252 = vmatmul.mubr.bf16.vlgmr.msra.gmra.mxu0 %v5109_v36  ;;  %v5189_v36 = vld [vmem:[%s6837_s0 + $0x200] ss:$16 sps:$4 sm:$0xff]  }
  0x64   :  { %1349 = vmatmul.mubr.bf16.vlgmr.msra.gmra.mxu1 %v5112_v37  ;;  %4742 = vmatpush3.bf16.msra.mxu0 %v5117_v38  ;;  %v5192_v37 = vld [vmem:[%s6837_s0 + $0x208] ss:$16 sps:$4 sm:$0xff]  }
  0x65   :  { %4806 = vmatpush3.bf16.msra.mxu1 %v5118_v39  ;;  %1259 = vmatprep.mubr.bf16.mxu0 %v5119_v40  ;;  %v5197_v38 = vld [vmem:[%s6836_s1 + $0x338] sm:$0xff]   ;;  %v5199_v40 = vld [vmem:[%s6837_s0 + $0x224] ss:$16 sps:$4 sm:$0xff]  }
  0x66   :  { %1356 = vmatprep.mubr.bf16.mxu1 %v5121_v41  ;;  %4743 = vmatprep.subr.bf16.mxu0 %v5125_v42  ;;  %v5198_v39 = vld [vmem:[%s6836_s1 + $0x3b8] sm:$0xff]   ;;  %v5205_v42 = vld [vmem:[%s6836_s1 + $0x370] sm:$0xff]  }
  0x67   :  { %4807 = vmatprep.subr.bf16.mxu1 %v5126_v43  ;;  %v5201_v41 = vld [vmem:[%s6837_s0 + $0x22c] ss:$16 sps:$4 sm:$0xff]   ;;  %v5206_v43 = vld [vmem:[%s6836_s1 + $0x3f0] sm:$0xff]  }
  0x68   :  { %4744 = vmatpush3.bf16.msra.mxu0 %v5127_v44  ;;  %v5207_v44 = vld [vmem:[%s6836_s1 + $0x330] sm:$0xff]  }
  0x69   :  { %4808 = vmatpush3.bf16.msra.mxu1 %v5128_v45  ;;  %4745 = vmatprep.subr.bf16.mxu0 %v5135_v47  ;;  %v5208_v45 = vld [vmem:[%s6836_s1 + $0x3b0] sm:$0xff]   ;;  %v5215_v47 = vld [vmem:[%s6836_s1 + $0x368] sm:$0xff]  }
  0x6a   :  { %4809 = vmatprep.subr.bf16.mxu1 %v5136_v49  ;;  %v5209_v49 = vld [vmem:[%s6837_s0 + $0x244] ss:$16 sps:$4 sm:$0xff]  }
  0x6b   :  { %1260 = vmatmul.mubr.bf16.gmra.mxu0 %v5123_v46  ;;  %v5203_v46 = vld [vmem:[%s6837_s0 + $0x220] ss:$16 sps:$4 sm:$0xff]  }
  0x6c   :  { %1357 = vmatmul.mubr.bf16.gmra.mxu1 %v5124_v48  ;;  %1267 = vmatprep.mubr.bf16.mxu0 %v5129_v50  ;;  %v5204_v48 = vld [vmem:[%s6837_s0 + $0x228] ss:$16 sps:$4 sm:$0xff]  }
  0x6d   :  { %1364 = vmatprep.mubr.bf16.mxu1 %v5131_v51  ;;  %4746 = vmatpush3.bf16.msra.mxu0 %v5137_v52  ;;  %v5216_v50 = vld [vmem:[%s6836_s1 + $0x3e8] sm:$0xff]  }
  0x6e   :  { %4810 = vmatpush3.bf16.msra.mxu1 %v5138_v53  ;;  %4747 = vmatprep.subr.bf16.mxu0 %v5145_v54  ;;  %v5211_v51 = vld [vmem:[%s6837_s0 + $0x24c] ss:$16 sps:$4 sm:$0xff]   ;;  %v5225_v54 = vld [vmem:[%s6836_s1 + $0x360] sm:$0xff]  }
  0x6f   :  { %4811 = vmatprep.subr.bf16.mxu1 %v5146_v55  ;;  %v5217_v52 = vld [vmem:[%s6836_s1 + $0x328] sm:$0xff]   ;;  %v5226_v55 = vld [vmem:[%s6836_s1 + $0x3e0] sm:$0xff]  }
  0x70   :  { %v5218_v53 = vld [vmem:[%s6836_s1 + $0x3a8] sm:$0xff]  }
  0x71   :  { %4748 = vmatpush3.bf16.msra.mxu0 %v5147_v57  ;;  %v5227_v57 = vld [vmem:[%s6836_s1 + $0x320] sm:$0xff]  }
  0x72   :  { %4812 = vmatpush3.bf16.msra.mxu1 %v5148_v58  ;;  %4749 = vmatprep.subr.bf16.mxu0 %v5155_v62  ;;  %v5228_v58 = vld [vmem:[%s6836_s1 + $0x3a0] sm:$0xff]   ;;  %v5221_v62 = vld [vmem:[%s6837_s0 + $0x26c] ss:$16 sps:$4 sm:$0xff]  }
  0x73   :  { %1268 = vmatmul.mubr.bf16.gmra.mxu0 %v5133_v56  ;;  %4813 = vmatprep.subr.bf16.mxu1 %v5156_v63  ;;  %v5213_v56 = vld [vmem:[%s6837_s0 + $0x240] ss:$16 sps:$4 sm:$0xff]   ;;  %v5236_v63 = vld [vmem:[%s6836_s1 + $0x3d8] sm:$0xff]  }
  0x74   :  { %1365 = vmatmul.mubr.bf16.gmra.mxu1 %v5134_v59  ;;  %1275 = vmatprep.mubr.bf16.mxu0 %v5139_v60  ;;  %v5214_v59 = vld [vmem:[%s6837_s0 + $0x248] ss:$16 sps:$4 sm:$0xff]   ;;  %v5219_v60 = vld [vmem:[%s6837_s0 + $0x264] ss:$16 sps:$4 sm:$0xff]  }
  0x75   :  { %1372 = vmatprep.mubr.bf16.mxu1 %v5141_v61  ;;  %4750 = vmatpush3.bf16.msra.mxu0 %v5157_v0  ;;  %v5235_v61 = vld [vmem:[%s6836_s1 + $0x358] sm:$0xff]  }
  0x76   :  { %4814 = vmatpush3.bf16.msra.mxu1 %v5158_v1  ;;  %4751 = vmatprep.subr.bf16.mxu0 %v5165_v6  ;;  %v5237_v0 = vld [vmem:[%s6836_s1 + $0x318] sm:$0xff]   ;;  %v5248_v6 = vld [vmem:[%s6836_s1 + $0x390] sm:$0xff]  }
  0x77   :  { %4815 = vmatprep.subr.bf16.mxu1 %v5166_v7  ;;  %v5238_v1 = vld [vmem:[%s6836_s1 + $0x398] sm:$0xff]  }
  0x78   :  { %v5224_v7 = vld [vmem:[%s6837_s0 + $0x268] ss:$16 sps:$4 sm:$0xff]  }
  0x79   :  { %4752 = vmatpush3.bf16.msra.mxu0 %v5167_v8  ;;  %v5229_v8 = vld [vmem:[%s6837_s0 + $0x284] ss:$16 sps:$4 sm:$0xff]  }
  0x7a   :  { %4816 = vmatpush3.bf16.msra.mxu1 %v5168_v9  ;;  %4753 = vmatprep.subr.bf16.mxu0 %v5175_v14  ;;  %v5255_v9 = vld [vmem:[%s6836_s1 + $0x348] sm:$0xff]   ;;  %v5265_v14 = vld [vmem:[%s6836_s1 + $0x340] sm:$0xff]  }
  0x7b   :  { %1276 = vmatmul.mubr.bf16.gmra.mxu0 %v5143_v2  ;;  %4817 = vmatprep.subr.bf16.mxu1 %v5176_v15  ;;  %v5245_v2 = vld [vmem:[%s6836_s1 + $0x350] sm:$0xff]   ;;  %v5266_v15 = vld [vmem:[%s6836_s1 + $0x3c0] sm:$0xff]  }
  0x7c   :  { %1373 = vmatmul.mubr.bf16.gmra.mxu1 %v5144_v3  ;;  %1283 = vmatprep.mubr.bf16.mxu0 %v5149_v4  ;;  %v5246_v3 = vld [vmem:[%s6836_s1 + $0x3d0] sm:$0xff]  }
  0x7d   :  { %1380 = vmatprep.mubr.bf16.mxu1 %v5151_v5  ;;  %4754 = vmatpush3.bf16.msra.mxu0 %v5177_v16  ;;  %v5247_v4 = vld [vmem:[%s6836_s1 + $0x310] sm:$0xff]  }
  0x7e   :  { %4818 = vmatpush3.bf16.msra.mxu1 %v5178_v17  ;;  %4755 = vmatprep.subr.bf16.mxu0 %v5185_v21  ;;  %v5223_v5 = vld [vmem:[%s6837_s0 + $0x260] ss:$16 sps:$4 sm:$0xff]   ;;  %v5241_v21 = vld [vmem:[%s6837_s0 + $0x2ac] ss:$16 sps:$4 sm:$0xff]  }
  0x7f   :  { %4819 = vmatprep.subr.bf16.mxu1 %v5186_v23  ;;  %v5233_v16 = vld [vmem:[%s6837_s0 + $0x280] ss:$16 sps:$4 sm:$0xff]   ;;  %v5244_v23 = vld [vmem:[%s6837_s0 + $0x2a8] ss:$16 sps:$4 sm:$0xff]  }
  0x80   :  { %v5267_v17 = vld [vmem:[%s6836_s1 + $0x300] sm:$0xff]  }
  0x81   :  { %4756 = vmatpush3.bf16.msra.mxu0 %v5187_v24  ;;  %v5249_v24 = vld [vmem:[%s6837_s0 + $0x2c4] ss:$16 sps:$4 sm:$0xff]  }
  0x82   :  { %4820 = vmatpush3.bf16.msra.mxu1 %v5188_v25  ;;  %4869 = vmatprep.subr.bf16.mxu0 %v5195_v27  ;;  %v5251_v25 = vld [vmem:[%s6837_s0 + $0x2cc] ss:$16 sps:$4 sm:$0xff]   ;;  %v5254_v27 = vld [vmem:[%s6837_s0 + $0x2c8] ss:$16 sps:$4 sm:$0xff]  }
  0x83   :  { %1284 = vmatmul.mubr.bf16.gmra.mxu0 %v5153_v10  ;;  %4933 = vmatprep.subr.bf16.mxu1 %v5196_v28  ;;  %v5256_v10 = vld [vmem:[%s6836_s1 + $0x3c8] sm:$0xff]   ;;  %v5259_v28 = vld [vmem:[%s6837_s0 + $0x2e4] ss:$16 sps:$4 sm:$0xff]  }
  0x84   :  { %1381 = vmatmul.mubr.bf16.gmra.mxu1 %v5154_v11  ;;  %1291 = vmatprep.mubr.bf16.mxu0 %v5159_v12  ;;  %v5231_v11 = vld [vmem:[%s6837_s0 + $0x28c] ss:$16 sps:$4 sm:$0xff]  }
  0x85   :  { %1388 = vmatprep.mubr.bf16.mxu1 %v5161_v13  ;;  %v5257_v12 = vld [vmem:[%s6836_s1 + $0x308] sm:$0xff]  }
  0x86   :  { %v5258_v13 = vld [vmem:[%s6836_s1 + $0x388] sm:$0xff]  }
  0x8b   :  { %1292 = vmatmul.mubr.bf16.gmra.mxu0 %v5163_v18  ;;  %v5268_v18 = vld [vmem:[%s6836_s1 + $0x380] sm:$0xff]  }
  0x8c   :  { %1389 = vmatmul.mubr.bf16.gmra.mxu1 %v5164_v19  ;;  %1299 = vmatprep.mubr.bf16.mxu0 %v5169_v20  ;;  %v5234_v19 = vld [vmem:[%s6837_s0 + $0x288] ss:$16 sps:$4 sm:$0xff]   ;;  %v5239_v20 = vld [vmem:[%s6837_s0 + $0x2a4] ss:$16 sps:$4 sm:$0xff]  }
  0x8d   :  { %1396 = vmatprep.mubr.bf16.mxu1 %v5171_v22  ;;  %v5243_v22 = vld [vmem:[%s6837_s0 + $0x2a0] ss:$16 sps:$4 sm:$0xff]  }
  0x93   :  { %1300 = vmatmul.mubr.bf16.gmra.mxu0 %v5173_v26  ;;  %v5253_v26 = vld [vmem:[%s6837_s0 + $0x2c0] ss:$16 sps:$4 sm:$0xff]  }
  0x94   :  { %1397 = vmatmul.mubr.bf16.gmra.mxu1 %v5174_v29  ;;  %1307 = vmatprep.mubr.bf16.mxu0 %v5179_v30  ;;  %v5261_v29 = vld [vmem:[%s6837_s0 + $0x2ec] ss:$16 sps:$4 sm:$0xff]   ;;  %v5263_v30 = vld [vmem:[%s6837_s0 + $0x2e0] ss:$16 sps:$4 sm:$0xff]  }
  0x95   :  { %1404 = vmatprep.mubr.bf16.mxu1 %v5181_v31  ;;  %v5264_v31 = vld [vmem:[%s6837_s0 + $0x2e8] ss:$16 sps:$4 sm:$0xff]  }
  0x9b   :  { %1308 = vmatmul.mubr.bf16.gmra.mxu0 %v5183_v32  ;;  %v5271_v32 = vld [vmem:[%s6837_s0 + $0x304] ss:$16 sps:$4 sm:$0xff]  }
  0x9c   :  { %1405 = vmatmul.mubr.bf16.gmra.mxu1 %v5184_v33  ;;  %2004 = vmatprep.mubr.bf16.mxu0 %v5191_v34  ;;  %v5274_v33 = vld [vmem:[%s6837_s0 + $0x30c] ss:$16 sps:$4 sm:$0xff]   ;;  %v5269_v34 = vld [vmem:[%s6837_s0 + $0x300] ss:$16 sps:$4 sm:$0xff]  }
  0x9d   :  { %2101 = vmatprep.mubr.bf16.mxu1 %v5194_v35  ;;  %v5272_v35 = vld [vmem:[%s6837_s0 + $0x308] ss:$16 sps:$4 sm:$0xff]  }
  0xa3   :  { %2005 = vmatmul.mubr.bf16.vlgmr.msra.gmra.mxu0 %v5189_v36  ;;  %v5275_v36 = vld [vmem:[%s6837_s0 + $0x324] ss:$16 sps:$4 sm:$0xff]  }
  0xa4   :  { %2102 = vmatmul.mubr.bf16.vlgmr.msra.gmra.mxu1 %v5192_v37  ;;  %4870 = vmatpush3.bf16.msra.mxu0 %v5197_v38  ;;  %v5277_v37 = vld [vmem:[%s6837_s0 + $0x32c] ss:$16 sps:$4 sm:$0xff]  }
  0xa5   :  { %4934 = vmatpush3.bf16.msra.mxu1 %v5198_v39  ;;  %2012 = vmatprep.mubr.bf16.mxu0 %v5199_v40 }
  0xa6   :  { %2109 = vmatprep.mubr.bf16.mxu1 %v5201_v41  ;;  %4871 = vmatprep.subr.bf16.mxu0 %v5205_v42 }
  0xa7   :  { %4935 = vmatprep.subr.bf16.mxu1 %v5206_v43 }
  0xa8   :  { %4872 = vmatpush3.bf16.msra.mxu0 %v5207_v44 }
  0xa9   :  { %4936 = vmatpush3.bf16.msra.mxu1 %v5208_v45  ;;  %4873 = vmatprep.subr.bf16.mxu0 %v5215_v47  ;;  %v5279_v45 = vld [vmem:[%s6837_s0 + $0x320] ss:$16 sps:$4 sm:$0xff]   ;;  %v5280_v47 = vld [vmem:[%s6837_s0 + $0x328] ss:$16 sps:$4 sm:$0xff]  }
  0xaa   :  { %4937 = vmatprep.subr.bf16.mxu1 %v5216_v50 }
  0xab   :  { %2013 = vmatmul.mubr.bf16.gmra.mxu0 %v5203_v46 }
  0xac   :  { %2110 = vmatmul.mubr.bf16.gmra.mxu1 %v5204_v48  ;;  %2020 = vmatprep.mubr.bf16.mxu0 %v5209_v49  ;;  %v5281_v48 = vld [vmem:[%s6837_s0 + $0x344] ss:$16 sps:$4 sm:$0xff]  }
  0xad   :  { %2117 = vmatprep.mubr.bf16.mxu1 %v5211_v51  ;;  %4874 = vmatpush3.bf16.msra.mxu0 %v5217_v52  ;;  %v5283_v51 = vld [vmem:[%s6837_s0 + $0x34c] ss:$16 sps:$4 sm:$0xff]  }
  0xae   :  { %4938 = vmatpush3.bf16.msra.mxu1 %v5218_v53  ;;  %4875 = vmatprep.subr.bf16.mxu0 %v5225_v54 }
  0xaf   :  { %4939 = vmatprep.subr.bf16.mxu1 %v5226_v55 }
  0xb1   :  { %4876 = vmatpush3.bf16.msra.mxu0 %v5227_v57 }
  0xb2   :  { %4940 = vmatpush3.bf16.msra.mxu1 %v5228_v58  ;;  %4877 = vmatprep.subr.bf16.mxu0 %v5235_v61 }
  0xb3   :  { %2021 = vmatmul.mubr.bf16.gmra.mxu0 %v5213_v56  ;;  %4941 = vmatprep.subr.bf16.mxu1 %v5236_v63 }
  0xb4   :  { %2118 = vmatmul.mubr.bf16.gmra.mxu1 %v5214_v59  ;;  %2028 = vmatprep.mubr.bf16.mxu0 %v5219_v60 }
  0xb5   :  { %2125 = vmatprep.mubr.bf16.mxu1 %v5221_v62  ;;  %4878 = vmatpush3.bf16.msra.mxu0 %v5237_v0 }
  0xb6   :  { %4942 = vmatpush3.bf16.msra.mxu1 %v5238_v1  ;;  %4879 = vmatprep.subr.bf16.mxu0 %v5245_v2 }
  0xb7   :  { %4943 = vmatprep.subr.bf16.mxu1 %v5246_v3  ;;  %v5285_v3 = vld [vmem:[%s6837_s0 + $0x340] ss:$16 sps:$4 sm:$0xff]  }
  0xb9   :  { %4880 = vmatpush3.bf16.msra.mxu0 %v5247_v4 }
  0xba   :  { %4944 = vmatpush3.bf16.msra.mxu1 %v5248_v6  ;;  %4881 = vmatprep.subr.bf16.mxu0 %v5255_v9  ;;  %v5286_v6 = vld [vmem:[%s6837_s0 + $0x348] ss:$16 sps:$4 sm:$0xff]  }
  0xbb   :  { %2029 = vmatmul.mubr.bf16.gmra.mxu0 %v5223_v5  ;;  %4945 = vmatprep.subr.bf16.mxu1 %v5256_v10 }
  0xbc   :  { %2126 = vmatmul.mubr.bf16.gmra.mxu1 %v5224_v7  ;;  %2036 = vmatprep.mubr.bf16.mxu0 %v5229_v8  ;;  %v5287_v7 = vld [vmem:[%s6837_s0 + $0x364] ss:$16 sps:$4 sm:$0xff]  }
  0xbd   :  { %2133 = vmatprep.mubr.bf16.mxu1 %v5231_v11  ;;  %4882 = vmatpush3.bf16.msra.mxu0 %v5257_v12  ;;  %v5289_v12 = vld [vmem:[%s6837_s0 + $0x36c] ss:$16 sps:$4 sm:$0xff]  }
  0xbe   :  { %4946 = vmatpush3.bf16.msra.mxu1 %v5258_v13  ;;  %4883 = vmatprep.subr.bf16.mxu0 %v5265_v14 }
  0xbf   :  { %4947 = vmatprep.subr.bf16.mxu1 %v5266_v15 }
  0xc1   :  { %4884 = vmatpush3.bf16.msra.mxu0 %v5267_v17 }
  0xc2   :  { %4948 = vmatpush3.bf16.msra.mxu1 %v5268_v18 }
  0xc3   :  { %2037 = vmatmul.mubr.bf16.gmra.mxu0 %v5233_v16 }
  0xc4   :  { %2134 = vmatmul.mubr.bf16.gmra.mxu1 %v5234_v19  ;;  %2044 = vmatprep.mubr.bf16.mxu0 %v5239_v20 }
  0xc5   :  { %2141 = vmatprep.mubr.bf16.mxu1 %v5241_v21 }
  0xcb   :  { %2045 = vmatmul.mubr.bf16.gmra.mxu0 %v5243_v22 }
  0xcc   :  { %2142 = vmatmul.mubr.bf16.gmra.mxu1 %v5244_v23  ;;  %2052 = vmatprep.mubr.bf16.mxu0 %v5249_v24 }
  0xcd   :  { %2149 = vmatprep.mubr.bf16.mxu1 %v5251_v25 }
  0xd3   :  { %2053 = vmatmul.mubr.bf16.gmra.mxu0 %v5253_v26 }
  0xd4   :  { %2150 = vmatmul.mubr.bf16.gmra.mxu1 %v5254_v27  ;;  %2060 = vmatprep.mubr.bf16.mxu0 %v5259_v28 }
  0xd5   :  { %2157 = vmatprep.mubr.bf16.mxu1 %v5261_v29 }
  0xdb   :  { %2061 = vmatmul.mubr.bf16.gmra.mxu0 %v5263_v30 }
  0xdc   :  { %2158 = vmatmul.mubr.bf16.gmra.mxu1 %v5264_v31  ;;  %2757 = vmatprep.mubr.bf16.mxu0 %v5271_v32  ;;  %v5291_v32 = vld [vmem:[%s6837_s0 + $0x360] ss:$16 sps:$4 sm:$0xff]  }
  0xdd   :  { %2854 = vmatprep.mubr.bf16.mxu1 %v5274_v33 }
  0xe3   :  { %v4501_v38 = vpop.f32.mrf.mxu0  ;;  %2758 = vmatmul.mubr.bf16.vlgmr.msra.gmra.mxu0 %v5269_v34 }
  0xe4   :  { %v4565_v39 = vpop.f32.mrf.mxu1  ;;  %2855 = vmatmul.mubr.bf16.vlgmr.msra.gmra.mxu1 %v5272_v35  ;;  %2765 = vmatprep.mubr.bf16.mxu0 %v5275_v36  ;;  %v5292_v35 = vld [vmem:[%s6837_s0 + $0x368] ss:$16 sps:$4 sm:$0xff]   ;;  %v5295_v36 = vld [vmem:[%s6837_s0 + $0x384] ss:$16 sps:$4 sm:$0xff]  }
  0xe5   :  { %v4502_v40 = vpop.f32.mrf.mxu0  ;;  %2862 = vmatprep.mubr.bf16.mxu1 %v5277_v37 }
  0xe6   :  { %v4503_v41 = vadd.f32 %v4502_v40, %v4501_v38  ;;  %v4566_v42 = vpop.f32.mrf.mxu1  ;;  %v5298_v40 = vld [vmem:[%s6837_s0 + $0x38c] ss:$16 sps:$4 sm:$0xff]  }
  0xe7   :  { %v4567_v43 = vadd.f32 %v4566_v42, %v4565_v39  ;;  %v4504_v44 = vpop.f32.mrf.mxu0 }
  0xe8   :  { %v4568_v46 = vpop.f32.mrf.mxu1 }
  0xe9   :  { %v598_v49 = vadd.f32 %v4567_v43, %v4503_v41  ;;  %v4505_v50 = vpop.f32.mrf.mxu0 }
  0xea   :  { %v4506_v52 = vadd.f32 %v4505_v50, %v4504_v44  ;;  %v4569_v53 = vpop.f32.mrf.mxu1 }
  0xeb   :  { %661 = vst.msk [vmem:[#allocation2] sm:$0xff] %vm660_vm0, %v598_v49  ;;  %v4570_v54 = vadd.f32 %v4569_v53, %v4568_v46  ;;  %v4507_v55 = vpop.f32.mrf.mxu0  ;;  %2766 = vmatmul.mubr.bf16.gmra.mxu0 %v5279_v45  ;;  %v715_v57 = vmul.f32 %v598_v49, %v598_v49  ;;  %v677_v62 = vsel %vm660_vm0, %v598_v49, 0.0 }
  0xec   :  { %v4571_v56 = vpop.f32.mrf.mxu1  ;;  %2863 = vmatmul.mubr.bf16.gmra.mxu1 %v5280_v47  ;;  %2773 = vmatprep.mubr.bf16.mxu0 %v5281_v48 }
  0xed   :  { %v601_v58 = vadd.f32 %v4570_v54, %v4506_v52  ;;  %v4508_v59 = vpop.f32.mrf.mxu0  ;;  %2870 = vmatprep.mubr.bf16.mxu1 %v5283_v51  ;;  %v731_v8 = vsel %vm660_vm0, %v715_v57, 0.0 }
  0xee   :  { %v4509_v60 = vadd.f32 %v4508_v59, %v4507_v55  ;;  %v4572_v61 = vpop.f32.mrf.mxu1 }
  0xef   :  { %662 = vst.msk [vmem:[#allocation2 + $0x8] sm:$0xff] %vm660_vm0, %v601_v58  ;;  %v678_v63 = vsel %vm660_vm0, %v601_v58, 0.0  ;;  %v716_v0 = vmul.f32 %v601_v58, %v601_v58  ;;  %v4573_v1 = vadd.f32 %v4572_v61, %v4571_v56  ;;  %v4510_v2 = vpop.f32.mrf.mxu0 }
  0xf0   :  { %v679_v4 = vadd.f32 %v678_v63, %v677_v62  ;;  %v4574_v5 = vpop.f32.mrf.mxu1  ;;  %v5296_v63 = vld [vmem:[%s6837_s0 + $0x388] ss:$16 sps:$4 sm:$0xff]  }
  0xf1   :  { %v732_v9 = vsel %vm660_vm0, %v716_v0, 0.0  ;;  %v606_v10 = vadd.f32 %v4573_v1, %v4509_v60  ;;  %v4511_v11 = vpop.f32.mrf.mxu0  ;;  %v5293_v60 = vld [vmem:[%s6837_s0 + $0x380] ss:$16 sps:$4 sm:$0xff]   ;;  %v5301_v0 = vld [vmem:[%s6837_s0 + $0x3a4] ss:$16 sps:$4 sm:$0xff]  }
  0xf2   :  { %v733_v13 = vadd.f32 %v732_v9, %v731_v8  ;;  %v4512_v14 = vadd.f32 %v4511_v11, %v4510_v2  ;;  %v4575_v15 = vpop.f32.mrf.mxu1 }
  0xf3   :  { %663 = vst.msk [vmem:[#allocation2 + $0x10] sm:$0xff] %vm660_vm0, %v606_v10  ;;  %v680_v16 = vsel %vm660_vm0, %v606_v10, 0.0  ;;  %v717_v17 = vmul.f32 %v606_v10, %v606_v10  ;;  %v4576_v18 = vadd.f32 %v4575_v15, %v4574_v5  ;;  %v4513_v19 = vpop.f32.mrf.mxu0  ;;  %2774 = vmatmul.mubr.bf16.gmra.mxu0 %v5285_v3 }
  0xf4   :  { %v681_v20 = vadd.f32 %v680_v16, %v679_v4  ;;  %v4577_v21 = vpop.f32.mrf.mxu1  ;;  %2871 = vmatmul.mubr.bf16.gmra.mxu1 %v5286_v6  ;;  %2781 = vmatprep.mubr.bf16.mxu0 %v5287_v7  ;;  %v5304_v4 = vld [vmem:[%s6837_s0 + $0x3ac] ss:$16 sps:$4 sm:$0xff]  }
  0xf5   :  { %v734_v22 = vsel %vm660_vm0, %v717_v17, 0.0  ;;  %v609_v23 = vadd.f32 %v4576_v18, %v4512_v14  ;;  %v4514_v24 = vpop.f32.mrf.mxu0  ;;  %2878 = vmatprep.mubr.bf16.mxu1 %v5289_v12 }
  0xf6   :  { %v735_v25 = vadd.f32 %v734_v22, %v733_v13  ;;  %v4515_v26 = vadd.f32 %v4514_v24, %v4513_v19  ;;  %v4578_v27 = vpop.f32.mrf.mxu1  ;;  %v5299_v24 = vld [vmem:[%s6837_s0 + $0x3a0] ss:$16 sps:$4 sm:$0xff]  }
  0xf7   :  { %664 = vst.msk [vmem:[#allocation2 + $0x18] sm:$0xff] %vm660_vm0, %v609_v23  ;;  %v682_v28 = vsel %vm660_vm0, %v609_v23, 0.0  ;;  %v718_v29 = vmul.f32 %v609_v23, %v609_v23  ;;  %v4579_v30 = vadd.f32 %v4578_v27, %v4577_v21  ;;  %v4516_v31 = vpop.f32.mrf.mxu0  ;;  %v5302_v27 = vld [vmem:[%s6837_s0 + $0x3a8] ss:$16 sps:$4 sm:$0xff]  }
  0xf8   :  { %v683_v33 = vadd.f32 %v682_v28, %v681_v20  ;;  %v4580_v34 = vpop.f32.mrf.mxu1  ;;  %v5307_v28 = vld [vmem:[%s6837_s0 + $0x3c4] ss:$16 sps:$4 sm:$0xff]  }
  0xf9   :  { %v736_v37 = vsel %vm660_vm0, %v718_v29, 0.0  ;;  %v614_v38 = vadd.f32 %v4579_v30, %v4515_v26  ;;  %v4517_v39 = vpop.f32.mrf.mxu0 }
  0xfa   :  { %v737_v41 = vadd.f32 %v736_v37, %v735_v25  ;;  %v4518_v42 = vadd.f32 %v4517_v39, %v4516_v31  ;;  %v4581_v43 = vpop.f32.mrf.mxu1 }
  0xfb   :  { %665 = vst.msk [vmem:[#allocation2 + $0x20] sm:$0xff] %vm660_vm0, %v614_v38  ;;  %v684_v44 = vsel %vm660_vm0, %v614_v38, 0.0  ;;  %v719_v45 = vmul.f32 %v614_v38, %v614_v38  ;;  %v4582_v46 = vadd.f32 %v4581_v43, %v4580_v34  ;;  %v4519_v47 = vpop.f32.mrf.mxu0  ;;  %2782 = vmatmul.mubr.bf16.gmra.mxu0 %v5291_v32  ;;  %v5310_v32 = vld [vmem:[%s6837_s0 + $0x3cc] ss:$16 sps:$4 sm:$0xff]  }
  0xfc   :  { %v685_v48 = vadd.f32 %v684_v44, %v683_v33  ;;  %v4583_v49 = vpop.f32.mrf.mxu1  ;;  %2879 = vmatmul.mubr.bf16.gmra.mxu1 %v5292_v35  ;;  %2789 = vmatprep.mubr.bf16.mxu0 %v5295_v36 }
  0xfd   :  { %v738_v50 = vsel %vm660_vm0, %v719_v45, 0.0  ;;  %v617_v51 = vadd.f32 %v4582_v46, %v4518_v42  ;;  %v4520_v52 = vpop.f32.mrf.mxu0  ;;  %2886 = vmatprep.mubr.bf16.mxu1 %v5298_v40 }
  0xfe   :  { %v739_v53 = vadd.f32 %v738_v50, %v737_v41  ;;  %v4521_v54 = vadd.f32 %v4520_v52, %v4519_v47  ;;  %v4584_v55 = vpop.f32.mrf.mxu1  ;;  %v5305_v52 = vld [vmem:[%s6837_s0 + $0x3c0] ss:$16 sps:$4 sm:$0xff]  }
  0xff   :  { %666 = vst.msk [vmem:[#allocation2 + $0x28] sm:$0xff] %vm660_vm0, %v617_v51  ;;  %v686_v56 = vsel %vm660_vm0, %v617_v51, 0.0  ;;  %v720_v57 = vmul.f32 %v617_v51, %v617_v51  ;;  %v4585_v58 = vadd.f32 %v4584_v55, %v4583_v49  ;;  %v4522_v59 = vpop.f32.mrf.mxu0  ;;  %v5308_v55 = vld [vmem:[%s6837_s0 + $0x3c8] ss:$16 sps:$4 sm:$0xff]  }
 0x100   :  { %v687_v61 = vadd.f32 %v686_v56, %v685_v48  ;;  %v4586_v62 = vpop.f32.mrf.mxu1  ;;  %v5313_v56 = vld [vmem:[%s6837_s0 + $0x3e4] ss:$16 sps:$4 sm:$0xff]  }
 0x101   :  { %v740_v1 = vsel %vm660_vm0, %v720_v57, 0.0  ;;  %v622_v2 = vadd.f32 %v4585_v58, %v4521_v54  ;;  %v4523_v3 = vpop.f32.mrf.mxu0 }
 0x102   :  { %v741_v5 = vadd.f32 %v740_v1, %v739_v53  ;;  %v4524_v6 = vadd.f32 %v4523_v3, %v4522_v59  ;;  %v4587_v7 = vpop.f32.mrf.mxu1 }
 0x103   :  { %667 = vst.msk [vmem:[#allocation2 + $0x30] sm:$0xff] %vm660_vm0, %v622_v2  ;;  %v688_v8 = vsel %vm660_vm0, %v622_v2, 0.0  ;;  %v721_v9 = vmul.f32 %v622_v2, %v622_v2  ;;  %v4588_v10 = vadd.f32 %v4587_v7, %v4586_v62  ;;  %v4525_v11 = vpop.f32.mrf.mxu0  ;;  %2790 = vmatmul.mubr.bf16.gmra.mxu0 %v5293_v60  ;;  %v5316_v60 = vld [vmem:[%s6837_s0 + $0x3ec] ss:$16 sps:$4 sm:$0xff]  }
 0x104   :  { %v689_v12 = vadd.f32 %v688_v8, %v687_v61  ;;  %v4589_v13 = vpop.f32.mrf.mxu1  ;;  %2887 = vmatmul.mubr.bf16.gmra.mxu1 %v5296_v63  ;;  %2797 = vmatprep.mubr.bf16.mxu0 %v5301_v0 }
 0x105   :  { %v742_v14 = vsel %vm660_vm0, %v721_v9, 0.0  ;;  %v625_v15 = vadd.f32 %v4588_v10, %v4524_v6  ;;  %v4526_v16 = vpop.f32.mrf.mxu0  ;;  %2894 = vmatprep.mubr.bf16.mxu1 %v5304_v4 }
 0x106   :  { %v743_v17 = vadd.f32 %v742_v14, %v741_v5  ;;  %v4527_v18 = vadd.f32 %v4526_v16, %v4525_v11  ;;  %v4590_v19 = vpop.f32.mrf.mxu1  ;;  %v5311_v16 = vld [vmem:[%s6837_s0 + $0x3e0] ss:$16 sps:$4 sm:$0xff]  }
 0x107   :  { %668 = vst.msk [vmem:[#allocation2 + $0x38] sm:$0xff] %vm660_vm0, %v625_v15  ;;  %v690_v20 = vsel %vm660_vm0, %v625_v15, 0.0  ;;  %v722_v21 = vmul.f32 %v625_v15, %v625_v15  ;;  %v4591_v22 = vadd.f32 %v4590_v19, %v4589_v13  ;;  %v4528_v23 = vpop.f32.mrf.mxu0  ;;  %v5314_v19 = vld [vmem:[%s6837_s0 + $0x3e8] ss:$16 sps:$4 sm:$0xff]  }
 0x108   :  { %v691_v25 = vadd.f32 %v690_v20, %v689_v12  ;;  %v4592_v26 = vpop.f32.mrf.mxu1 }
 0x109   :  { %v744_v29 = vsel %vm660_vm0, %v722_v21, 0.0  ;;  %v630_v30 = vadd.f32 %v4591_v22, %v4527_v18  ;;  %v4529_v31 = vpop.f32.mrf.mxu0 }
 0x10a   :  { %v745_v33 = vadd.f32 %v744_v29, %v743_v17  ;;  %v4530_v34 = vadd.f32 %v4529_v31, %v4528_v23  ;;  %v4593_v35 = vpop.f32.mrf.mxu1 }
 0x10b   :  { %669 = vst.msk [vmem:[#allocation2 + $0x40] sm:$0xff] %vm660_vm0, %v630_v30  ;;  %v692_v36 = vsel %vm660_vm0, %v630_v30, 0.0  ;;  %v723_v37 = vmul.f32 %v630_v30, %v630_v30  ;;  %v4594_v38 = vadd.f32 %v4593_v35, %v4592_v26  ;;  %v4531_v39 = vpop.f32.mrf.mxu0  ;;  %2798 = vmatmul.mubr.bf16.gmra.mxu0 %v5299_v24 }
 0x10c   :  { %v693_v40 = vadd.f32 %v692_v36, %v691_v25  ;;  %v4595_v41 = vpop.f32.mrf.mxu1  ;;  %2895 = vmatmul.mubr.bf16.gmra.mxu1 %v5302_v27  ;;  %2805 = vmatprep.mubr.bf16.mxu0 %v5307_v28 }
 0x10d   :  { %v746_v42 = vsel %vm660_vm0, %v723_v37, 0.0  ;;  %v633_v43 = vadd.f32 %v4594_v38, %v4530_v34  ;;  %v4532_v44 = vpop.f32.mrf.mxu0  ;;  %2902 = vmatprep.mubr.bf16.mxu1 %v5310_v32 }
 0x10e   :  { %v747_v45 = vadd.f32 %v746_v42, %v745_v33  ;;  %v4533_v46 = vadd.f32 %v4532_v44, %v4531_v39  ;;  %v4596_v47 = vpop.f32.mrf.mxu1 }
 0x10f   :  { %670 = vst.msk [vmem:[#allocation2 + $0x48] sm:$0xff] %vm660_vm0, %v633_v43  ;;  %v694_v48 = vsel %vm660_vm0, %v633_v43, 0.0  ;;  %v724_v49 = vmul.f32 %v633_v43, %v633_v43  ;;  %v4597_v50 = vadd.f32 %v4596_v47, %v4595_v41  ;;  %v4534_v51 = vpop.f32.mrf.mxu0 }
 0x110   :  { %v695_v53 = vadd.f32 %v694_v48, %v693_v40  ;;  %v4598_v54 = vpop.f32.mrf.mxu1 }
 0x111   :  { %v748_v57 = vsel %vm660_vm0, %v724_v49, 0.0  ;;  %v638_v58 = vadd.f32 %v4597_v50, %v4533_v46  ;;  %v4535_v59 = vpop.f32.mrf.mxu0 }
 0x112   :  { %v749_v61 = vadd.f32 %v748_v57, %v747_v45  ;;  %v4536_v62 = vadd.f32 %v4535_v59, %v4534_v51  ;;  %v4599_v63 = vpop.f32.mrf.mxu1 }
 0x113   :  { %671 = vst.msk [vmem:[#allocation2 + $0x50] sm:$0xff] %vm660_vm0, %v638_v58  ;;  %v696_v0 = vsel %vm660_vm0, %v638_v58, 0.0  ;;  %v725_v1 = vmul.f32 %v638_v58, %v638_v58  ;;  %v4600_v2 = vadd.f32 %v4599_v63, %v4598_v54  ;;  %v4537_v3 = vpop.f32.mrf.mxu0  ;;  %2806 = vmatmul.mubr.bf16.gmra.mxu0 %v5305_v52 }
 0x114   :  { %v697_v4 = vadd.f32 %v696_v0, %v695_v53  ;;  %v4601_v5 = vpop.f32.mrf.mxu1  ;;  %2903 = vmatmul.mubr.bf16.gmra.mxu1 %v5308_v55  ;;  %2813 = vmatprep.mubr.bf16.mxu0 %v5313_v56 }
 0x115   :  { %v750_v6 = vsel %vm660_vm0, %v725_v1, 0.0  ;;  %v641_v7 = vadd.f32 %v4600_v2, %v4536_v62  ;;  %v4538_v8 = vpop.f32.mrf.mxu0  ;;  %2910 = vmatprep.mubr.bf16.mxu1 %v5316_v60 }
 0x116   :  { %v751_v9 = vadd.f32 %v750_v6, %v749_v61  ;;  %v4539_v10 = vadd.f32 %v4538_v8, %v4537_v3  ;;  %v4602_v11 = vpop.f32.mrf.mxu1 }
 0x117   :  { %672 = vst.msk [vmem:[#allocation2 + $0x58] sm:$0xff] %vm660_vm0, %v641_v7  ;;  %v698_v12 = vsel %vm660_vm0, %v641_v7, 0.0  ;;  %v726_v13 = vmul.f32 %v641_v7, %v641_v7  ;;  %v4603_v14 = vadd.f32 %v4602_v11, %v4601_v5  ;;  %v4540_v15 = vpop.f32.mrf.mxu0 }
 0x118   :  { %v699_v17 = vadd.f32 %v698_v12, %v697_v4  ;;  %v4604_v18 = vpop.f32.mrf.mxu1 }
 0x119   :  { %v752_v20 = vsel %vm660_vm0, %v726_v13, 0.0  ;;  %v646_v21 = vadd.f32 %v4603_v14, %v4539_v10  ;;  %v4541_v22 = vpop.f32.mrf.mxu0 }
 0x11a   :  { %v753_v23 = vadd.f32 %v752_v20, %v751_v9  ;;  %v4542_v24 = vadd.f32 %v4541_v22, %v4540_v15  ;;  %v4605_v25 = vpop.f32.mrf.mxu1 }
 0x11b   :  { %673 = vst.msk [vmem:[#allocation2 + $0x60] sm:$0xff] %vm660_vm0, %v646_v21  ;;  %v700_v26 = vsel %vm660_vm0, %v646_v21, 0.0  ;;  %v727_v27 = vmul.f32 %v646_v21, %v646_v21  ;;  %v4606_v28 = vadd.f32 %v4605_v25, %v4604_v18  ;;  %v4543_v29 = vpop.f32.mrf.mxu0  ;;  %2814 = vmatmul.mubr.bf16.gmra.mxu0 %v5311_v16 }
 0x11c   :  { %v701_v30 = vadd.f32 %v700_v26, %v699_v17  ;;  %v4607_v31 = vpop.f32.mrf.mxu1  ;;  %2911 = vmatmul.mubr.bf16.gmra.mxu1 %v5314_v19 }
 0x11d   :  { %v754_v32 = vsel %vm660_vm0, %v727_v27, 0.0  ;;  %v649_v33 = vadd.f32 %v4606_v28, %v4542_v24  ;;  %v4544_v34 = vpop.f32.mrf.mxu0 }
 0x11e   :  { %v755_v35 = vadd.f32 %v754_v32, %v753_v23  ;;  %v4545_v36 = vadd.f32 %v4544_v34, %v4543_v29  ;;  %v4608_v37 = vpop.f32.mrf.mxu1 }
 0x11f   :  { %674 = vst.msk [vmem:[#allocation2 + $0x68] sm:$0xff] %vm660_vm0, %v649_v33  ;;  %v702_v38 = vsel %vm660_vm0, %v649_v33, 0.0  ;;  %v728_v39 = vmul.f32 %v649_v33, %v649_v33  ;;  %v4609_v40 = vadd.f32 %v4608_v37, %v4607_v31  ;;  %v4546_v41 = vpop.f32.mrf.mxu0 }
 0x120   :  { %v703_v42 = vadd.f32 %v702_v38, %v701_v30  ;;  %v4610_v43 = vpop.f32.mrf.mxu1 }
 0x121   :  { %v756_v44 = vsel %vm660_vm0, %v728_v39, 0.0  ;;  %v654_v45 = vadd.f32 %v4609_v40, %v4545_v36  ;;  %v4547_v46 = vpop.f32.mrf.mxu0 }
 0x122   :  { %v757_v47 = vadd.f32 %v756_v44, %v755_v35  ;;  %v4548_v48 = vadd.f32 %v4547_v46, %v4546_v41  ;;  %v4611_v49 = vpop.f32.mrf.mxu1 }
 0x123   :  { %675 = vst.msk [vmem:[#allocation2 + $0x70] sm:$0xff] %vm660_vm0, %v654_v45  ;;  %v704_v50 = vsel %vm660_vm0, %v654_v45, 0.0  ;;  %v729_v51 = vmul.f32 %v654_v45, %v654_v45  ;;  %v4612_v52 = vadd.f32 %v4611_v49, %v4610_v43  ;;  %v4629_v53 = vpop.f32.mrf.mxu0 }
 0x124   :  { %v705_v54 = vadd.f32 %v704_v50, %v703_v42  ;;  %v4693_v55 = vpop.f32.mrf.mxu1 }
 0x125   :  { %v758_v56 = vsel %vm660_vm0, %v729_v51, 0.0  ;;  %v657_v57 = vadd.f32 %v4612_v52, %v4548_v48  ;;  %v4630_v58 = vpop.f32.mrf.mxu0 }
 0x126   :  { %v759_v59 = vadd.f32 %v758_v56, %v757_v47  ;;  %v4631_v60 = vadd.f32 %v4630_v58, %v4629_v53  ;;  %v4694_v61 = vpop.f32.mrf.mxu1 }
 0x127   :  { %676 = vst.msk [vmem:[#allocation2 + $0x78] sm:$0xff] %vm660_vm0, %v657_v57  ;;  %v706_v62 = vsel %vm660_vm0, %v657_v57, 0.0  ;;  %v730_v63 = vmul.f32 %v657_v57, %v657_v57  ;;  %v4695_v0 = vadd.f32 %v4694_v61, %v4693_v55  ;;  %v4632_v1 = vpop.f32.mrf.mxu0 }
 0x128   :  { %v6159_v2 = vadd.f32 %v706_v62, %v705_v54  ;;  %v4696_v3 = vpop.f32.mrf.mxu1 }
 0x129   :  { %v760_v4 = vsel %vm660_vm0, %v730_v63, 0.0  ;;  %v1351_v5 = vadd.f32 %v4695_v0, %v4631_v60  ;;  %v4633_v6 = vpop.f32.mrf.mxu0 }
 0x12a   :  { %v6162_v7 = vadd.f32 %v760_v4, %v759_v59  ;;  %v4634_v8 = vadd.f32 %v4633_v6, %v4632_v1  ;;  %v4697_v9 = vpop.f32.mrf.mxu1 }
 0x12b   :  { %1414 = vst.msk [vmem:[#allocation2 + $0x80] sm:$0xff] %vm660_vm0, %v1351_v5  ;;  %v4698_v10 = vadd.f32 %v4697_v9, %v4696_v3  ;;  %v4635_v11 = vpop.f32.mrf.mxu0  ;;  %v1468_v13 = vmul.f32 %v1351_v5, %v1351_v5  ;;  %v1430_v18 = vsel %vm660_vm0, %v1351_v5, 0.0 }
 0x12c   :  { %v4699_v12 = vpop.f32.mrf.mxu1 }
 0x12d   :  { %v1354_v14 = vadd.f32 %v4698_v10, %v4634_v8  ;;  %v4636_v15 = vpop.f32.mrf.mxu0  ;;  %v1484_v25 = vsel %vm660_vm0, %v1468_v13, 0.0 }
 0x12e   :  { %v4637_v16 = vadd.f32 %v4636_v15, %v4635_v11  ;;  %v4700_v17 = vpop.f32.mrf.mxu1 }
 0x12f   :  { %1415 = vst.msk [vmem:[#allocation2 + $0x88] sm:$0xff] %vm660_vm0, %v1354_v14  ;;  %v1431_v19 = vsel %vm660_vm0, %v1354_v14, 0.0  ;;  %v1469_v20 = vmul.f32 %v1354_v14, %v1354_v14  ;;  %v4701_v21 = vadd.f32 %v4700_v17, %v4699_v12  ;;  %v4638_v22 = vpop.f32.mrf.mxu0 }
 0x130   :  { %v1432_v23 = vadd.f32 %v1431_v19, %v1430_v18  ;;  %v4702_v24 = vpop.f32.mrf.mxu1 }
 0x131   :  { %v1485_v26 = vsel %vm660_vm0, %v1469_v20, 0.0  ;;  %v1359_v27 = vadd.f32 %v4701_v21, %v4637_v16  ;;  %v4639_v28 = vpop.f32.mrf.mxu0 }
 0x132   :  { %v1486_v29 = vadd.f32 %v1485_v26, %v1484_v25  ;;  %v4640_v30 = vadd.f32 %v4639_v28, %v4638_v22  ;;  %v4703_v31 = vpop.f32.mrf.mxu1 }
 0x133   :  { %1416 = vst.msk [vmem:[#allocation2 + $0x90] sm:$0xff] %vm660_vm0, %v1359_v27  ;;  %v1433_v32 = vsel %vm660_vm0, %v1359_v27, 0.0  ;;  %v1470_v33 = vmul.f32 %v1359_v27, %v1359_v27  ;;  %v4704_v34 = vadd.f32 %v4703_v31, %v4702_v24  ;;  %v4641_v35 = vpop.f32.mrf.mxu0 }
 0x134   :  { %v1434_v36 = vadd.f32 %v1433_v32, %v1432_v23  ;;  %v4705_v37 = vpop.f32.mrf.mxu1 }
 0x135   :  { %v1487_v38 = vsel %vm660_vm0, %v1470_v33, 0.0  ;;  %v1362_v39 = vadd.f32 %v4704_v34, %v4640_v30  ;;  %v4642_v40 = vpop.f32.mrf.mxu0 }
 0x136   :  { %v1488_v41 = vadd.f32 %v1487_v38, %v1486_v29  ;;  %v4643_v42 = vadd.f32 %v4642_v40, %v4641_v35  ;;  %v4706_v43 = vpop.f32.mrf.mxu1 }
 0x137   :  { %1417 = vst.msk [vmem:[#allocation2 + $0x98] sm:$0xff] %vm660_vm0, %v1362_v39  ;;  %v1435_v44 = vsel %vm660_vm0, %v1362_v39, 0.0  ;;  %v1471_v45 = vmul.f32 %v1362_v39, %v1362_v39  ;;  %v4707_v46 = vadd.f32 %v4706_v43, %v4705_v37  ;;  %v4644_v47 = vpop.f32.mrf.mxu0 }
 0x138   :  { %v1436_v48 = vadd.f32 %v1435_v44, %v1434_v36  ;;  %v4708_v49 = vpop.f32.mrf.mxu1 }
 0x139   :  { %v1489_v50 = vsel %vm660_vm0, %v1471_v45, 0.0  ;;  %v1367_v51 = vadd.f32 %v4707_v46, %v4643_v42  ;;  %v4645_v52 = vpop.f32.mrf.mxu0 }
 0x13a   :  { %v1490_v53 = vadd.f32 %v1489_v50, %v1488_v41  ;;  %v4646_v54 = vadd.f32 %v4645_v52, %v4644_v47  ;;  %v4709_v55 = vpop.f32.mrf.mxu1 }
 0x13b   :  { %1418 = vst.msk [vmem:[#allocation2 + $0xa0] sm:$0xff] %vm660_vm0, %v1367_v51  ;;  %v1437_v56 = vsel %vm660_vm0, %v1367_v51, 0.0  ;;  %v1472_v57 = vmul.f32 %v1367_v51, %v1367_v51  ;;  %v4710_v58 = vadd.f32 %v4709_v55, %v4708_v49  ;;  %v4647_v59 = vpop.f32.mrf.mxu0 }
 0x13c   :  { %v1438_v60 = vadd.f32 %v1437_v56, %v1436_v48  ;;  %v4711_v61 = vpop.f32.mrf.mxu1 }
 0x13d   :  { %v1491_v62 = vsel %vm660_vm0, %v1472_v57, 0.0  ;;  %v1370_v63 = vadd.f32 %v4710_v58, %v4646_v54  ;;  %v4648_v0 = vpop.f32.mrf.mxu0 }
 0x13e   :  { %v1492_v1 = vadd.f32 %v1491_v62, %v1490_v53  ;;  %v4649_v3 = vadd.f32 %v4648_v0, %v4647_v59  ;;  %v4712_v4 = vpop.f32.mrf.mxu1 }
 0x13f   :  { %1419 = vst.msk [vmem:[#allocation2 + $0xa8] sm:$0xff] %vm660_vm0, %v1370_v63  ;;  %v1439_v5 = vsel %vm660_vm0, %v1370_v63, 0.0  ;;  %v1473_v6 = vmul.f32 %v1370_v63, %v1370_v63  ;;  %v4713_v8 = vadd.f32 %v4712_v4, %v4711_v61  ;;  %v4650_v9 = vpop.f32.mrf.mxu0 }
 0x140   :  { %v1440_v10 = vadd.f32 %v1439_v5, %v1438_v60  ;;  %v4714_v11 = vpop.f32.mrf.mxu1 }
 0x141   :  { %v1493_v12 = vsel %vm660_vm0, %v1473_v6, 0.0  ;;  %v1375_v13 = vadd.f32 %v4713_v8, %v4649_v3  ;;  %v4651_v14 = vpop.f32.mrf.mxu0 }
 0x142   :  { %v1494_v15 = vadd.f32 %v1493_v12, %v1492_v1  ;;  %v4652_v16 = vadd.f32 %v4651_v14, %v4650_v9  ;;  %v4715_v17 = vpop.f32.mrf.mxu1 }
 0x143   :  { %1420 = vst.msk [vmem:[#allocation2 + $0xb0] sm:$0xff] %vm660_vm0, %v1375_v13  ;;  %v1441_v18 = vsel %vm660_vm0, %v1375_v13, 0.0  ;;  %v1474_v19 = vmul.f32 %v1375_v13, %v1375_v13  ;;  %v4716_v20 = vadd.f32 %v4715_v17, %v4714_v11  ;;  %v4653_v21 = vpop.f32.mrf.mxu0 }
 0x144   :  { %v1442_v22 = vadd.f32 %v1441_v18, %v1440_v10  ;;  %v4717_v23 = vpop.f32.mrf.mxu1 }
 0x145   :  { %v1495_v24 = vsel %vm660_vm0, %v1474_v19, 0.0  ;;  %v1378_v25 = vadd.f32 %v4716_v20, %v4652_v16  ;;  %v4654_v26 = vpop.f32.mrf.mxu0 }
 0x146   :  { %v1496_v27 = vadd.f32 %v1495_v24, %v1494_v15  ;;  %v4655_v28 = vadd.f32 %v4654_v26, %v4653_v21  ;;  %v4718_v29 = vpop.f32.mrf.mxu1 }
 0x147   :  { %1421 = vst.msk [vmem:[#allocation2 + $0xb8] sm:$0xff] %vm660_vm0, %v1378_v25  ;;  %v1443_v30 = vsel %vm660_vm0, %v1378_v25, 0.0  ;;  %v1475_v31 = vmul.f32 %v1378_v25, %v1378_v25  ;;  %v4719_v32 = vadd.f32 %v4718_v29, %v4717_v23  ;;  %v4656_v33 = vpop.f32.mrf.mxu0 }
 0x148   :  { %v1444_v34 = vadd.f32 %v1443_v30, %v1442_v22  ;;  %v4720_v35 = vpop.f32.mrf.mxu1 }
 0x149   :  { %v1497_v36 = vsel %vm660_vm0, %v1475_v31, 0.0  ;;  %v1383_v37 = vadd.f32 %v4719_v32, %v4655_v28  ;;  %v4657_v38 = vpop.f32.mrf.mxu0 }
 0x14a   :  { %v1498_v39 = vadd.f32 %v1497_v36, %v1496_v27  ;;  %v4658_v40 = vadd.f32 %v4657_v38, %v4656_v33  ;;  %v4721_v41 = vpop.f32.mrf.mxu1 }
 0x14b   :  { %1422 = vst.msk [vmem:[#allocation2 + $0xc0] sm:$0xff] %vm660_vm0, %v1383_v37  ;;  %v1445_v42 = vsel %vm660_vm0, %v1383_v37, 0.0  ;;  %v1476_v43 = vmul.f32 %v1383_v37, %v1383_v37  ;;  %v4722_v44 = vadd.f32 %v4721_v41, %v4720_v35  ;;  %v4659_v45 = vpop.f32.mrf.mxu0 }
 0x14c   :  { %v1446_v46 = vadd.f32 %v1445_v42, %v1444_v34  ;;  %v4723_v47 = vpop.f32.mrf.mxu1 }
 0x14d   :  { %v1499_v48 = vsel %vm660_vm0, %v1476_v43, 0.0  ;;  %v1386_v49 = vadd.f32 %v4722_v44, %v4658_v40  ;;  %v4660_v50 = vpop.f32.mrf.mxu0  ;;  %v708_v44 = vrot.slane %v6159_v2, 4 }
 0x14e   :  { %v1500_v51 = vadd.f32 %v1499_v48, %v1498_v39  ;;  %v4661_v52 = vadd.f32 %v4660_v50, %v4659_v45  ;;  %v4724_v53 = vpop.f32.mrf.mxu1 }
 0x14f   :  { %1423 = vst.msk [vmem:[#allocation2 + $0xc8] sm:$0xff] %vm660_vm0, %v1386_v49  ;;  %v1447_v54 = vsel %vm660_vm0, %v1386_v49, 0.0  ;;  %v1477_v55 = vmul.f32 %v1386_v49, %v1386_v49  ;;  %v4725_v56 = vadd.f32 %v4724_v53, %v4723_v47  ;;  %v4662_v57 = vpop.f32.mrf.mxu0  ;;  %v762_v47 = vrot.slane %v6162_v7, 4 }
 0x150   :  { %v1448_v58 = vadd.f32 %v1447_v54, %v1446_v46  ;;  %v4726_v59 = vpop.f32.mrf.mxu1 }
 0x151   :  { %v1501_v60 = vsel %vm660_vm0, %v1477_v55, 0.0  ;;  %v1391_v61 = vadd.f32 %v4725_v56, %v4661_v52  ;;  %v4663_v62 = vpop.f32.mrf.mxu0 }
 0x152   :  { %v1502_v63 = vadd.f32 %v1501_v60, %v1500_v51  ;;  %v4664_v0 = vadd.f32 %v4663_v62, %v4662_v57  ;;  %v4727_v1 = vpop.f32.mrf.mxu1 }
 0x153   :  { %1424 = vst.msk [vmem:[#allocation2 + $0xd0] sm:$0xff] %vm660_vm0, %v1391_v61  ;;  %v1449_v3 = vsel %vm660_vm0, %v1391_v61, 0.0  ;;  %v1478_v4 = vmul.f32 %v1391_v61, %v1391_v61  ;;  %v4728_v5 = vadd.f32 %v4727_v1, %v4726_v59  ;;  %v4665_v6 = vpop.f32.mrf.mxu0  ;;  %v763_v61 = vadd.f32 %v762_v47, %v6162_v7 }
 0x154   :  { %v1450_v8 = vadd.f32 %v1449_v3, %v1448_v58  ;;  %v4729_v9 = vpop.f32.mrf.mxu1  ;;  %v709_v58 = vadd.f32 %v708_v44, %v6159_v2 }
 0x155   :  { %v1503_v10 = vsel %vm660_vm0, %v1478_v4, 0.0  ;;  %v1394_v11 = vadd.f32 %v4728_v5, %v4664_v0  ;;  %v4666_v12 = vpop.f32.mrf.mxu0 }
 0x156   :  { %v1504_v13 = vadd.f32 %v1503_v10, %v1502_v63  ;;  %v4667_v14 = vadd.f32 %v4666_v12, %v4665_v6  ;;  %v4730_v15 = vpop.f32.mrf.mxu1  ;;  %v710_v10 = vrot.slane %v709_v58, 2  ;;  %v764_v12 = vrot.slane %v763_v61, 2 }
 0x157   :  { %1425 = vst.msk [vmem:[#allocation2 + $0xd8] sm:$0xff] %vm660_vm0, %v1394_v11  ;;  %v1451_v16 = vsel %vm660_vm0, %v1394_v11, 0.0  ;;  %v1479_v17 = vmul.f32 %v1394_v11, %v1394_v11  ;;  %v4731_v18 = vadd.f32 %v4730_v15, %v4729_v9  ;;  %v4668_v19 = vpop.f32.mrf.mxu0 }
 0x158   :  { %v1452_v20 = vadd.f32 %v1451_v16, %v1450_v8  ;;  %v4732_v21 = vpop.f32.mrf.mxu1 }
 0x159   :  { %v1505_v22 = vsel %vm660_vm0, %v1479_v17, 0.0  ;;  %v1399_v23 = vadd.f32 %v4731_v18, %v4667_v14  ;;  %v4669_v24 = vpop.f32.mrf.mxu0 }
 0x15a   :  { %v1506_v25 = vadd.f32 %v1505_v22, %v1504_v13  ;;  %v4670_v26 = vadd.f32 %v4669_v24, %v4668_v19  ;;  %v4733_v27 = vpop.f32.mrf.mxu1 }
 0x15b   :  { %1426 = vst.msk [vmem:[#allocation2 + $0xe0] sm:$0xff] %vm660_vm0, %v1399_v23  ;;  %v1453_v28 = vsel %vm660_vm0, %v1399_v23, 0.0  ;;  %v1480_v29 = vmul.f32 %v1399_v23, %v1399_v23  ;;  %v4734_v30 = vadd.f32 %v4733_v27, %v4732_v21  ;;  %v4671_v31 = vpop.f32.mrf.mxu0  ;;  %v711_v21 = vadd.f32 %v710_v10, %v709_v58 }
 0x15c   :  { %v1454_v32 = vadd.f32 %v1453_v28, %v1452_v20  ;;  %v4735_v33 = vpop.f32.mrf.mxu1 }
 0x15d   :  { %v1507_v34 = vsel %vm660_vm0, %v1480_v29, 0.0  ;;  %v1402_v35 = vadd.f32 %v4734_v30, %v4670_v26  ;;  %v4672_v36 = vpop.f32.mrf.mxu0 }
 0x15e   :  { %v1508_v37 = vadd.f32 %v1507_v34, %v1506_v25  ;;  %v4673_v38 = vadd.f32 %v4672_v36, %v4671_v31  ;;  %v4736_v39 = vpop.f32.mrf.mxu1  ;;  %v765_v25 = vadd.f32 %v764_v12, %v763_v61 }
 0x15f   :  { %1427 = vst.msk [vmem:[#allocation2 + $0xe8] sm:$0xff] %vm660_vm0, %v1402_v35  ;;  %v1455_v40 = vsel %vm660_vm0, %v1402_v35, 0.0  ;;  %v1481_v41 = vmul.f32 %v1402_v35, %v1402_v35  ;;  %v4737_v42 = vadd.f32 %v4736_v39, %v4735_v33  ;;  %v4674_v43 = vpop.f32.mrf.mxu0 }
 0x160   :  { %v1456_v45 = vadd.f32 %v1455_v40, %v1454_v32  ;;  %v4738_v46 = vpop.f32.mrf.mxu1 }
 0x161   :  { %v1509_v48 = vsel %vm660_vm0, %v1481_v41, 0.0  ;;  %v1407_v49 = vadd.f32 %v4737_v42, %v4673_v38  ;;  %v4675_v50 = vpop.f32.mrf.mxu0  ;;  %v712_v38 = vrot.slane %v711_v21, 1 }
 0x162   :  { %v1510_v51 = vadd.f32 %v1509_v48, %v1508_v37  ;;  %v4676_v52 = vadd.f32 %v4675_v50, %v4674_v43  ;;  %v4739_v53 = vpop.f32.mrf.mxu1  ;;  %v766_v43 = vrot.slane %v765_v25, 1 }
 0x163   :  { %1428 = vst.msk [vmem:[#allocation2 + $0xf0] sm:$0xff] %vm660_vm0, %v1407_v49  ;;  %v1457_v54 = vsel %vm660_vm0, %v1407_v49, 0.0  ;;  %v1482_v55 = vmul.f32 %v1407_v49, %v1407_v49  ;;  %v4740_v56 = vadd.f32 %v4739_v53, %v4738_v46  ;;  %v4757_v57 = vpop.f32.mrf.mxu0 }
 0x164   :  { %v1458_v59 = vadd.f32 %v1457_v54, %v1456_v45  ;;  %v4821_v60 = vpop.f32.mrf.mxu1 }
 0x165   :  { %v1511_v62 = vsel %vm660_vm0, %v1482_v55, 0.0  ;;  %v1410_v63 = vadd.f32 %v4740_v56, %v4676_v52  ;;  %v4758_v0 = vpop.f32.mrf.mxu0 }
 0x166   :  { %v1512_v1 = vadd.f32 %v1511_v62, %v1510_v51  ;;  %v4759_v3 = vadd.f32 %v4758_v0, %v4757_v57  ;;  %v4822_v4 = vpop.f32.mrf.mxu1  ;;  %v713_v57 = vadd.f32 %v712_v38, %v711_v21  ;;  %v767_v62 = vadd.f32 %v766_v43, %v765_v25 }
 0x167   :  { %1429 = vst.msk [vmem:[#allocation2 + $0xf8] sm:$0xff] %vm660_vm0, %v1410_v63  ;;  %v1459_v5 = vsel %vm660_vm0, %v1410_v63, 0.0  ;;  %v1483_v6 = vmul.f32 %v1410_v63, %v1410_v63  ;;  %v4823_v8 = vadd.f32 %v4822_v4, %v4821_v60  ;;  %v4760_v9 = vpop.f32.mrf.mxu0 }
 0x168   :  { %v1460_v2 = vadd.f32 %v1459_v5, %v1458_v59  ;;  %v4824_v11 = vpop.f32.mrf.mxu1 }
 0x169   :  { %v1513_v7 = vsel %vm660_vm0, %v1483_v6, 0.0  ;;  %v2104_v13 = vadd.f32 %v4823_v8, %v4759_v3  ;;  %v4761_v14 = vpop.f32.mrf.mxu0 }
 0x16a   :  { %v1461_v15 = vrot.slane %v1460_v2, 4  ;;  %v1514_v16 = vadd.f32 %v1513_v7, %v1512_v1  ;;  %v4762_v17 = vadd.f32 %v4761_v14, %v4760_v9  ;;  %v4825_v18 = vpop.f32.mrf.mxu1 }
 0x16b   :  { %2167 = vst.msk [vmem:[#allocation2 + $0x100] sm:$0xff] %vm660_vm0, %v2104_v13  ;;  %v4826_v19 = vadd.f32 %v4825_v18, %v4824_v11  ;;  %v4763_v20 = vpop.f32.mrf.mxu0  ;;  %v2221_v26 = vmul.f32 %v2104_v13, %v2104_v13  ;;  %v2183_v33 = vsel %vm660_vm0, %v2104_v13, 0.0 }
 0x16c   :  { %v1462_v22 = vadd.f32 %v1461_v15, %v1460_v2  ;;  %v1515_v23 = vrot.slane %v1514_v16, 4  ;;  %v4827_v24 = vpop.f32.mrf.mxu1 }
 0x16d   :  { %v2107_v27 = vadd.f32 %v4826_v19, %v4762_v17  ;;  %v4764_v28 = vpop.f32.mrf.mxu0  ;;  %v2237_v44 = vsel %vm660_vm0, %v2221_v26, 0.0 }
 0x16e   :  { %v1463_v29 = vrot.slane %v1462_v22, 2  ;;  %v1516_v30 = vadd.f32 %v1515_v23, %v1514_v16  ;;  %v4765_v31 = vadd.f32 %v4764_v28, %v4763_v20  ;;  %v4828_v32 = vpop.f32.mrf.mxu1 }
 0x16f   :  { %2168 = vst.msk [vmem:[#allocation2 + $0x108] sm:$0xff] %vm660_vm0, %v2107_v27  ;;  %v2184_v34 = vsel %vm660_vm0, %v2107_v27, 0.0  ;;  %v2222_v35 = vmul.f32 %v2107_v27, %v2107_v27  ;;  %v4829_v36 = vadd.f32 %v4828_v32, %v4827_v24  ;;  %v4766_v37 = vpop.f32.mrf.mxu0 }
 0x170   :  { %v1464_v39 = vadd.f32 %v1463_v29, %v1462_v22  ;;  %v1517_v40 = vrot.slane %v1516_v30, 2  ;;  %v2185_v41 = vadd.f32 %v2184_v34, %v2183_v33  ;;  %v4830_v42 = vpop.f32.mrf.mxu1 }
 0x171   :  { %v2238_v45 = vsel %vm660_vm0, %v2222_v35, 0.0  ;;  %v2112_v46 = vadd.f32 %v4829_v36, %v4765_v31  ;;  %v4767_v47 = vpop.f32.mrf.mxu0 }
 0x172   :  { %v1465_v48 = vrot.slane %v1464_v39, 1  ;;  %v1518_v49 = vadd.f32 %v1517_v40, %v1516_v30  ;;  %v2239_v50 = vadd.f32 %v2238_v45, %v2237_v44  ;;  %v4768_v51 = vadd.f32 %v4767_v47, %v4766_v37  ;;  %v4831_v52 = vpop.f32.mrf.mxu1 }
 0x173   :  { %2169 = vst.msk [vmem:[#allocation2 + $0x110] sm:$0xff] %vm660_vm0, %v2112_v46  ;;  %v2186_v53 = vsel %vm660_vm0, %v2112_v46, 0.0  ;;  %v2223_v54 = vmul.f32 %v2112_v46, %v2112_v46  ;;  %v4832_v55 = vadd.f32 %v4831_v52, %v4830_v42  ;;  %v4769_v56 = vpop.f32.mrf.mxu0 }
 0x174   :  { %v1466_v58 = vadd.f32 %v1465_v48, %v1464_v39  ;;  %v1519_v59 = vrot.slane %v1518_v49, 1  ;;  %v2187_v60 = vadd.f32 %v2186_v53, %v2185_v41  ;;  %v4833_v61 = vpop.f32.mrf.mxu1 }
 0x175   :  { %v2240_v63 = vsel %vm660_vm0, %v2223_v54, 0.0  ;;  %v2115_v0 = vadd.f32 %v4832_v55, %v4768_v51  ;;  %v4770_v1 = vpop.f32.mrf.mxu0 }
 0x176   :  { %v6225_v3 = vadd.f32 %v1466_v58, %v713_v57  ;;  %v1520_v4 = vadd.f32 %v1519_v59, %v1518_v49  ;;  %v2241_v5 = vadd.f32 %v2240_v63, %v2239_v50  ;;  %v4771_v6 = vadd.f32 %v4770_v1, %v4769_v56  ;;  %v4834_v8 = vpop.f32.mrf.mxu1 }
 0x177   :  { %2170 = vst.msk [vmem:[#allocation2 + $0x118] sm:$0xff] %vm660_vm0, %v2115_v0  ;;  %v2188_v9 = vsel %vm660_vm0, %v2115_v0, 0.0  ;;  %v2224_v10 = vmul.f32 %v2115_v0, %v2115_v0  ;;  %v4835_v2 = vadd.f32 %v4834_v8, %v4833_v61  ;;  %v4772_v11 = vpop.f32.mrf.mxu0 }
 0x178   :  { %v6229_v12 = vadd.f32 %v1520_v4, %v767_v62  ;;  %v2189_v7 = vadd.f32 %v2188_v9, %v2187_v60  ;;  %v4836_v13 = vpop.f32.mrf.mxu1 }
 0x179   :  { %v2242_v14 = vsel %vm660_vm0, %v2224_v10, 0.0  ;;  %v2120_v15 = vadd.f32 %v4835_v2, %v4771_v6  ;;  %v4773_v16 = vpop.f32.mrf.mxu0 }
 0x17a   :  { %v2243_v17 = vadd.f32 %v2242_v14, %v2241_v5  ;;  %v4774_v18 = vadd.f32 %v4773_v16, %v4772_v11  ;;  %v4837_v19 = vpop.f32.mrf.mxu1 }
 0x17b   :  { %2171 = vst.msk [vmem:[#allocation2 + $0x120] sm:$0xff] %vm660_vm0, %v2120_v15  ;;  %v2190_v20 = vsel %vm660_vm0, %v2120_v15, 0.0  ;;  %v2225_v21 = vmul.f32 %v2120_v15, %v2120_v15  ;;  %v4838_v22 = vadd.f32 %v4837_v19, %v4836_v13  ;;  %v4775_v23 = vpop.f32.mrf.mxu0 }
 0x17c   :  { %v2191_v24 = vadd.f32 %v2190_v20, %v2189_v7  ;;  %v4839_v25 = vpop.f32.mrf.mxu1 }
 0x17d   :  { %v2244_v26 = vsel %vm660_vm0, %v2225_v21, 0.0  ;;  %v2123_v27 = vadd.f32 %v4838_v22, %v4774_v18  ;;  %v4776_v28 = vpop.f32.mrf.mxu0 }
 0x17e   :  { %v2245_v29 = vadd.f32 %v2244_v26, %v2243_v17  ;;  %v4777_v30 = vadd.f32 %v4776_v28, %v4775_v23  ;;  %v4840_v31 = vpop.f32.mrf.mxu1 }
 0x17f   :  { %2172 = vst.msk [vmem:[#allocation2 + $0x128] sm:$0xff] %vm660_vm0, %v2123_v27  ;;  %v2192_v32 = vsel %vm660_vm0, %v2123_v27, 0.0  ;;  %v2226_v33 = vmul.f32 %v2123_v27, %v2123_v27  ;;  %v4841_v34 = vadd.f32 %v4840_v31, %v4839_v25  ;;  %v4778_v35 = vpop.f32.mrf.mxu0 }
 0x180   :  { %v2193_v36 = vadd.f32 %v2192_v32, %v2191_v24  ;;  %v4842_v37 = vpop.f32.mrf.mxu1 }
 0x181   :  { %v2246_v38 = vsel %vm660_vm0, %v2226_v33, 0.0  ;;  %v2128_v39 = vadd.f32 %v4841_v34, %v4777_v30  ;;  %v4779_v40 = vpop.f32.mrf.mxu0 }
 0x182   :  { %v2247_v41 = vadd.f32 %v2246_v38, %v2245_v29  ;;  %v4780_v42 = vadd.f32 %v4779_v40, %v4778_v35  ;;  %v4843_v43 = vpop.f32.mrf.mxu1 }
 0x183   :  { %2173 = vst.msk [vmem:[#allocation2 + $0x130] sm:$0xff] %vm660_vm0, %v2128_v39  ;;  %v2194_v44 = vsel %vm660_vm0, %v2128_v39, 0.0  ;;  %v2227_v45 = vmul.f32 %v2128_v39, %v2128_v39  ;;  %v4844_v46 = vadd.f32 %v4843_v43, %v4842_v37  ;;  %v4781_v47 = vpop.f32.mrf.mxu0 }
 0x184   :  { %v2195_v48 = vadd.f32 %v2194_v44, %v2193_v36  ;;  %v4845_v49 = vpop.f32.mrf.mxu1 }
 0x185   :  { %v2248_v50 = vsel %vm660_vm0, %v2227_v45, 0.0  ;;  %v2131_v51 = vadd.f32 %v4844_v46, %v4780_v42  ;;  %v4782_v52 = vpop.f32.mrf.mxu0 }
 0x186   :  { %v2249_v53 = vadd.f32 %v2248_v50, %v2247_v41  ;;  %v4783_v54 = vadd.f32 %v4782_v52, %v4781_v47  ;;  %v4846_v55 = vpop.f32.mrf.mxu1 }
 0x187   :  { %2174 = vst.msk [vmem:[#allocation2 + $0x138] sm:$0xff] %vm660_vm0, %v2131_v51  ;;  %v2196_v56 = vsel %vm660_vm0, %v2131_v51, 0.0  ;;  %v2228_v57 = vmul.f32 %v2131_v51, %v2131_v51  ;;  %v4847_v58 = vadd.f32 %v4846_v55, %v4845_v49  ;;  %v4784_v59 = vpop.f32.mrf.mxu0 }
 0x188   :  { %v2197_v60 = vadd.f32 %v2196_v56, %v2195_v48  ;;  %v4848_v61 = vpop.f32.mrf.mxu1 }
 0x189   :  { %v2250_v62 = vsel %vm660_vm0, %v2228_v57, 0.0  ;;  %v2136_v63 = vadd.f32 %v4847_v58, %v4783_v54  ;;  %v4785_v0 = vpop.f32.mrf.mxu0 }
 0x18a   :  { %v2251_v1 = vadd.f32 %v2250_v62, %v2249_v53  ;;  %v4786_v4 = vadd.f32 %v4785_v0, %v4784_v59  ;;  %v4849_v5 = vpop.f32.mrf.mxu1 }
 0x18b   :  { %2175 = vst.msk [vmem:[#allocation2 + $0x140] sm:$0xff] %vm660_vm0, %v2136_v63  ;;  %v2198_v6 = vsel %vm660_vm0, %v2136_v63, 0.0  ;;  %v2229_v8 = vmul.f32 %v2136_v63, %v2136_v63  ;;  %v4850_v9 = vadd.f32 %v4849_v5, %v4848_v61  ;;  %v4787_v10 = vpop.f32.mrf.mxu0 }
 0x18c   :  { %v2199_v2 = vadd.f32 %v2198_v6, %v2197_v60  ;;  %v4851_v11 = vpop.f32.mrf.mxu1 }
 0x18d   :  { %v2252_v7 = vsel %vm660_vm0, %v2229_v8, 0.0  ;;  %v2139_v13 = vadd.f32 %v4850_v9, %v4786_v4  ;;  %v4788_v14 = vpop.f32.mrf.mxu0 }
 0x18e   :  { %v2253_v15 = vadd.f32 %v2252_v7, %v2251_v1  ;;  %v4789_v16 = vadd.f32 %v4788_v14, %v4787_v10  ;;  %v4852_v17 = vpop.f32.mrf.mxu1 }
 0x18f   :  { %2176 = vst.msk [vmem:[#allocation2 + $0x148] sm:$0xff] %vm660_vm0, %v2139_v13  ;;  %v2200_v18 = vsel %vm660_vm0, %v2139_v13, 0.0  ;;  %v2230_v19 = vmul.f32 %v2139_v13, %v2139_v13  ;;  %v4853_v20 = vadd.f32 %v4852_v17, %v4851_v11  ;;  %v4790_v21 = vpop.f32.mrf.mxu0 }
 0x190   :  { %v2201_v22 = vadd.f32 %v2200_v18, %v2199_v2  ;;  %v4854_v23 = vpop.f32.mrf.mxu1 }
 0x191   :  { %v2254_v24 = vsel %vm660_vm0, %v2230_v19, 0.0  ;;  %v2144_v25 = vadd.f32 %v4853_v20, %v4789_v16  ;;  %v4791_v26 = vpop.f32.mrf.mxu0 }
 0x192   :  { %v2255_v27 = vadd.f32 %v2254_v24, %v2253_v15  ;;  %v4792_v28 = vadd.f32 %v4791_v26, %v4790_v21  ;;  %v4855_v29 = vpop.f32.mrf.mxu1 }
 0x193   :  { %2177 = vst.msk [vmem:[#allocation2 + $0x150] sm:$0xff] %vm660_vm0, %v2144_v25  ;;  %v2202_v30 = vsel %vm660_vm0, %v2144_v25, 0.0  ;;  %v2231_v31 = vmul.f32 %v2144_v25, %v2144_v25  ;;  %v4856_v32 = vadd.f32 %v4855_v29, %v4854_v23  ;;  %v4793_v33 = vpop.f32.mrf.mxu0 }
 0x194   :  { %v2203_v34 = vadd.f32 %v2202_v30, %v2201_v22  ;;  %v4857_v35 = vpop.f32.mrf.mxu1 }
 0x195   :  { %v2256_v36 = vsel %vm660_vm0, %v2231_v31, 0.0  ;;  %v2147_v37 = vadd.f32 %v4856_v32, %v4792_v28  ;;  %v4794_v38 = vpop.f32.mrf.mxu0 }
 0x196   :  { %v2257_v39 = vadd.f32 %v2256_v36, %v2255_v27  ;;  %v4795_v40 = vadd.f32 %v4794_v38, %v4793_v33  ;;  %v4858_v41 = vpop.f32.mrf.mxu1 }
 0x197   :  { %2178 = vst.msk [vmem:[#allocation2 + $0x158] sm:$0xff] %vm660_vm0, %v2147_v37  ;;  %v2204_v42 = vsel %vm660_vm0, %v2147_v37, 0.0  ;;  %v2232_v43 = vmul.f32 %v2147_v37, %v2147_v37  ;;  %v4859_v44 = vadd.f32 %v4858_v41, %v4857_v35  ;;  %v4796_v45 = vpop.f32.mrf.mxu0 }
 0x198   :  { %v2205_v46 = vadd.f32 %v2204_v42, %v2203_v34  ;;  %v4860_v47 = vpop.f32.mrf.mxu1 }
 0x199   :  { %v2258_v48 = vsel %vm660_vm0, %v2232_v43, 0.0  ;;  %v2152_v49 = vadd.f32 %v4859_v44, %v4795_v40  ;;  %v4797_v50 = vpop.f32.mrf.mxu0 }
 0x19a   :  { %v2259_v51 = vadd.f32 %v2258_v48, %v2257_v39  ;;  %v4798_v52 = vadd.f32 %v4797_v50, %v4796_v45  ;;  %v4861_v53 = vpop.f32.mrf.mxu1 }
 0x19b   :  { %2179 = vst.msk [vmem:[#allocation2 + $0x160] sm:$0xff] %vm660_vm0, %v2152_v49  ;;  %v2206_v54 = vsel %vm660_vm0, %v2152_v49, 0.0  ;;  %v2233_v55 = vmul.f32 %v2152_v49, %v2152_v49  ;;  %v4862_v56 = vadd.f32 %v4861_v53, %v4860_v47  ;;  %v4799_v57 = vpop.f32.mrf.mxu0 }
 0x19c   :  { %v2207_v58 = vadd.f32 %v2206_v54, %v2205_v46  ;;  %v4863_v59 = vpop.f32.mrf.mxu1 }
 0x19d   :  { %v2260_v60 = vsel %vm660_vm0, %v2233_v55, 0.0  ;;  %v2155_v61 = vadd.f32 %v4862_v56, %v4798_v52  ;;  %v4800_v62 = vpop.f32.mrf.mxu0 }
 0x19e   :  { %v2261_v63 = vadd.f32 %v2260_v60, %v2259_v51  ;;  %v4801_v0 = vadd.f32 %v4800_v62, %v4799_v57  ;;  %v4864_v1 = vpop.f32.mrf.mxu1 }
 0x19f   :  { %2180 = vst.msk [vmem:[#allocation2 + $0x168] sm:$0xff] %vm660_vm0, %v2155_v61  ;;  %v2208_v4 = vsel %vm660_vm0, %v2155_v61, 0.0  ;;  %v2234_v5 = vmul.f32 %v2155_v61, %v2155_v61  ;;  %v4865_v6 = vadd.f32 %v4864_v1, %v4863_v59  ;;  %v4802_v8 = vpop.f32.mrf.mxu0 }
 0x1a0   :  { %v2209_v9 = vadd.f32 %v2208_v4, %v2207_v58  ;;  %v4866_v10 = vpop.f32.mrf.mxu1 }
 0x1a1   :  { %v2262_v2 = vsel %vm660_vm0, %v2234_v5, 0.0  ;;  %v2160_v11 = vadd.f32 %v4865_v6, %v4801_v0  ;;  %v4803_v7 = vpop.f32.mrf.mxu0 }
 0x1a2   :  { %v2263_v13 = vadd.f32 %v2262_v2, %v2261_v63  ;;  %v4804_v14 = vadd.f32 %v4803_v7, %v4802_v8  ;;  %v4867_v15 = vpop.f32.mrf.mxu1 }
 0x1a3   :  { %2181 = vst.msk [vmem:[#allocation2 + $0x170] sm:$0xff] %vm660_vm0, %v2160_v11  ;;  %v2210_v16 = vsel %vm660_vm0, %v2160_v11, 0.0  ;;  %v2235_v17 = vmul.f32 %v2160_v11, %v2160_v11  ;;  %v4868_v18 = vadd.f32 %v4867_v15, %v4866_v10  ;;  %v4885_v19 = vpop.f32.mrf.mxu0 }
 0x1a4   :  { %v2211_v20 = vadd.f32 %v2210_v16, %v2209_v9  ;;  %v4949_v21 = vpop.f32.mrf.mxu1 }
 0x1a5   :  { %v2264_v22 = vsel %vm660_vm0, %v2235_v17, 0.0  ;;  %v2163_v23 = vadd.f32 %v4868_v18, %v4804_v14  ;;  %v4886_v24 = vpop.f32.mrf.mxu0 }
 0x1a6   :  { %v2265_v25 = vadd.f32 %v2264_v22, %v2263_v13  ;;  %v4887_v26 = vadd.f32 %v4886_v24, %v4885_v19  ;;  %v4950_v27 = vpop.f32.mrf.mxu1 }
 0x1a7   :  { %2182 = vst.msk [vmem:[#allocation2 + $0x178] sm:$0xff] %vm660_vm0, %v2163_v23  ;;  %v2212_v28 = vsel %vm660_vm0, %v2163_v23, 0.0  ;;  %v2236_v29 = vmul.f32 %v2163_v23, %v2163_v23  ;;  %v4951_v30 = vadd.f32 %v4950_v27, %v4949_v21  ;;  %v4888_v31 = vpop.f32.mrf.mxu0 }
 0x1a8   :  { %v2213_v32 = vadd.f32 %v2212_v28, %v2211_v20  ;;  %v4952_v33 = vpop.f32.mrf.mxu1 }
 0x1a9   :  { %v2266_v34 = vsel %vm660_vm0, %v2236_v29, 0.0  ;;  %v6268_v35 = vadd.f32 %v4951_v30, %v4887_v26  ;;  %v4889_v36 = vpop.f32.mrf.mxu0 }
 0x1aa   :  { %v2214_v37 = vrot.slane %v2213_v32, 4  ;;  %v2267_v38 = vadd.f32 %v2266_v34, %v2265_v25  ;;  %v4890_v39 = vadd.f32 %v4889_v36, %v4888_v31  ;;  %v4953_v40 = vpop.f32.mrf.mxu1 }
 0x1ab   :  { %2920 = vst.msk [vmem:[#allocation2 + $0x180] sm:$0xff] %vm660_vm0, %v6268_v35  ;;  %v4954_v41 = vadd.f32 %v4953_v40, %v4952_v33  ;;  %v4891_v42 = vpop.f32.mrf.mxu0 }
 0x1ac   :  { %v2215_v43 = vadd.f32 %v2214_v37, %v2213_v32  ;;  %v2268_v44 = vrot.slane %v2267_v38, 4  ;;  %v4955_v45 = vpop.f32.mrf.mxu1 }
 0x1ad   :  { %v6272_v46 = vadd.f32 %v4954_v41, %v4890_v39  ;;  %v4892_v47 = vpop.f32.mrf.mxu0 }
 0x1ae   :  { %v2216_v48 = vrot.slane %v2215_v43, 2  ;;  %v2269_v49 = vadd.f32 %v2268_v44, %v2267_v38  ;;  %v4893_v50 = vadd.f32 %v4892_v47, %v4891_v42  ;;  %v4956_v51 = vpop.f32.mrf.mxu1 }
 0x1af   :  { %2921 = vst.msk [vmem:[#allocation2 + $0x188] sm:$0xff] %vm660_vm0, %v6272_v46  ;;  %v4957_v52 = vadd.f32 %v4956_v51, %v4955_v45  ;;  %v4894_v53 = vpop.f32.mrf.mxu0  ;;  %v2975_v40 = vmul.f32 %v6272_v46, %v6272_v46  ;;  %v2937_v45 = vsel %vm660_vm0, %v6272_v46, 0.0 }
 0x1b0   :  { %v2217_v54 = vadd.f32 %v2216_v48, %v2215_v43  ;;  %v2270_v55 = vrot.slane %v2269_v49, 2  ;;  %v4958_v56 = vpop.f32.mrf.mxu1  ;;  %v2974_v43 = vmul.f32 %v6268_v35, %v6268_v35 }
 0x1b1   :  { %v6276_v57 = vadd.f32 %v4957_v52, %v4893_v50  ;;  %v4895_v58 = vpop.f32.mrf.mxu0  ;;  %v2936_v50 = vsel %vm660_vm0, %v6268_v35, 0.0 }
 0x1b2   :  { %v2218_v59 = vrot.slane %v2217_v54, 1  ;;  %v2271_v60 = vadd.f32 %v2270_v55, %v2269_v49  ;;  %v4896_v61 = vadd.f32 %v4895_v58, %v4894_v53  ;;  %v4959_v62 = vpop.f32.mrf.mxu1  ;;  %v2991_v53 = vsel %vm660_vm0, %v2975_v40, 0.0 }
 0x1b3   :  { %2922 = vst.msk [vmem:[#allocation2 + $0x190] sm:$0xff] %vm660_vm0, %v6276_v57  ;;  %v4960_v63 = vadd.f32 %v4959_v62, %v4958_v56  ;;  %v4897_v0 = vpop.f32.mrf.mxu0  ;;  %v2976_v47 = vmul.f32 %v6276_v57, %v6276_v57  ;;  %v2990_v58 = vsel %vm660_vm0, %v2974_v43, 0.0 }
 0x1b4   :  { %v2219_v1 = vadd.f32 %v2218_v59, %v2217_v54  ;;  %v2272_v4 = vrot.slane %v2271_v60, 1  ;;  %v4961_v5 = vpop.f32.mrf.mxu1  ;;  %v2939_v54 = vsel %vm660_vm0, %v6276_v57, 0.0  ;;  %v2938_v59 = vadd.f32 %v2937_v45, %v2936_v50 }
 0x1b5   :  { %v2868_v6 = vadd.f32 %v4960_v63, %v4896_v61  ;;  %v4898_v8 = vpop.f32.mrf.mxu0  ;;  %v2993_v61 = vsel %vm660_vm0, %v2976_v47, 0.0 }
 0x1b6   :  { %v6281_v9 = vadd.f32 %v2219_v1, %v6225_v3  ;;  %v2273_v10 = vadd.f32 %v2272_v4, %v2271_v60  ;;  %v4899_v2 = vadd.f32 %v4898_v8, %v4897_v0  ;;  %v4962_v11 = vpop.f32.mrf.mxu1  ;;  %v2992_v1 = vadd.f32 %v2991_v53, %v2990_v58 }
 0x1b7   :  { %2923 = vst.msk [vmem:[#allocation2 + $0x198] sm:$0xff] %vm660_vm0, %v2868_v6  ;;  %v4963_v7 = vadd.f32 %v4962_v11, %v4961_v5  ;;  %v4900_v13 = vpop.f32.mrf.mxu0  ;;  %v2977_v55 = vmul.f32 %v2868_v6, %v2868_v6  ;;  %v2941_v35 = vsel %vm660_vm0, %v2868_v6, 0.0  ;;  %v2940_v4 = vadd.f32 %v2939_v54, %v2938_v59 }
 0x1b8   :  { %v6285_v14 = vadd.f32 %v2273_v10, %v6229_v12  ;;  %v4964_v15 = vpop.f32.mrf.mxu1 }
 0x1b9   :  { %v2873_v16 = vadd.f32 %v4963_v7, %v4899_v2  ;;  %v4901_v17 = vpop.f32.mrf.mxu0  ;;  %v2995_v8 = vsel %vm660_vm0, %v2977_v55, 0.0 }
 0x1ba   :  { %v4902_v18 = vadd.f32 %v4901_v17, %v4900_v13  ;;  %v4965_v19 = vpop.f32.mrf.mxu1  ;;  %v2994_v13 = vadd.f32 %v2993_v61, %v2992_v1 }
 0x1bb   :  { %2924 = vst.msk [vmem:[#allocation2 + $0x1a0] sm:$0xff] %vm660_vm0, %v2873_v16  ;;  %v4966_v20 = vadd.f32 %v4965_v19, %v4964_v15  ;;  %v4903_v3 = vpop.f32.mrf.mxu0  ;;  %v2978_v62 = vmul.f32 %v2873_v16, %v2873_v16  ;;  %v2943_v10 = vsel %vm660_vm0, %v2873_v16, 0.0  ;;  %v2942_v15 = vadd.f32 %v2941_v35, %v2940_v4 }
 0x1bc   :  { %v4967_v21 = vpop.f32.mrf.mxu1 }
 0x1bd   :  { %v2876_v22 = vadd.f32 %v4966_v20, %v4902_v18  ;;  %v4904_v23 = vpop.f32.mrf.mxu0  ;;  %v2997_v6 = vsel %vm660_vm0, %v2978_v62, 0.0 }
 0x1be   :  { %v4905_v24 = vadd.f32 %v4904_v23, %v4903_v3  ;;  %v4968_v25 = vpop.f32.mrf.mxu1  ;;  %v2944_v23 = vadd.f32 %v2943_v10, %v2942_v15 }
 0x1bf   :  { %2925 = vst.msk [vmem:[#allocation2 + $0x1a8] sm:$0xff] %vm660_vm0, %v2876_v22  ;;  %v4969_v26 = vadd.f32 %v4968_v25, %v4967_v21  ;;  %v4906_v27 = vpop.f32.mrf.mxu0  ;;  %v2979_v2 = vmul.f32 %v2876_v22, %v2876_v22  ;;  %v2945_v18 = vsel %vm660_vm0, %v2876_v22, 0.0  ;;  %v2996_v21 = vadd.f32 %v2995_v8, %v2994_v13 }
 0x1c0   :  { %v4970_v12 = vpop.f32.mrf.mxu1  ;;  %v2946_v22 = vadd.f32 %v2945_v18, %v2944_v23 }
 0x1c1   :  { %v2881_v28 = vadd.f32 %v4969_v26, %v4905_v24  ;;  %v4907_v29 = vpop.f32.mrf.mxu0  ;;  %v2999_v16 = vsel %vm660_vm0, %v2979_v2, 0.0 }
 0x1c2   :  { %v4908_v30 = vadd.f32 %v4907_v29, %v4906_v27  ;;  %v4971_v31 = vpop.f32.mrf.mxu1 }
 0x1c3   :  { %2926 = vst.msk [vmem:[#allocation2 + $0x1b0] sm:$0xff] %vm660_vm0, %v2881_v28  ;;  %v4972_v32 = vadd.f32 %v4971_v31, %v4970_v12  ;;  %v4909_v33 = vpop.f32.mrf.mxu0  ;;  %v2980_v19 = vmul.f32 %v2881_v28, %v2881_v28  ;;  %v2947_v26 = vsel %vm660_vm0, %v2881_v28, 0.0 }
 0x1c4   :  { %v4973_v34 = vpop.f32.mrf.mxu1  ;;  %v2948_v28 = vadd.f32 %v2947_v26, %v2946_v22 }
 0x1c5   :  { %v6290_v36 = vadd.f32 %v4972_v32, %v4908_v30  ;;  %v4910_v37 = vpop.f32.mrf.mxu0  ;;  %v2998_v30 = vadd.f32 %v2997_v6, %v2996_v21  ;;  %v3001_v32 = vsel %vm660_vm0, %v2980_v19, 0.0 }
 0x1c6   :  { %v4911_v38 = vadd.f32 %v4910_v37, %v4909_v33  ;;  %v4974_v39 = vpop.f32.mrf.mxu1 }
 0x1c7   :  { %2927 = vst.msk [vmem:[#allocation2 + $0x1b8] sm:$0xff] %vm660_vm0, %v6290_v36  ;;  %v4975_v41 = vadd.f32 %v4974_v39, %v4973_v34  ;;  %v4912_v42 = vpop.f32.mrf.mxu0  ;;  %v2981_v27 = vmul.f32 %v6290_v36, %v6290_v36  ;;  %v2949_v33 = vsel %vm660_vm0, %v6290_v36, 0.0  ;;  %v3000_v39 = vadd.f32 %v2999_v16, %v2998_v30 }
 0x1c8   :  { %v4976_v44 = vpop.f32.mrf.mxu1  ;;  %v2950_v50 = vadd.f32 %v2949_v33, %v2948_v28 }
 0x1c9   :  { %v2889_v48 = vadd.f32 %v4975_v41, %v4911_v38  ;;  %v4913_v49 = vpop.f32.mrf.mxu0 }
 0x1ca   :  { %v4914_v51 = vadd.f32 %v4913_v49, %v4912_v42  ;;  %v4977_v52 = vpop.f32.mrf.mxu1  ;;  %v3003_v42 = vsel %vm660_vm0, %v2981_v27, 0.0  ;;  %v3002_v49 = vadd.f32 %v3001_v32, %v3000_v39 }
 0x1cb   :  { %2928 = vst.msk [vmem:[#allocation2 + $0x1c0] sm:$0xff] %vm660_vm0, %v2889_v48  ;;  %v4978_v56 = vadd.f32 %v4977_v52, %v4976_v44  ;;  %v4915_v46 = vpop.f32.mrf.mxu0  ;;  %v2982_v34 = vmul.f32 %v2889_v48, %v2889_v48  ;;  %v2951_v43 = vsel %vm660_vm0, %v2889_v48, 0.0 }
 0x1cc   :  { %v4979_v60 = vpop.f32.mrf.mxu1 }
 0x1cd   :  { %v2892_v63 = vadd.f32 %v4978_v56, %v4914_v51  ;;  %v4916_v0 = vpop.f32.mrf.mxu0  ;;  %v3005_v36 = vsel %vm660_vm0, %v2982_v34, 0.0  ;;  %v3004_v56 = vadd.f32 %v3003_v42, %v3002_v49 }
 0x1ce   :  { %v4917_v5 = vadd.f32 %v4916_v0, %v4915_v46  ;;  %v4980_v57 = vpop.f32.mrf.mxu1  ;;  %v2952_v46 = vadd.f32 %v2951_v43, %v2950_v50 }
 0x1cf   :  { %2929 = vst.msk [vmem:[#allocation2 + $0x1c8] sm:$0xff] %vm660_vm0, %v2892_v63  ;;  %v4981_v11 = vadd.f32 %v4980_v57, %v4979_v60  ;;  %v4918_v7 = vpop.f32.mrf.mxu0  ;;  %v2983_v44 = vmul.f32 %v2892_v63, %v2892_v63  ;;  %v2953_v52 = vsel %vm660_vm0, %v2892_v63, 0.0  ;;  %v3006_v0 = vadd.f32 %v3005_v36, %v3004_v56 }
 0x1d0   :  { %v4982_v17 = vpop.f32.mrf.mxu1  ;;  %v2954_v1 = vadd.f32 %v2953_v52, %v2952_v46 }
 0x1d1   :  { %v2897_v20 = vadd.f32 %v4981_v11, %v4917_v5  ;;  %v4919_v3 = vpop.f32.mrf.mxu0  ;;  %v3007_v48 = vsel %vm660_vm0, %v2983_v44, 0.0 }
 0x1d2   :  { %v4920_v24 = vadd.f32 %v4919_v3, %v4918_v7  ;;  %v4983_v25 = vpop.f32.mrf.mxu1  ;;  %v3008_v2 = vadd.f32 %v3007_v48, %v3006_v0 }
 0x1d3   :  { %2930 = vst.msk [vmem:[#allocation2 + $0x1d0] sm:$0xff] %vm660_vm0, %v2897_v20  ;;  %v4984_v12 = vadd.f32 %v4983_v25, %v4982_v17  ;;  %v4921_v29 = vpop.f32.mrf.mxu0  ;;  %v2984_v53 = vmul.f32 %v2897_v20, %v2897_v20  ;;  %v2955_v60 = vsel %vm660_vm0, %v2897_v20, 0.0 }
 0x1d4   :  { %v4985_v31 = vpop.f32.mrf.mxu1  ;;  %v2956_v11 = vadd.f32 %v2955_v60, %v2954_v1 }
 0x1d5   :  { %v2900_v37 = vadd.f32 %v4984_v12, %v4920_v24  ;;  %v4922_v38 = vpop.f32.mrf.mxu0  ;;  %v3009_v63 = vsel %vm660_vm0, %v2984_v53, 0.0 }
 0x1d6   :  { %v4923_v40 = vadd.f32 %v4922_v38, %v4921_v29  ;;  %v4986_v41 = vpop.f32.mrf.mxu1  ;;  %v3010_v20 = vadd.f32 %v3009_v63, %v3008_v2  ;;  %v3042_v2 = vld [vmem:[#allocation2 + $0x8] sm:$0xff] }
 0x1d7   :  { %2931 = vst.msk [vmem:[#allocation2 + $0x1d8] sm:$0xff] %vm660_vm0, %v2900_v37  ;;  %v4987_v45 = vadd.f32 %v4986_v41, %v4985_v31  ;;  %v4924_v47 = vpop.f32.mrf.mxu0  ;;  %v2985_v61 = vmul.f32 %v2900_v37, %v2900_v37  ;;  %v2957_v5 = vsel %vm660_vm0, %v2900_v37, 0.0 }
 0x1d8   :  { %v4988_v51 = vpop.f32.mrf.mxu1  ;;  %v2958_v3 = vadd.f32 %v2957_v5, %v2956_v11  ;;  %v3034_v5 = vld [vmem:[%s6838_s2] sm:$0x1]  ;;  %v3043_v11 = vld [vmem:[#allocation2 + $0x10] sm:$0xff] }
 0x1d9   :  { %v2905_v54 = vadd.f32 %v4987_v45, %v4923_v40  ;;  %v4925_v55 = vpop.f32.mrf.mxu0  ;;  %v3011_v15 = vsel %vm660_vm0, %v2985_v61, 0.0 }
 0x1da   :  { %v4926_v58 = vadd.f32 %v4925_v55, %v4924_v47  ;;  %v4989_v59 = vpop.f32.mrf.mxu1  ;;  %v3012_v26 = vadd.f32 %v3011_v15, %v3010_v20  ;;  %v3049_v20 = vld [vmem:[#allocation2 + $0x40] sm:$0xff] }
 0x1db   :  { %2932 = vst.msk [vmem:[#allocation2 + $0x1e0] sm:$0xff] %vm660_vm0, %v2905_v54  ;;  %v4990_v35 = vadd.f32 %v4989_v59, %v4988_v51  ;;  %v4927_v62 = vpop.f32.mrf.mxu0  ;;  %v2986_v57 = vmul.f32 %v2905_v54, %v2905_v54  ;;  %v2959_v17 = vsel %vm660_vm0, %v2905_v54, 0.0 }
 0x1dc   :  { %v4991_v4 = vpop.f32.mrf.mxu1  ;;  %v2960_v27 = vadd.f32 %v2959_v17, %v2958_v3  ;;  %v3045_v17 = vld [vmem:[#allocation2 + $0x20] sm:$0xff]  ;;  %v3050_v3 = vld [vmem:[#allocation2 + $0x48] sm:$0xff] }
 0x1dd   :  { %v2908_v8 = vadd.f32 %v4990_v35, %v4926_v58  ;;  %v4928_v10 = vpop.f32.mrf.mxu0  ;;  %v3013_v23 = vsel %vm660_vm0, %v2986_v57, 0.0 }
 0x1de   :  { %v4929_v7 = vadd.f32 %v4928_v10, %v4927_v62  ;;  %v4992_v13 = vpop.f32.mrf.mxu1  ;;  %v3014_v33 = vadd.f32 %v3013_v23, %v3012_v26  ;;  %v3052_v26 = vld [vmem:[#allocation2 + $0x58] sm:$0xff] }
 0x1df   :  { %2933 = vst.msk [vmem:[#allocation2 + $0x1e8] sm:$0xff] %vm660_vm0, %v2908_v8  ;;  %v2987_v6 = vmul.f32 %v2908_v8, %v2908_v8  ;;  %v4993_v18 = vadd.f32 %v4992_v13, %v4991_v4  ;;  %v4930_v19 = vpop.f32.mrf.mxu0  ;;  %v2961_v24 = vsel %vm660_vm0, %v2908_v8, 0.0  ;;  %v3058_v4 = vlaneseq }
 0x1e0   :  { %v4994_v21 = vpop.f32.mrf.mxu1  ;;  %v2962_v34 = vadd.f32 %v2961_v24, %v2960_v27  ;;  %v3053_v27 = vld [vmem:[#allocation2 + $0x60] sm:$0xff] }
 0x1e1   :  { %v2913_v25 = vadd.f32 %v4993_v18, %v4929_v7  ;;  %v4931_v16 = vpop.f32.mrf.mxu0  ;;  %v3015_v30 = vsel %vm660_vm0, %v2987_v6, 0.0  ;;  %v3059_v63 = vshrl.u32 %v3058_v4, 7  ;;  %v3044_v7 = vld [vmem:[#allocation2 + $0x18] sm:$0xff]  ;;  %v3046_v6 = vld [vmem:[#allocation2 + $0x28] sm:$0xff]  ;;  %v3047_v18 = vld [vmem:[#allocation2 + $0x30] sm:$0xff] }
 0x1e2   :  { %v4932_v12 = vadd.f32 %v4931_v16, %v4930_v19  ;;  %v4995_v29 = vpop.f32.mrf.mxu1  ;;  %v3016_v39 = vadd.f32 %v3015_v30, %v3014_v33  ;;  %v3048_v19 = vld [vmem:[#allocation2 + $0x38] sm:$0xff]  ;;  %v3051_v16 = vld [vmem:[#allocation2 + $0x50] sm:$0xff] }
 0x1e3   :  { %2934 = vst.msk [vmem:[#allocation2 + $0x1f0] sm:$0xff] %vm660_vm0, %v2913_v25  ;;  %v2963_v22 = vsel %vm660_vm0, %v2913_v25, 0.0  ;;  %v2988_v31 = vmul.f32 %v2913_v25, %v2913_v25  ;;  %v4996_v32 = vadd.f32 %v4995_v29, %v4994_v21  ;;  %v3060_v57 = vsub.s32 0, %v3059_v63  ;;  %v3056_v33 = vld [vmem:[#allocation2 + $0x78] sm:$0xff] }
 0x1e4   :  { %v2964_v28 = vadd.f32 %v2963_v22, %v2962_v34 }
 0x1e5   :  { %v3017_v37 = vsel %vm660_vm0, %v2988_v31, 0.0  ;;  %v2916_v38 = vadd.f32 %v4996_v32, %v4932_v12  ;;  %v3054_v31 = vld [vmem:[#allocation2 + $0x68] sm:$0xff]  ;;  %v3055_v32 = vld [vmem:[#allocation2 + $0x70] sm:$0xff] }
 0x1e6   :  { %v3018_v42 = vadd.f32 %v3017_v37, %v3016_v39 }
 0x1e7   :  { %2935 = vst.msk [vmem:[#allocation2 + $0x1f8] sm:$0xff] %vm660_vm0, %v2916_v38  ;;  %v2965_v40 = vsel %vm660_vm0, %v2916_v38, 0.0  ;;  %v2989_v41 = vmul.f32 %v2916_v38, %v2916_v38 }
 0x1e8   :  { %v2966_v43 = vadd.f32 %v2965_v40, %v2964_v28  ;;  %v3230_v28 = vld [vmem:[#allocation2 + $0x80] sm:$0xff]  ;;  %v3231_v40 = vld [vmem:[#allocation2 + $0x88] sm:$0xff] }
 0x1e9   :  { %v3019_v44 = vsel %vm660_vm0, %v2989_v41, 0.0  ;;  %v3232_v41 = vld [vmem:[#allocation2 + $0x90] sm:$0xff] }
 0x1ea   :  { %v2967_v45 = vrot.slane %v2966_v43, 4  ;;  %v3020_v47 = vadd.f32 %v3019_v44, %v3018_v42 }
 0x1ec   :  { %v2968_v49 = vadd.f32 %v2967_v45, %v2966_v43  ;;  %v3021_v50 = vrot.slane %v3020_v47, 4 }
 0x1ee   :  { %v2969_v51 = vrot.slane %v2968_v49, 2  ;;  %v3022_v36 = vadd.f32 %v3021_v50, %v3020_v47  ;;  %v3233_v47 = vld [vmem:[#allocation2 + $0x98] sm:$0xff]  ;;  %v3235_v50 = vld [vmem:[#allocation2 + $0xa8] sm:$0xff] }
 0x1f0   :  { %v2970_v52 = vadd.f32 %v2969_v51, %v2968_v49  ;;  %v3023_v53 = vrot.slane %v3022_v36, 2  ;;  %v3234_v49 = vld [vmem:[#allocation2 + $0xa0] sm:$0xff] }
 0x1f2   :  { %v2971_v54 = vrot.slane %v2970_v52, 1  ;;  %v3024_v55 = vadd.f32 %v3023_v53, %v3022_v36 }
 0x1f4   :  { %v2972_v56 = vadd.f32 %v2971_v54, %v2970_v52  ;;  %v3025_v46 = vrot.slane %v3024_v55, 1 }
 0x1f6   :  { %v2973_v58 = vadd.f32 %v2972_v56, %v6281_v9  ;;  %v3026_v59 = vadd.f32 %v3025_v46, %v3024_v55  ;;  %v3041_v9 = vld [vmem:[#allocation2] sm:$0xff] }
 0x1f8   :  { %v3027_v48 = vadd.f32 %v3026_v59, %v6285_v14  ;;  %v3029_v60 = vmul.f32 0.001953125, %v2973_v58  ;;  %v3038_v14 = vld [vmem:[%s6839_s3] sm:$0x1] }
 0x1fa   :  { %v3030_v61 = vmul.f32 0.001953125, %v3027_v48  ;;  %v3031_v35 = vmul.f32 %v3029_v60, %v3029_v60 }
 0x1fc   :  { %v3032_v62 = vsub.f32 %v3030_v61, %v3031_v35 }
 0x1fe   :  { %v3033_v0 = vmax.f32 %v3032_v62, 0.0 }
 0x200   :  { %v3035_v1 = vadd.f32 1e-05, %v3033_v0 }
 0x202   :  { %5317 = vrsqrt.f32 %v3035_v1 }
 0x20f   :  { %v5318_v8 = vpop.eup %5317 }
 0x210   :  { %v3037_v10 = vmul.f32 %v5318_v8, %v3034_v5 }
 0x212   :  { %v3039_v13 = vmul.f32 %v3037_v10, %v3029_v60  ;;  %v6354_v15 = vrot.slane %v3037_v10, %v3060_v57 }
 0x214   :  { %v3040_v21 = vsub.f32 %v3038_v14, %v3039_v13  ;;  %v3063_v23 = vmul.f32 %v6354_v15, %v3041_v9  ;;  %v3064_v24 = vmul.f32 %v6354_v15, %v3042_v2  ;;  %v3065_v25 = vmul.f32 %v6354_v15, %v3043_v11  ;;  %v3236_v14 = vld [vmem:[#allocation2 + $0xb0] sm:$0xff]  ;;  %v3237_v2 = vld [vmem:[#allocation2 + $0xb8] sm:$0xff] }
 0x215   :  { %v3066_v12 = vmul.f32 %v6354_v15, %v3044_v7  ;;  %v3067_v29 = vmul.f32 %v6354_v15, %v3045_v17  ;;  %v3068_v30 = vmul.f32 %v6354_v15, %v3046_v6  ;;  %v3069_v22 = vmul.f32 %v6354_v15, %v3047_v18 }
 0x216   :  { %v3070_v34 = vmul.f32 %v6354_v15, %v3048_v19  ;;  %v3071_v37 = vmul.f32 %v6354_v15, %v3049_v20  ;;  %v3072_v38 = vmul.f32 %v6354_v15, %v3050_v3  ;;  %v3073_v39 = vmul.f32 %v6354_v15, %v3051_v16 }
 0x217   :  { %v3074_v42 = vmul.f32 %v6354_v15, %v3052_v26  ;;  %v3075_v43 = vmul.f32 %v6354_v15, %v3053_v27  ;;  %v3076_v44 = vmul.f32 %v6354_v15, %v3054_v31  ;;  %v3077_v45 = vmul.f32 %v6354_v15, %v3055_v32 }
 0x218   :  { %v3078_v51 = vmul.f32 %v6354_v15, %v3056_v33  ;;  %v6372_v36 = vrot.slane %v3040_v21, %v3060_v57  ;;  %v6375_v52 = vmul.f32 %v3230_v28, %v6354_v15  ;;  %v6378_v53 = vmul.f32 %v3231_v40, %v6354_v15 }
 0x219   :  { %v6381_v54 = vmul.f32 %v3232_v41, %v6354_v15  ;;  %v6384_v55 = vmul.f32 %v3233_v47, %v6354_v15  ;;  %v6387_v56 = vmul.f32 %v3234_v49, %v6354_v15  ;;  %v6390_v46 = vmul.f32 %v3235_v50, %v6354_v15 }
 0x21a   :  { %v3085_v58 = vadd.f32 %v6372_v36, %v3063_v23  ;;  %v3086_v59 = vadd.f32 %v6372_v36, %v3064_v24  ;;  %v3087_v48 = vadd.f32 %v6372_v36, %v3065_v25  ;;  %v3088_v60 = vadd.f32 %v6372_v36, %v3066_v12 }
 0x21b   :  { %v3089_v61 = vadd.f32 %v6372_v36, %v3067_v29  ;;  %v3090_v35 = vadd.f32 %v6372_v36, %v3068_v30  ;;  %v3091_v62 = vadd.f32 %v6372_v36, %v3069_v22  ;;  %v3092_v0 = vadd.f32 %v6372_v36, %v3070_v34 }
 0x21c   :  { %v3093_v1 = vadd.f32 %v6372_v36, %v3071_v37  ;;  %v3094_v4 = vadd.f32 %v6372_v36, %v3072_v38  ;;  %v3095_v63 = vadd.f32 %v6372_v36, %v3073_v39  ;;  %v3096_v5 = vadd.f32 %v6372_v36, %v3074_v42 }
 0x21d   :  { %v3097_v57 = vadd.f32 %v6372_v36, %v3075_v43  ;;  %v3098_v8 = vadd.f32 %v6372_v36, %v3076_v44  ;;  %v3099_v10 = vadd.f32 %v6372_v36, %v3077_v45  ;;  %v3100_v9 = vadd.f32 %v6372_v36, %v3078_v51 }
 0x21e   :  { %vm3102_vm2 = vcmp.ge.f32.partialorder %v3086_v59, 0.0  ;;  %vm3103_vm3 = vcmp.ge.f32.partialorder %v3087_v48, 0.0  ;;  %vm3104_vm4 = vcmp.ge.f32.partialorder %v3088_v60, 0.0  ;;  %vm3105_vm5 = vcmp.ge.f32.partialorder %v3089_v61, 0.0 }
 0x21f   :  { %vm3106_vm6 = vcmp.ge.f32.partialorder %v3090_v35, 0.0  ;;  %vm3107_vm7 = vcmp.ge.f32.partialorder %v3091_v62, 0.0  ;;  %vm3108_vm8 = vcmp.ge.f32.partialorder %v3092_v0, 0.0  ;;  %vm3109_vm9 = vcmp.ge.f32.partialorder %v3093_v1, 0.0 }
 0x220   :  { %vm3110_vm10 = vcmp.ge.f32.partialorder %v3094_v4, 0.0  ;;  %vm3111_vm11 = vcmp.ge.f32.partialorder %v3095_v63, 0.0  ;;  %vm3112_vm12 = vcmp.ge.f32.partialorder %v3096_v5, 0.0  ;;  %vm3114_vm14 = vcmp.ge.f32.partialorder %v3098_v8, 0.0 }
 0x221   :  { %vm3115_vm15 = vcmp.ge.f32.partialorder %v3099_v10, 0.0  ;;  %vm3116_vm0 = vcmp.ge.f32.partialorder %v3100_v9, 0.0  ;;  %v3117_v11 = vmul.f32 0.2, %v3085_v58  ;;  %v3118_v7 = vmul.f32 0.2, %v3086_v59 }
 0x222   :  { %v3119_v13 = vmul.f32 0.2, %v3087_v48  ;;  %v6409_v17 = vmul.f32 %v3236_v14, %v6354_v15  ;;  %v3120_v6 = vmul.f32 0.2, %v3088_v60  ;;  %v3121_v18 = vmul.f32 0.2, %v3089_v61 }
 0x223   :  { %v3122_v19 = vmul.f32 0.2, %v3090_v35  ;;  %v6412_v20 = vmul.f32 %v3237_v2, %v6354_v15  ;;  %v3123_v3 = vmul.f32 0.2, %v3091_v62  ;;  %v3124_v21 = vmul.f32 0.2, %v3092_v0 }
 0x224   :  { %v3125_v23 = vmul.f32 0.2, %v3093_v1  ;;  %vm6842_vm13 = vcmp.ge.f32.partialorder %v3085_v58, 0.0  ;;  %v3126_v25 = vmul.f32 0.2, %v3094_v4  ;;  %v3134_v27 = vsel %vm3102_vm2, %v3086_v59, %v3118_v7 }
 0x225   :  { %v3133_v24 = vsel %vm6842_vm13, %v3085_v58, %v3117_v11  ;;  %v3127_v16 = vmul.f32 0.2, %v3095_v63  ;;  %v3128_v26 = vmul.f32 0.2, %v3096_v5  ;;  %v3129_v12 = vmul.f32 0.2, %v3097_v57 }
 0x226   :  { %v3130_v29 = vmul.f32 0.2, %v3098_v8  ;;  %v3131_v30 = vmul.f32 0.2, %v3099_v10  ;;  %v3135_v22 = vsel %vm3103_vm3, %v3087_v48, %v3119_v13  ;;  %v3132_v31 = vmul.f32 0.2, %v3100_v9 }
 0x227   :  { %v3136_v32 = vsel %vm3104_vm4, %v3088_v60, %v3120_v6  ;;  %v3137_v33 = vsel %vm3105_vm5, %v3089_v61, %v3121_v18  ;;  %v3138_v34 = vsel %vm3106_vm6, %v3090_v35, %v3122_v19  ;;  %v3139_v37 = vsel %vm3107_vm7, %v3091_v62, %v3123_v3  ;;  %v3238_v62 = vld [vmem:[#allocation2 + $0xc0] sm:$0xff]  ;;  %v3244_v13 = vld [vmem:[#allocation2 + $0xf0] sm:$0xff]  ;;  %v3245_v6 = vld [vmem:[#allocation2 + $0xf8] sm:$0xff] }
 0x228   :  { %v3140_v38 = vsel %vm3108_vm8, %v3092_v0, %v3124_v21  ;;  %v3141_v39 = vsel %vm3109_vm9, %v3093_v1, %v3125_v23  ;;  %v3142_v28 = vsel %vm3110_vm10, %v3094_v4, %v3126_v25  ;;  %v3143_v40 = vsel %vm3111_vm11, %v3095_v63, %v3127_v16  ;;  %v3239_v0 = vld [vmem:[#allocation2 + $0xc8] sm:$0xff]  ;;  %v3240_v1 = vld [vmem:[#allocation2 + $0xd0] sm:$0xff] }
 0x229   :  { %v3144_v41 = vsel %vm3112_vm12, %v3096_v5, %v3128_v26  ;;  %vm6843_vm2 = vcmp.ge.f32.partialorder %v3097_v57, 0.0  ;;  %v3146_v43 = vsel %vm3114_vm14, %v3098_v8, %v3130_v29  ;;  %v3147_v44 = vsel %vm3115_vm15, %v3099_v10, %v3131_v30  ;;  %v3241_v8 = vld [vmem:[#allocation2 + $0xd8] sm:$0xff]  ;;  %v3242_v10 = vld [vmem:[#allocation2 + $0xe0] sm:$0xff] }
 0x22a   :  { %v3145_v42 = vsel %vm6843_vm2, %v3097_v57, %v3129_v12  ;;  %v3148_v45 = vsel %vm3116_vm0, %v3100_v9, %v3132_v31  ;;  %v4421_v47 = vpack.c.bf16 %v3133_v24, %v3133_v24  ;;  %v4422_v49 = vpack.c.bf16 %v3134_v27, %v3134_v27  ;;  %v3243_v9 = vld [vmem:[#allocation2 + $0xe8] sm:$0xff] }
 0x22b   :  { %v4423_v50 = vpack.c.bf16 %v3135_v22, %v3135_v22  ;;  %v4424_v51 = vpack.c.bf16 %v3136_v32, %v3136_v32  ;;  %v4425_v58 = vpack.c.bf16 %v3137_v33, %v3137_v33  ;;  %v4426_v59 = vpack.c.bf16 %v3138_v34, %v3138_v34 }
 0x22c   :  { %v4427_v48 = vpack.c.bf16 %v3139_v37, %v3139_v37  ;;  %v4428_v60 = vpack.c.bf16 %v3140_v38, %v3140_v38  ;;  %v4429_v61 = vpack.c.bf16 %v3141_v39, %v3141_v39  ;;  %v4430_v35 = vpack.c.bf16 %v3142_v28, %v3142_v28  ;;  %3214 = vst.msk [vmem:[%s6840_s4] sm:$0xf] %vm6841_vm1, %v4421_v47 }
 0x22d   :  { %3215 = vst.msk [vmem:[%s6840_s4 + $0x4] sm:$0xf] %vm6841_vm1, %v4422_v49  ;;  %v4431_v4 = vpack.c.bf16 %v3143_v40, %v3143_v40  ;;  %v4432_v63 = vpack.c.bf16 %v3144_v41, %v3144_v41  ;;  %v4433_v5 = vpack.c.bf16 %v3145_v42, %v3145_v42  ;;  %v4434_v57 = vpack.c.bf16 %v3146_v43, %v3146_v43 }
 0x22e   :  { %3216 = vst.msk [vmem:[%s6840_s4 + $0x8] sm:$0xf] %vm6841_vm1, %v4423_v50  ;;  %3217 = vst.msk [vmem:[%s6840_s4 + $0xc] sm:$0xf] %vm6841_vm1, %v4424_v51  ;;  %v4435_v14 = vpack.c.bf16 %v3147_v44, %v3147_v44  ;;  %v4436_v2 = vpack.c.bf16 %v3148_v45, %v3148_v45  ;;  %v3254_v11 = vmul.f32 %v3238_v62, %v6354_v15 }
 0x22f   :  { %3218 = vst.msk [vmem:[%s6840_s4 + $0x10] sm:$0xf] %vm6841_vm1, %v4425_v58  ;;  %3219 = vst.msk [vmem:[%s6840_s4 + $0x14] sm:$0xf] %vm6841_vm1, %v4426_v59  ;;  %v3255_v7 = vmul.f32 %v3239_v0, %v6354_v15  ;;  %v3256_v18 = vmul.f32 %v3240_v1, %v6354_v15  ;;  %v3257_v19 = vmul.f32 %v3241_v8, %v6354_v15 }
 0x230   :  { %3220 = vst.msk [vmem:[%s6840_s4 + $0x18] sm:$0xf] %vm6841_vm1, %v4427_v48  ;;  %3221 = vst.msk [vmem:[%s6840_s4 + $0x1c] sm:$0xf] %vm6841_vm1, %v4428_v60  ;;  %v3258_v3 = vmul.f32 %v3242_v10, %v6354_v15  ;;  %v3259_v21 = vmul.f32 %v3243_v9, %v6354_v15  ;;  %v3260_v23 = vmul.f32 %v3244_v13, %v6354_v15 }
 0x231   :  { %3222 = vst.msk [vmem:[%s6840_s4 + $0x20] sm:$0xf] %vm6841_vm1, %v4429_v61  ;;  %3223 = vst.msk [vmem:[%s6840_s4 + $0x24] sm:$0xf] %vm6841_vm1, %v4430_v35  ;;  %v3261_v24 = vmul.f32 %v3245_v6, %v6354_v15  ;;  %v3262_v25 = vadd.f32 %v6375_v52, %v6372_v36  ;;  %v3263_v16 = vadd.f32 %v6378_v53, %v6372_v36  ;;  %v3408_v6 = vld [vmem:[#allocation2 + $0x108] sm:$0xff] }
 0x232   :  { %3224 = vst.msk [vmem:[%s6840_s4 + $0x28] sm:$0xf] %vm6841_vm1, %v4431_v4  ;;  %3225 = vst.msk [vmem:[%s6840_s4 + $0x2c] sm:$0xf] %vm6841_vm1, %v4432_v63  ;;  %v3264_v26 = vadd.f32 %v6381_v54, %v6372_v36  ;;  %v3265_v27 = vadd.f32 %v6384_v55, %v6372_v36  ;;  %v3266_v12 = vadd.f32 %v6387_v56, %v6372_v36 }
 0x233   :  { %3226 = vst.msk [vmem:[%s6840_s4 + $0x30] sm:$0xf] %vm6841_vm1, %v4433_v5  ;;  %3227 = vst.msk [vmem:[%s6840_s4 + $0x34] sm:$0xf] %vm6841_vm1, %v4434_v57  ;;  %v3267_v29 = vadd.f32 %v6390_v46, %v6372_v36  ;;  %v3268_v30 = vadd.f32 %v6409_v17, %v6372_v36  ;;  %v3269_v52 = vadd.f32 %v6412_v20, %v6372_v36  ;;  %vm3278_vm3 = vcmp.ge.f32.partialorder %v3262_v25, 0.0  ;;  %v3407_v17 = vld [vmem:[#allocation2 + $0x100] sm:$0xff] }
 0x234   :  { %3228 = vst.msk [vmem:[%s6840_s4 + $0x38] sm:$0xf] %vm6841_vm1, %v4435_v14  ;;  %3229 = vst.msk [vmem:[%s6840_s4 + $0x3c] sm:$0xf] %vm6841_vm1, %v4436_v2  ;;  %v3270_v53 = vadd.f32 %v3254_v11, %v6372_v36  ;;  %v3271_v22 = vadd.f32 %v3255_v7, %v6372_v36  ;;  %v3272_v54 = vadd.f32 %v3256_v18, %v6372_v36  ;;  %vm3279_vm4 = vcmp.ge.f32.partialorder %v3263_v16, 0.0 }
 0x235   :  { %v3273_v55 = vadd.f32 %v3257_v19, %v6372_v36  ;;  %v3274_v31 = vadd.f32 %v3258_v3, %v6372_v36  ;;  %v3275_v56 = vadd.f32 %v3259_v21, %v6372_v36  ;;  %v3276_v46 = vadd.f32 %v3260_v23, %v6372_v36  ;;  %v3409_v23 = vld [vmem:[#allocation2 + $0x110] sm:$0xff] }
 0x236   :  { %v3277_v32 = vadd.f32 %v3261_v24, %v6372_v36  ;;  %vm3280_vm5 = vcmp.ge.f32.partialorder %v3264_v26, 0.0  ;;  %vm3281_vm6 = vcmp.ge.f32.partialorder %v3265_v27, 0.0  ;;  %vm3282_vm7 = vcmp.ge.f32.partialorder %v3266_v12, 0.0  ;;  %v3410_v24 = vld [vmem:[#allocation2 + $0x118] sm:$0xff] }
 0x237   :  { %vm3283_vm8 = vcmp.ge.f32.partialorder %v3267_v29, 0.0  ;;  %vm3284_vm9 = vcmp.ge.f32.partialorder %v3268_v30, 0.0  ;;  %vm3285_vm10 = vcmp.ge.f32.partialorder %v3269_v52, 0.0  ;;  %vm3286_vm11 = vcmp.ge.f32.partialorder %v3270_v53, 0.0 }
 0x238   :  { %vm3287_vm12 = vcmp.ge.f32.partialorder %v3271_v22, 0.0  ;;  %vm3288_vm13 = vcmp.ge.f32.partialorder %v3272_v54, 0.0  ;;  %vm3289_vm14 = vcmp.ge.f32.partialorder %v3273_v55, 0.0  ;;  %vm3290_vm15 = vcmp.ge.f32.partialorder %v3274_v31, 0.0 }
 0x239   :  { %vm3291_vm0 = vcmp.ge.f32.partialorder %v3275_v56, 0.0  ;;  %vm3292_vm2 = vcmp.ge.f32.partialorder %v3276_v46, 0.0  ;;  %vm3293_vm1 = vcmp.ge.f32.partialorder %v3277_v32, 0.0  ;;  %v3294_v20 = vmul.f32 0.2, %v3262_v25 }
 0x23a   :  { %v3295_v33 = vmul.f32 0.2, %v3263_v16  ;;  %v3296_v34 = vmul.f32 0.2, %v3264_v26  ;;  %v3297_v37 = vmul.f32 0.2, %v3265_v27  ;;  %v6527_v39 = vmul.f32 %v3407_v17, %v6354_v15 }
 0x23b   :  { %v3298_v38 = vmul.f32 0.2, %v3266_v12  ;;  %v3299_v28 = vmul.f32 0.2, %v3267_v29  ;;  %v3300_v40 = vmul.f32 0.2, %v3268_v30  ;;  %v3310_v42 = vsel %vm3278_vm3, %v3262_v25, %v3294_v20 }
 0x23c   :  { %v3301_v41 = vmul.f32 0.2, %v3269_v52  ;;  %v3302_v43 = vmul.f32 0.2, %v3270_v53  ;;  %v3303_v44 = vmul.f32 0.2, %v3271_v22  ;;  %v3311_v47 = vsel %vm3279_vm4, %v3263_v16, %v3295_v33 }
 0x23d   :  { %v3304_v45 = vmul.f32 0.2, %v3272_v54  ;;  %v3305_v49 = vmul.f32 0.2, %v3273_v55  ;;  %v3306_v50 = vmul.f32 0.2, %v3274_v31  ;;  %v3312_v58 = vsel %vm3280_vm5, %v3264_v26, %v3296_v34 }
 0x23e   :  { %v3307_v51 = vmul.f32 0.2, %v3275_v56  ;;  %v3308_v59 = vmul.f32 0.2, %v3276_v46  ;;  %v3309_v48 = vmul.f32 0.2, %v3277_v32  ;;  %v3313_v60 = vsel %vm3281_vm6, %v3265_v27, %v3297_v37 }
 0x23f   :  { %v3314_v61 = vsel %vm3282_vm7, %v3266_v12, %v3298_v38  ;;  %v3315_v35 = vsel %vm3283_vm8, %v3267_v29, %v3299_v28  ;;  %v3316_v62 = vsel %vm3284_vm9, %v3268_v30, %v3300_v40  ;;  %v3317_v0 = vsel %vm3285_vm10, %v3269_v52, %v3301_v41  ;;  %v3411_v25 = vld [vmem:[#allocation2 + $0x120] sm:$0xff]  ;;  %v3412_v29 = vld [vmem:[#allocation2 + $0x128] sm:$0xff]  ;;  %v3413_v30 = vld [vmem:[#allocation2 + $0x130] sm:$0xff] }
 0x240   :  { %v3318_v1 = vsel %vm3286_vm11, %v3270_v53, %v3302_v43  ;;  %v3319_v4 = vsel %vm3287_vm12, %v3271_v22, %v3303_v44  ;;  %v3320_v63 = vsel %vm3288_vm13, %v3272_v54, %v3304_v45  ;;  %v3321_v5 = vsel %vm3289_vm14, %v3273_v55, %v3305_v49  ;;  %v3414_v52 = vld [vmem:[#allocation2 + $0x138] sm:$0xff]  ;;  %v3419_v37 = vld [vmem:[#allocation2 + $0x160] sm:$0xff]  ;;  %v3420_v38 = vld [vmem:[#allocation2 + $0x168] sm:$0xff] }
 0x241   :  { %v3322_v57 = vsel %vm3290_vm15, %v3274_v31, %v3306_v50  ;;  %v3323_v8 = vsel %vm3291_vm0, %v3275_v56, %v3307_v51  ;;  %v3324_v10 = vsel %vm3292_vm2, %v3276_v46, %v3308_v59  ;;  %v3325_v9 = vsel %vm3293_vm1, %v3277_v32, %v3309_v48  ;;  %v3415_v31 = vld [vmem:[#allocation2 + $0x140] sm:$0xff]  ;;  %v3416_v56 = vld [vmem:[#allocation2 + $0x148] sm:$0xff]  ;;  %v3417_v46 = vld [vmem:[#allocation2 + $0x150] sm:$0xff] }
 0x242   :  { %v4437_v14 = vpack.c.bf16 %v3310_v42, %v3310_v42  ;;  %v4438_v2 = vpack.c.bf16 %v3311_v47, %v3311_v47  ;;  %v4439_v11 = vpack.c.bf16 %v3312_v58, %v3312_v58  ;;  %v4440_v7 = vpack.c.bf16 %v3313_v60, %v3313_v60  ;;  %v3418_v34 = vld [vmem:[#allocation2 + $0x158] sm:$0xff]  ;;  %v3421_v43 = vld [vmem:[#allocation2 + $0x170] sm:$0xff] }
 0x243   :  { %v4441_v13 = vpack.c.bf16 %v3314_v61, %v3314_v61  ;;  %v4442_v18 = vpack.c.bf16 %v3315_v35, %v3315_v35  ;;  %v4443_v19 = vpack.c.bf16 %v3316_v62, %v3316_v62  ;;  %v4444_v3 = vpack.c.bf16 %v3317_v0, %v3317_v0  ;;  %v3422_v44 = vld [vmem:[#allocation2 + $0x178] sm:$0xff] }
 0x244   :  { %v4445_v21 = vpack.c.bf16 %v3318_v1, %v3318_v1  ;;  %vm6844_vm3 = vcmask 519168   ;;  %v4446_v16 = vpack.c.bf16 %v3319_v4, %v3319_v4  ;;  %v4447_v26 = vpack.c.bf16 %v3320_v63, %v3320_v63 }
 0x245   :  { %4341 = vst.msk [vmem:[%s6840_s4 + $0x40] sm:$0xf] %vm6844_vm3, %v4437_v14  ;;  %v4448_v27 = vpack.c.bf16 %v3321_v5, %v3321_v5  ;;  %v4449_v12 = vpack.c.bf16 %v3322_v57, %v3322_v57  ;;  %vm6845_vm1 = vmmov %vm6844_vm3  ;;  %v4450_v53 = vpack.c.bf16 %v3323_v8, %v3323_v8  ;;  %v4451_v22 = vpack.c.bf16 %v3324_v10, %v3324_v10  ;;  %v3584_v14 = vld [vmem:[#allocation2 + $0x180] sm:$0xff] }
 0x246   :  { %4342 = vst.msk [vmem:[%s6840_s4 + $0x44] sm:$0xf] %vm6845_vm1, %v4438_v2  ;;  %vm6846_vm4 = vmmov %vm6845_vm1  ;;  %v4452_v54 = vpack.c.bf16 %v3325_v9, %v3325_v9  ;;  %v3424_v55 = vmul.f32 %v3408_v6, %v6354_v15  ;;  %v3425_v32 = vmul.f32 %v3409_v23, %v6354_v15  ;;  %v3426_v17 = vmul.f32 %v3410_v24, %v6354_v15 }
 0x247   :  { %4343 = vst.msk [vmem:[%s6840_s4 + $0x48] sm:$0xf] %vm6846_vm4, %v4439_v11  ;;  %vm6847_vm5 = vmmov %vm6845_vm1  ;;  %v3427_v20 = vmul.f32 %v3411_v25, %v6354_v15  ;;  %v3428_v33 = vmul.f32 %v3412_v29, %v6354_v15  ;;  %v3429_v28 = vmul.f32 %v3413_v30, %v6354_v15  ;;  %v3430_v40 = vmul.f32 %v3414_v52, %v6354_v15 }
 0x248   :  { %4344 = vst.msk [vmem:[%s6840_s4 + $0x4c] sm:$0xf] %vm6847_vm5, %v4440_v7  ;;  %vm6848_vm6 = vmmov %vm6845_vm1  ;;  %v3431_v41 = vmul.f32 %v3415_v31, %v6354_v15  ;;  %v3432_v42 = vmul.f32 %v3416_v56, %v6354_v15  ;;  %v3433_v45 = vmul.f32 %v3417_v46, %v6354_v15  ;;  %v3434_v47 = vmul.f32 %v3418_v34, %v6354_v15 }
 0x249   :  { %4345 = vst.msk [vmem:[%s6840_s4 + $0x50] sm:$0xf] %vm6848_vm6, %v4441_v13  ;;  %vm6849_vm7 = vmmov %vm6845_vm1  ;;  %v3435_v49 = vmul.f32 %v3419_v37, %v6354_v15  ;;  %v3436_v50 = vmul.f32 %v3420_v38, %v6354_v15  ;;  %v3437_v51 = vmul.f32 %v3421_v43, %v6354_v15  ;;  %v3438_v58 = vmul.f32 %v3422_v44, %v6354_v15  ;;  %v3585_v44 = vld [vmem:[#allocation2 + $0x188] sm:$0xff] }
 0x24a   :  { %4346 = vst.msk [vmem:[%s6840_s4 + $0x54] sm:$0xf] %vm6849_vm7, %v4442_v18  ;;  %vm6850_vm8 = vmmov %vm6845_vm1  ;;  %v3439_v59 = vadd.f32 %v6527_v39, %v6372_v36  ;;  %v3440_v48 = vadd.f32 %v3424_v55, %v6372_v36  ;;  %v3441_v60 = vadd.f32 %v3425_v32, %v6372_v36  ;;  %v3442_v61 = vadd.f32 %v3426_v17, %v6372_v36 }
 0x24b   :  { %4347 = vst.msk [vmem:[%s6840_s4 + $0x58] sm:$0xf] %vm6850_vm8, %v4443_v19  ;;  %vm6851_vm9 = vmmov %vm6845_vm1  ;;  %v3443_v35 = vadd.f32 %v3427_v20, %v6372_v36  ;;  %v3444_v62 = vadd.f32 %v3428_v33, %v6372_v36  ;;  %v3445_v0 = vadd.f32 %v3429_v28, %v6372_v36  ;;  %v3446_v1 = vadd.f32 %v3430_v40, %v6372_v36 }
 0x24c   :  { %4348 = vst.msk [vmem:[%s6840_s4 + $0x5c] sm:$0xf] %vm6851_vm9, %v4444_v3  ;;  %vm6852_vm10 = vmmov %vm6845_vm1  ;;  %v3447_v4 = vadd.f32 %v3431_v41, %v6372_v36  ;;  %v3448_v63 = vadd.f32 %v3432_v42, %v6372_v36  ;;  %v3449_v39 = vadd.f32 %v3433_v45, %v6372_v36  ;;  %v3450_v5 = vadd.f32 %v3434_v47, %v6372_v36 }
 0x24d   :  { %4349 = vst.msk [vmem:[%s6840_s4 + $0x60] sm:$0xf] %vm6852_vm10, %v4445_v21  ;;  %vm6853_vm11 = vmmov %vm6845_vm1  ;;  %v3451_v57 = vadd.f32 %v3435_v49, %v6372_v36  ;;  %v3452_v8 = vadd.f32 %v3436_v50, %v6372_v36  ;;  %v3453_v10 = vadd.f32 %v3437_v51, %v6372_v36  ;;  %v3454_v9 = vadd.f32 %v3438_v58, %v6372_v36  ;;  %v3586_v51 = vld [vmem:[#allocation2 + $0x190] sm:$0xff]  ;;  %v3587_v58 = vld [vmem:[#allocation2 + $0x198] sm:$0xff] }
 0x24e   :  { %4350 = vst.msk [vmem:[%s6840_s4 + $0x64] sm:$0xf] %vm6853_vm11, %v4446_v16  ;;  %vm6854_vm12 = vmmov %vm6845_vm1  ;;  %vm3455_vm3 = vcmp.ge.f32.partialorder %v3439_v59, 0.0  ;;  %vm3457_vm4 = vcmp.ge.f32.partialorder %v3441_v60, 0.0  ;;  %vm3458_vm5 = vcmp.ge.f32.partialorder %v3442_v61, 0.0  ;;  %vm3459_vm6 = vcmp.ge.f32.partialorder %v3443_v35, 0.0 }
 0x24f   :  { %4351 = vst.msk [vmem:[%s6840_s4 + $0x68] sm:$0xf] %vm6854_vm12, %v4447_v26  ;;  %vm6855_vm13 = vmmov %vm6845_vm1  ;;  %vm3460_vm7 = vcmp.ge.f32.partialorder %v3444_v62, 0.0  ;;  %vm3461_vm8 = vcmp.ge.f32.partialorder %v3445_v0, 0.0  ;;  %vm3462_vm9 = vcmp.ge.f32.partialorder %v3446_v1, 0.0  ;;  %vm3463_vm10 = vcmp.ge.f32.partialorder %v3447_v4, 0.0 }
 0x250   :  { %4352 = vst.msk [vmem:[%s6840_s4 + $0x6c] sm:$0xf] %vm6855_vm13, %v4448_v27  ;;  %vm6856_vm14 = vmmov %vm6845_vm1  ;;  %vm3464_vm11 = vcmp.ge.f32.partialorder %v3448_v63, 0.0  ;;  %vm3465_vm12 = vcmp.ge.f32.partialorder %v3449_v39, 0.0  ;;  %vm3466_vm13 = vcmp.ge.f32.partialorder %v3450_v5, 0.0  ;;  %v6642_v18 = vmul.f32 %v3584_v14, %v6354_v15 }
 0x251   :  { %4353 = vst.msk [vmem:[%s6840_s4 + $0x70] sm:$0xf] %vm6856_vm14, %v4449_v12  ;;  %vm6857_vm15 = vmmov %vm6845_vm1  ;;  %vm3467_vm14 = vcmp.ge.f32.partialorder %v3451_v57, 0.0  ;;  %v3471_v2 = vmul.f32 0.2, %v3439_v59  ;;  %v3603_v14 = vmul.f32 %v3587_v58, %v6354_v15 }
 0x252   :  { %4354 = vst.msk [vmem:[%s6840_s4 + $0x74] sm:$0xf] %vm6857_vm15, %v4450_v53  ;;  %vm6858_vm0 = vmmov %vm6845_vm1  ;;  %vm3456_vm1 = vcmp.ge.f32.partialorder %v3440_v48, 0.0  ;;  %vm3468_vm15 = vcmp.ge.f32.partialorder %v3452_v8, 0.0  ;;  %v3472_v11 = vmul.f32 0.2, %v3440_v48 }
 0x253   :  { %4355 = vst.msk [vmem:[%s6840_s4 + $0x78] sm:$0xf] %vm6858_vm0, %v4451_v22  ;;  %vm6859_vm2 = vmmov %vm6858_vm0  ;;  %vm3469_vm0 = vcmp.ge.f32.partialorder %v3453_v10, 0.0  ;;  %v3473_v7 = vmul.f32 0.2, %v3441_v60  ;;  %v3487_v23 = vsel %vm3455_vm3, %v3439_v59, %v3471_v2  ;;  %vm6860_vm3 = vcmask 519168  }
 0x254   :  { %4356 = vst.msk [vmem:[%s6840_s4 + $0x7c] sm:$0xf] %vm6859_vm2, %v4452_v54  ;;  %vm3470_vm2 = vcmp.ge.f32.partialorder %v3454_v9, 0.0  ;;  %v3474_v13 = vmul.f32 0.2, %v3442_v61  ;;  %v3488_v26 = vsel %vm3456_vm1, %v3440_v48, %v3472_v11  ;;  %v4453_v28 = vpack.c.bf16 %v3487_v23, %v3487_v23  ;;  %v3588_v59 = vld [vmem:[#allocation2 + $0x1a0] sm:$0xff]  ;;  %vm6861_vm1 = vmmov %vm6860_vm3 }
 0x255   :  { %v3475_v6 = vmul.f32 0.2, %v3443_v35  ;;  %v3476_v19 = vmul.f32 0.2, %v3444_v62  ;;  %v3477_v3 = vmul.f32 0.2, %v3445_v0  ;;  %v3489_v30 = vsel %vm3457_vm4, %v3441_v60, %v3473_v7  ;;  %vm6862_vm4 = vmmov %vm6861_vm1 }
 0x256   :  { %v3478_v21 = vmul.f32 0.2, %v3446_v1  ;;  %v3479_v24 = vmul.f32 0.2, %v3447_v4  ;;  %v3480_v25 = vmul.f32 0.2, %v3448_v63  ;;  %v3490_v22 = vsel %vm3458_vm5, %v3442_v61, %v3474_v13  ;;  %vm6863_vm5 = vmmov %vm6861_vm1 }
 0x257   :  { %v3481_v16 = vmul.f32 0.2, %v3449_v39  ;;  %v3482_v27 = vmul.f32 0.2, %v3450_v5  ;;  %v3483_v12 = vmul.f32 0.2, %v3451_v57  ;;  %v3491_v54 = vsel %vm3459_vm6, %v3443_v35, %v3475_v6  ;;  %vm6864_vm6 = vmmov %vm6861_vm1 }
 0x258   :  { %v3484_v29 = vmul.f32 0.2, %v3452_v8  ;;  %v3485_v52 = vmul.f32 0.2, %v3453_v10  ;;  %v3486_v53 = vmul.f32 0.2, %v3454_v9  ;;  %v3492_v55 = vsel %vm3460_vm7, %v3444_v62, %v3476_v19  ;;  %vm6865_vm7 = vmmov %vm6861_vm1 }
 0x259   :  { %v3493_v31 = vsel %vm3461_vm8, %v3445_v0, %v3477_v3  ;;  %v3494_v56 = vsel %vm3462_vm9, %v3446_v1, %v3478_v21  ;;  %v3495_v46 = vsel %vm3463_vm10, %v3447_v4, %v3479_v24  ;;  %v3496_v32 = vsel %vm3464_vm11, %v3448_v63, %v3480_v25  ;;  %4373 = vst.msk [vmem:[%s6840_s4 + $0x80] sm:$0xf] %vm6860_vm3, %v4453_v28  ;;  %v3589_v62 = vld [vmem:[#allocation2 + $0x1a8] sm:$0xff]  ;;  %v3590_v0 = vld [vmem:[#allocation2 + $0x1b0] sm:$0xff]  ;;  %v3591_v1 = vld [vmem:[#allocation2 + $0x1b8] sm:$0xff] }
 0x25a   :  { %v3497_v17 = vsel %vm3465_vm12, %v3449_v39, %v3481_v16  ;;  %v3498_v20 = vsel %vm3466_vm13, %v3450_v5, %v3482_v27  ;;  %v3499_v33 = vsel %vm3467_vm14, %v3451_v57, %v3483_v12  ;;  %v3500_v34 = vsel %vm3468_vm15, %v3452_v8, %v3484_v29  ;;  %vm6866_vm8 = vmmov %vm6861_vm1  ;;  %v3592_v57 = vld [vmem:[#allocation2 + $0x1c0] sm:$0xff]  ;;  %v3593_v8 = vld [vmem:[#allocation2 + $0x1c8] sm:$0xff] }
 0x25b   :  { %v3501_v37 = vsel %vm3469_vm0, %v3453_v10, %v3485_v52  ;;  %v3502_v38 = vsel %vm3470_vm2, %v3454_v9, %v3486_v53  ;;  %v4454_v40 = vpack.c.bf16 %v3488_v26, %v3488_v26  ;;  %v4455_v41 = vpack.c.bf16 %v3489_v30, %v3489_v30  ;;  %vm6867_vm9 = vmmov %vm6861_vm1  ;;  %v3594_v10 = vld [vmem:[#allocation2 + $0x1d0] sm:$0xff]  ;;  %v3595_v7 = vld [vmem:[#allocation2 + $0x1d8] sm:$0xff] }
 0x25c   :  { %v4456_v42 = vpack.c.bf16 %v3490_v22, %v3490_v22  ;;  %v4457_v43 = vpack.c.bf16 %v3491_v54, %v3491_v54  ;;  %v4458_v45 = vpack.c.bf16 %v3492_v55, %v3492_v55  ;;  %v4459_v47 = vpack.c.bf16 %v3493_v31, %v3493_v31  ;;  %vm6868_vm10 = vmmov %vm6861_vm1  ;;  %v3596_v13 = vld [vmem:[#allocation2 + $0x1e0] sm:$0xff]  ;;  %v3597_v6 = vld [vmem:[#allocation2 + $0x1e8] sm:$0xff] }
 0x25d   :  { %v4460_v49 = vpack.c.bf16 %v3494_v56, %v3494_v56  ;;  %v4461_v50 = vpack.c.bf16 %v3495_v46, %v3495_v46  ;;  %v4462_v48 = vpack.c.bf16 %v3496_v32, %v3496_v32  ;;  %v4463_v60 = vpack.c.bf16 %v3497_v17, %v3497_v17  ;;  %4374 = vst.msk [vmem:[%s6840_s4 + $0x84] sm:$0xf] %vm6861_vm1, %v4454_v40  ;;  %vm6869_vm11 = vmmov %vm6861_vm1  ;;  %v3598_v24 = vld [vmem:[#allocation2 + $0x1f0] sm:$0xff]  ;;  %v3599_v25 = vld [vmem:[#allocation2 + $0x1f8] sm:$0xff] }
 0x25e   :  { %v4464_v61 = vpack.c.bf16 %v3498_v20, %v3498_v20  ;;  %v4465_v35 = vpack.c.bf16 %v3499_v33, %v3499_v33  ;;  %4375 = vst.msk [vmem:[%s6840_s4 + $0x88] sm:$0xf] %vm6862_vm4, %v4455_v41  ;;  %v4466_v4 = vpack.c.bf16 %v3500_v34, %v3500_v34  ;;  %v4467_v63 = vpack.c.bf16 %v3501_v37, %v3501_v37  ;;  %vm6870_vm12 = vmmov %vm6861_vm1 }
 0x25f   :  { %4376 = vst.msk [vmem:[%s6840_s4 + $0x8c] sm:$0xf] %vm6863_vm5, %v4456_v42  ;;  %v4468_v39 = vpack.c.bf16 %v3502_v38, %v3502_v38  ;;  %v3601_v5 = vmul.f32 %v3585_v44, %v6354_v15  ;;  %vm6871_vm13 = vmmov %vm6861_vm1  ;;  %v3602_v9 = vmul.f32 %v3586_v51, %v6354_v15  ;;  %v3604_v2 = vmul.f32 %v3588_v59, %v6354_v15 }
 0x260   :  { %4377 = vst.msk [vmem:[%s6840_s4 + $0x90] sm:$0xf] %vm6864_vm6, %v4457_v43  ;;  %vm6872_vm14 = vmmov %vm6861_vm1  ;;  %v3605_v11 = vmul.f32 %v3589_v62, %v6354_v15  ;;  %v3606_v19 = vmul.f32 %v3590_v0, %v6354_v15  ;;  %v3607_v3 = vmul.f32 %v3591_v1, %v6354_v15  ;;  %v3608_v21 = vmul.f32 %v3592_v57, %v6354_v15 }
 0x261   :  { %4378 = vst.msk [vmem:[%s6840_s4 + $0x94] sm:$0xf] %vm6865_vm7, %v4458_v45  ;;  %vm6873_vm15 = vmmov %vm6861_vm1  ;;  %v3609_v23 = vmul.f32 %v3593_v8, %v6354_v15  ;;  %v3610_v16 = vmul.f32 %v3594_v10, %v6354_v15  ;;  %v3611_v26 = vmul.f32 %v3595_v7, %v6354_v15  ;;  %v3612_v27 = vmul.f32 %v3596_v13, %v6354_v15 }
 0x262   :  { %4379 = vst.msk [vmem:[%s6840_s4 + $0x98] sm:$0xf] %vm6866_vm8, %v4459_v47  ;;  %vm6874_vm0 = vmmov %vm6861_vm1  ;;  %v3613_v12 = vmul.f32 %v3597_v6, %v6354_v15  ;;  %v3614_v29 = vmul.f32 %v3598_v24, %v6354_v15  ;;  %v3615_v30 = vmul.f32 %v3599_v25, %v6354_v15  ;;  %v3616_v52 = vadd.f32 %v6642_v18, %v6372_v36 }
 0x263   :  { %4380 = vst.msk [vmem:[%s6840_s4 + $0x9c] sm:$0xf] %vm6867_vm9, %v4460_v49  ;;  %vm6875_vm2 = vmmov %vm6874_vm0  ;;  %v3617_v53 = vadd.f32 %v3601_v5, %v6372_v36  ;;  %v3618_v22 = vadd.f32 %v3602_v9, %v6372_v36  ;;  %v3619_v54 = vadd.f32 %v3603_v14, %v6372_v36  ;;  %v3620_v55 = vadd.f32 %v3604_v2, %v6372_v36 }
 0x264   :  { %4381 = vst.msk [vmem:[%s6840_s4 + $0xa0] sm:$0xf] %vm6868_vm10, %v4461_v50  ;;  %v3621_v31 = vadd.f32 %v3605_v11, %v6372_v36  ;;  %v3622_v56 = vadd.f32 %v3606_v19, %v6372_v36  ;;  %v3623_v46 = vadd.f32 %v3607_v3, %v6372_v36  ;;  %v3624_v32 = vadd.f32 %v3608_v21, %v6372_v36 }
 0x265   :  { %4382 = vst.msk [vmem:[%s6840_s4 + $0xa4] sm:$0xf] %vm6869_vm11, %v4462_v48  ;;  %v3625_v15 = vadd.f32 %v3609_v23, %v6372_v36  ;;  %v3626_v18 = vadd.f32 %v3610_v16, %v6372_v36  ;;  %v3627_v17 = vadd.f32 %v3611_v26, %v6372_v36  ;;  %v3628_v20 = vadd.f32 %v3612_v27, %v6372_v36 }
 0x266   :  { %4383 = vst.msk [vmem:[%s6840_s4 + $0xa8] sm:$0xf] %vm6870_vm12, %v4463_v60  ;;  %v3629_v33 = vadd.f32 %v3613_v12, %v6372_v36  ;;  %v3630_v34 = vadd.f32 %v3614_v29, %v6372_v36  ;;  %v3631_v37 = vadd.f32 %v3615_v30, %v6372_v36  ;;  %vm3632_vm3 = vcmp.ge.f32.partialorder %v3616_v52, 0.0 }
 0x267   :  { %4384 = vst.msk [vmem:[%s6840_s4 + $0xac] sm:$0xf] %vm6871_vm13, %v4464_v61  ;;  %vm3633_vm1 = vcmp.ge.f32.partialorder %v3617_v53, 0.0  ;;  %vm3634_vm4 = vcmp.ge.f32.partialorder %v3618_v22, 0.0  ;;  %vm3635_vm5 = vcmp.ge.f32.partialorder %v3619_v54, 0.0  ;;  %vm3636_vm6 = vcmp.ge.f32.partialorder %v3620_v55, 0.0 }
 0x268   :  { %4385 = vst.msk [vmem:[%s6840_s4 + $0xb0] sm:$0xf] %vm6872_vm14, %v4465_v35  ;;  %vm3637_vm7 = vcmp.ge.f32.partialorder %v3621_v31, 0.0  ;;  %vm3638_vm8 = vcmp.ge.f32.partialorder %v3622_v56, 0.0  ;;  %vm3639_vm9 = vcmp.ge.f32.partialorder %v3623_v46, 0.0  ;;  %vm3640_vm10 = vcmp.ge.f32.partialorder %v3624_v32, 0.0 }
 0x269   :  { %4386 = vst.msk [vmem:[%s6840_s4 + $0xb4] sm:$0xf] %vm6873_vm15, %v4466_v4  ;;  %vm3641_vm11 = vcmp.ge.f32.partialorder %v3625_v15, 0.0  ;;  %vm3642_vm12 = vcmp.ge.f32.partialorder %v3626_v18, 0.0  ;;  %vm3643_vm13 = vcmp.ge.f32.partialorder %v3627_v17, 0.0  ;;  %vm3644_vm14 = vcmp.ge.f32.partialorder %v3628_v20, 0.0 }
 0x26a   :  { %4387 = vst.msk [vmem:[%s6840_s4 + $0xb8] sm:$0xf] %vm6874_vm0, %v4467_v63  ;;  %vm3645_vm15 = vcmp.ge.f32.partialorder %v3629_v33, 0.0  ;;  %vm3646_vm0 = vcmp.ge.f32.partialorder %v3630_v34, 0.0  ;;  %v3648_v38 = vmul.f32 0.2, %v3616_v52 }
 0x26b   :  { %4388 = vst.msk [vmem:[%s6840_s4 + $0xbc] sm:$0xf] %vm6875_vm2, %v4468_v39  ;;  %vm3647_vm2 = vcmp.ge.f32.partialorder %v3631_v37, 0.0  ;;  %v3649_v28 = vmul.f32 0.2, %v3617_v53 }
 0x26c   :  { %v3650_v40 = vmul.f32 0.2, %v3618_v22  ;;  %v3651_v36 = vmul.f32 0.2, %v3619_v54  ;;  %v3652_v41 = vmul.f32 0.2, %v3620_v55  ;;  %v3664_v45 = vsel %vm3632_vm3, %v3616_v52, %v3648_v38 }
 0x26d   :  { %v3653_v42 = vmul.f32 0.2, %v3621_v31  ;;  %v3654_v43 = vmul.f32 0.2, %v3622_v56  ;;  %v3655_v44 = vmul.f32 0.2, %v3623_v46  ;;  %v3665_v51 = vsel %vm3633_vm1, %v3617_v53, %v3649_v28 }
 0x26e   :  { %v3656_v47 = vmul.f32 0.2, %v3624_v32  ;;  %v3657_v49 = vmul.f32 0.2, %v3625_v15  ;;  %v3658_v50 = vmul.f32 0.2, %v3626_v18  ;;  %v3666_v60 = vsel %vm3634_vm4, %v3618_v22, %v3650_v40 }
 0x26f   :  { %v3659_v58 = vmul.f32 0.2, %v3627_v17  ;;  %v3660_v59 = vmul.f32 0.2, %v3628_v20  ;;  %v3661_v48 = vmul.f32 0.2, %v3629_v33  ;;  %v3667_v62 = vsel %vm3635_vm5, %v3619_v54, %v3651_v36 }
 0x270   :  { %v3662_v61 = vmul.f32 0.2, %v3630_v34  ;;  %v3663_v35 = vmul.f32 0.2, %v3631_v37  ;;  %v3668_v0 = vsel %vm3636_vm6, %v3620_v55, %v3652_v41  ;;  %v3669_v1 = vsel %vm3637_vm7, %v3621_v31, %v3653_v42 }
 0x271   :  { %v3670_v4 = vsel %vm3638_vm8, %v3622_v56, %v3654_v43  ;;  %v3671_v63 = vsel %vm3639_vm9, %v3623_v46, %v3655_v44  ;;  %v3672_v39 = vsel %vm3640_vm10, %v3624_v32, %v3656_v47  ;;  %v3673_v5 = vsel %vm3641_vm11, %v3625_v15, %v3657_v49 }
 0x272   :  { %v3674_v57 = vsel %vm3642_vm12, %v3626_v18, %v3658_v50  ;;  %v3675_v8 = vsel %vm3643_vm13, %v3627_v17, %v3659_v58  ;;  %v3676_v10 = vsel %vm3644_vm14, %v3628_v20, %v3660_v59  ;;  %v3677_v9 = vsel %vm3645_vm15, %v3629_v33, %v3661_v48 }
 0x273   :  { %v3678_v14 = vsel %vm3646_vm0, %v3630_v34, %v3662_v61  ;;  %v3679_v2 = vsel %vm3647_vm2, %v3631_v37, %v3663_v35  ;;  %v4469_v11 = vpack.c.bf16 %v3664_v45, %v3664_v45  ;;  %v4470_v7 = vpack.c.bf16 %v3665_v51, %v3665_v51 }
 0x274   :  { %v4471_v13 = vpack.c.bf16 %v3666_v60, %v3666_v60  ;;  %v4472_v6 = vpack.c.bf16 %v3667_v62, %v3667_v62  ;;  %v4473_v19 = vpack.c.bf16 %v3668_v0, %v3668_v0  ;;  %v4474_v3 = vpack.c.bf16 %v3669_v1, %v3669_v1 }
 0x275   :  { %v4475_v21 = vpack.c.bf16 %v3670_v4, %v3670_v4  ;;  %v4476_v23 = vpack.c.bf16 %v3671_v63, %v3671_v63  ;;  %v4477_v24 = vpack.c.bf16 %v3672_v39, %v3672_v39  ;;  %vm6876_vm3 = vcmask 519168  }
 0x276   :  { %4405 = vst.msk [vmem:[%s6840_s4 + $0xc0] sm:$0xf] %vm6876_vm3, %v4469_v11  ;;  %v4478_v25 = vpack.c.bf16 %v3673_v5, %v3673_v5  ;;  %v4479_v16 = vpack.c.bf16 %v3674_v57, %v3674_v57  ;;  %v4480_v26 = vpack.c.bf16 %v3675_v8, %v3675_v8  ;;  %v4481_v27 = vpack.c.bf16 %v3676_v10, %v3676_v10  ;;  %vm6877_vm1 = vmmov %vm6876_vm3 }
 0x277   :  { %4406 = vst.msk [vmem:[%s6840_s4 + $0xc4] sm:$0xf] %vm6877_vm1, %v4470_v7  ;;  %vm6878_vm4 = vmmov %vm6877_vm1  ;;  %v4482_v12 = vpack.c.bf16 %v3677_v9, %v3677_v9  ;;  %v4483_v29 = vpack.c.bf16 %v3678_v14, %v3678_v14  ;;  %v4484_v30 = vpack.c.bf16 %v3679_v2, %v3679_v2 }
 0x278   :  { %4407 = vst.msk [vmem:[%s6840_s4 + $0xc8] sm:$0xf] %vm6878_vm4, %v4471_v13  ;;  %vm6879_vm5 = vmmov %vm6877_vm1 }
 0x279   :  { %4408 = vst.msk [vmem:[%s6840_s4 + $0xcc] sm:$0xf] %vm6879_vm5, %v4472_v6  ;;  %vm6880_vm6 = vmmov %vm6877_vm1 }
 0x27a   :  { %4409 = vst.msk [vmem:[%s6840_s4 + $0xd0] sm:$0xf] %vm6880_vm6, %v4473_v19  ;;  %vm6881_vm7 = vmmov %vm6877_vm1 }
 0x27b   :  { %4410 = vst.msk [vmem:[%s6840_s4 + $0xd4] sm:$0xf] %vm6881_vm7, %v4474_v3  ;;  %vm6882_vm8 = vmmov %vm6877_vm1 }
 0x27c   :  { %4411 = vst.msk [vmem:[%s6840_s4 + $0xd8] sm:$0xf] %vm6882_vm8, %v4475_v21  ;;  %vm6883_vm9 = vmmov %vm6877_vm1 }
 0x27d   :  { %4412 = vst.msk [vmem:[%s6840_s4 + $0xdc] sm:$0xf] %vm6883_vm9, %v4476_v23  ;;  %vm6884_vm10 = vmmov %vm6877_vm1 }
 0x27e   :  { %4413 = vst.msk [vmem:[%s6840_s4 + $0xe0] sm:$0xf] %vm6884_vm10, %v4477_v24  ;;  %vm6885_vm11 = vmmov %vm6877_vm1 }
 0x27f   :  { %4414 = vst.msk [vmem:[%s6840_s4 + $0xe4] sm:$0xf] %vm6885_vm11, %v4478_v25  ;;  %vm6886_vm12 = vmmov %vm6877_vm1 }
 0x280   :  { %4415 = vst.msk [vmem:[%s6840_s4 + $0xe8] sm:$0xf] %vm6886_vm12, %v4479_v16  ;;  %vm6887_vm13 = vmmov %vm6877_vm1 }
 0x281   :  { %4416 = vst.msk [vmem:[%s6840_s4 + $0xec] sm:$0xf] %vm6887_vm13, %v4480_v26  ;;  %vm6888_vm14 = vmmov %vm6877_vm1 }
 0x282   :  { %4417 = vst.msk [vmem:[%s6840_s4 + $0xf0] sm:$0xf] %vm6888_vm14, %v4481_v27  ;;  %vm6889_vm15 = vmmov %vm6877_vm1 }
 0x283   :  { %4418 = vst.msk [vmem:[%s6840_s4 + $0xf4] sm:$0xf] %vm6889_vm15, %v4482_v12  ;;  %vm6890_vm0 = vmmov %vm6877_vm1 }
 0x284   :  { %4419 = vst.msk [vmem:[%s6840_s4 + $0xf8] sm:$0xf] %vm6890_vm0, %v4483_v29  ;;  %vm6891_vm2 = vmmov %vm6890_vm0 }
 0x285   :  { %4420 = vst.msk [vmem:[%s6840_s4 + $0xfc] sm:$0xf] %vm6891_vm2, %v4484_v30 }

// kernel: _lambda_.7
= control target key start
LH: loop header
LB: loop body
LE: loop exit
PB: predicated region body
PF: predicated region fallthrough
CT: control target
= control target key end

     0   :  { %s3731_s9 = smov 0   ;;  %s3733_s10 = smov 0   ;;  %s4285_s0 = inlined_call_operand.vmem [shape: bf16[4,512,256], index: 0, kind: input, shape index: {}]   ;;  %s4286_s1 = inlined_call_operand.vmem [shape: bf16[4,256,128], index: 1, kind: input, shape index: {}]   ;;  %s4287_s2 = inlined_call_operand.vmem [shape: bf16[4,512,128], index: 2, kind: output, shape index: {}]  }
   0x1   :  { %s3735_s11 = smov 0  }
   0x2 LB: > { %s2466_s12 = sadd.s32 4294967295, %s3714_s11   ;;  %s3748_s13 = sadd.s32 1, %s3714_s11   ;;  %s3714_s11 = sphi %s3735_s11, %s4291_s11   ;;  %s3710_s10 = sphi %s3733_s10, %s4290_s10   ;;  %s3706_s9 = sphi %s3731_s9, %s4289_s9  }
   0x3   : > { %s16_s14 = ssub.s32 %s3714_s11, %s3748_s13  ;;  %s19_s15 = sadd.s32 1, %s3710_s10 }
   0x4   : > { %p17_p0 = scmp.eq.s32.totalorder %s16_s14, 0  ;;  %p26_p1 = scmp.ne.s32.totalorder %s3710_s10, %s3706_s9 }
   0x5   : > { %p27_p2 = scmp.eq.s32.totalorder %s3714_s11, 0  ;;  %p77_p3 = scmp.eq.s32.totalorder %s2466_s12, 3 }
   0x6   : > { %s3759_s16 = scalar_select %p17_p0, %s3710_s10, %s19_s15  }
   0x7   : > { %p28_p4 = por %p27_p2, %p26_p1  ;;  %p3761_p5 = por %p77_p3, %p26_p1 }
   0x8   : > { %p2469_p6 = scmp.ge.s32.totalorder %s3714_s11, 4 }
   0xa   : > { %102 = sbr.rel (%p2469_p6) target bundleno = 51 (0x33), region = 20 }
   0xf   : > { %105 = sbr.rel (!%p28_p4) target bundleno = 51 (0x33), region = 24  ;;  %s107_s18 = sand.u32 (%p28_p4), 1, %s3710_s10  }
  0x10   : > { %s2867_s19 = sshll.u32 (%p28_p4), %s3714_s11, 7  ;;  %s2470_s20 = sshll.u32 (%p28_p4), %s107_s18, 9 }
  0x11   : > { %s3771_s23 = scalar_lea.vmem (%p28_p4), %s4285_s0, %s2867_s19  ;;  %s3776_s24 = scalar_lea.vmem (%p28_p4), [#allocation2], %s2470_s20 }
  0x12   : > { %v268_v0 = vld [vmem:[%s3771_s23] sm:$0xff] (%p28_p4)  ;;  %v270_v1 = vld [vmem:[%s3771_s23 + $0x8] sm:$0xff] (%p28_p4)  ;;  %v272_v2 = vld [vmem:[%s3771_s23 + $0x10] sm:$0xff] (%p28_p4) }
  0x13   : > { %269 = vst [vmem:[%s3776_s24] sm:$0xff] (%p28_p4), %v268_v0  ;;  %271 = vst [vmem:[%s3776_s24 + $0x8] sm:$0xff] (%p28_p4), %v270_v1  ;;  %v274_v3 = vld [vmem:[%s3771_s23 + $0x18] sm:$0xff] (%p28_p4)  ;;  %v276_v4 = vld [vmem:[%s3771_s23 + $0x20] sm:$0xff] (%p28_p4) }
  0x14   : > { %273 = vst [vmem:[%s3776_s24 + $0x10] sm:$0xff] %v272_v2  ;;  %v278_v5 = vld [vmem:[%s3771_s23 + $0x28] sm:$0xff]  ;;  %275 = vst [vmem:[%s3776_s24 + $0x18] sm:$0xff] %v274_v3  ;;  %v280_v6 = vld [vmem:[%s3771_s23 + $0x30] sm:$0xff] }
  0x15   : > { %277 = vst [vmem:[%s3776_s24 + $0x20] sm:$0xff] %v276_v4  ;;  %279 = vst [vmem:[%s3776_s24 + $0x28] sm:$0xff] %v278_v5  ;;  %v282_v7 = vld [vmem:[%s3771_s23 + $0x38] sm:$0xff]  ;;  %v284_v8 = vld [vmem:[%s3771_s23 + $0x40] sm:$0xff] }
  0x16   : > { %281 = vst [vmem:[%s3776_s24 + $0x30] sm:$0xff] %v280_v6  ;;  %283 = vst [vmem:[%s3776_s24 + $0x38] sm:$0xff] %v282_v7  ;;  %v286_v9 = vld [vmem:[%s3771_s23 + $0x48] sm:$0xff]  ;;  %v288_v10 = vld [vmem:[%s3771_s23 + $0x50] sm:$0xff] }
  0x17   : > { %285 = vst [vmem:[%s3776_s24 + $0x40] sm:$0xff] %v284_v8  ;;  %v290_v11 = vld [vmem:[%s3771_s23 + $0x58] sm:$0xff]  ;;  %287 = vst [vmem:[%s3776_s24 + $0x48] sm:$0xff] %v286_v9  ;;  %v292_v12 = vld [vmem:[%s3771_s23 + $0x60] sm:$0xff] }
  0x18   : > { %289 = vst [vmem:[%s3776_s24 + $0x50] sm:$0xff] %v288_v10  ;;  %291 = vst [vmem:[%s3776_s24 + $0x58] sm:$0xff] %v290_v11  ;;  %v294_v13 = vld [vmem:[%s3771_s23 + $0x68] sm:$0xff]  ;;  %v296_v14 = vld [vmem:[%s3771_s23 + $0x70] sm:$0xff] }
  0x19   : > { %293 = vst [vmem:[%s3776_s24 + $0x60] sm:$0xff] %v292_v12  ;;  %295 = vst [vmem:[%s3776_s24 + $0x68] sm:$0xff] %v294_v13  ;;  %v298_v15 = vld [vmem:[%s3771_s23 + $0x78] sm:$0xff]  ;;  %v300_v16 = vld [vmem:[%s3771_s23 + $0x200] sm:$0xff] }
  0x1a   : > { %297 = vst [vmem:[%s3776_s24 + $0x70] sm:$0xff] %v296_v14  ;;  %v302_v17 = vld [vmem:[%s3771_s23 + $0x208] sm:$0xff]  ;;  %299 = vst [vmem:[%s3776_s24 + $0x78] sm:$0xff] %v298_v15  ;;  %v304_v18 = vld [vmem:[%s3771_s23 + $0x210] sm:$0xff] }
  0x1b   : > { %301 = vst [vmem:[%s3776_s24 + $0x80] sm:$0xff] %v300_v16  ;;  %303 = vst [vmem:[%s3776_s24 + $0x88] sm:$0xff] %v302_v17  ;;  %v306_v19 = vld [vmem:[%s3771_s23 + $0x218] sm:$0xff]  ;;  %v308_v20 = vld [vmem:[%s3771_s23 + $0x220] sm:$0xff] }
  0x1c   : > { %305 = vst [vmem:[%s3776_s24 + $0x90] sm:$0xff] %v304_v18  ;;  %307 = vst [vmem:[%s3776_s24 + $0x98] sm:$0xff] %v306_v19  ;;  %v310_v21 = vld [vmem:[%s3771_s23 + $0x228] sm:$0xff]  ;;  %v312_v22 = vld [vmem:[%s3771_s23 + $0x230] sm:$0xff] }
  0x1d   : > { %309 = vst [vmem:[%s3776_s24 + $0xa0] sm:$0xff] %v308_v20  ;;  %v314_v23 = vld [vmem:[%s3771_s23 + $0x238] sm:$0xff]  ;;  %311 = vst [vmem:[%s3776_s24 + $0xa8] sm:$0xff] %v310_v21  ;;  %v316_v24 = vld [vmem:[%s3771_s23 + $0x240] sm:$0xff] }
  0x1e   : > { %313 = vst [vmem:[%s3776_s24 + $0xb0] sm:$0xff] %v312_v22  ;;  %315 = vst [vmem:[%s3776_s24 + $0xb8] sm:$0xff] %v314_v23  ;;  %v318_v25 = vld [vmem:[%s3771_s23 + $0x248] sm:$0xff]  ;;  %v320_v26 = vld [vmem:[%s3771_s23 + $0x250] sm:$0xff] }
  0x1f   : > { %317 = vst [vmem:[%s3776_s24 + $0xc0] sm:$0xff] %v316_v24  ;;  %319 = vst [vmem:[%s3776_s24 + $0xc8] sm:$0xff] %v318_v25  ;;  %v322_v27 = vld [vmem:[%s3771_s23 + $0x258] sm:$0xff]  ;;  %v324_v28 = vld [vmem:[%s3771_s23 + $0x260] sm:$0xff] }
  0x20   : > { %321 = vst [vmem:[%s3776_s24 + $0xd0] sm:$0xff] %v320_v26  ;;  %v326_v29 = vld [vmem:[%s3771_s23 + $0x268] sm:$0xff]  ;;  %323 = vst [vmem:[%s3776_s24 + $0xd8] sm:$0xff] %v322_v27  ;;  %v328_v30 = vld [vmem:[%s3771_s23 + $0x270] sm:$0xff] }
  0x21   : > { %325 = vst [vmem:[%s3776_s24 + $0xe0] sm:$0xff] %v324_v28  ;;  %327 = vst [vmem:[%s3776_s24 + $0xe8] sm:$0xff] %v326_v29  ;;  %v330_v31 = vld [vmem:[%s3771_s23 + $0x278] sm:$0xff]  ;;  %v332_v32 = vld [vmem:[%s3771_s23 + $0x400] sm:$0xff] }
  0x22   : > { %329 = vst [vmem:[%s3776_s24 + $0xf0] sm:$0xff] %v328_v30  ;;  %331 = vst [vmem:[%s3776_s24 + $0xf8] sm:$0xff] %v330_v31  ;;  %v334_v33 = vld [vmem:[%s3771_s23 + $0x408] sm:$0xff]  ;;  %v336_v34 = vld [vmem:[%s3771_s23 + $0x410] sm:$0xff] }
  0x23   : > { %333 = vst [vmem:[%s3776_s24 + $0x100] sm:$0xff] %v332_v32  ;;  %v338_v35 = vld [vmem:[%s3771_s23 + $0x418] sm:$0xff]  ;;  %335 = vst [vmem:[%s3776_s24 + $0x108] sm:$0xff] %v334_v33  ;;  %v340_v36 = vld [vmem:[%s3771_s23 + $0x420] sm:$0xff] }
  0x24   : > { %337 = vst [vmem:[%s3776_s24 + $0x110] sm:$0xff] %v336_v34  ;;  %339 = vst [vmem:[%s3776_s24 + $0x118] sm:$0xff] %v338_v35  ;;  %v342_v37 = vld [vmem:[%s3771_s23 + $0x428] sm:$0xff]  ;;  %v344_v38 = vld [vmem:[%s3771_s23 + $0x430] sm:$0xff] }
  0x25   : > { %341 = vst [vmem:[%s3776_s24 + $0x120] sm:$0xff] %v340_v36  ;;  %343 = vst [vmem:[%s3776_s24 + $0x128] sm:$0xff] %v342_v37  ;;  %v346_v39 = vld [vmem:[%s3771_s23 + $0x438] sm:$0xff]  ;;  %v348_v40 = vld [vmem:[%s3771_s23 + $0x440] sm:$0xff] }
  0x26   : > { %345 = vst [vmem:[%s3776_s24 + $0x130] sm:$0xff] %v344_v38  ;;  %v350_v41 = vld [vmem:[%s3771_s23 + $0x448] sm:$0xff]  ;;  %347 = vst [vmem:[%s3776_s24 + $0x138] sm:$0xff] %v346_v39  ;;  %v352_v42 = vld [vmem:[%s3771_s23 + $0x450] sm:$0xff] }
  0x27   : > { %349 = vst [vmem:[%s3776_s24 + $0x140] sm:$0xff] %v348_v40  ;;  %351 = vst [vmem:[%s3776_s24 + $0x148] sm:$0xff] %v350_v41  ;;  %v354_v43 = vld [vmem:[%s3771_s23 + $0x458] sm:$0xff]  ;;  %v356_v44 = vld [vmem:[%s3771_s23 + $0x460] sm:$0xff] }
  0x28   : > { %353 = vst [vmem:[%s3776_s24 + $0x150] sm:$0xff] %v352_v42  ;;  %355 = vst [vmem:[%s3776_s24 + $0x158] sm:$0xff] %v354_v43  ;;  %v358_v45 = vld [vmem:[%s3771_s23 + $0x468] sm:$0xff]  ;;  %v360_v46 = vld [vmem:[%s3771_s23 + $0x470] sm:$0xff] }
  0x29   : > { %357 = vst [vmem:[%s3776_s24 + $0x160] sm:$0xff] %v356_v44  ;;  %v362_v47 = vld [vmem:[%s3771_s23 + $0x478] sm:$0xff]  ;;  %359 = vst [vmem:[%s3776_s24 + $0x168] sm:$0xff] %v358_v45  ;;  %v364_v48 = vld [vmem:[%s3771_s23 + $0x600] sm:$0xff] }
  0x2a   : > { %361 = vst [vmem:[%s3776_s24 + $0x170] sm:$0xff] %v360_v46  ;;  %363 = vst [vmem:[%s3776_s24 + $0x178] sm:$0xff] %v362_v47  ;;  %v366_v49 = vld [vmem:[%s3771_s23 + $0x608] sm:$0xff]  ;;  %v368_v50 = vld [vmem:[%s3771_s23 + $0x610] sm:$0xff] }
  0x2b   : > { %365 = vst [vmem:[%s3776_s24 + $0x180] sm:$0xff] %v364_v48  ;;  %367 = vst [vmem:[%s3776_s24 + $0x188] sm:$0xff] %v366_v49  ;;  %v370_v51 = vld [vmem:[%s3771_s23 + $0x618] sm:$0xff]  ;;  %v372_v52 = vld [vmem:[%s3771_s23 + $0x620] sm:$0xff] }
  0x2c   : > { %369 = vst [vmem:[%s3776_s24 + $0x190] sm:$0xff] %v368_v50  ;;  %v374_v53 = vld [vmem:[%s3771_s23 + $0x628] sm:$0xff]  ;;  %371 = vst [vmem:[%s3776_s24 + $0x198] sm:$0xff] %v370_v51  ;;  %v376_v54 = vld [vmem:[%s3771_s23 + $0x630] sm:$0xff] }
  0x2d   : > { %373 = vst [vmem:[%s3776_s24 + $0x1a0] sm:$0xff] %v372_v52  ;;  %375 = vst [vmem:[%s3776_s24 + $0x1a8] sm:$0xff] %v374_v53  ;;  %v378_v55 = vld [vmem:[%s3771_s23 + $0x638] sm:$0xff]  ;;  %v380_v56 = vld [vmem:[%s3771_s23 + $0x640] sm:$0xff] }
  0x2e   : > { %377 = vst [vmem:[%s3776_s24 + $0x1b0] sm:$0xff] %v376_v54  ;;  %379 = vst [vmem:[%s3776_s24 + $0x1b8] sm:$0xff] %v378_v55  ;;  %v382_v57 = vld [vmem:[%s3771_s23 + $0x648] sm:$0xff]  ;;  %v384_v58 = vld [vmem:[%s3771_s23 + $0x650] sm:$0xff] }
  0x2f   : > { %381 = vst [vmem:[%s3776_s24 + $0x1c0] sm:$0xff] %v380_v56  ;;  %v386_v59 = vld [vmem:[%s3771_s23 + $0x658] sm:$0xff]  ;;  %383 = vst [vmem:[%s3776_s24 + $0x1c8] sm:$0xff] %v382_v57  ;;  %v388_v60 = vld [vmem:[%s3771_s23 + $0x660] sm:$0xff] }
  0x30   : > { %385 = vst [vmem:[%s3776_s24 + $0x1d0] sm:$0xff] %v384_v58  ;;  %387 = vst [vmem:[%s3776_s24 + $0x1d8] sm:$0xff] %v386_v59  ;;  %v390_v61 = vld [vmem:[%s3771_s23 + $0x668] sm:$0xff]  ;;  %v392_v62 = vld [vmem:[%s3771_s23 + $0x670] sm:$0xff] }
  0x31   : > { %389 = vst [vmem:[%s3776_s24 + $0x1e0] sm:$0xff] %v388_v60  ;;  %391 = vst [vmem:[%s3776_s24 + $0x1e8] sm:$0xff] %v390_v61  ;;  %v394_v63 = vld [vmem:[%s3771_s23 + $0x678] sm:$0xff] }
  0x32   : > { %393 = vst [vmem:[%s3776_s24 + $0x1f0] sm:$0xff] %v392_v62  ;;  %395 = vst [vmem:[%s3776_s24 + $0x1f8] sm:$0xff] %v394_v63 }
  0x33 PF: > { %p2474_p7 = scmp.ge.s32.totalorder %s3714_s11, 1  ;;  %p400_p8 = scmp.lt.s32.totalorder %s3714_s11, 5 }
  0x35   : > { %p401_p9 = pnand %p2474_p7, %p400_p8 }
  0x36   : > { %s407_s3 = sand.u32 (!%p401_p9), 1, %s3706_s9  }
  0x37   : > { %404 = sbr.rel (%p401_p9) target bundleno = 441 (0x1b9), region = 62  ;;  %s2475_s15 = sshll.u32 (!%p401_p9), %s407_s3, 9 }
  0x38   : > { %s4004_s28 = scalar_lea.vmem (!%p401_p9), [#allocation2], %s2475_s15 }
  0x3c   : > { %v3404_v0 = vld [vmem:[%s4286_s1 + $0x78] sm:$0xff]   ;;  %v3408_v4 = vld [vmem:[%s4286_s1 + $0x70] sm:$0xff]   ;;  %v3412_v8 = vld [vmem:[%s4286_s1 + $0x68] sm:$0xff]  }
  0x3d   : > { %v3405_v1 = vld [vmem:[%s4286_s1 + $0xf8] sm:$0xff]   ;;  %3124 = vmatprep.subr.bf16.mxu0 %v3404_v0  ;;  %v3409_v5 = vld [vmem:[%s4286_s1 + $0xf0] sm:$0xff]   ;;  %v3413_v9 = vld [vmem:[%s4286_s1 + $0xe8] sm:$0xff]  }
  0x3e   : > { %v3406_v2 = vld [vmem:[%s4286_s1 + $0x38] sm:$0xff]   ;;  %3188 = vmatprep.subr.bf16.mxu1 %v3405_v1  ;;  %v3410_v6 = vld [vmem:[%s4286_s1 + $0x30] sm:$0xff]   ;;  %v3414_v10 = vld [vmem:[%s4286_s1 + $0x28] sm:$0xff]  }
  0x3f   : > { %v3407_v3 = vld [vmem:[%s4286_s1 + $0xb8] sm:$0xff]   ;;  %3125 = vmatpush3.bf16.msra.mxu0 %v3406_v2  ;;  %v3411_v7 = vld [vmem:[%s4286_s1 + $0xb0] sm:$0xff]   ;;  %v3415_v11 = vld [vmem:[%s4286_s1 + $0xa8] sm:$0xff]  }
  0x40   : > { %3189 = vmatpush3.bf16.msra.mxu1 %v3407_v3  ;;  %3126 = vmatprep.subr.bf16.mxu0 %v3408_v4  ;;  %v3416_v12 = vld [vmem:[%s4286_s1 + $0x60] sm:$0xff]   ;;  %v3420_v16 = vld [vmem:[%s4286_s1 + $0x58] sm:$0xff]   ;;  %v3424_v20 = vld [vmem:[%s4286_s1 + $0x50] sm:$0xff]  }
  0x41   : > { %3190 = vmatprep.subr.bf16.mxu1 %v3409_v5  ;;  %v3417_v13 = vld [vmem:[%s4286_s1 + $0xe0] sm:$0xff]   ;;  %v3421_v17 = vld [vmem:[%s4286_s1 + $0xd8] sm:$0xff]   ;;  %v3425_v21 = vld [vmem:[%s4286_s1 + $0xd0] sm:$0xff]  }
  0x42   : > { %v3418_v14 = vld [vmem:[%s4286_s1 + $0x20] sm:$0xff]   ;;  %v3422_v18 = vld [vmem:[%s4286_s1 + $0x18] sm:$0xff]   ;;  %v3426_v22 = vld [vmem:[%s4286_s1 + $0x10] sm:$0xff]  }
  0x43   : > { %3127 = vmatpush3.bf16.msra.mxu0 %v3410_v6  ;;  %v3419_v15 = vld [vmem:[%s4286_s1 + $0xa0] sm:$0xff]   ;;  %v3423_v19 = vld [vmem:[%s4286_s1 + $0x98] sm:$0xff]   ;;  %v3427_v23 = vld [vmem:[%s4286_s1 + $0x90] sm:$0xff]  }
  0x44   : > { %3191 = vmatpush3.bf16.msra.mxu1 %v3411_v7  ;;  %3128 = vmatprep.subr.bf16.mxu0 %v3412_v8  ;;  %v3428_v24 = vld [vmem:[%s4286_s1 + $0x48] sm:$0xff]   ;;  %v3432_v28 = vld [vmem:[%s4286_s1 + $0x40] sm:$0xff]   ;;  %v3442_v36 = vld [vmem:[%s4286_s1 + $0x178] sm:$0xff]  }
  0x45   : > { %3192 = vmatprep.subr.bf16.mxu1 %v3413_v9  ;;  %v3429_v25 = vld [vmem:[%s4286_s1 + $0xc8] sm:$0xff]   ;;  %v3433_v29 = vld [vmem:[%s4286_s1 + $0xc0] sm:$0xff]   ;;  %v3443_v37 = vld [vmem:[%s4286_s1 + $0x1f8] sm:$0xff]  }
  0x46   : > { %v3430_v26 = vld [vmem:[%s4286_s1 + $0x8] sm:$0xff]   ;;  %v3434_v30 = vld [vmem:[%s4286_s1] sm:$0xff]   ;;  %v3444_v38 = vld [vmem:[%s4286_s1 + $0x138] sm:$0xff]  }
  0x47   : > { %3129 = vmatpush3.bf16.msra.mxu0 %v3414_v10  ;;  %v3431_v27 = vld [vmem:[%s4286_s1 + $0x88] sm:$0xff]   ;;  %v3435_v31 = vld [vmem:[%s4286_s1 + $0x80] sm:$0xff]   ;;  %v3445_v39 = vld [vmem:[%s4286_s1 + $0x1b8] sm:$0xff]  }
  0x48   : > { %3193 = vmatpush3.bf16.msra.mxu1 %v3415_v11  ;;  %3130 = vmatprep.subr.bf16.mxu0 %v3416_v12  ;;  %v3436_v32 = vld [vmem:[%s4004_s28] ss:$8 sps:$4 sm:$0xff]   ;;  %v3438_v33 = vld [vmem:[%s4004_s28 + $0x4] ss:$8 sps:$4 sm:$0xff]   ;;  %v3446_v40 = vld [vmem:[%s4004_s28 + $0x14] ss:$8 sps:$4 sm:$0xff]  }
  0x49   : > { %3194 = vmatprep.subr.bf16.mxu1 %v3417_v13  ;;  %v3439_v34 = vld [vmem:[%s4004_s28 + $0x80] ss:$8 sps:$4 sm:$0xff]   ;;  %v3441_v35 = vld [vmem:[%s4004_s28 + $0x84] ss:$8 sps:$4 sm:$0xff]   ;;  %686 = vmatprep.mubr.bf16.mxu0 %v3438_v33  ;;  %v3448_v41 = vld [vmem:[%s4004_s28 + $0x94] ss:$8 sps:$4 sm:$0xff]  }
  0x4a   : > { %1105 = vmatprep.mubr.bf16.mxu1 %v3441_v35  ;;  %v3450_v42 = vld [vmem:[%s4004_s28 + $0x10] ss:$8 sps:$4 sm:$0xff]   ;;  %v3456_v48 = vld [vmem:[%s4004_s28 + $0x24] ss:$8 sps:$4 sm:$0xff]   ;;  %v3460_v50 = vld [vmem:[%s4004_s28 + $0x20] ss:$8 sps:$4 sm:$0xff]  }
  0x4b   : > { %3131 = vmatpush3.bf16.msra.mxu0 %v3418_v14  ;;  %v3451_v43 = vld [vmem:[%s4004_s28 + $0x90] ss:$8 sps:$4 sm:$0xff]   ;;  %v3458_v49 = vld [vmem:[%s4004_s28 + $0xa4] ss:$8 sps:$4 sm:$0xff]   ;;  %v3461_v51 = vld [vmem:[%s4004_s28 + $0xa0] ss:$8 sps:$4 sm:$0xff]  }
  0x4c   : > { %3195 = vmatpush3.bf16.msra.mxu1 %v3419_v15  ;;  %3132 = vmatprep.subr.bf16.mxu0 %v3420_v16  ;;  %v3452_v44 = vld [vmem:[%s4286_s1 + $0x170] sm:$0xff]   ;;  %v3462_v52 = vld [vmem:[%s4286_s1 + $0x168] sm:$0xff]   ;;  %v3472_v60 = vld [vmem:[%s4286_s1 + $0x160] sm:$0xff]  }
  0x4d   : > { %3196 = vmatprep.subr.bf16.mxu1 %v3421_v17  ;;  %v3453_v45 = vld [vmem:[%s4286_s1 + $0x1f0] sm:$0xff]   ;;  %v3463_v53 = vld [vmem:[%s4286_s1 + $0x1e8] sm:$0xff]   ;;  %v3473_v61 = vld [vmem:[%s4286_s1 + $0x1e0] sm:$0xff]  }
  0x4e   : > { %v3454_v46 = vld [vmem:[%s4286_s1 + $0x130] sm:$0xff]   ;;  %v3464_v54 = vld [vmem:[%s4286_s1 + $0x128] sm:$0xff]   ;;  %v3474_v62 = vld [vmem:[%s4286_s1 + $0x120] sm:$0xff]  }
  0x4f   : > { %3133 = vmatpush3.bf16.msra.mxu0 %v3422_v18  ;;  %v3455_v47 = vld [vmem:[%s4286_s1 + $0x1b0] sm:$0xff]   ;;  %v3465_v55 = vld [vmem:[%s4286_s1 + $0x1a8] sm:$0xff]   ;;  %v3475_v63 = vld [vmem:[%s4286_s1 + $0x1a0] sm:$0xff]  }
  0x50   : > { %3197 = vmatpush3.bf16.msra.mxu1 %v3423_v19  ;;  %3134 = vmatprep.subr.bf16.mxu0 %v3424_v20  ;;  %v3466_v56 = vld [vmem:[%s4004_s28 + $0x34] ss:$8 sps:$4 sm:$0xff]   ;;  %v3470_v58 = vld [vmem:[%s4004_s28 + $0x30] ss:$8 sps:$4 sm:$0xff]   ;;  %v3476_v0 = vld [vmem:[%s4004_s28 + $0x44] ss:$8 sps:$4 sm:$0xff]  }
  0x51   : > { %3198 = vmatprep.subr.bf16.mxu1 %v3425_v21  ;;  %v3468_v57 = vld [vmem:[%s4004_s28 + $0xb4] ss:$8 sps:$4 sm:$0xff]   ;;  %v3471_v59 = vld [vmem:[%s4004_s28 + $0xb0] ss:$8 sps:$4 sm:$0xff]   ;;  %v3478_v1 = vld [vmem:[%s4004_s28 + $0xc4] ss:$8 sps:$4 sm:$0xff]  }
  0x52   : > { %v3480_v2 = vld [vmem:[%s4004_s28 + $0x40] ss:$8 sps:$4 sm:$0xff]   ;;  %v3482_v3 = vld [vmem:[%s4286_s1 + $0x158] sm:$0xff]   ;;  %v3492_v10 = vld [vmem:[%s4286_s1 + $0x150] sm:$0xff]  }
  0x53   : > { %3135 = vmatpush3.bf16.msra.mxu0 %v3426_v22  ;;  %v3481_v4 = vld [vmem:[%s4004_s28 + $0xc0] ss:$8 sps:$4 sm:$0xff]   ;;  %v3483_v5 = vld [vmem:[%s4286_s1 + $0x1d8] sm:$0xff]   ;;  %v3493_v11 = vld [vmem:[%s4286_s1 + $0x1d0] sm:$0xff]  }
  0x54   : > { %3199 = vmatpush3.bf16.msra.mxu1 %v3427_v23  ;;  %3136 = vmatprep.subr.bf16.mxu0 %v3428_v24  ;;  %v3484_v6 = vld [vmem:[%s4286_s1 + $0x118] sm:$0xff]   ;;  %v3494_v13 = vld [vmem:[%s4286_s1 + $0x110] sm:$0xff]   ;;  %v3496_v16 = vld [vmem:[%s4004_s28 + $0x64] ss:$8 sps:$4 sm:$0xff]  }
  0x55   : > { %3200 = vmatprep.subr.bf16.mxu1 %v3429_v25  ;;  %v3485_v7 = vld [vmem:[%s4286_s1 + $0x198] sm:$0xff]   ;;  %v3495_v14 = vld [vmem:[%s4286_s1 + $0x190] sm:$0xff]   ;;  %v3498_v17 = vld [vmem:[%s4004_s28 + $0xe4] ss:$8 sps:$4 sm:$0xff]  }
  0x56   : > { %v3486_v8 = vld [vmem:[%s4004_s28 + $0x54] ss:$8 sps:$4 sm:$0xff]   ;;  %v3490_v12 = vld [vmem:[%s4004_s28 + $0x50] ss:$8 sps:$4 sm:$0xff]   ;;  %v3502_v18 = vld [vmem:[%s4286_s1 + $0x148] sm:$0xff]  }
  0x57   : > { %3137 = vmatpush3.bf16.msra.mxu0 %v3430_v26  ;;  %v3488_v9 = vld [vmem:[%s4004_s28 + $0xd4] ss:$8 sps:$4 sm:$0xff]   ;;  %v3491_v15 = vld [vmem:[%s4004_s28 + $0xd0] ss:$8 sps:$4 sm:$0xff]   ;;  %v3503_v19 = vld [vmem:[%s4286_s1 + $0x1c8] sm:$0xff]  }
  0x58   : > { %3201 = vmatpush3.bf16.msra.mxu1 %v3431_v27  ;;  %3138 = vmatprep.subr.bf16.mxu0 %v3432_v28  ;;  %v3504_v20 = vld [vmem:[%s4286_s1 + $0x108] sm:$0xff]   ;;  %v3506_v24 = vld [vmem:[%s4004_s28 + $0x74] ss:$8 sps:$4 sm:$0xff]   ;;  %v3512_v26 = vld [vmem:[%s4286_s1 + $0x140] sm:$0xff]  }
  0x59   : > { %3202 = vmatprep.subr.bf16.mxu1 %v3433_v29  ;;  %v3505_v21 = vld [vmem:[%s4286_s1 + $0x188] sm:$0xff]   ;;  %v3508_v25 = vld [vmem:[%s4004_s28 + $0xf4] ss:$8 sps:$4 sm:$0xff]   ;;  %v3513_v27 = vld [vmem:[%s4286_s1 + $0x1c0] sm:$0xff]  }
  0x5a   : > { %v3500_v22 = vld [vmem:[%s4004_s28 + $0x60] ss:$8 sps:$4 sm:$0xff]   ;;  %v3521_v33 = vld [vmem:[%s4004_s28 + $0x184] ss:$8 sps:$4 sm:$0xff]  }
  0x5b   : > { %3139 = vmatpush3.bf16.msra.mxu0 %v3434_v30  ;;  %v3501_v23 = vld [vmem:[%s4004_s28 + $0xe0] ss:$8 sps:$4 sm:$0xff]   ;;  %v3510_v30 = vld [vmem:[%s4004_s28 + $0x70] ss:$8 sps:$4 sm:$0xff]  }
  0x5c   : > { %3203 = vmatpush3.bf16.msra.mxu1 %v3435_v31  ;;  %3252 = vmatprep.subr.bf16.mxu0 %v3442_v36  ;;  %v3514_v28 = vld [vmem:[%s4286_s1 + $0x100] sm:$0xff]   ;;  %v3511_v31 = vld [vmem:[%s4004_s28 + $0xf0] ss:$8 sps:$4 sm:$0xff]   ;;  %v3522_v36 = vld [vmem:[%s4004_s28 + $0x114] ss:$8 sps:$4 sm:$0xff]  }
  0x5d   : > { %3316 = vmatprep.subr.bf16.mxu1 %v3443_v37  ;;  %v3515_v29 = vld [vmem:[%s4286_s1 + $0x180] sm:$0xff]   ;;  %v3524_v37 = vld [vmem:[%s4004_s28 + $0x194] ss:$8 sps:$4 sm:$0xff]  }
  0x5e   : > { %687 = vmatmul.mubr.bf16.vlgmr.msra.gmra.mxu0 %v3436_v32  ;;  %v3518_v32 = vld [vmem:[%s4004_s28 + $0x104] ss:$8 sps:$4 sm:$0xff]   ;;  %v3519_v35 = vld [vmem:[%s4004_s28 + $0x180] ss:$8 sps:$4 sm:$0xff]  }
  0x5f   : > { %1106 = vmatmul.mubr.bf16.vlgmr.msra.gmra.mxu1 %v3439_v34  ;;  %3253 = vmatpush3.bf16.msra.mxu0 %v3444_v38  ;;  %v3516_v34 = vld [vmem:[%s4004_s28 + $0x100] ss:$8 sps:$4 sm:$0xff]   ;;  %v3526_v38 = vld [vmem:[%s4004_s28 + $0x110] ss:$8 sps:$4 sm:$0xff]  }
  0x60   : > { %3317 = vmatpush3.bf16.msra.mxu1 %v3445_v39  ;;  %694 = vmatprep.mubr.bf16.mxu0 %v3446_v40  ;;  %v3527_v39 = vld [vmem:[%s4004_s28 + $0x190] ss:$8 sps:$4 sm:$0xff]   ;;  %v3528_v40 = vld [vmem:[%s4004_s28 + $0x124] ss:$8 sps:$4 sm:$0xff]  }
  0x61   : > { %1113 = vmatprep.mubr.bf16.mxu1 %v3448_v41  ;;  %3254 = vmatprep.subr.bf16.mxu0 %v3452_v44  ;;  %v3530_v41 = vld [vmem:[%s4004_s28 + $0x1a4] ss:$8 sps:$4 sm:$0xff]   ;;  %v3534_v44 = vld [vmem:[%s4004_s28 + $0x134] ss:$8 sps:$4 sm:$0xff]  }
  0x62   : > { %3318 = vmatprep.subr.bf16.mxu1 %v3453_v45  ;;  %v3536_v45 = vld [vmem:[%s4004_s28 + $0x1b4] ss:$8 sps:$4 sm:$0xff]  }
  0x63   : > { %3255 = vmatpush3.bf16.msra.mxu0 %v3454_v46  ;;  %v3538_v46 = vld [vmem:[%s4004_s28 + $0x130] ss:$8 sps:$4 sm:$0xff]  }
  0x64   : > { %3319 = vmatpush3.bf16.msra.mxu1 %v3455_v47  ;;  %3256 = vmatprep.subr.bf16.mxu0 %v3462_v52  ;;  %v3539_v47 = vld [vmem:[%s4004_s28 + $0x1b0] ss:$8 sps:$4 sm:$0xff]   ;;  %v3546_v52 = vld [vmem:[%s4004_s28 + $0x154] ss:$8 sps:$4 sm:$0xff]  }
  0x65   : > { %3320 = vmatprep.subr.bf16.mxu1 %v3463_v53  ;;  %v3548_v53 = vld [vmem:[%s4004_s28 + $0x1d4] ss:$8 sps:$4 sm:$0xff]  }
  0x66   : > { %695 = vmatmul.mubr.bf16.gmra.mxu0 %v3450_v42  ;;  %v3532_v42 = vld [vmem:[%s4004_s28 + $0x120] ss:$8 sps:$4 sm:$0xff]  }
  0x67   : > { %1114 = vmatmul.mubr.bf16.gmra.mxu1 %v3451_v43  ;;  %702 = vmatprep.mubr.bf16.mxu0 %v3456_v48  ;;  %v3533_v43 = vld [vmem:[%s4004_s28 + $0x1a0] ss:$8 sps:$4 sm:$0xff]   ;;  %v3540_v48 = vld [vmem:[%s4004_s28 + $0x144] ss:$8 sps:$4 sm:$0xff]  }
  0x68   : > { %1121 = vmatprep.mubr.bf16.mxu1 %v3458_v49  ;;  %3257 = vmatpush3.bf16.msra.mxu0 %v3464_v54  ;;  %v3542_v49 = vld [vmem:[%s4004_s28 + $0x1c4] ss:$8 sps:$4 sm:$0xff]   ;;  %v3550_v54 = vld [vmem:[%s4004_s28 + $0x150] ss:$8 sps:$4 sm:$0xff]  }
  0x69   : > { %3321 = vmatpush3.bf16.msra.mxu1 %v3465_v55  ;;  %3258 = vmatprep.subr.bf16.mxu0 %v3472_v60  ;;  %v3551_v55 = vld [vmem:[%s4004_s28 + $0x1d0] ss:$8 sps:$4 sm:$0xff]   ;;  %v3558_v60 = vld [vmem:[%s4004_s28 + $0x174] ss:$8 sps:$4 sm:$0xff]  }
  0x6a   : > { %3322 = vmatprep.subr.bf16.mxu1 %v3473_v61  ;;  %v3560_v61 = vld [vmem:[%s4004_s28 + $0x1f4] ss:$8 sps:$4 sm:$0xff]  }
  0x6c   : > { %3259 = vmatpush3.bf16.msra.mxu0 %v3474_v62  ;;  %v3562_v62 = vld [vmem:[%s4004_s28 + $0x170] ss:$8 sps:$4 sm:$0xff]  }
  0x6d   : > { %3323 = vmatpush3.bf16.msra.mxu1 %v3475_v63  ;;  %3260 = vmatprep.subr.bf16.mxu0 %v3482_v3  ;;  %v3563_v63 = vld [vmem:[%s4004_s28 + $0x1f0] ss:$8 sps:$4 sm:$0xff]  }
  0x6e   : > { %703 = vmatmul.mubr.bf16.gmra.mxu0 %v3460_v50  ;;  %3324 = vmatprep.subr.bf16.mxu1 %v3483_v5  ;;  %v3544_v50 = vld [vmem:[%s4004_s28 + $0x140] ss:$8 sps:$4 sm:$0xff]  }
  0x6f   : > { %1122 = vmatmul.mubr.bf16.gmra.mxu1 %v3461_v51  ;;  %710 = vmatprep.mubr.bf16.mxu0 %v3466_v56  ;;  %v3545_v51 = vld [vmem:[%s4004_s28 + $0x1c0] ss:$8 sps:$4 sm:$0xff]   ;;  %v3552_v56 = vld [vmem:[%s4004_s28 + $0x164] ss:$8 sps:$4 sm:$0xff]  }
  0x70   : > { %1129 = vmatprep.mubr.bf16.mxu1 %v3468_v57  ;;  %3261 = vmatpush3.bf16.msra.mxu0 %v3484_v6  ;;  %v3554_v57 = vld [vmem:[%s4004_s28 + $0x1e4] ss:$8 sps:$4 sm:$0xff]  }
  0x71   : > { %3325 = vmatpush3.bf16.msra.mxu1 %v3485_v7  ;;  %3262 = vmatprep.subr.bf16.mxu0 %v3492_v10 }
  0x72   : > { %3326 = vmatprep.subr.bf16.mxu1 %v3493_v11 }
  0x74   : > { %3263 = vmatpush3.bf16.msra.mxu0 %v3494_v13 }
  0x75   : > { %3327 = vmatpush3.bf16.msra.mxu1 %v3495_v14  ;;  %3264 = vmatprep.subr.bf16.mxu0 %v3502_v18 }
  0x76   : > { %711 = vmatmul.mubr.bf16.gmra.mxu0 %v3470_v58  ;;  %3328 = vmatprep.subr.bf16.mxu1 %v3503_v19  ;;  %v3556_v58 = vld [vmem:[%s4004_s28 + $0x160] ss:$8 sps:$4 sm:$0xff]  }
  0x77   : > { %1130 = vmatmul.mubr.bf16.gmra.mxu1 %v3471_v59  ;;  %718 = vmatprep.mubr.bf16.mxu0 %v3476_v0  ;;  %v3557_v59 = vld [vmem:[%s4004_s28 + $0x1e0] ss:$8 sps:$4 sm:$0xff]   ;;  %s2476_s28 = sshll.u32 %s407_s3, 8  ;;  %s2932_s3 = sshll.u32 (%p3761_p5), %s2466_s12, 6 }
  0x78   : > { %1137 = vmatprep.mubr.bf16.mxu1 %v3478_v1  ;;  %3265 = vmatpush3.bf16.msra.mxu0 %v3504_v20  ;;  %s4168_s9 = scalar_lea.vmem [#allocation3], %s2476_s28  ;;  %s4212_s17 = scalar_lea.vmem (%p3761_p5), %s4287_s2, %s2932_s3 }
  0x79   : > { %3329 = vmatpush3.bf16.msra.mxu1 %v3505_v21  ;;  %3266 = vmatprep.subr.bf16.mxu0 %v3512_v26 }
  0x7a   : > { %3330 = vmatprep.subr.bf16.mxu1 %v3513_v27 }
  0x7c   : > { %3267 = vmatpush3.bf16.msra.mxu0 %v3514_v28 }
  0x7d   : > { %3331 = vmatpush3.bf16.msra.mxu1 %v3515_v29 }
  0x7e   : > { %719 = vmatmul.mubr.bf16.gmra.mxu0 %v3480_v2 }
  0x7f   : > { %1138 = vmatmul.mubr.bf16.gmra.mxu1 %v3481_v4  ;;  %726 = vmatprep.mubr.bf16.mxu0 %v3486_v8 }
  0x80   : > { %1145 = vmatprep.mubr.bf16.mxu1 %v3488_v9 }
  0x86   : > { %727 = vmatmul.mubr.bf16.gmra.mxu0 %v3490_v12 }
  0x87   : > { %1146 = vmatmul.mubr.bf16.gmra.mxu1 %v3491_v15  ;;  %734 = vmatprep.mubr.bf16.mxu0 %v3496_v16 }
  0x88   : > { %1153 = vmatprep.mubr.bf16.mxu1 %v3498_v17 }
  0x8e   : > { %735 = vmatmul.mubr.bf16.gmra.mxu0 %v3500_v22 }
  0x8f   : > { %1154 = vmatmul.mubr.bf16.gmra.mxu1 %v3501_v23  ;;  %742 = vmatprep.mubr.bf16.mxu0 %v3506_v24 }
  0x90   : > { %1161 = vmatprep.mubr.bf16.mxu1 %v3508_v25 }
  0x96   : > { %743 = vmatmul.mubr.bf16.gmra.mxu0 %v3510_v30 }
  0x97   : > { %1162 = vmatmul.mubr.bf16.gmra.mxu1 %v3511_v31  ;;  %1525 = vmatprep.mubr.bf16.mxu0 %v3518_v32 }
  0x98   : > { %1945 = vmatprep.mubr.bf16.mxu1 %v3521_v33 }
  0x9e   : > { %1526 = vmatmul.mubr.bf16.vlgmr.msra.gmra.mxu0 %v3516_v34 }
  0x9f   : > { %1946 = vmatmul.mubr.bf16.vlgmr.msra.gmra.mxu1 %v3519_v35  ;;  %1533 = vmatprep.mubr.bf16.mxu0 %v3522_v36 }
  0xa0   : > { %1953 = vmatprep.mubr.bf16.mxu1 %v3524_v37 }
  0xa6   : > { %1534 = vmatmul.mubr.bf16.gmra.mxu0 %v3526_v38 }
  0xa7   : > { %1954 = vmatmul.mubr.bf16.gmra.mxu1 %v3527_v39  ;;  %1541 = vmatprep.mubr.bf16.mxu0 %v3528_v40 }
  0xa8   : > { %1961 = vmatprep.mubr.bf16.mxu1 %v3530_v41 }
  0xae   : > { %1542 = vmatmul.mubr.bf16.gmra.mxu0 %v3532_v42 }
  0xaf   : > { %1962 = vmatmul.mubr.bf16.gmra.mxu1 %v3533_v43  ;;  %1549 = vmatprep.mubr.bf16.mxu0 %v3534_v44 }
  0xb0   : > { %1969 = vmatprep.mubr.bf16.mxu1 %v3536_v45 }
  0xb6   : > { %1550 = vmatmul.mubr.bf16.gmra.mxu0 %v3538_v46 }
  0xb7   : > { %1970 = vmatmul.mubr.bf16.gmra.mxu1 %v3539_v47  ;;  %1557 = vmatprep.mubr.bf16.mxu0 %v3540_v48 }
  0xb8   : > { %1977 = vmatprep.mubr.bf16.mxu1 %v3542_v49 }
  0xbe   : > { %1558 = vmatmul.mubr.bf16.gmra.mxu0 %v3544_v50 }
  0xbf   : > { %1978 = vmatmul.mubr.bf16.gmra.mxu1 %v3545_v51  ;;  %1565 = vmatprep.mubr.bf16.mxu0 %v3546_v52 }
  0xc0   : > { %1985 = vmatprep.mubr.bf16.mxu1 %v3548_v53 }
  0xc6   : > { %1566 = vmatmul.mubr.bf16.gmra.mxu0 %v3550_v54 }
  0xc7   : > { %1986 = vmatmul.mubr.bf16.gmra.mxu1 %v3551_v55  ;;  %1573 = vmatprep.mubr.bf16.mxu0 %v3552_v56 }
  0xc8   : > { %1993 = vmatprep.mubr.bf16.mxu1 %v3554_v57 }
  0xce   : > { %1574 = vmatmul.mubr.bf16.gmra.mxu0 %v3556_v58 }
  0xcf   : > { %1994 = vmatmul.mubr.bf16.gmra.mxu1 %v3557_v59  ;;  %1581 = vmatprep.mubr.bf16.mxu0 %v3558_v60 }
  0xd0   : > { %2001 = vmatprep.mubr.bf16.mxu1 %v3560_v61 }
  0xd6   : > { %1582 = vmatmul.mubr.bf16.gmra.mxu0 %v3562_v62 }
  0xd7   : > { %2002 = vmatmul.mubr.bf16.gmra.mxu1 %v3563_v63 }
 0x11e   : > { %v3140_v0 = vpop.f32.mrf.mxu0 }
 0x11f   : > { %v3204_v1 = vpop.f32.mrf.mxu1 }
 0x120   : > { %v3141_v2 = vpop.f32.mrf.mxu0 }
 0x121   : > { %v3142_v3 = vadd.f32 %v3141_v2, %v3140_v0  ;;  %v3205_v4 = vpop.f32.mrf.mxu1 }
 0x122   : > { %v3206_v5 = vadd.f32 %v3205_v4, %v3204_v1  ;;  %v3143_v6 = vpop.f32.mrf.mxu0 }
 0x123   : > { %v3207_v7 = vpop.f32.mrf.mxu1  ;;  %3564 = vtanh.f32 %v3142_v3 }
 0x124   : > { %v3144_v8 = vpop.f32.mrf.mxu0  ;;  %3566 = vtanh.f32 %v3206_v5 }
 0x125   : > { %v3145_v9 = vadd.f32 %v3144_v8, %v3143_v6  ;;  %v3208_v10 = vpop.f32.mrf.mxu1 }
 0x126   : > { %v3209_v11 = vadd.f32 %v3208_v10, %v3207_v7  ;;  %v3146_v12 = vpop.f32.mrf.mxu0 }
 0x127   : > { %3568 = vtanh.f32 %v3145_v9  ;;  %v3210_v13 = vpop.f32.mrf.mxu1 }
 0x128   : > { %3570 = vtanh.f32 %v3209_v11  ;;  %v3147_v14 = vpop.f32.mrf.mxu0 }
 0x129   : > { %v3148_v15 = vadd.f32 %v3147_v14, %v3146_v12  ;;  %v3211_v16 = vpop.f32.mrf.mxu1 }
 0x12a   : > { %v3212_v17 = vadd.f32 %v3211_v16, %v3210_v13  ;;  %v3149_v18 = vpop.f32.mrf.mxu0 }
 0x12b   : > { %v3213_v19 = vpop.f32.mrf.mxu1  ;;  %3572 = vtanh.f32 %v3148_v15 }
 0x12c   : > { %v3150_v20 = vpop.f32.mrf.mxu0  ;;  %3574 = vtanh.f32 %v3212_v17 }
 0x12d   : > { %v3151_v21 = vadd.f32 %v3150_v20, %v3149_v18  ;;  %v3214_v22 = vpop.f32.mrf.mxu1 }
 0x12e   : > { %v3215_v23 = vadd.f32 %v3214_v22, %v3213_v19  ;;  %v3152_v24 = vpop.f32.mrf.mxu0 }
 0x12f   : > { %3576 = vtanh.f32 %v3151_v21  ;;  %v3216_v25 = vpop.f32.mrf.mxu1 }
 0x130   : > { %3578 = vtanh.f32 %v3215_v23  ;;  %v3153_v26 = vpop.f32.mrf.mxu0  ;;  %v3565_v29 = vpop.eup %3564 }
 0x131   : > { %v3154_v27 = vadd.f32 %v3153_v26, %v3152_v24  ;;  %v3217_v28 = vpop.f32.mrf.mxu1  ;;  %v3567_v32 = vpop.eup %3566 }
 0x132   : > { %v3218_v30 = vadd.f32 %v3217_v28, %v3216_v25  ;;  %v3155_v31 = vpop.f32.mrf.mxu0 }
 0x133   : > { %v3219_v33 = vpop.f32.mrf.mxu1  ;;  %3580 = vtanh.f32 %v3154_v27 }
 0x134   : > { %v3569_v34 = vpop.eup %3568  ;;  %v3156_v35 = vpop.f32.mrf.mxu0  ;;  %3582 = vtanh.f32 %v3218_v30 }
 0x135   : > { %v3571_v36 = vpop.eup %3570  ;;  %v2936_v37 = vpack.c.bf16 %v3569_v34, %v3565_v29  ;;  %v3157_v38 = vadd.f32 %v3156_v35, %v3155_v31  ;;  %v3220_v39 = vpop.f32.mrf.mxu1 }
 0x136   : > { %v2976_v40 = vpack.c.bf16 %v3571_v36, %v3567_v32  ;;  %v3221_v41 = vadd.f32 %v3220_v39, %v3219_v33  ;;  %v3158_v42 = vpop.f32.mrf.mxu0 }
 0x137   : > { %2937 = vst [vmem:[%s4168_s9] sm:$0xff] %v2936_v37   ;;  %3584 = vtanh.f32 %v3157_v38  ;;  %v3222_v43 = vpop.f32.mrf.mxu1 }
 0x138   : > { %3100 = vst [vmem:[%s4168_s9 + $0x40] sm:$0xff] %v2976_v40   ;;  %3586 = vtanh.f32 %v3221_v41  ;;  %v3159_v44 = vpop.f32.mrf.mxu0  ;;  %v3573_v47 = vpop.eup %3572 }
 0x139   : > { %v3160_v45 = vadd.f32 %v3159_v44, %v3158_v42  ;;  %v3223_v46 = vpop.f32.mrf.mxu1  ;;  %v3575_v50 = vpop.eup %3574 }
 0x13a   : > { %v3224_v48 = vadd.f32 %v3223_v46, %v3222_v43  ;;  %v3161_v49 = vpop.f32.mrf.mxu0 }
 0x13b   : > { %v3225_v51 = vpop.f32.mrf.mxu1  ;;  %3588 = vtanh.f32 %v3160_v45 }
 0x13c   : > { %v3577_v52 = vpop.eup %3576  ;;  %v3162_v53 = vpop.f32.mrf.mxu0  ;;  %3590 = vtanh.f32 %v3224_v48 }
 0x13d   : > { %v3579_v54 = vpop.eup %3578  ;;  %v2941_v55 = vpack.c.bf16 %v3577_v52, %v3573_v47  ;;  %v3163_v56 = vadd.f32 %v3162_v53, %v3161_v49  ;;  %v3226_v57 = vpop.f32.mrf.mxu1 }
 0x13e   : > { %v2981_v58 = vpack.c.bf16 %v3579_v54, %v3575_v50  ;;  %v3227_v59 = vadd.f32 %v3226_v57, %v3225_v51  ;;  %v3164_v60 = vpop.f32.mrf.mxu0 }
 0x13f   : > { %3093 = vst [vmem:[%s4168_s9 + $0x8] sm:$0xff] %v2941_v55   ;;  %3592 = vtanh.f32 %v3163_v56  ;;  %v3228_v61 = vpop.f32.mrf.mxu1 }
 0x140   : > { %3101 = vst [vmem:[%s4168_s9 + $0x48] sm:$0xff] %v2981_v58   ;;  %3594 = vtanh.f32 %v3227_v59  ;;  %v3165_v62 = vpop.f32.mrf.mxu0  ;;  %v3581_v1 = vpop.eup %3580 }
 0x141   : > { %v3166_v63 = vadd.f32 %v3165_v62, %v3164_v60  ;;  %v3229_v0 = vpop.f32.mrf.mxu1  ;;  %v3583_v4 = vpop.eup %3582 }
 0x142   : > { %v3230_v2 = vadd.f32 %v3229_v0, %v3228_v61  ;;  %v3167_v3 = vpop.f32.mrf.mxu0 }
 0x143   : > { %v3231_v5 = vpop.f32.mrf.mxu1  ;;  %3596 = vtanh.f32 %v3166_v63 }
 0x144   : > { %v3585_v6 = vpop.eup %3584  ;;  %v3168_v7 = vpop.f32.mrf.mxu0  ;;  %3598 = vtanh.f32 %v3230_v2 }
 0x145   : > { %v3587_v8 = vpop.eup %3586  ;;  %v2946_v9 = vpack.c.bf16 %v3585_v6, %v3581_v1  ;;  %v3169_v10 = vadd.f32 %v3168_v7, %v3167_v3  ;;  %v3232_v11 = vpop.f32.mrf.mxu1 }
 0x146   : > { %v2986_v12 = vpack.c.bf16 %v3587_v8, %v3583_v4  ;;  %v3233_v13 = vadd.f32 %v3232_v11, %v3231_v5  ;;  %v3170_v14 = vpop.f32.mrf.mxu0 }
 0x147   : > { %3094 = vst [vmem:[%s4168_s9 + $0x10] sm:$0xff] %v2946_v9   ;;  %3600 = vtanh.f32 %v3169_v10  ;;  %v3234_v15 = vpop.f32.mrf.mxu1 }
 0x148   : > { %3102 = vst [vmem:[%s4168_s9 + $0x50] sm:$0xff] %v2986_v12   ;;  %3602 = vtanh.f32 %v3233_v13  ;;  %v3171_v16 = vpop.f32.mrf.mxu0  ;;  %v3589_v19 = vpop.eup %3588 }
 0x149   : > { %v3172_v17 = vadd.f32 %v3171_v16, %v3170_v14  ;;  %v3235_v18 = vpop.f32.mrf.mxu1  ;;  %v3591_v22 = vpop.eup %3590 }
 0x14a   : > { %v3236_v20 = vadd.f32 %v3235_v18, %v3234_v15  ;;  %v3173_v21 = vpop.f32.mrf.mxu0 }
 0x14b   : > { %v3237_v23 = vpop.f32.mrf.mxu1  ;;  %3604 = vtanh.f32 %v3172_v17 }
 0x14c   : > { %v3593_v24 = vpop.eup %3592  ;;  %v3174_v25 = vpop.f32.mrf.mxu0  ;;  %3606 = vtanh.f32 %v3236_v20 }
 0x14d   : > { %v3595_v26 = vpop.eup %3594  ;;  %v2951_v27 = vpack.c.bf16 %v3593_v24, %v3589_v19  ;;  %v3175_v28 = vadd.f32 %v3174_v25, %v3173_v21  ;;  %v3238_v29 = vpop.f32.mrf.mxu1 }
 0x14e   : > { %v2991_v30 = vpack.c.bf16 %v3595_v26, %v3591_v22  ;;  %v3239_v31 = vadd.f32 %v3238_v29, %v3237_v23  ;;  %v3176_v32 = vpop.f32.mrf.mxu0 }
 0x14f   : > { %3095 = vst [vmem:[%s4168_s9 + $0x18] sm:$0xff] %v2951_v27   ;;  %3608 = vtanh.f32 %v3175_v28  ;;  %v3240_v33 = vpop.f32.mrf.mxu1 }
 0x150   : > { %3103 = vst [vmem:[%s4168_s9 + $0x58] sm:$0xff] %v2991_v30   ;;  %3610 = vtanh.f32 %v3239_v31  ;;  %v3177_v34 = vpop.f32.mrf.mxu0  ;;  %v3597_v37 = vpop.eup %3596 }
 0x151   : > { %v3178_v35 = vadd.f32 %v3177_v34, %v3176_v32  ;;  %v3241_v36 = vpop.f32.mrf.mxu1  ;;  %v3599_v40 = vpop.eup %3598 }
 0x152   : > { %v3242_v38 = vadd.f32 %v3241_v36, %v3240_v33  ;;  %v3179_v39 = vpop.f32.mrf.mxu0 }
 0x153   : > { %v3243_v41 = vpop.f32.mrf.mxu1  ;;  %3612 = vtanh.f32 %v3178_v35 }
 0x154   : > { %v3601_v42 = vpop.eup %3600  ;;  %v3180_v43 = vpop.f32.mrf.mxu0  ;;  %3614 = vtanh.f32 %v3242_v38 }
 0x155   : > { %v3603_v44 = vpop.eup %3602  ;;  %v2956_v45 = vpack.c.bf16 %v3601_v42, %v3597_v37  ;;  %v3181_v46 = vadd.f32 %v3180_v43, %v3179_v39  ;;  %v3244_v47 = vpop.f32.mrf.mxu1 }
 0x156   : > { %v2996_v48 = vpack.c.bf16 %v3603_v44, %v3599_v40  ;;  %v3245_v49 = vadd.f32 %v3244_v47, %v3243_v41  ;;  %v3182_v50 = vpop.f32.mrf.mxu0 }
 0x157   : > { %3096 = vst [vmem:[%s4168_s9 + $0x20] sm:$0xff] %v2956_v45   ;;  %3616 = vtanh.f32 %v3181_v46  ;;  %v3246_v51 = vpop.f32.mrf.mxu1 }
 0x158   : > { %3104 = vst [vmem:[%s4168_s9 + $0x60] sm:$0xff] %v2996_v48   ;;  %3618 = vtanh.f32 %v3245_v49  ;;  %v3183_v52 = vpop.f32.mrf.mxu0  ;;  %v3605_v55 = vpop.eup %3604 }
 0x159   : > { %v3184_v53 = vadd.f32 %v3183_v52, %v3182_v50  ;;  %v3247_v54 = vpop.f32.mrf.mxu1  ;;  %v3607_v58 = vpop.eup %3606 }
 0x15a   : > { %v3248_v56 = vadd.f32 %v3247_v54, %v3246_v51  ;;  %v3185_v57 = vpop.f32.mrf.mxu0 }
 0x15b   : > { %v3249_v59 = vpop.f32.mrf.mxu1  ;;  %3620 = vtanh.f32 %v3184_v53 }
 0x15c   : > { %v3609_v60 = vpop.eup %3608  ;;  %v3186_v61 = vpop.f32.mrf.mxu0  ;;  %3622 = vtanh.f32 %v3248_v56 }
 0x15d   : > { %v3611_v62 = vpop.eup %3610  ;;  %v2961_v63 = vpack.c.bf16 %v3609_v60, %v3605_v55  ;;  %v3187_v0 = vadd.f32 %v3186_v61, %v3185_v57  ;;  %v3250_v1 = vpop.f32.mrf.mxu1 }
 0x15e   : > { %v3001_v2 = vpack.c.bf16 %v3611_v62, %v3607_v58  ;;  %v3251_v3 = vadd.f32 %v3250_v1, %v3249_v59  ;;  %v3268_v4 = vpop.f32.mrf.mxu0 }
 0x15f   : > { %3097 = vst [vmem:[%s4168_s9 + $0x28] sm:$0xff] %v2961_v63   ;;  %3624 = vtanh.f32 %v3187_v0  ;;  %v3332_v5 = vpop.f32.mrf.mxu1 }
 0x160   : > { %3105 = vst [vmem:[%s4168_s9 + $0x68] sm:$0xff] %v3001_v2   ;;  %3626 = vtanh.f32 %v3251_v3  ;;  %v3269_v6 = vpop.f32.mrf.mxu0  ;;  %v3613_v9 = vpop.eup %3612 }
 0x161   : > { %v3270_v7 = vadd.f32 %v3269_v6, %v3268_v4  ;;  %v3333_v8 = vpop.f32.mrf.mxu1  ;;  %v3615_v12 = vpop.eup %3614 }
 0x162   : > { %v3334_v10 = vadd.f32 %v3333_v8, %v3332_v5  ;;  %v3271_v11 = vpop.f32.mrf.mxu0 }
 0x163   : > { %v3335_v13 = vpop.f32.mrf.mxu1  ;;  %3628 = vtanh.f32 %v3270_v7 }
 0x164   : > { %v3617_v14 = vpop.eup %3616  ;;  %v3272_v15 = vpop.f32.mrf.mxu0  ;;  %3630 = vtanh.f32 %v3334_v10 }
 0x165   : > { %v3619_v16 = vpop.eup %3618  ;;  %v2966_v17 = vpack.c.bf16 %v3617_v14, %v3613_v9  ;;  %v3273_v18 = vadd.f32 %v3272_v15, %v3271_v11  ;;  %v3336_v19 = vpop.f32.mrf.mxu1 }
 0x166   : > { %v3006_v20 = vpack.c.bf16 %v3619_v16, %v3615_v12  ;;  %v3337_v21 = vadd.f32 %v3336_v19, %v3335_v13  ;;  %v3274_v22 = vpop.f32.mrf.mxu0 }
 0x167   : > { %3098 = vst [vmem:[%s4168_s9 + $0x30] sm:$0xff] %v2966_v17   ;;  %3632 = vtanh.f32 %v3273_v18  ;;  %v3338_v23 = vpop.f32.mrf.mxu1 }
 0x168   : > { %3106 = vst [vmem:[%s4168_s9 + $0x70] sm:$0xff] %v3006_v20   ;;  %3634 = vtanh.f32 %v3337_v21  ;;  %v3275_v24 = vpop.f32.mrf.mxu0  ;;  %v3621_v27 = vpop.eup %3620 }
 0x169   : > { %v3276_v25 = vadd.f32 %v3275_v24, %v3274_v22  ;;  %v3339_v26 = vpop.f32.mrf.mxu1  ;;  %v3623_v30 = vpop.eup %3622 }
 0x16a   : > { %v3340_v28 = vadd.f32 %v3339_v26, %v3338_v23  ;;  %v3277_v29 = vpop.f32.mrf.mxu0 }
 0x16b   : > { %v3341_v31 = vpop.f32.mrf.mxu1  ;;  %3636 = vtanh.f32 %v3276_v25 }
 0x16c   : > { %v3625_v32 = vpop.eup %3624  ;;  %v3278_v33 = vpop.f32.mrf.mxu0  ;;  %3638 = vtanh.f32 %v3340_v28 }
 0x16d   : > { %v3627_v34 = vpop.eup %3626  ;;  %v2971_v35 = vpack.c.bf16 %v3625_v32, %v3621_v27  ;;  %v3279_v36 = vadd.f32 %v3278_v33, %v3277_v29  ;;  %v3342_v37 = vpop.f32.mrf.mxu1 }
 0x16e   : > { %v3011_v38 = vpack.c.bf16 %v3627_v34, %v3623_v30  ;;  %v3343_v39 = vadd.f32 %v3342_v37, %v3341_v31  ;;  %v3280_v40 = vpop.f32.mrf.mxu0 }
 0x16f   : > { %3099 = vst [vmem:[%s4168_s9 + $0x38] sm:$0xff] %v2971_v35   ;;  %3640 = vtanh.f32 %v3279_v36  ;;  %v3344_v41 = vpop.f32.mrf.mxu1 }
 0x170   : > { %3107 = vst [vmem:[%s4168_s9 + $0x78] sm:$0xff] %v3011_v38   ;;  %3642 = vtanh.f32 %v3343_v39  ;;  %v3281_v42 = vpop.f32.mrf.mxu0  ;;  %v3629_v45 = vpop.eup %3628 }
 0x171   : > { %v3282_v43 = vadd.f32 %v3281_v42, %v3280_v40  ;;  %v3345_v44 = vpop.f32.mrf.mxu1  ;;  %v3631_v48 = vpop.eup %3630 }
 0x172   : > { %v3346_v46 = vadd.f32 %v3345_v44, %v3344_v41  ;;  %v3283_v47 = vpop.f32.mrf.mxu0 }
 0x173   : > { %v3347_v49 = vpop.f32.mrf.mxu1  ;;  %3644 = vtanh.f32 %v3282_v43 }
 0x174   : > { %v3633_v50 = vpop.eup %3632  ;;  %v3284_v51 = vpop.f32.mrf.mxu0  ;;  %3646 = vtanh.f32 %v3346_v46 }
 0x175   : > { %v3635_v52 = vpop.eup %3634  ;;  %v3016_v53 = vpack.c.bf16 %v3633_v50, %v3629_v45  ;;  %v3285_v54 = vadd.f32 %v3284_v51, %v3283_v47  ;;  %v3348_v55 = vpop.f32.mrf.mxu1 }
 0x176   : > { %v3056_v56 = vpack.c.bf16 %v3635_v52, %v3631_v48  ;;  %v3349_v57 = vadd.f32 %v3348_v55, %v3347_v49  ;;  %v3286_v58 = vpop.f32.mrf.mxu0 }
 0x177   : > { %3108 = vst [vmem:[%s4168_s9 + $0x80] sm:$0xff] %v3016_v53   ;;  %3648 = vtanh.f32 %v3285_v54  ;;  %v3350_v59 = vpop.f32.mrf.mxu1 }
 0x178   : > { %3116 = vst [vmem:[%s4168_s9 + $0xc0] sm:$0xff] %v3056_v56   ;;  %3650 = vtanh.f32 %v3349_v57  ;;  %v3287_v60 = vpop.f32.mrf.mxu0  ;;  %v3637_v63 = vpop.eup %3636 }
 0x179   : > { %v3288_v61 = vadd.f32 %v3287_v60, %v3286_v58  ;;  %v3351_v62 = vpop.f32.mrf.mxu1  ;;  %v3639_v2 = vpop.eup %3638 }
 0x17a   : > { %v3352_v0 = vadd.f32 %v3351_v62, %v3350_v59  ;;  %v3289_v1 = vpop.f32.mrf.mxu0 }
 0x17b   : > { %v3353_v3 = vpop.f32.mrf.mxu1  ;;  %3652 = vtanh.f32 %v3288_v61 }
 0x17c   : > { %v3641_v4 = vpop.eup %3640  ;;  %v3290_v5 = vpop.f32.mrf.mxu0  ;;  %3654 = vtanh.f32 %v3352_v0 }
 0x17d   : > { %v3643_v6 = vpop.eup %3642  ;;  %v3021_v7 = vpack.c.bf16 %v3641_v4, %v3637_v63  ;;  %v3291_v8 = vadd.f32 %v3290_v5, %v3289_v1  ;;  %v3354_v9 = vpop.f32.mrf.mxu1 }
 0x17e   : > { %v3061_v10 = vpack.c.bf16 %v3643_v6, %v3639_v2  ;;  %v3355_v11 = vadd.f32 %v3354_v9, %v3353_v3  ;;  %v3292_v12 = vpop.f32.mrf.mxu0 }
 0x17f   : > { %3109 = vst [vmem:[%s4168_s9 + $0x88] sm:$0xff] %v3021_v7   ;;  %3656 = vtanh.f32 %v3291_v8  ;;  %v3356_v13 = vpop.f32.mrf.mxu1 }
 0x180   : > { %3117 = vst [vmem:[%s4168_s9 + $0xc8] sm:$0xff] %v3061_v10   ;;  %3658 = vtanh.f32 %v3355_v11  ;;  %v3293_v14 = vpop.f32.mrf.mxu0  ;;  %v3645_v17 = vpop.eup %3644 }
 0x181   : > { %v3294_v15 = vadd.f32 %v3293_v14, %v3292_v12  ;;  %v3357_v16 = vpop.f32.mrf.mxu1  ;;  %v3647_v20 = vpop.eup %3646 }
 0x182   : > { %v3358_v18 = vadd.f32 %v3357_v16, %v3356_v13  ;;  %v3295_v19 = vpop.f32.mrf.mxu0 }
 0x183   : > { %v3359_v21 = vpop.f32.mrf.mxu1  ;;  %3660 = vtanh.f32 %v3294_v15 }
 0x184   : > { %v3649_v22 = vpop.eup %3648  ;;  %v3296_v23 = vpop.f32.mrf.mxu0  ;;  %3662 = vtanh.f32 %v3358_v18 }
 0x185   : > { %v3651_v24 = vpop.eup %3650  ;;  %v3026_v25 = vpack.c.bf16 %v3649_v22, %v3645_v17  ;;  %v3297_v26 = vadd.f32 %v3296_v23, %v3295_v19  ;;  %v3360_v27 = vpop.f32.mrf.mxu1 }
 0x186   : > { %v3066_v28 = vpack.c.bf16 %v3651_v24, %v3647_v20  ;;  %v3361_v29 = vadd.f32 %v3360_v27, %v3359_v21  ;;  %v3298_v30 = vpop.f32.mrf.mxu0 }
 0x187   : > { %3110 = vst [vmem:[%s4168_s9 + $0x90] sm:$0xff] %v3026_v25   ;;  %3664 = vtanh.f32 %v3297_v26  ;;  %v3362_v31 = vpop.f32.mrf.mxu1 }
 0x188   : > { %3118 = vst [vmem:[%s4168_s9 + $0xd0] sm:$0xff] %v3066_v28   ;;  %3666 = vtanh.f32 %v3361_v29  ;;  %v3299_v32 = vpop.f32.mrf.mxu0  ;;  %v3653_v35 = vpop.eup %3652 }
 0x189   : > { %v3300_v33 = vadd.f32 %v3299_v32, %v3298_v30  ;;  %v3363_v34 = vpop.f32.mrf.mxu1  ;;  %v3655_v38 = vpop.eup %3654  ;;  %v2133_v32 = vld [vmem:[%s4168_s9] sm:$0xff] (%p3761_p5)  }
 0x18a   : > { %v3364_v36 = vadd.f32 %v3363_v34, %v3362_v31  ;;  %v3301_v37 = vpop.f32.mrf.mxu0  ;;  %v2141_v34 = vld [vmem:[%s4168_s9 + $0x10] sm:$0xff] (%p3761_p5)   ;;  %2134 = vst [vmem:[%s4212_s17] sm:$0xff] (%p3761_p5), %v2133_v32  }
 0x18b   : > { %v3365_v39 = vpop.f32.mrf.mxu1  ;;  %3668 = vtanh.f32 %v3300_v33  ;;  %v2137_v33 = vld [vmem:[%s4168_s9 + $0x8] sm:$0xff] (%p3761_p5)   ;;  %2142 = vst [vmem:[%s4212_s17 + $0x10] sm:$0xff] (%p3761_p5), %v2141_v34  }
 0x18c   : > { %v3657_v40 = vpop.eup %3656  ;;  %v3302_v41 = vpop.f32.mrf.mxu0  ;;  %3670 = vtanh.f32 %v3364_v36  ;;  %v2149_v36 = vld [vmem:[%s4168_s9 + $0x20] sm:$0xff] (%p3761_p5)   ;;  %2138 = vst [vmem:[%s4212_s17 + $0x8] sm:$0xff] (%p3761_p5), %v2137_v33  }
 0x18d   : > { %v3659_v42 = vpop.eup %3658  ;;  %v3031_v43 = vpack.c.bf16 %v3657_v40, %v3653_v35  ;;  %v3303_v44 = vadd.f32 %v3302_v41, %v3301_v37  ;;  %v3366_v45 = vpop.f32.mrf.mxu1  ;;  %v2145_v35 = vld [vmem:[%s4168_s9 + $0x18] sm:$0xff] (%p3761_p5)   ;;  %v2153_v37 = vld [vmem:[%s4168_s9 + $0x28] sm:$0xff] (%p3761_p5)   ;;  %2150 = vst [vmem:[%s4212_s17 + $0x20] sm:$0xff] (%p3761_p5), %v2149_v36   ;;  %v2165_v40 = vld [vmem:[%s4168_s9 + $0x40] sm:$0xff] (%p3761_p5)  }
 0x18e   : > { %v3071_v46 = vpack.c.bf16 %v3659_v42, %v3655_v38  ;;  %v3367_v47 = vadd.f32 %v3366_v45, %v3365_v39  ;;  %v3304_v48 = vpop.f32.mrf.mxu0  ;;  %2146 = vst [vmem:[%s4212_s17 + $0x18] sm:$0xff] (%p3761_p5), %v2145_v35   ;;  %2154 = vst [vmem:[%s4212_s17 + $0x28] sm:$0xff] (%p3761_p5), %v2153_v37   ;;  %v2157_v38 = vld [vmem:[%s4168_s9 + $0x30] sm:$0xff] (%p3761_p5)   ;;  %v2161_v39 = vld [vmem:[%s4168_s9 + $0x38] sm:$0xff] (%p3761_p5)  }
 0x18f   : > { %3111 = vst [vmem:[%s4168_s9 + $0x98] sm:$0xff] %v3031_v43   ;;  %3672 = vtanh.f32 %v3303_v44  ;;  %v3368_v49 = vpop.f32.mrf.mxu1  ;;  %2158 = vst [vmem:[%s4212_s17 + $0x30] sm:$0xff] (%p3761_p5), %v2157_v38   ;;  %v2169_v41 = vld [vmem:[%s4168_s9 + $0x48] sm:$0xff] (%p3761_p5)   ;;  %v2173_v42 = vld [vmem:[%s4168_s9 + $0x50] sm:$0xff] (%p3761_p5)  }
 0x190   : > { %3119 = vst [vmem:[%s4168_s9 + $0xd8] sm:$0xff] %v3071_v46   ;;  %3674 = vtanh.f32 %v3367_v47  ;;  %v3305_v50 = vpop.f32.mrf.mxu0  ;;  %v3661_v53 = vpop.eup %3660  ;;  %2162 = vst [vmem:[%s4212_s17 + $0x38] sm:$0xff] (%p3761_p5), %v2161_v39   ;;  %v2177_v43 = vld [vmem:[%s4168_s9 + $0x58] sm:$0xff] (%p3761_p5)   ;;  %v2181_v44 = vld [vmem:[%s4168_s9 + $0x60] sm:$0xff] (%p3761_p5)  }
 0x191   : > { %v3306_v51 = vadd.f32 %v3305_v50, %v3304_v48  ;;  %v3369_v52 = vpop.f32.mrf.mxu1  ;;  %v3663_v56 = vpop.eup %3662  ;;  %2166 = vst [vmem:[%s4212_s17 + $0x100] sm:$0xff] (%p3761_p5), %v2165_v40   ;;  %2170 = vst [vmem:[%s4212_s17 + $0x108] sm:$0xff] (%p3761_p5), %v2169_v41   ;;  %v2185_v45 = vld [vmem:[%s4168_s9 + $0x68] sm:$0xff] (%p3761_p5)   ;;  %v2189_v46 = vld [vmem:[%s4168_s9 + $0x70] sm:$0xff] (%p3761_p5)  }
 0x192   : > { %v3370_v54 = vadd.f32 %v3369_v52, %v3368_v49  ;;  %v3307_v55 = vpop.f32.mrf.mxu0  ;;  %2174 = vst [vmem:[%s4212_s17 + $0x110] sm:$0xff] (%p3761_p5), %v2173_v42   ;;  %2178 = vst [vmem:[%s4212_s17 + $0x118] sm:$0xff] (%p3761_p5), %v2177_v43   ;;  %v2193_v47 = vld [vmem:[%s4168_s9 + $0x78] sm:$0xff] (%p3761_p5)   ;;  %v2197_v48 = vld [vmem:[%s4168_s9 + $0x80] sm:$0xff] (%p3761_p5)  }
 0x193   : > { %v3371_v57 = vpop.f32.mrf.mxu1  ;;  %3676 = vtanh.f32 %v3306_v51  ;;  %2182 = vst [vmem:[%s4212_s17 + $0x120] sm:$0xff] (%p3761_p5), %v2181_v44   ;;  %2186 = vst [vmem:[%s4212_s17 + $0x128] sm:$0xff] (%p3761_p5), %v2185_v45   ;;  %v2201_v49 = vld [vmem:[%s4168_s9 + $0x88] sm:$0xff] (%p3761_p5)   ;;  %v2205_v50 = vld [vmem:[%s4168_s9 + $0x90] sm:$0xff] (%p3761_p5)  }
 0x194   : > { %v3665_v58 = vpop.eup %3664  ;;  %v3308_v59 = vpop.f32.mrf.mxu0  ;;  %3678 = vtanh.f32 %v3370_v54  ;;  %2190 = vst [vmem:[%s4212_s17 + $0x130] sm:$0xff] (%p3761_p5), %v2189_v46   ;;  %2194 = vst [vmem:[%s4212_s17 + $0x138] sm:$0xff] (%p3761_p5), %v2193_v47  }
 0x195   : > { %v3667_v60 = vpop.eup %3666  ;;  %v3036_v61 = vpack.c.bf16 %v3665_v58, %v3661_v53  ;;  %v3309_v62 = vadd.f32 %v3308_v59, %v3307_v55  ;;  %v3372_v63 = vpop.f32.mrf.mxu1  ;;  %2198 = vst [vmem:[%s4212_s17 + $0x200] sm:$0xff] (%p3761_p5), %v2197_v48   ;;  %2202 = vst [vmem:[%s4212_s17 + $0x208] sm:$0xff] (%p3761_p5), %v2201_v49   ;;  %v2237_v58 = vld [vmem:[%s4168_s9 + $0xd0] sm:$0xff] (%p3761_p5)  }
 0x196   : > { %v3076_v0 = vpack.c.bf16 %v3667_v60, %v3663_v56  ;;  %v3373_v1 = vadd.f32 %v3372_v63, %v3371_v57  ;;  %v3310_v2 = vpop.f32.mrf.mxu0  ;;  %v2209_v51 = vld [vmem:[%s4168_s9 + $0x98] sm:$0xff] (%p3761_p5)   ;;  %2206 = vst [vmem:[%s4212_s17 + $0x210] sm:$0xff] (%p3761_p5), %v2205_v50   ;;  %v2229_v56 = vld [vmem:[%s4168_s9 + $0xc0] sm:$0xff] (%p3761_p5)   ;;  %v2233_v57 = vld [vmem:[%s4168_s9 + $0xc8] sm:$0xff] (%p3761_p5)  }
 0x197   : > { %3112 = vst [vmem:[%s4168_s9 + $0xa0] sm:$0xff] %v3036_v61   ;;  %3680 = vtanh.f32 %v3309_v62  ;;  %v3374_v3 = vpop.f32.mrf.mxu1  ;;  %2210 = vst [vmem:[%s4212_s17 + $0x218] sm:$0xff] (%p3761_p5), %v2209_v51   ;;  %v2241_v59 = vld [vmem:[%s4168_s9 + $0xd8] sm:$0xff] (%p3761_p5)  }
 0x198   : > { %3120 = vst [vmem:[%s4168_s9 + $0xe0] sm:$0xff] %v3076_v0   ;;  %3682 = vtanh.f32 %v3373_v1  ;;  %v3311_v4 = vpop.f32.mrf.mxu0  ;;  %v3669_v7 = vpop.eup %3668  ;;  %2230 = vst [vmem:[%s4212_s17 + $0x300] sm:$0xff] (%p3761_p5), %v2229_v56  }
 0x199   : > { %v3312_v5 = vadd.f32 %v3311_v4, %v3310_v2  ;;  %v3375_v6 = vpop.f32.mrf.mxu1  ;;  %v3671_v10 = vpop.eup %3670  ;;  %2234 = vst [vmem:[%s4212_s17 + $0x308] sm:$0xff] (%p3761_p5), %v2233_v57   ;;  %2238 = vst [vmem:[%s4212_s17 + $0x310] sm:$0xff] (%p3761_p5), %v2237_v58  }
 0x19a   : > { %v3376_v8 = vadd.f32 %v3375_v6, %v3374_v3  ;;  %v3313_v9 = vpop.f32.mrf.mxu0  ;;  %2242 = vst [vmem:[%s4212_s17 + $0x318] sm:$0xff] (%p3761_p5), %v2241_v59  }
 0x19b   : > { %v3377_v11 = vpop.f32.mrf.mxu1  ;;  %3684 = vtanh.f32 %v3312_v5 }
 0x19c   : > { %v3673_v12 = vpop.eup %3672  ;;  %v3314_v13 = vpop.f32.mrf.mxu0  ;;  %3686 = vtanh.f32 %v3376_v8 }
 0x19d   : > { %v3675_v14 = vpop.eup %3674  ;;  %v3041_v15 = vpack.c.bf16 %v3673_v12, %v3669_v7  ;;  %v3315_v16 = vadd.f32 %v3314_v13, %v3313_v9  ;;  %v3378_v17 = vpop.f32.mrf.mxu1 }
 0x19e   : > { %v3081_v18 = vpack.c.bf16 %v3675_v14, %v3671_v10  ;;  %v3379_v19 = vadd.f32 %v3378_v17, %v3377_v11  ;;  %v2213_v52 = vld [vmem:[%s4168_s9 + $0xa0] sm:$0xff] (%p3761_p5)  }
 0x19f   : > { %3113 = vst [vmem:[%s4168_s9 + $0xa8] sm:$0xff] %v3041_v15   ;;  %3688 = vtanh.f32 %v3315_v16  ;;  %2214 = vst [vmem:[%s4212_s17 + $0x220] sm:$0xff] (%p3761_p5), %v2213_v52   ;;  %v2245_v60 = vld [vmem:[%s4168_s9 + $0xe0] sm:$0xff] (%p3761_p5)  }
 0x1a0   : > { %3121 = vst [vmem:[%s4168_s9 + $0xe8] sm:$0xff] %v3081_v18   ;;  %3690 = vtanh.f32 %v3379_v19  ;;  %v3677_v20 = vpop.eup %3676  ;;  %2246 = vst [vmem:[%s4212_s17 + $0x320] sm:$0xff] (%p3761_p5), %v2245_v60  }
 0x1a1   : > { %v3679_v21 = vpop.eup %3678 }
 0x1a4   : > { %v3681_v22 = vpop.eup %3680 }
 0x1a5   : > { %v3683_v23 = vpop.eup %3682  ;;  %v3046_v24 = vpack.c.bf16 %v3681_v22, %v3677_v20 }
 0x1a6   : > { %v3086_v25 = vpack.c.bf16 %v3683_v23, %v3679_v21  ;;  %v2217_v53 = vld [vmem:[%s4168_s9 + $0xa8] sm:$0xff] (%p3761_p5)  }
 0x1a7   : > { %3114 = vst [vmem:[%s4168_s9 + $0xb0] sm:$0xff] %v3046_v24   ;;  %2218 = vst [vmem:[%s4212_s17 + $0x228] sm:$0xff] (%p3761_p5), %v2217_v53   ;;  %v2249_v61 = vld [vmem:[%s4168_s9 + $0xe8] sm:$0xff] (%p3761_p5)  }
 0x1a8   : > { %3122 = vst [vmem:[%s4168_s9 + $0xf0] sm:$0xff] %v3086_v25   ;;  %v3685_v26 = vpop.eup %3684  ;;  %2250 = vst [vmem:[%s4212_s17 + $0x328] sm:$0xff] (%p3761_p5), %v2249_v61  }
 0x1a9   : > { %v3687_v27 = vpop.eup %3686 }
 0x1ac   : > { %v3689_v28 = vpop.eup %3688  ;;  %2113 = sbr.rel (!%p3761_p5) target bundleno = 441 (0x1b9), region = 70 }
 0x1ad   : > { %v3691_v29 = vpop.eup %3690  ;;  %v3051_v30 = vpack.c.bf16 %v3689_v28, %v3685_v26 }
 0x1ae   : > { %v3091_v31 = vpack.c.bf16 %v3691_v29, %v3687_v27  ;;  %v2221_v54 = vld [vmem:[%s4168_s9 + $0xb0] sm:$0xff] (%p3761_p5)  }
 0x1af   : > { %3115 = vst [vmem:[%s4168_s9 + $0xb8] sm:$0xff] %v3051_v30   ;;  %2222 = vst [vmem:[%s4212_s17 + $0x230] sm:$0xff] (%p3761_p5), %v2221_v54   ;;  %v2253_v62 = vld [vmem:[%s4168_s9 + $0xf0] sm:$0xff] (%p3761_p5)  }
 0x1b0   : > { %3123 = vst [vmem:[%s4168_s9 + $0xf8] sm:$0xff] %v3091_v31   ;;  %2254 = vst [vmem:[%s4212_s17 + $0x330] sm:$0xff] (%p3761_p5), %v2253_v62  }
 0x1b6   : > { %v2225_v55 = vld [vmem:[%s4168_s9 + $0xb8] sm:$0xff]  }
 0x1b7   : > { %2226 = vst [vmem:[%s4212_s17 + $0x238] sm:$0xff] %v2225_v55   ;;  %v2257_v63 = vld [vmem:[%s4168_s9 + $0xf8] sm:$0xff]  }
 0x1b8   : > { %2258 = vst [vmem:[%s4212_s17 + $0x338] sm:$0xff] %v2257_v63  }
 0x1b9 PF: > { %p9_p10 = scmp.ge.s32.totalorder %s3748_s13, 6   ;;  %s4289_s9 = smov %s3710_s10 }
 0x1ba   : > { %s4290_s10 = smov %s3759_s16  ;;  %s4291_s11 = smov %s3748_s13 }
 0x1bb   :  { %11 = sbr.rel (!%p9_p10) target bundleno = 2 (0x2), region = 151 }

</bundles_post_ra>
